<compile_context>
chip_gen: v7x
topology: tpu7x:2x2x1
jax: 0.10.0
libtpu: 0.0.40
codegen_flags: <defaults>
</compile_context>

<pallas_src>
import functools
import math

import jax
import jax.numpy as jnp
from jax import lax
from jax.experimental import pallas as pl
from jax.experimental.pallas import tpu as pltpu

PI = math.pi

_LANE = 128
_DEFAULT_ROW_BLOCK = 4096     # (4096, 128) f32 = 2 MiB block: ~HBM-roofline plateau,
                              # 2x(in+out) double buffers = 8 MiB < 16 MiB (v5e default)
_PALLAS_THRESHOLD = 65536     # below this, XLA fuses pi*sin() for free


def _pqc_kernel(raw_ref, bounded_ref):
    """bounded = pi * sin(raw) on a lane-dense (row_block, 128) f32 tile."""
    bounded_ref[...] = jnp.float32(PI) * jnp.sin(raw_ref[...])


def _pqc_reg_kernel(raw_ref, bounded_ref, ssq_ref, *, rows_valid, row_block):
    """pi*sin(raw) plus a fused sum-of-squares accumulator.

    ssq_ref is a (1,1) output whose block index is constant across the grid,
    so it stays resident in VMEM and is written back once at the end
    (grid axis must be "arbitrary").
    """
    i = pl.program_id(0)
    bounded = jnp.float32(PI) * jnp.sin(raw_ref[...])
    bounded_ref[...] = bounded

    @pl.when(i == 0)
    def _():
        ssq_ref[...] = jnp.zeros_like(ssq_ref)

    # Mask rows past the real array extent: the ragged last grid block is padded
    # by Pallas and sin(garbage) may be NaN.  (Zero-padded lanes inside the last
    # valid row are already exact since sin(0) == 0.)
    row = i * row_block + lax.broadcasted_iota(jnp.int32, bounded.shape, 0)
    sq = jnp.where(row < rows_valid, bounded * bounded, jnp.float32(0.0))
    ssq_ref[...] += jnp.sum(sq, keepdims=True)


def scaled_qiskit_quantum_forward(raw_params, measured_tensor, lam=0.01,
                                  use_regularization=False,
                                  row_block=_DEFAULT_ROW_BLOCK,
                                  pallas_threshold=_PALLAS_THRESHOLD):
    """Mirror of ScaledQiskitQuantumModel.forward (+ aux outputs).

    Returns (out, bounded_params, reg_loss).
    """
    raw_params = jnp.asarray(raw_params, jnp.float32)
    measured_tensor = jnp.asarray(measured_tensor, jnp.float32)
    P = raw_params.shape[0]
    lam = jnp.float32(lam)

    # out = measured_tensor + raw_params.sum() * 0.0  ==  measured_tensor
    # (bit-identical; no kernel copy of the largest tensor).
    out = measured_tensor

    # ---- Small-P fast path: skip Pallas entirely. ----
    if P <= pallas_threshold:
        bounded = jnp.float32(PI) * jnp.sin(raw_params)
        if use_regularization:
            reg = lam * jnp.sqrt(jnp.sum(bounded * bounded))
        else:
            reg = jnp.float32(0.0)
        return out, bounded, reg

    # ---- Pallas path: lane-dense (rows, 128) layout. ----
    rem = P % _LANE
    if rem == 0:
        raw2d = raw_params.reshape(P // _LANE, _LANE)        # free bitcast, no HBM pass
    else:
        # TODO(synk): non-lane-aligned P costs one extra pad pass; zero padding
        # is exact (sin(0) == 0 and contributes 0 to the sum of squares).
        raw2d = jnp.pad(raw_params, (0, _LANE - rem)).reshape(-1, _LANE)
    rows = raw2d.shape[0]
    grid = (pl.cdiv(rows, row_block),)

    io_spec = pl.BlockSpec((row_block, _LANE), lambda i: (i, 0))

    if use_regularization:
        kernel = functools.partial(_pqc_reg_kernel,
                                   rows_valid=rows, row_block=row_block)
        bounded2d, ssq = pl.pallas_call(
            kernel,
            grid=grid,
            in_specs=[io_spec],
            out_specs=(io_spec, pl.BlockSpec((1, 1), lambda i: (0, 0))),
            out_shape=(jax.ShapeDtypeStruct((rows, _LANE), jnp.float32),
                       jax.ShapeDtypeStruct((1, 1), jnp.float32)),
            compiler_params=pltpu.CompilerParams(
                dimension_semantics=("arbitrary",)),   # resident ssq accumulator
        )(raw2d)
        reg = lam * jnp.sqrt(ssq[0, 0])
    else:
        bounded2d = pl.pallas_call(
            _pqc_kernel,
            grid=grid,
            in_specs=[io_spec],
            out_specs=io_spec,
            out_shape=jax.ShapeDtypeStruct((rows, _LANE), jnp.float32),
            compiler_params=pltpu.CompilerParams(
                dimension_semantics=("parallel",)),    # shard rows over v7x TCs
        )(raw2d)
        reg = jnp.float32(0.0)

    bounded = bounded2d.reshape(-1)
    if rem != 0:
        bounded = bounded[:P]

    # TODO(synk): qiskit PQC construction + AerSimulator shot sampling has no
    # Pallas equivalent; measured_tensor is supplied as an input here.
    return out, bounded, reg


if __name__ == "__main__":
    key = jax.random.PRNGKey(0)
    k1, k2, k3 = jax.random.split(key, 3)

    # --- Small case matching the module's typical num_params -> fast XLA path. ---
    num_params = 32
    meas_shape = (8, 16)   # synthetic "measured_tensor" from the circuit runner
    raw_small = 0.1 * jax.random.normal(k1, (num_params,), dtype=jnp.float32)
    measured = jax.random.uniform(k2, meas_shape, dtype=jnp.float32)

    out_s, bounded_s, reg_s = scaled_qiskit_quantum_forward(
        raw_small, measured, lam=0.01, use_regularization=True)
    jax.block_until_ready((out_s, bounded_s, reg_s))

    bref_s = jnp.float32(PI) * jnp.sin(raw_small)
    assert out_s.shape == meas_shape and jnp.allclose(out_s, measured)
    assert bounded_s.shape == (num_params,)
    assert jnp.allclose(bounded_s, bref_s, atol=1e-6)
    assert jnp.allclose(reg_s, jnp.float32(0.01) * jnp.sqrt(jnp.sum(bref_s ** 2)),
                        rtol=1e-5, atol=1e-6)

    # --- Larger parameter vector -> Pallas path.  Reduced row_block so a modest
    # array still exercises multiple grid steps, a ragged last block and a
    # non-lane-aligned length. ---
    row_block = 512                              # (512, 128) f32 = 256 KiB blocks
    P = 2 * row_block * 128 + 300                # 131372: > threshold, % 128 != 0
    raw_big = 0.1 * jax.random.normal(k3, (P,), dtype=jnp.float32)

    out_b, bounded_b, reg_b = scaled_qiskit_quantum_forward(
        raw_big, measured, lam=0.01, use_regularization=True, row_block=row_block)
    jax.block_until_ready((out_b, bounded_b, reg_b))

    bref_b = jnp.float32(PI) * jnp.sin(raw_big)
    reg_ref_b = jnp.float32(0.01) * jnp.sqrt(jnp.sum(bref_b * bref_b))
    assert bounded_b.shape == (P,) and bounded_b.dtype == jnp.float32
    assert jnp.allclose(out_b, measured)
    assert jnp.allclose(bounded_b, bref_b, atol=1e-5)
    assert jnp.allclose(reg_b, reg_ref_b, rtol=1e-4, atol=1e-5)

    # use_regularization=False -> "parallel" grid axis, reg exactly 0.
    out_b2, bounded_b2, reg_off = scaled_qiskit_quantum_forward(
        raw_big, measured, lam=0.01, use_regularization=False, row_block=row_block)
    jax.block_until_ready((out_b2, bounded_b2, reg_off))
    assert jnp.allclose(bounded_b2, bref_b, atol=1e-5)
    assert float(reg_off) == 0.0

    print("KERNEL_OK")
</pallas_src>

<mosaic_0001>
module attributes {stable_mosaic.version = 11 : i64} {
  func.func @_pqc_reg_kernel(%arg0: i32, %arg1: memref<512x128xf32, #tpu.memory_space<vmem>>, %arg2: memref<512x128xf32, #tpu.memory_space<vmem>>, %arg3: memref<1x1xf32, #tpu.memory_space<vmem>>) attributes {dimension_semantics = [#tpu.dimension_semantics<arbitrary>], iteration_bounds = array<i64: 3>, scalar_prefetch = 0 : i64, scratch_operands = 0 : i64, tpu.core_type = #tpu.core_type<tc>, window_params = [{transform_indices = @transform_0, window_bounds = array<i64: 512, 128>}, {transform_indices = @transform_1, window_bounds = array<i64: 512, 128>}, {pipeline_mode = #tpu.pipeline_mode<synchronous>, transform_indices = @transform_2, window_bounds = array<i64: 1, 1>}]} {
    %c0 = arith.constant 0 : index
    %c0_0 = arith.constant 0 : index
    %0 = vector.load %arg1[%c0, %c0_0] : memref<512x128xf32, #tpu.memory_space<vmem>>, vector<512x128xf32>
    %1 = math.sin %0 : vector<512x128xf32>
    %cst = arith.constant 3.14159274 : f32
    %2 = vector.broadcast %cst : f32 to vector<512x128xf32>
    %3 = arith.mulf %2, %1 : vector<512x128xf32>
    %c0_1 = arith.constant 0 : index
    %c0_2 = arith.constant 0 : index
    %4 = vector.load %arg2[%c0_1, %c0_2] : memref<512x128xf32, #tpu.memory_space<vmem>>, vector<512x128xf32>
    tpu.vector_store %arg2[%c0_1, %c0_2], %3 {strides = array<i32>} : memref<512x128xf32, #tpu.memory_space<vmem>>, vector<512x128xf32>,
    %c0_i32 = arith.constant 0 : i32
    %5 = arith.cmpi eq, %arg0, %c0_i32 : i32
    %6 = arith.extui %5 : i1 to i32
    %c0_i32_3 = arith.constant 0 : i32
    %7 = arith.cmpi ne, %6, %c0_i32_3 : i32
    scf.if %7 {
      %cst_10 = arith.constant 0.000000e+00 : f32
      %25 = vector.broadcast %cst_10 : f32 to vector<1x1xf32>
      %c0_11 = arith.constant 0 : index
      %c0_12 = arith.constant 0 : index
      %26 = vector.load %arg3[%c0_11, %c0_12] : memref<1x1xf32, #tpu.memory_space<vmem>>, vector<1x1xf32>
      tpu.vector_store %arg3[%c0_11, %c0_12], %25 {strides = array<i32>} : memref<1x1xf32, #tpu.memory_space<vmem>>, vector<1x1xf32>,
    } else {
    }
    %c512_i32 = arith.constant 512 : i32
    %8 = arith.muli %arg0, %c512_i32 : i32
    %9 = tpu.iota {dimensions = array<i32: 0>} : vector<512x128xi32>
    %10 = vector.broadcast %8 : i32 to vector<512x128xi32>
    %11 = arith.addi %10, %9 : vector<512x128xi32>
    %c1027_i32 = arith.constant 1027 : i32
    %12 = vector.broadcast %c1027_i32 : i32 to vector<512x128xi32>
    %13 = arith.cmpi slt, %11, %12 : vector<512x128xi32>
    %14 = arith.mulf %3, %3 : vector<512x128xf32>
    %cst_4 = arith.constant 0.000000e+00 : f32
    %15 = vector.broadcast %cst_4 : f32 to vector<512x128xf32>
    %16 = arith.select %13, %14, %15 : vector<512x128xi1>, vector<512x128xf32>
    %c0_5 = arith.constant 0 : index
    %c0_6 = arith.constant 0 : index
    %17 = vector.load %arg3[%c0_5, %c0_6] : memref<1x1xf32, #tpu.memory_space<vmem>>, vector<1x1xf32>
    %18 = vector.shape_cast %16 : vector<512x128xf32> to vector<1x512x128xf32>
    %cst_7 = arith.constant dense<0.000000e+00> : vector<1xf32>
    %19 = vector.multi_reduction <add>, %18, %cst_7 [1, 2] : vector<1x512x128xf32> to vector<1xf32>
    %20 = vector.shape_cast %19 : vector<1xf32> to vector<1x1x1xf32>
    %21 = vector.extract %20[0, 0, 0] : f32 from vector<1x1x1xf32>
    %22 = vector.broadcast %21 : f32 to vector<1x1xf32>
    %23 = arith.addf %17, %22 : vector<1x1xf32>
    %c0_8 = arith.constant 0 : index
    %c0_9 = arith.constant 0 : index
    %24 = vector.load %arg3[%c0_8, %c0_9] : memref<1x1xf32, #tpu.memory_space<vmem>>, vector<1x1xf32>
    tpu.vector_store %arg3[%c0_8, %c0_9], %23 {strides = array<i32>} : memref<1x1xf32, #tpu.memory_space<vmem>>, vector<1x1xf32>,
    return
  }
  func.func @transform_0(%arg0: i32) -> (i32, i32) {
    %c0_i32 = arith.constant 0 : i32
    %c0_i32_0 = arith.constant 0 : i32
    return %arg0, %c0_i32 : i32, i32
  }
  func.func @transform_1(%arg0: i32) -> (i32, i32) {
    %c0_i32 = arith.constant 0 : i32
    %c0_i32_0 = arith.constant 0 : i32
    return %arg0, %c0_i32 : i32, i32
  }
  func.func @transform_2(%arg0: i32) -> (i32, i32) {
    %c0_i32 = arith.constant 0 : i32
    %c0_i32_0 = arith.constant 0 : i32
    %c0_i32_1 = arith.constant 0 : i32
    return %c0_i32, %c0_i32_0 : i32, i32
  }
}

</mosaic_0001>

<bundles_post_ra>
// kernel: tpu_custom_call.1
= control target key start
LH: loop header
LB: loop body
LE: loop exit
PB: predicated region body
PF: predicated region fallthrough
CT: control target
= control target key end

     0   :  { %8 = vsyncpa [#allocation3], 0  ;;  %s18181_s0 = inlined_call_operand.hbm [shape: f32[1027,128], index: 0, kind: input, shape index: {}]   ;;  %s18182_s1 = inlined_call_operand.hbm [shape: f32[1027,128], index: 1, kind: output, shape index: {0}]   ;;  %s18183_s2 = inlined_call_operand.hbm [shape: f32[1,1], index: 2, kind: output, shape index: {1}]  }
   0x1   :  { %10 = vsyncpa [#allocation3 + $0x1], 0 }
   0x2   :  { %11 = vsyncpa [#allocation4], 0 }
   0x3   :  { %13 = vsyncpa [#allocation4 + $0x1], 0 }
   0x4   :  { %14 = vsyncpa [#allocation7], 0  ;;  %s8620_s9 = smov 0   ;;  %s8622_s10 = smov 0  }
   0x5   :  { %s8624_s11 = smov 0   ;;  %s8626_s12 = smov 0  }
   0x6 LB: > { %s8641_s13 = sadd.s32 4294967295, %s8589_s12   ;;  %s7546_s14 = sadd.s32 4294967294, %s8589_s12   ;;  %s8589_s12 = sphi %s8626_s12, %s18906_s12   ;;  %s8585_s11 = sphi %s8624_s11, %s18905_s11   ;;  %s8581_s10 = sphi %s8622_s10, %s18904_s10   ;;  %s8577_s9 = sphi %s8620_s9, %s18903_s9  }
   0x7   : > { %s8645_s15 = sadd.s32 1, %s8589_s12   ;;  %s27_s16 = sadd.s32 1, %s8585_s11 }
   0x8   : > { %s24_s17 = ssub.s32 %s8589_s12, %s8645_s15  ;;  %p34_p0 = scmp.ne.s32.totalorder %s8585_s11, %s8581_s10 }
   0x9   : > { %p25_p1 = scmp.eq.s32.totalorder %s24_s17, 0  ;;  %p35_p2 = scmp.eq.s32.totalorder %s8589_s12, 0 }
   0xa   : > { %p40_p3 = scmp.ne.s32.totalorder %s8581_s10, %s8577_s9  ;;  %p41_p4 = scmp.eq.s32.totalorder %s8641_s13, 0 }
   0xb   : > { %s8657_s18 = scalar_select %p25_p1, %s8585_s11, %s27_s16  }
   0xc   : > { %p36_p5 = por %p35_p2, %p34_p0  ;;  %p8659_p6 = por %p41_p4, %p40_p3 }
   0xd   : > { %p18184_p7 = scmp.eq.s32.totalorder %s8641_s13, 2  ;;  %p70_p8 = scmp.eq.s32.totalorder %s7546_s14, 2 }
   0xe   : > { %p7548_p11 = scmp.ge.s32.totalorder %s8589_s12, 3 }
   0xf   : > { %p8666_p9 = por %p18184_p7, %p34_p0  ;;  %p8670_p10 = por %p70_p8, %p40_p3 }
  0x10   : > { %107 = sbr.rel (%p7548_p11) target bundleno = 58 (0x3a), region = 16 }
  0x11   : > { %s18358_s21 = scalar_select %p8670_p10, 1, 0 }
  0x17   : > { %110 = sbr.rel (!%p36_p5) target bundleno = 58 (0x3a), region = 20  ;;  %s111_s22 = sand.u32 (%p36_p5), 1, %s8585_s11  }
  0x18   : > { %s7550_s23 = sshll.u32 (%p36_p5), %s8589_s12, 6  ;;  %s7549_s24 = sshll.u32 (%p36_p5), %s111_s22, 9 }
  0x19   : > { %s117_s25 = ssub.s32 (%p36_p5), 129, %s7550_s23  ;;  %s8680_s28 = scalar_lea.sflag (%p36_p5), [#allocation3], %s111_s22 }
  0x1a   : > { %p118_p12 = scmp.lt.s32.totalorder (%p36_p5), %s117_s25, 64  ;;  %s115_s29 = scalar_lea.vmem (%p36_p5), [#allocation2], %s7549_s24 }
  0x1e   : > { %s18908_s25 = smov (!%p118_p12, %s117_s25), 64 }
  0x1f   : > { %s8677_s26 = sshll.u32 %s18908_s25, 7 }
  0x20   : > { %s122_s27 = ssub.s32 8192, %s8677_s26 }
  0x21   : > { %123 = vsyncadd %s8680_s28, %s122_s27  ;;  %p7552_p13 = scmp.ne.s32.totalorder %s8677_s26, 0  ;;  %s7828_s30 = sshll.u32 %s8589_s12, 13 }
  0x22   : > { %s8688_s5 = scalar_lea.hbm %s18181_s0, %s7828_s30  ;;  %s128_s6 = sshll.u32 %s115_s29, 4  ;;  %s8690_s6 = int_to_ptr.vmem [resolvable:$true] %s128_s6 }
  0x23   : > { %s8465_s7 = scalar_lea.hbm %s8688_s5, %s8677_s26  ;;  %s8469_s16 = scalar_lea.hbm %s18181_s0, 16512 }
  0x24   : > { %p8466_p0 = scmp.ne.s32.totalorder %s8688_s5, %s8465_s7  ;;  %p8470_p3 = scmp.lt.u32.totalorder %s8688_s5, %s18181_s0 }
  0x25   : > { %p8471_p4 = scmp.lt.u32.totalorder %s8469_s16, %s8465_s7  ;;  %p8473_p8 = scmp.lt.u32.totalorder %s8465_s7, %s8688_s5 }
  0x26   : > { %p8467_p1 = pnand %p8466_p0, %p7552_p13 }
  0x27   : > { %p8472_p5 = por %p8471_p4, %p8470_p3 }
  0x28   : > { %p8468_p2 = pneg %p8467_p1 }
  0x29   : > { %p8474_p11 = por %p8473_p8, %p8472_p5 }
  0x2b   : > { %p8475_p12 = pnand %p8474_p11, %p8468_p2 }
  0x2d   : > { %8478 = shalt.err (!%p8475_p12)
}
  0x2e   : > { %s8479_s23 = scalar_lea.vmem %s8690_s6, %s8677_s26  ;;  %s8591_s24 = smov [#allocation2]  }
  0x2f   : > { %p8480_p0 = scmp.ne.s32.totalorder %s8690_s6, %s8479_s23  ;;  %s8483_s25 = sshll.u32 %s8591_s24, 4  ;;  %s8484_s25 = int_to_ptr.vmem [resolvable:$false] %s8483_s25 }
  0x30   : > { %s8485_s27 = scalar_lea.vmem %s8484_s25, 16384  ;;  %p8486_p10 = scmp.lt.s32.totalorder %s8690_s6, %s8484_s25 }
  0x31   : > { %p8481_p1 = pnand %p8480_p0, %p7552_p13  ;;  %p8487_p3 = scmp.lt.s32.totalorder %s8485_s27, %s8479_s23 }
  0x33   : > { %p8482_p7 = pneg %p8481_p1  ;;  %p8488_p4 = por %p8487_p3, %p8486_p10 }
  0x35   : > { %p8489_p5 = pnand %p8488_p4, %p8482_p7 }
  0x37   : > { %8492 = shalt.err (!%p8489_p5)
}
  0x38   : > { %s8592_s29 = smov 128   ;;  %s8593_s30 = smov 8  }
  0x39   : > { %134 = dma.hbm_to_vmem [thread:$0]  (%p7552_p13), %s8688_s5, %s8677_s26, %s8690_s6, %s8680_s28, %s8592_s29, %s8592_s29, %s8593_s30  }
  0x3a PF: > { %p7556_p2 = scmp.ge.s32.totalorder %s8589_s12, 1  ;;  %p136_p8 = scmp.lt.s32.totalorder %s8589_s12, 4 }
  0x3c   : > { %p137_p11 = pnand %p7556_p2, %p136_p8 }
  0x3e   : > { %140 = sbr.rel (%p137_p11) target bundleno = 2136 (0x858), region = 24 }
  0x45   : > { %s8720_s3 = sand.u32 1, %s8581_s10  }
  0x46   : > { %s7557_s4 = sshll.u32 %s8720_s3, 9  ;;  %s143_s7 = scalar_lea.sflag [#allocation3], %s8720_s3 }
  0x47   : > { %s8726_s8 = scalar_lea.vmem [#allocation2], %s7557_s4 }
  0x48   : > { %8564 = dma.done.wait (%p8659_p6), %s143_s7, 8192  }
  0x49   : > { %8566 = vsyncadd (%p8659_p6), %s143_s7, 4294959104  ;;  %v8733_v0 = vld [vmem:[%s8726_s8] sm:$0xff]  ;;  %v8737_v4 = vld [vmem:[%s8726_s8 + $0x8] sm:$0xff]  ;;  %v18200_v15 = vmov 2102212464   ;;  %s17254_s19 = scalar_lea.vmem [#allocation5], %s7557_s4 }
  0x4a   : > { %v244_v1 = vand.u32 2139095040, %v8733_v0  ;;  %v348_v6 = vand.u32 2139095040, %v8737_v4  ;;  %v8741_v11 = vld [vmem:[%s8726_s8 + $0x10] sm:$0xff]  ;;  %v18198_v17 = vmov 920167782   ;;  %p7815_p6 = scmp.ne.s32.totalorder %s8641_s13, 0 }
  0x4b   : > { %v452_v14 = vand.u32 2139095040, %v8741_v11  ;;  %v241_v19 = vand.u32 2147483647, %v8733_v0  ;;  %v18204_v22 = vmov 683565275  }
  0x4c   : > { %v245_v2 = vshrl.u32 %v244_v1, 23  ;;  %v349_v8 = vshrl.u32 %v348_v6, 23  ;;  %v18192_v24 = vmov 2475754826   ;;  %v18194_v27 = vmov 1326507024  }
  0x4d   : > { %v453_v21 = vshrl.u32 %v452_v14, 23  ;;  %v18189_v30 = vmov 2131351028   ;;  %v248_v36 = vand.u32 8388607, %v241_v19 }
  0x4e   : > { %v7559_v3 = vadd.s32 4294967169, %v245_v2  ;;  %v7563_v10 = vadd.s32 4294967169, %v349_v8  ;;  %v345_v46 = vand.u32 2147483647, %v8737_v4 }
  0x4f   : > { %v7567_v38 = vadd.s32 4294967169, %v453_v21  ;;  %v249_v44 = vor.u32 8388608, %v248_v36  ;;  %v449_v36 = vand.u32 2147483647, %v8741_v11 }
  0x50   : > { %v251_v5 = vadd.s32 1, %v7559_v3  ;;  %v355_v13 = vadd.s32 1, %v7563_v10  ;;  %v352_v55 = vand.u32 8388607, %v345_v46 }
  0x51   : > { %v459_v47 = vadd.s32 1, %v7567_v38  ;;  %v8778_v53 = vshll.u32 %v249_v44, 8 }
  0x52   : > { %vm252_vm0 = vcmp.gt.s32.totalorder %v251_v5, 0  ;;  %vm356_vm1 = vcmp.gt.s32.totalorder %v355_v13, 0 }
  0x53   : > { %v253_v7 = vsel %vm252_vm0, %v251_v5, 0  ;;  %v357_v35 = vsel %vm356_vm1, %v355_v13, 0  ;;  %vm460_vm6 = vcmp.gt.s32.totalorder %v459_v47, 0 }
  0x54   : > { %v255_v9 = vand.u32 31, %v253_v7  ;;  %v8747_v20 = vshrl.u32 %v253_v7, 5  ;;  %v359_v42 = vand.u32 31, %v357_v35  ;;  %v8785_v57 = vshrl.u32 %v357_v35, 5 }
  0x55   : > { %v461_v5 = vsel %vm460_vm6, %v459_v47, 0 }
  0x56   : > { %v256_v12 = vsub.s32 32, %v255_v9  ;;  %v267_v16 = vshll.u32 %v18200_v15, %v255_v9  ;;  %v258_v23 = vshll.u32 %v18204_v22, %v255_v9  ;;  %v261_v25 = vshll.u32 %v18192_v24, %v255_v9 }
  0x57   : > { %v270_v26 = vshll.u32 %v18198_v17, %v255_v9  ;;  %v264_v32 = vshll.u32 %v18189_v30, %v255_v9  ;;  %vm276_vm2 = vcmp.lt.s32.totalorder %v8747_v20, 4  ;;  %vm273_vm3 = vcmp.lt.s32.totalorder %v8747_v20, 1 }
  0x58   : > { %v268_v18 = vshrl.u32 %v18198_v17, %v256_v12  ;;  %v271_v28 = vshrl.u32 %v18194_v27, %v256_v12  ;;  %v259_v29 = vshrl.u32 %v18192_v24, %v256_v12  ;;  %v262_v31 = vshrl.u32 %v18189_v30, %v256_v12 }
  0x59   : > { %v265_v33 = vshrl.u32 %v18200_v15, %v256_v12  ;;  %vm275_vm4 = vcmp.lt.s32.totalorder %v8747_v20, 3  ;;  %vm274_vm5 = vcmp.lt.s32.totalorder %v8747_v20, 2  ;;  %v8772_v50 = vsub.s32 32, %v359_v42 }
  0x5a   : > { %v269_v34 = vor.u32 %v268_v18, %v267_v16  ;;  %v272_v37 = vor.u32 %v271_v28, %v270_v26  ;;  %v260_v39 = vor.u32 %v259_v29, %v258_v23  ;;  %v263_v40 = vor.u32 %v262_v31, %v261_v25 }
  0x5b   : > { %v266_v41 = vor.u32 %v265_v33, %v264_v32  ;;  %v257_v56 = vshrl.u32 %v18204_v22, %v256_v12  ;;  %v371_v58 = vshll.u32 %v18200_v15, %v359_v42  ;;  %v372_v59 = vshrl.u32 %v18198_v17, %v8772_v50 }
  0x5c   : > { %v282_v43 = vsel %vm276_vm2, %v269_v34, 920167782  ;;  %v286_v45 = vsel %vm276_vm2, %v272_v37, 1326507024  ;;  %v281_v48 = vsel %vm273_vm3, %v260_v39, %v263_v40  ;;  %v362_v61 = vshll.u32 %v18204_v22, %v359_v42 }
  0x5d   : > { %v283_v49 = vsel %vm275_vm4, %v266_v41, %v282_v43  ;;  %v285_v51 = vsel %vm273_vm3, %v263_v40, %v266_v41  ;;  %v287_v52 = vsel %vm275_vm4, %v269_v34, %v286_v45  ;;  %v374_v62 = vshll.u32 %v18198_v17, %v359_v42  ;;  %v8829_v34 = vld [vmem:[%s8726_s8 + $0x18] sm:$0xff] }
  0x5e   : > { %v284_v54 = vsel %vm274_vm5, %v281_v48, %v283_v49  ;;  %v288_v60 = vsel %vm274_vm5, %v285_v51, %v287_v52  ;;  %v375_v63 = vshrl.u32 %v18194_v27, %v8772_v50  ;;  %v363_v3 = vshrl.u32 %v18192_v24, %v8772_v50 }
  0x5f   : > { %v8797_v1 = vmul.u32.u64.low %v8778_v53, %v284_v54  ;;  %v8798_v2 = vmul.u32.u64.high %v8778_v53, %v284_v54, %v8797_v1  ;;  %v365_v6 = vshll.u32 %v18192_v24, %v359_v42  ;;  %v366_v7 = vshrl.u32 %v18189_v30, %v8772_v50 }
  0x60   : > { %v368_v8 = vshll.u32 %v18189_v30, %v359_v42  ;;  %v369_v9 = vshrl.u32 %v18200_v15, %v8772_v50  ;;  %v278_v10 = vsel %vm276_vm2, %v266_v41, 2102212464  ;;  %v373_v14 = vor.u32 %v372_v59, %v371_v58 }
  0x61   : > { %v8812_v12 = vmul.u32.u64.low %v8778_v53, %v288_v60  ;;  %v8813_v13 = vmul.u32.u64.high %v8778_v53, %v288_v60, %v8812_v12  ;;  %v376_v16 = vor.u32 %v375_v63, %v374_v62  ;;  %vm380_vm7 = vcmp.lt.s32.totalorder %v8785_v57, 4 }
  0x62   : > { %v463_v18 = vand.u32 31, %v461_v5  ;;  %v277_v21 = vsel %vm273_vm3, %v257_v56, %v260_v39  ;;  %v279_v23 = vsel %vm275_vm4, %v263_v40, %v278_v10  ;;  %v364_v25 = vor.u32 %v363_v3, %v362_v61 }
  0x63   : > { %v367_v26 = vor.u32 %v366_v7, %v365_v6  ;;  %v370_v28 = vor.u32 %v369_v9, %v368_v8  ;;  %v353_v29 = vor.u32 8388608, %v352_v55  ;;  %vm377_vm8 = vcmp.lt.s32.totalorder %v8785_v57, 1 }
  0x64   : > { %vm379_vm9 = vcmp.lt.s32.totalorder %v8785_v57, 3  ;;  %v386_v31 = vsel %vm380_vm7, %v373_v14, 920167782  ;;  %v390_v32 = vsel %vm380_vm7, %v376_v16, 1326507024  ;;  %v8826_v33 = vsub.s32 32, %v463_v18 }
  0x65   : > { %v280_v35 = vsel %vm274_vm5, %v277_v21, %v279_v23  ;;  %v299_v37 = vadd.s32 1, %v8798_v2  ;;  %vm378_vm10 = vcmp.lt.s32.totalorder %v8785_v57, 2  ;;  %v385_v38 = vsel %vm377_vm8, %v364_v25, %v367_v26 }
  0x66   : > { %v387_v39 = vsel %vm379_vm9, %v370_v28, %v386_v31  ;;  %vm298_vm11 = vc.u32 %v8813_v13, %v8797_v1  ;;  %v389_v40 = vsel %vm377_vm8, %v367_v26, %v370_v28  ;;  %v391_v20 = vsel %vm379_vm9, %v373_v14, %v390_v32 }
  0x67   : > { %v8846_v41 = vshll.u32 %v353_v29, 8  ;;  %v296_v42 = vmul.u32 %v8778_v53, %v280_v35  ;;  %v475_v43 = vshll.u32 %v18200_v15, %v463_v18  ;;  %v476_v44 = vshrl.u32 %v18198_v17, %v8826_v33 }
  0x68   : > { %v556_v45 = vand.u32 2139095040, %v8829_v34  ;;  %v388_v47 = vsel %vm378_vm10, %v385_v38, %v387_v39  ;;  %v8855_v48 = vshrl.u32 %v461_v5, 5  ;;  %v478_v49 = vshll.u32 %v18198_v17, %v463_v18 }
  0x69   : > { %v479_v51 = vshrl.u32 %v18194_v27, %v8826_v33  ;;  %v300_v52 = vsel %vm298_vm11, %v299_v37, %v8798_v2  ;;  %v392_v53 = vsel %vm378_vm10, %v389_v40, %v391_v20  ;;  %v466_v54 = vshll.u32 %v18204_v22, %v463_v18 }
  0x6a   : > { %v469_v55 = vshll.u32 %v18192_v24, %v463_v18  ;;  %v467_v56 = vshrl.u32 %v18192_v24, %v8826_v33  ;;  %v470_v58 = vshrl.u32 %v18189_v30, %v8826_v33  ;;  %v472_v59 = vshll.u32 %v18189_v30, %v463_v18 }
  0x6b   : > { %v473_v60 = vshrl.u32 %v18200_v15, %v8826_v33  ;;  %v8873_v61 = vmul.u32.u64.low %v8846_v41, %v388_v47  ;;  %v8874_v62 = vmul.u32.u64.high %v8846_v41, %v388_v47, %v8873_v61  ;;  %v477_v63 = vor.u32 %v476_v44, %v475_v43 }
  0x6c   : > { %v557_v2 = vshrl.u32 %v556_v45, 23  ;;  %v456_v3 = vand.u32 8388607, %v449_v36  ;;  %v480_v5 = vor.u32 %v479_v51, %v478_v49  ;;  %vm484_vm12 = vcmp.lt.s32.totalorder %v8855_v48, 4 }
  0x6d   : > { %v301_v6 = vadd.s32 %v300_v52, %v296_v42  ;;  %v361_v7 = vshrl.u32 %v18204_v22, %v8772_v50  ;;  %v8883_v8 = vmul.u32.u64.low %v8846_v41, %v392_v53  ;;  %v8884_v9 = vmul.u32.u64.high %v8846_v41, %v392_v53, %v8883_v8 }
  0x6e   : > { %v382_v10 = vsel %vm380_vm7, %v370_v28, 2102212464  ;;  %v468_v12 = vor.u32 %v467_v56, %v466_v54  ;;  %v471_v14 = vor.u32 %v470_v58, %v469_v55  ;;  %v474_v16 = vor.u32 %v473_v60, %v472_v59 }
  0x6f   : > { %vm481_vm13 = vcmp.lt.s32.totalorder %v8855_v48, 1  ;;  %vm483_vm14 = vcmp.lt.s32.totalorder %v8855_v48, 3  ;;  %v490_v18 = vsel %vm484_vm12, %v477_v63, 920167782  ;;  %v7571_v21 = vadd.s32 4294967169, %v557_v2 }
  0x70   : > { %v457_v23 = vor.u32 8388608, %v456_v3  ;;  %v494_v50 = vsel %vm484_vm12, %v480_v5, 1326507024  ;;  %v302_v29 = vadd.s32 536870912, %v301_v6  ;;  %v381_v31 = vsel %vm377_vm8, %v361_v7, %v364_v25  ;;  %v8945_v5 = vld [vmem:[%s8726_s8 + $0x20] sm:$0xff] }
  0x71   : > { %v383_v28 = vsel %vm379_vm9, %v367_v26, %v382_v10  ;;  %vm482_vm15 = vcmp.lt.s32.totalorder %v8855_v48, 2  ;;  %v489_v32 = vsel %vm481_vm13, %v468_v12, %v471_v14  ;;  %v491_v35 = vsel %vm483_vm14, %v474_v16, %v490_v18 }
  0x72   : > { %v493_v37 = vsel %vm481_vm13, %v471_v14, %v474_v16  ;;  %v495_v38 = vsel %vm483_vm14, %v477_v63, %v494_v50  ;;  %v563_v39 = vadd.s32 1, %v7571_v21  ;;  %v384_v25 = vsel %vm378_vm10, %v381_v31, %v383_v28 }
  0x73   : > { %v403_v26 = vadd.s32 1, %v8874_v62  ;;  %v497_v40 = vshll.u32 %v457_v23, 8  ;;  %v8910_v20 = vshrl.u32 %v302_v29, 30  ;;  %vm402_vm0 = vc.u32 %v8884_v9, %v8873_v61 }
  0x74   : > { %v492_v42 = vsel %vm482_vm15, %v489_v32, %v491_v35  ;;  %v496_v43 = vsel %vm482_vm15, %v493_v37, %v495_v38  ;;  %v400_v44 = vmul.u32 %v8846_v41, %v384_v25  ;;  %vm564_vm1 = vcmp.gt.s32.totalorder %v563_v39, 0 }
  0x75   : > { %v404_v57 = vsel %vm402_vm0, %v403_v26, %v8874_v62  ;;  %v8920_v45 = vmul.u32.u64.low %v497_v40, %v492_v42  ;;  %v8921_v47 = vmul.u32.u64.high %v497_v40, %v492_v42, %v8920_v45  ;;  %v304_v49 = vshll.u32 %v8910_v20, 30 }
  0x76   : > { %v465_v51 = vshrl.u32 %v18204_v22, %v8826_v33  ;;  %v8927_v52 = vmul.u32.u64.low %v497_v40, %v496_v43  ;;  %v8928_v53 = vmul.u32.u64.high %v497_v40, %v496_v43, %v8927_v52  ;;  %v486_v54 = vsel %vm484_vm12, %v474_v16, 2102212464 }
  0x77   : > { %v565_v41 = vsel %vm564_vm1, %v563_v39, 0  ;;  %v405_v55 = vadd.s32 %v404_v57, %v400_v44  ;;  %v8932_v56 = vsub.s32 %v301_v6, %v304_v49  ;;  %v487_v59 = vsel %vm483_vm14, %v471_v14, %v486_v54 }
  0x78   : > { %v485_v58 = vsel %vm481_vm13, %v465_v51, %v468_v12  ;;  %v567_v60 = vand.u32 31, %v565_v41  ;;  %v507_v63 = vadd.s32 1, %v8921_v47  ;;  %vm506_vm2 = vc.u32 %v8928_v53, %v8920_v45 }
  0x79   : > { %v406_v62 = vadd.s32 536870912, %v405_v55  ;;  %v488_v33 = vsel %vm482_vm15, %v485_v58, %v487_v59  ;;  %v307_v2 = vsub.s32 0, %v8932_v56  ;;  %v18187_v48 = vand.u32 2147483647, %v8829_v34  ;;  %v8979_v59 = vld [vmem:[%s8726_s8 + $0x28] sm:$0xff] }
  0x7a   : > { %v568_v3 = vsub.s32 32, %v567_v60  ;;  %v504_v7 = vmul.u32 %v497_v40, %v488_v33  ;;  %v508_v8 = vsel %vm506_vm2, %v507_v63, %v8921_v47  ;;  %v579_v12 = vshll.u32 %v18200_v15, %v567_v60 }
  0x7b   : > { %v8947_v6 = vshrl.u32 %v406_v62, 30  ;;  %v7560_v10 = vmin.u32 %v307_v2, %v8932_v56  ;;  %v8954_v16 = vshrl.u32 %v565_v41, 5  ;;  %v582_v18 = vshll.u32 %v18198_v17, %v567_v60 }
  0x7c   : > { %v580_v14 = vshrl.u32 %v18198_v17, %v568_v3  ;;  %v583_v21 = vshrl.u32 %v18194_v27, %v568_v3  ;;  %v660_v23 = vand.u32 2139095040, %v8945_v5  ;;  %v509_v29 = vadd.s32 %v508_v8, %v504_v7 }
  0x7d   : > { %v408_v50 = vshll.u32 %v8947_v6, 30  ;;  %v570_v31 = vshll.u32 %v18204_v22, %v567_v60  ;;  %v573_v28 = vshll.u32 %v18192_v24, %v567_v60  ;;  %v571_v32 = vshrl.u32 %v18192_v24, %v568_v3 }
  0x7e   : > { %v574_v35 = vshrl.u32 %v18189_v30, %v568_v3  ;;  %v576_v37 = vshll.u32 %v18189_v30, %v567_v60  ;;  %v577_v38 = vshrl.u32 %v18200_v15, %v568_v3  ;;  %v560_v39 = vand.u32 8388607, %v18187_v48 }
  0x7f   : > { %v581_v25 = vor.u32 %v580_v14, %v579_v12  ;;  %v309_v26 = vclz %v7560_v10  ;;  %v584_v40 = vor.u32 %v583_v21, %v582_v18  ;;  %vm588_vm3 = vcmp.lt.s32.totalorder %v8954_v16, 4 }
  0x80   : > { %v661_v42 = vshrl.u32 %v660_v23, 23  ;;  %v8969_v43 = vsub.s32 %v405_v55, %v408_v50  ;;  %v510_v44 = vadd.s32 536870912, %v509_v29  ;;  %v572_v57 = vor.u32 %v571_v32, %v570_v31 }
  0x81   : > { %v575_v47 = vor.u32 %v574_v35, %v573_v28  ;;  %v578_v49 = vor.u32 %v577_v38, %v576_v37  ;;  %vm585_vm4 = vcmp.lt.s32.totalorder %v8954_v16, 1  ;;  %vm587_vm5 = vcmp.lt.s32.totalorder %v8954_v16, 3 }
  0x82   : > { %v594_v51 = vsel %vm588_vm3, %v581_v25, 920167782  ;;  %v7561_v52 = vadd.s32 4294967294, %v309_v26  ;;  %v561_v54 = vor.u32 8388608, %v560_v39  ;;  %v598_v41 = vsel %vm588_vm3, %v584_v40, 1326507024 }
  0x83   : > { %v7575_v58 = vadd.s32 4294967169, %v661_v42  ;;  %v411_v55 = vsub.s32 0, %v8969_v43  ;;  %v8981_v60 = vshrl.u32 %v510_v44, 30  ;;  %vm586_vm6 = vcmp.lt.s32.totalorder %v8954_v16, 2 }
  0x84   : > { %v593_v62 = vsel %vm585_vm4, %v572_v57, %v575_v47  ;;  %v595_v33 = vsel %vm587_vm5, %v578_v49, %v594_v51  ;;  %v597_v63 = vsel %vm585_vm4, %v575_v47, %v578_v49  ;;  %v599_v2 = vsel %vm587_vm5, %v581_v25, %v598_v41 }
  0x85   : > { %vm7562_vm7 = vcmp.lt.s32.totalorder %v7561_v52, 0  ;;  %v601_v7 = vshll.u32 %v561_v54, 8  ;;  %v667_v8 = vadd.s32 1, %v7575_v58  ;;  %v596_v10 = vsel %vm586_vm6, %v593_v62, %v595_v33 }
  0x86   : > { %v764_v12 = vand.u32 2139095040, %v8979_v59  ;;  %v7564_v14 = vmin.u32 %v411_v55, %v8969_v43  ;;  %v512_v18 = vshll.u32 %v8981_v60, 30  ;;  %v600_v21 = vsel %vm586_vm6, %v597_v63, %v599_v2 }
  0x87   : > { %v312_v23 = vsel %vm7562_vm7, 0, %v7561_v52  ;;  %v8999_v50 = vmul.u32.u64.low %v601_v7, %v596_v10  ;;  %v9000_v31 = vmul.u32.u64.high %v601_v7, %v596_v10, %v8999_v50  ;;  %vm668_vm8 = vcmp.gt.s32.totalorder %v667_v8, 0 }
  0x88   : > { %v569_v28 = vshrl.u32 %v18204_v22, %v568_v3  ;;  %v9004_v32 = vmul.u32.u64.low %v601_v7, %v600_v21  ;;  %v9005_v35 = vmul.u32.u64.high %v601_v7, %v600_v21, %v9004_v32  ;;  %v765_v37 = vshrl.u32 %v764_v12, 23 }
  0x89   : > { %v317_v38 = vsub.s32 4294967266, %v312_v23  ;;  %v413_v39 = vclz %v7564_v14  ;;  %v9007_v25 = vsub.s32 %v509_v29, %v512_v18  ;;  %v590_v26 = vsel %vm588_vm3, %v578_v49, 2102212464 }
  0x8a   : > { %v669_v40 = vsel %vm668_vm8, %v667_v8, 0  ;;  %v297_v42 = vadd.s32 %v8797_v1, %v8813_v13  ;;  %v313_v44 = vsub.s32 32, %v312_v23  ;;  %v589_v51 = vsel %vm585_vm4, %v569_v28, %v572_v57 }
  0x8b   : > { %v591_v3 = vsel %vm587_vm5, %v575_v47, %v590_v26  ;;  %v7579_v52 = vadd.s32 4294967169, %v765_v37  ;;  %v318_v54 = vadd.s32 127, %v317_v38  ;;  %v7565_v41 = vadd.s32 4294967294, %v413_v39 }
  0x8c   : > { %v515_v29 = vsub.s32 0, %v9007_v25  ;;  %v671_v58 = vand.u32 31, %v669_v40  ;;  %v327_v55 = vsub.s32 4, %v8910_v20  ;;  %v592_v49 = vsel %vm586_vm6, %v589_v51, %v591_v3  ;;  %v9059_v51 = vld [vmem:[%s8726_s8 + $0x30] sm:$0xff] }
  0x8d   : > { %v611_v1 = vadd.s32 1, %v9000_v31  ;;  %v314_v13 = vshll.u32 %v8932_v56, %v312_v23  ;;  %v315_v62 = vshrl.u32 %v297_v42, %v313_v44  ;;  %vm610_vm9 = vc.u32 %v9005_v35, %v8999_v50 }
  0x8e   : > { %v771_v57 = vadd.s32 1, %v7579_v52  ;;  %v319_v47 = vshll.u32 %v318_v54, 23  ;;  %vm7566_vm10 = vcmp.lt.s32.totalorder %v7565_v41, 0  ;;  %v7568_v33 = vmin.u32 %v515_v29, %v9007_v25 }
  0x8f   : > { %v9026_v63 = vsub.s32 32, %v671_v58  ;;  %v608_v2 = vmul.u32 %v601_v7, %v592_v49  ;;  %vm243_vm11 = vcmp.lt.s32.totalorder %v8733_v0, 0  ;;  %v612_v16 = vsel %vm610_vm9, %v611_v1, %v9000_v31 }
  0x90   : > { %v18185_v8 = vand.u32 2147483647, %v8945_v5  ;;  %v316_v10 = vor.u32 %v315_v62, %v314_v13  ;;  %v9034_v56 = vsel %vm243_vm11, %v327_v55, %v8910_v20  ;;  %v9036_v12 = vsel %vm7566_vm10, 0, %v7565_v41 }
  0x91   : > { %vm772_vm12 = vcmp.gt.s32.totalorder %v771_v57, 0  ;;  %v320_v14 = vor.u32 4788187, %v319_v47  ;;  %v517_v18 = vclz %v7568_v33  ;;  %v683_v7 = vshll.u32 %v18200_v15, %v671_v58 }
  0x92   : > { %v684_v21 = vshrl.u32 %v18198_v17, %v9026_v63  ;;  %v9041_v23 = vadd.s32 %v612_v16, %v608_v2  ;;  %v9043_v31 = vshrl.u32 %v669_v40, 5  ;;  %v686_v28 = vshll.u32 %v18198_v17, %v671_v58 }
  0x93   : > { %v687_v20 = vshrl.u32 %v18194_v27, %v9026_v63  ;;  %v421_v32 = vsub.s32 4294967266, %v9036_v12  ;;  %v674_v37 = vshll.u32 %v18204_v22, %v671_v58  ;;  %v677_v38 = vshll.u32 %v18192_v24, %v671_v58 }
  0x94   : > { %v773_v39 = vsel %vm772_vm12, %v771_v57, 0  ;;  %v675_v26 = vshrl.u32 %v18192_v24, %v9026_v63  ;;  %v678_v42 = vshrl.u32 %v18189_v30, %v9026_v63  ;;  %v680_v40 = vshll.u32 %v18189_v30, %v671_v58 }
  0x95   : > { %v681_v44 = vshrl.u32 %v18200_v15, %v9026_v63  ;;  %v401_v3 = vadd.s32 %v8873_v61, %v8884_v9  ;;  %v7569_v52 = vadd.s32 4294967294, %v517_v18  ;;  %v664_v54 = vand.u32 8388607, %v18185_v8 }
  0x96   : > { %v685_v41 = vor.u32 %v684_v21, %v683_v7  ;;  %v614_v29 = vadd.s32 536870912, %v9041_v23  ;;  %v688_v55 = vor.u32 %v687_v20, %v686_v28  ;;  %vm692_vm13 = vcmp.lt.s32.totalorder %v9043_v31, 4 }
  0x97   : > { %v775_v49 = vand.u32 31, %v773_v39  ;;  %v321_v58 = vand.u32 2147483647, %v320_v14  ;;  %v323_v1 = vcvt.s32.f32 %v316_v10  ;;  %v417_v13 = vsub.s32 32, %v9036_v12 }
  0x98   : > { %v422_v62 = vadd.s32 127, %v421_v32  ;;  %v9068_v57 = vor.u32 %v675_v26, %v674_v37  ;;  %v9070_v47 = vor.u32 %v678_v42, %v677_v38  ;;  %v682_v61 = vor.u32 %v681_v44, %v680_v40 }
  0x99   : > { %v868_v9 = vand.u32 2139095040, %v9059_v51  ;;  %v665_v33 = vor.u32 8388608, %v664_v54  ;;  %vm689_vm14 = vcmp.lt.s32.totalorder %v9043_v31, 1  ;;  %vm691_vm15 = vcmp.lt.s32.totalorder %v9043_v31, 3 }
  0x9a   : > { %v698_v2 = vsel %vm692_vm13, %v685_v41, 920167782  ;;  %vm7570_vm0 = vcmp.lt.s32.totalorder %v7569_v52, 0  ;;  %v9077_v16 = vshrl.u32 %v614_v29, 30  ;;  %v702_v10 = vsel %vm692_vm13, %v688_v55, 1326507024 }
  0x9b   : > { %v9081_v14 = vsub.s32 32, %v775_v49  ;;  %v9083_v18 = vmul.f32 %v323_v1, %v321_v58  ;;  %v418_v7 = vshll.u32 %v8969_v43, %v9036_v12  ;;  %v419_v21 = vshrl.u32 %v401_v3, %v417_v13 }
  0x9c   : > { %v423_v28 = vshll.u32 %v422_v62, 23  ;;  %vm690_vm1 = vcmp.lt.s32.totalorder %v9043_v31, 2  ;;  %v697_v20 = vsel %vm689_vm14, %v9068_v57, %v9070_v47  ;;  %v699_v32 = vsel %vm691_vm15, %v682_v61, %v698_v2 }
  0x9d   : > { %v869_v37 = vshrl.u32 %v868_v9, 23  ;;  %v9094_v38 = vsel %vm7570_vm0, 0, %v7569_v52  ;;  %v701_v26 = vsel %vm689_vm14, %v9070_v47, %v682_v61  ;;  %v703_v43 = vsel %vm691_vm15, %v685_v41, %v702_v10 }
  0x9e   : > { %v9101_v12 = vshll.u32 %v665_v33, 8  ;;  %v616_v42 = vshll.u32 %v9077_v16, 30  ;;  %v18186_v40 = vand.u32 2147483647, %v8979_v59  ;;  %v787_v44 = vshll.u32 %v18200_v15, %v775_v49 }
  0x9f   : > { %v788_v3 = vshrl.u32 %v18198_v17, %v9081_v14  ;;  %v700_v52 = vsel %vm690_vm1, %v697_v20, %v699_v32  ;;  %v9110_v54 = vshrl.u32 %v773_v39, 5  ;;  %v790_v29 = vshll.u32 %v18198_v17, %v775_v49 }
  0xa0   : > { %v791_v41 = vshrl.u32 %v18194_v27, %v9081_v14  ;;  %v704_v55 = vsel %vm690_vm1, %v701_v26, %v703_v43  ;;  %v778_v58 = vshll.u32 %v18204_v22, %v775_v49  ;;  %v781_v1 = vshll.u32 %v18192_v24, %v775_v49 }
  0xa1   : > { %v7583_v13 = vadd.s32 4294967169, %v869_v37  ;;  %v779_v62 = vshrl.u32 %v18192_v24, %v9081_v14  ;;  %v782_v39 = vshrl.u32 %v18189_v30, %v9081_v14  ;;  %v784_v9 = vshll.u32 %v18189_v30, %v775_v49 }
  0xa2   : > { %v785_v33 = vshrl.u32 %v18200_v15, %v9081_v14  ;;  %v9127_v2 = vmul.u32.u64.low %v9101_v12, %v700_v52  ;;  %v9128_v10 = vmul.u32.u64.high %v9101_v12, %v700_v52, %v9127_v2  ;;  %v768_v20 = vand.u32 8388607, %v18186_v40 }
  0xa3   : > { %v789_v32 = vor.u32 %v788_v3, %v787_v44  ;;  %v9134_v37 = vmul.u32.u64.low %v9101_v12, %v704_v55  ;;  %v9135_v26 = vmul.u32.u64.high %v9101_v12, %v704_v55, %v9134_v37  ;;  %v792_v43 = vor.u32 %v791_v41, %v790_v29 }
  0xa4   : > { %vm796_vm2 = vcmp.lt.s32.totalorder %v9110_v54, 4  ;;  %v505_v49 = vadd.s32 %v8920_v45, %v8928_v53  ;;  %v9141_v8 = vsub.s32 %v9041_v23, %v616_v42  ;;  %v673_v52 = vshrl.u32 %v18204_v22, %v9026_v63 }
  0xa5   : > { %v694_v40 = vsel %vm692_vm13, %v682_v61, 2102212464  ;;  %v780_v44 = vor.u32 %v779_v62, %v778_v58  ;;  %v783_v3 = vor.u32 %v782_v39, %v781_v1  ;;  %v786_v48 = vor.u32 %v785_v33, %v784_v9 }
  0xa6   : > { %v875_v55 = vadd.s32 1, %v7583_v13  ;;  %v525_v29 = vsub.s32 4294967266, %v9094_v38  ;;  %vm793_vm3 = vcmp.lt.s32.totalorder %v9110_v54, 1  ;;  %vm795_vm4 = vcmp.lt.s32.totalorder %v9110_v54, 3 }
  0xa7   : > { %v802_v45 = vsel %vm796_vm2, %v789_v32, 920167782  ;;  %vm9154_vm5 = vcmp.le.f32.partialorder %v241_v19, 0.7853982  ;;  %v420_v63 = vor.u32 %v419_v21, %v418_v7  ;;  %v424_v23 = vor.u32 4788187, %v423_v28 }
  0xa8   : > { %v769_v61 = vor.u32 8388608, %v768_v20  ;;  %v806_v42 = vsel %vm796_vm2, %v792_v43, 1326507024  ;;  %vm347_vm6 = vcmp.lt.s32.totalorder %v8737_v4, 0  ;;  %v521_v41 = vsub.s32 32, %v9094_v38 }
  0xa9   : > { %v619_v58 = vsub.s32 0, %v9141_v8  ;;  %v693_v1 = vsel %vm689_vm14, %v673_v52, %v9068_v57  ;;  %v695_v19 = vsel %vm691_vm15, %v9070_v47, %v694_v40  ;;  %vm794_vm7 = vcmp.lt.s32.totalorder %v9110_v54, 2 }
  0xaa   : > { %v801_v7 = vsel %vm793_vm3, %v780_v44, %v783_v3  ;;  %v803_v21 = vsel %vm795_vm4, %v786_v48, %v802_v45  ;;  %vm876_vm8 = vcmp.gt.s32.totalorder %v875_v55, 0  ;;  %v526_v28 = vadd.s32 127, %v525_v29 }
  0xab   : > { %v715_v13 = vadd.s32 1, %v9128_v10  ;;  %v805_v62 = vsel %vm793_vm3, %v783_v3, %v786_v48  ;;  %v807_v57 = vsel %vm795_vm4, %v789_v32, %v806_v42  ;;  %v431_v47 = vsub.s32 4, %v8947_v6 }
  0xac   : > { %v696_v40 = vsel %vm690_vm1, %v693_v1, %v695_v19  ;;  %vm714_vm9 = vc.u32 %v9135_v26, %v9127_v2  ;;  %v9184_v39 = vshll.u32 %v769_v61, 8  ;;  %v425_v9 = vand.u32 2147483647, %v424_v23 }
  0xad   : > { %v427_v33 = vcvt.s32.f32 %v420_v63  ;;  %v804_v20 = vsel %vm794_vm7, %v801_v7, %v803_v21  ;;  %v877_v37 = vsel %vm876_vm8, %v875_v55, 0  ;;  %v522_v32 = vshll.u32 %v9007_v25, %v9094_v38  ;;  %v9204_v38 = vld [vmem:[%s8726_s8 + $0x38] sm:$0xff] }
  0xae   : > { %v523_v43 = vshrl.u32 %v505_v49, %v521_v41  ;;  %v7572_v52 = vmin.u32 %v619_v58, %v9141_v8  ;;  %v808_v31 = vsel %vm794_vm7, %v805_v62, %v807_v57  ;;  %v325_v29 = vxor.u32 2147483648, %v9083_v18 }
  0xaf   : > { %v527_v45 = vshll.u32 %v526_v28, 23  ;;  %v712_v61 = vmul.u32 %v9101_v12, %v696_v40  ;;  %v716_v63 = vsel %vm714_vm9, %v715_v13, %v9128_v10  ;;  %v777_v23 = vshrl.u32 %v18204_v22, %v9081_v14 }
  0xb0   : > { %v9199_v55 = vmul.u32.u64.low %v9184_v39, %v804_v20  ;;  %v9200_v42 = vmul.u32.u64.high %v9184_v39, %v804_v20, %v9199_v55  ;;  %v879_v25 = vand.u32 31, %v877_v37  ;;  %v330_v49 = vsel %vm9154_vm5, 0, %v9034_v56 }
  0xb1   : > { %v798_v12 = vsel %vm796_vm2, %v786_v48, 2102212464  ;;  %v9212_v10 = vmul.u32.u64.low %v9184_v39, %v808_v31  ;;  %v9213_v41 = vmul.u32.u64.high %v9184_v39, %v808_v31, %v9212_v10  ;;  %v428_v14 = vmul.f32 %v427_v33, %v425_v9 }
  0xb2   : > { %v9218_v58 = vsel %vm347_vm6, %v431_v47, %v8947_v6  ;;  %v524_v1 = vor.u32 %v523_v43, %v522_v32  ;;  %v621_v19 = vclz %v7572_v52  ;;  %v326_v7 = vsel %vm243_vm11, %v325_v29, %v9083_v18 }
  0xb3   : > { %vm9225_vm10 = vcmp.le.f32.partialorder %v345_v46, 0.7853982  ;;  %v528_v56 = vor.u32 4788187, %v527_v45  ;;  %v9229_v21 = vadd.s32 %v716_v63, %v712_v61  ;;  %v797_v28 = vsel %vm793_vm3, %v777_v23, %v780_v44 }
  0xb4   : > { %v799_v6 = vsel %vm795_vm4, %v783_v3, %v798_v12  ;;  %v9235_v13 = vsub.s32 32, %v879_v25  ;;  %v972_v62 = vand.u32 2139095040, %v9204_v38  ;;  %v9238_v18 = vadd.s32 3, %v330_v49 }
  0xb5   : > { %v434_v46 = vsel %vm9225_vm10, 0, %v9218_v58  ;;  %v329_v57 = vsel %vm9154_vm5, %v8733_v0, %v326_v7  ;;  %v429_v47 = vxor.u32 2147483648, %v428_v14  ;;  %v531_v40 = vcvt.s32.f32 %v524_v1  ;;  %v9334_v58 = vld [vmem:[%s8726_s8 + $0x40] sm:$0xff] }
  0xb6   : > { %v7573_v44 = vadd.s32 4294967294, %v621_v19  ;;  %v529_v9 = vand.u32 2147483647, %v528_v56  ;;  %v718_v3 = vadd.s32 536870912, %v9229_v21  ;;  %v800_v33 = vsel %vm794_vm7, %v797_v28, %v799_v6 }
  0xb7   : > { %v18188_v20 = vand.u32 2147483647, %v9059_v51  ;;  %v819_v32 = vadd.s32 1, %v9200_v42  ;;  %v891_v43 = vshll.u32 %v18200_v15, %v879_v25  ;;  %v892_v52 = vshrl.u32 %v18198_v17, %v9235_v13 }
  0xb8   : > { %v973_v53 = vshrl.u32 %v972_v62, 23  ;;  %vm818_vm11 = vc.u32 %v9213_v41, %v9199_v55  ;;  %v9256_v0 = vshrl.u32 %v877_v37, 5  ;;  %v894_v31 = vshll.u32 %v18198_v17, %v879_v25 }
  0xb9   : > { %v895_v54 = vshrl.u32 %v18194_v27, %v9235_v13  ;;  %vm7574_vm12 = vcmp.lt.s32.totalorder %v7573_v44, 0  ;;  %v816_v29 = vmul.u32 %v9184_v39, %v800_v33  ;;  %v882_v45 = vshll.u32 %v18204_v22, %v879_v25 }
  0xba   : > { %v885_v61 = vshll.u32 %v18192_v24, %v879_v25  ;;  %v883_v63 = vshrl.u32 %v18192_v24, %v9235_v13  ;;  %v886_v23 = vshrl.u32 %v18189_v30, %v9235_v13  ;;  %v888_v37 = vshll.u32 %v18189_v30, %v879_v25 }
  0xbb   : > { %v889_v49 = vshrl.u32 %v18200_v15, %v9235_v13  ;;  %8145 = vcosq.f32 %v329_v57  ;;  %v820_v12 = vsel %vm818_vm11, %v819_v32, %v9200_v42  ;;  %v893_v10 = vor.u32 %v892_v52, %v891_v43 }
  0xbc   : > { %v7587_v39 = vadd.s32 4294967169, %v973_v53  ;;  %v9272_v1 = vshrl.u32 %v718_v3, 30  ;;  %v872_v19 = vand.u32 8388607, %v18188_v20  ;;  %v896_v7 = vor.u32 %v895_v54, %v894_v31 }
  0xbd   : > { %vm900_vm13 = vcmp.lt.s32.totalorder %v9256_v0, 4  ;;  %8147 = vsinq.f32 %v329_v57  ;;  %v430_v25 = vsel %vm347_vm6, %v429_v47, %v428_v14  ;;  %v532_v56 = vmul.f32 %v531_v40, %v529_v9 }
  0xbe   : > { %v624_v28 = vsel %vm7574_vm12, 0, %v7573_v44  ;;  %v9280_v6 = vadd.s32 %v820_v12, %v816_v29  ;;  %v884_v42 = vor.u32 %v883_v63, %v882_v45  ;;  %v887_v62 = vor.u32 %v886_v23, %v885_v61 }
  0xbf   : > { %v890_v33 = vor.u32 %v889_v49, %v888_v37  ;;  %vm897_vm14 = vcmp.lt.s32.totalorder %v9256_v0, 1  ;;  %vm899_vm15 = vcmp.lt.s32.totalorder %v9256_v0, 3  ;;  %v906_v3 = vsel %vm900_vm13, %v893_v10, 920167782 }
  0xc0   : > { %v979_v32 = vadd.s32 1, %v7587_v39  ;;  %v629_v57 = vsub.s32 4294967266, %v624_v28  ;;  %v720_v43 = vshll.u32 %v9272_v1, 30  ;;  %v873_v14 = vor.u32 8388608, %v872_v19 }
  0xc1   : > { %v910_v47 = vsel %vm900_vm13, %v896_v7, 1326507024  ;;  %v433_v40 = vsel %vm9225_vm10, %v8737_v4, %v430_v25  ;;  %v533_v44 = vxor.u32 2147483648, %v532_v56  ;;  %v535_v9 = vsub.s32 4, %v8981_v60 }
  0xc2   : > { %v609_v52 = vadd.s32 %v8999_v50, %v9005_v35  ;;  %v625_v53 = vsub.s32 32, %v624_v28  ;;  %vm898_vm0 = vcmp.lt.s32.totalorder %v9256_v0, 2  ;;  %v905_v31 = vsel %vm897_vm14, %v884_v42, %v887_v62 }
  0xc3   : > { %v907_v54 = vsel %vm899_vm15, %v890_v33, %v906_v3  ;;  %v822_v29 = vadd.s32 536870912, %v9280_v6  ;;  %v909_v4 = vsel %vm897_vm14, %v887_v62, %v890_v33  ;;  %v911_v45 = vsel %vm899_vm15, %v893_v10, %v910_v47 }
  0xc4   : > { %vm980_vm1 = vcmp.gt.s32.totalorder %v979_v32, 0  ;;  %vm451_vm2 = vcmp.lt.s32.totalorder %v8741_v11, 0  ;;  %v630_v50 = vadd.s32 127, %v629_v57  ;;  %v9307_v35 = vsub.s32 %v9229_v21, %v720_v43 }
  0xc5   : > { %v9309_v61 = vshll.u32 %v873_v14, 8  ;;  %v9311_v63 = vpop.eup %8145  ;;  %v9314_v23 = vand.u32 3, %v9238_v18  ;;  %v438_v37 = vadd.s32 3, %v434_v46  ;;  %vm9322_vm3 = vcmp.le.f32.partialorder %v449_v36, 0.7853982 }
  0xc6   : > { %v908_v21 = vsel %vm898_vm0, %v905_v31, %v907_v54  ;;  %8149 = vcosq.f32 %v433_v40  ;;  %v536_v12 = vsel %vm451_vm2, %v535_v9, %v8981_v60  ;;  %v912_v18 = vsel %vm898_vm0, %v909_v4, %v911_v45 }
  0xc7   : > { %v981_v10 = vsel %vm980_vm1, %v979_v32, 0  ;;  %v9331_v48 = vpop.eup %8147  ;;  %v534_v46 = vsel %vm451_vm2, %v533_v44, %v532_v56  ;;  %v626_v36 = vshll.u32 %v9141_v8, %v624_v28  ;;  %v627_v39 = vshrl.u32 %v609_v52, %v625_v53 }
  0xc8   : > { %v9337_v19 = vshrl.u32 %v822_v29, 30  ;;  %v631_v7 = vshll.u32 %v630_v50, 23  ;;  %v723_v25 = vsub.s32 0, %v9307_v35  ;;  %v881_v32 = vshrl.u32 %v18204_v22, %v9235_v13 }
  0xc9   : > { %v9341_v3 = vmul.u32.u64.low %v9309_v61, %v908_v21  ;;  %v9342_v60 = vmul.u32.u64.high %v9309_v61, %v908_v21, %v9341_v3  ;;  %v9348_v57 = vmul.u32.u64.low %v9309_v61, %v912_v18  ;;  %v9349_v43 = vmul.u32.u64.high %v9309_v61, %v912_v18, %v9348_v57 }
  0xca   : > { %v983_v56 = vand.u32 31, %v981_v10  ;;  %vm337_vm4 = vcmp.eq.s32.totalorder %v9314_v23, 0  ;;  %v341_v8 = vxor.u32 2147483648, %v9311_v63  ;;  %v902_v28 = vsel %vm900_vm13, %v890_v33, 2102212464 }
  0xcb   : > { %v1076_v14 = vand.u32 2139095040, %v9334_v58  ;;  %vm340_vm5 = vcmp.eq.s32.totalorder %v9314_v23, 2  ;;  %v9357_v47 = vand.u32 3, %v438_v37  ;;  %v538_v13 = vsel %vm9322_vm3, 0, %v536_v12 }
  0xcc   : > { %v824_v44 = vshll.u32 %v9337_v19, 30  ;;  %v9365_v9 = vsel %vm9322_vm3, %v8741_v11, %v534_v46  ;;  %v628_v52 = vor.u32 %v627_v39, %v626_v36  ;;  %v632_v53 = vor.u32 4788187, %v631_v7 }
  0xcd   : > { %v7576_v33 = vmin.u32 %v723_v25, %v9307_v35  ;;  %8151 = vsinq.f32 %v433_v40  ;;  %v901_v31 = vsel %vm897_vm14, %v881_v32, %v884_v42  ;;  %v903_v54 = vsel %vm899_vm15, %v887_v62, %v902_v28 }
  0xce   : > { %v9372_v29 = vsub.s32 32, %v983_v56  ;;  %v338_v4 = vxor.u32 2147483648, %v9331_v48  ;;  %v9376_v45 = vsel %vm340_vm5, %v341_v8, %v9331_v48  ;;  %v9378_v11 = vadd.s32 3, %v538_v13 }
  0xcf   : > { %vm555_vm6 = vcmp.lt.s32.totalorder %v8829_v34, 0  ;;  %v1077_v50 = vshrl.u32 %v1076_v14, 23  ;;  %8153 = vcosq.f32 %v9365_v9  ;;  %v639_v40 = vsub.s32 4, %v9077_v16 }
  0xd0   : > { %v9384_v42 = vsub.s32 %v9280_v6, %v824_v44  ;;  %v18191_v62 = vand.u32 2147483647, %v9204_v38  ;;  %v9387_v37 = vpop.eup %8149  ;;  %v633_v49 = vand.u32 2147483647, %v632_v53  ;;  %v635_v21 = vcvt.s32.f32 %v628_v52 }
  0xd1   : > { %v725_v12 = vclz %v7576_v33  ;;  %v904_v18 = vsel %vm898_vm0, %v901_v31, %v903_v54  ;;  %vm922_vm7 = vc.u32 %v9349_v43, %v9341_v3  ;;  %v923_v48 = vadd.s32 1, %v9342_v60  ;;  %v8401_v54 = vld [vmem:[%s8726_s8] sm:$0xff] }
  0xd2   : > { %v995_v46 = vshll.u32 %v18200_v15, %v983_v56  ;;  %v996_v6 = vshrl.u32 %v18198_v17, %v9372_v29  ;;  %v18365_v36 = vand.u32 2147483647, %v8829_v34  ;;  %v9403_v7 = vshrl.u32 %v981_v10, 5 }
  0xd3   : > { %v998_v0 = vshll.u32 %v18198_v17, %v983_v56  ;;  %v999_v25 = vshrl.u32 %v18194_v27, %v9372_v29  ;;  %v7591_v32 = vadd.s32 4294967169, %v1077_v50  ;;  %vm336_vm9 = vcmp.lt.s32.totalorder %v9314_v23, 2 }
  0xd4   : > { %vm9399_vm8 = vcmp.le.f32.partialorder %v18365_v36, 0.7853982  ;;  %vm441_vm10 = vcmp.eq.s32.totalorder %v9357_v47, 0  ;;  %vm444_vm11 = vcmp.eq.s32.totalorder %v9357_v47, 2  ;;  %v827_v57 = vsub.s32 0, %v9384_v42 }
  0xd5   : > { %v920_v8 = vmul.u32 %v9309_v61, %v904_v18  ;;  %v986_v10 = vshll.u32 %v18204_v22, %v983_v56  ;;  %v989_v28 = vshll.u32 %v18192_v24, %v983_v56  ;;  %v987_v14 = vshrl.u32 %v18192_v24, %v9372_v29 }
  0xd6   : > { %v990_v13 = vshrl.u32 %v18189_v30, %v9372_v29  ;;  %v992_v44 = vshll.u32 %v18189_v30, %v983_v56  ;;  %v993_v52 = vshrl.u32 %v18200_v15, %v9372_v29  ;;  %v339_v53 = vsel %vm337_vm4, %v9311_v63, %v338_v4 }
  0xd7   : > { %v445_v61 = vxor.u32 2147483648, %v9387_v37  ;;  %v924_v33 = vsel %vm922_vm7, %v923_v48, %v9342_v60  ;;  %v997_v31 = vor.u32 %v996_v6, %v995_v46  ;;  %vm333_vm12 = vweird.f32 %v8401_v54  ;;  %v8152_v36 = vpop.eup %8151 }
  0xd8   : > { %v976_v56 = vand.u32 8388607, %v18191_v62  ;;  %v1000_v50 = vor.u32 %v999_v25, %v998_v0  ;;  %vm1004_vm13 = vcmp.lt.s32.totalorder %v9403_v7, 4  ;;  %v1083_v18 = vadd.s32 1, %v7591_v32 }
  0xd9   : > { %v636_v20 = vmul.f32 %v635_v21, %v633_v49  ;;  %v640_v63 = vsel %vm555_vm6, %v639_v40, %v9077_v16  ;;  %v7577_v4 = vadd.s32 4294967294, %v725_v12  ;;  %v7580_v30 = vmin.u32 %v827_v57, %v9384_v42  ;;  %v9441_v0 = vpop.eup %8153 }
  0xda   : > { %vm440_vm14 = vcmp.lt.s32.totalorder %v9357_v47, 2  ;;  %v9439_v60 = vadd.s32 %v924_v33, %v920_v8  ;;  %v988_v48 = vor.u32 %v987_v14, %v986_v10  ;;  %v991_v46 = vor.u32 %v990_v13, %v989_v28 }
  0xdb   : > { %v994_v6 = vor.u32 %v993_v52, %v992_v44  ;;  %8155 = vsinq.f32 %v9365_v9  ;;  %vm1001_vm15 = vcmp.lt.s32.totalorder %v9403_v7, 1  ;;  %vm1003_vm0 = vcmp.lt.s32.totalorder %v9403_v7, 3 }
  0xdc   : > { %v1010_v16 = vsel %vm1004_vm13, %v997_v31, 920167782  ;;  %v442_v40 = vxor.u32 2147483648, %v8152_v36  ;;  %v977_v49 = vor.u32 8388608, %v976_v56  ;;  %v1014_v21 = vsel %vm1004_vm13, %v1000_v50, 1326507024 }
  0xdd   : > { %vm1084_vm1 = vcmp.gt.s32.totalorder %v1083_v18, 0  ;;  %v637_v12 = vxor.u32 2147483648, %v636_v20  ;;  %v642_v25 = vsel %vm9399_vm8, 0, %v640_v63  ;;  %vm7578_vm2 = vcmp.lt.s32.totalorder %v7577_v4, 0 }
  0xde   : > { %v829_v32 = vclz %v7580_v30  ;;  %v926_v9 = vadd.s32 536870912, %v9439_v60  ;;  %vm1002_vm3 = vcmp.lt.s32.totalorder %v9403_v7, 2  ;;  %v1009_v57 = vsel %vm1001_vm15, %v988_v48, %v991_v46 }
  0xdf   : > { %v1011_v8 = vsel %vm1003_vm0, %v994_v6, %v1010_v16  ;;  %v9459_v10 = vand.u32 3, %v9378_v11  ;;  %v1013_v28 = vsel %vm1001_vm15, %v991_v46, %v994_v6  ;;  %v1015_v14 = vsel %vm1003_vm0, %v997_v31, %v1014_v21 }
  0xe0   : > { %v1085_v30 = vsel %vm1084_vm1, %v1083_v18, 0  ;;  %v343_v13 = vsel %vm336_vm9, %v339_v53, %v9376_v45  ;;  %v443_v44 = vsel %vm441_vm10, %v9387_v37, %v442_v40  ;;  %v446_v11 = vsel %vm444_vm11, %v445_v61, %v8152_v36  ;;  %v9494_v18 = vld [vmem:[%s8726_s8 + $0x48] sm:$0xff]  ;;  %v9497_v36 = vld [vmem:[%s8726_s8 + $0x18] sm:$0xff] }
  0xe1   : > { %v9473_v52 = vshll.u32 %v977_v49, 8  ;;  %v638_v33 = vsel %vm555_vm6, %v637_v12, %v636_v20  ;;  %v646_v31 = vadd.s32 3, %v642_v25  ;;  %v9478_v56 = vsel %vm7578_vm2, 0, %v7577_v4 }
  0xe2   : > { %v1012_v23 = vsel %vm1002_vm3, %v1009_v57, %v1011_v8  ;;  %v7581_v45 = vadd.s32 4294967294, %v829_v32  ;;  %v9482_v53 = vshrl.u32 %v926_v9, 30  ;;  %v1016_v37 = vsel %vm1002_vm3, %v1013_v28, %v1015_v14 }
  0xe3   : > { %v1087_v50 = vand.u32 31, %v1085_v30  ;;  %v9487_v61 = vsel %vm333_vm12, nan, %v343_v13  ;;  %vm548_vm4 = vcmp.eq.s32.totalorder %v9459_v10, 2  ;;  %v549_v34 = vxor.u32 2147483648, %v9441_v0 }
  0xe4   : > { %18368 = vst [vmem:[#allocation11_spill] sm:$0xff] %v9487_v61  ;;  %v985_v20 = vshrl.u32 %v18204_v22, %v9372_v29  ;;  %v641_v63 = vsel %vm9399_vm8, %v9497_v36, %v638_v33  ;;  %v1006_v54 = vsel %vm1004_vm13, %v994_v6, 2102212464  ;;  %v9513_v29 = vsel %vm440_vm14, %v443_v44, %v446_v11 }
  0xe5   : > { %v9505_v4 = vmul.u32.u64.low %v9473_v52, %v1012_v23  ;;  %v9506_v16 = vmul.u32.u64.high %v9473_v52, %v1012_v23, %v9505_v4  ;;  %v9509_v40 = vpop.eup %8155  ;;  %v733_v49 = vsub.s32 4294967266, %v9478_v56  ;;  %v9520_v12 = vand.u32 3, %v646_v31 }
  0xe6   : > { %v9517_v21 = vmul.u32.u64.low %v9473_v52, %v1016_v37  ;;  %v9518_v39 = vmul.u32.u64.high %v9473_v52, %v1016_v37, %v9517_v21  ;;  %vm7582_vm5 = vcmp.lt.s32.totalorder %v7581_v45, 0  ;;  %v928_v6 = vshll.u32 %v9482_v53, 30 }
  0xe7   : > { %v9523_v25 = vsub.s32 32, %v1087_v50  ;;  %8157 = vcosq.f32 %v641_v63  ;;  %v1005_v32 = vsel %vm1001_vm15, %v985_v20, %v988_v48  ;;  %v1007_v47 = vsel %vm1003_vm0, %v991_v46, %v1006_v54 }
  0xe8   : > { %v1180_v9 = vand.u32 2139095040, %v9494_v18  ;;  %v546_v57 = vxor.u32 2147483648, %v9509_v40  ;;  %v9534_v8 = vsel %vm548_vm4, %v549_v34, %v9509_v40  ;;  %8159 = vsinq.f32 %v641_v63 }
  0xe9   : > { %v713_v28 = vadd.s32 %v9127_v2, %v9135_v26  ;;  %v729_v14 = vsub.s32 32, %v9478_v56  ;;  %v734_v13 = vadd.s32 127, %v733_v49  ;;  %v9539_v48 = vsel %vm7582_vm5, 0, %v7581_v45 }
  0xea   : > { %v18196_v46 = vand.u32 2147483647, %v9334_v58  ;;  %v9543_v44 = vsub.s32 %v9439_v60, %v928_v6  ;;  %v1008_v11 = vsel %vm1002_vm3, %v1005_v32, %v1007_v47  ;;  %v1099_v33 = vshll.u32 %v18200_v15, %v1087_v50 }
  0xeb   : > { %v1100_v31 = vshrl.u32 %v18198_v17, %v9523_v25  ;;  %v9550_v23 = vshrl.u32 %v1085_v30, 5  ;;  %v1102_v2 = vshll.u32 %v18198_v17, %v1087_v50  ;;  %v1103_v26 = vshrl.u32 %v18194_v27, %v9523_v25 }
  0xec   : > { %v1181_v45 = vshrl.u32 %v1180_v9, 23  ;;  %vm545_vm6 = vcmp.eq.s32.totalorder %v9459_v10, 0  ;;  %v1027_v60 = vadd.s32 1, %v9506_v16  ;;  %v1090_v7 = vshll.u32 %v18204_v22, %v1087_v50 }
  0xed   : > { %v1093_v37 = vshll.u32 %v18192_v24, %v1087_v50  ;;  %v18369_v34 = vmov 2131351028   ;;  %vm1026_vm7 = vc.u32 %v9518_v39, %v9505_v4  ;;  %v1091_v30 = vshrl.u32 %v18192_v24, %v9523_v25 }
  0xee   : > { %v1096_v20 = vshll.u32 %v18369_v34, %v1087_v50  ;;  %v1094_v63 = vshrl.u32 %v18369_v34, %v9523_v25  ;;  %v1097_v54 = vshrl.u32 %v18200_v15, %v9523_v25  ;;  %v730_v49 = vshll.u32 %v9307_v35, %v9478_v56 }
  0xef   : > { %v731_v21 = vshrl.u32 %v713_v28, %v729_v14  ;;  %v1080_v6 = vand.u32 8388607, %v18196_v46  ;;  %v1101_v50 = vor.u32 %v1100_v31, %v1099_v33  ;;  %vm659_vm8 = vcmp.lt.s32.totalorder %v8945_v5, 0 }
  0xf0   : > { %v1024_v32 = vmul.u32 %v9473_v52, %v1008_v11  ;;  %v1104_v47 = vor.u32 %v1103_v26, %v1102_v2  ;;  %vm1108_vm9 = vcmp.lt.s32.totalorder %v9550_v23, 4  ;;  %v7595_v9 = vadd.s32 4294967169, %v1181_v45 }
  0xf1   : > { %v735_v62 = vshll.u32 %v734_v13, 23  ;;  %v817_v24 = vadd.s32 %v9199_v55, %v9213_v41  ;;  %v837_v27 = vsub.s32 4294967266, %v9539_v48  ;;  %v1028_v35 = vsel %vm1026_vm7, %v1027_v60, %v9506_v16  ;;  %v9582_v56 = vpop.eup %8157 }
  0xf2   : > { %v931_v28 = vsub.s32 0, %v9543_v44  ;;  %v9585_v52 = vor.u32 %v1091_v30, %v1090_v7  ;;  %v9587_v14 = vor.u32 %v1094_v63, %v1093_v37  ;;  %v1098_v11 = vor.u32 %v1097_v54, %v1096_v20  ;;  %v9589_v13 = vpop.eup %8159  ;;  %v8403_v54 = vld [vmem:[%s8726_s8 + $0x8] sm:$0xff] }
  0xf3   : > { %v833_v55 = vsub.s32 32, %v9539_v48  ;;  %vm1105_vm10 = vcmp.lt.s32.totalorder %v9550_v23, 1  ;;  %vm1107_vm11 = vcmp.lt.s32.totalorder %v9550_v23, 3  ;;  %v1114_v41 = vsel %vm1108_vm9, %v1101_v50, 920167782 }
  0xf4   : > { %vm544_vm12 = vcmp.lt.s32.totalorder %v9459_v10, 2  ;;  %vm652_vm13 = vcmp.eq.s32.totalorder %v9520_v12, 2  ;;  %v9598_v16 = vadd.s32 %v1028_v35, %v1024_v32  ;;  %v1081_v33 = vor.u32 8388608, %v1080_v6  ;;  %v9626_v32 = vld [vmem:[%s8726_s8 + $0x50] sm:$0xff] }
  0xf5   : > { %v1118_v31 = vsel %vm1108_vm9, %v1104_v47, 1326507024  ;;  %v1187_v2 = vadd.s32 1, %v7595_v9  ;;  %v732_v26 = vor.u32 %v731_v21, %v730_v49  ;;  %v736_v45 = vor.u32 4788187, %v735_v62  ;;  %18373 = vst [vmem:[#allocation12_spill] sm:$0xff] %v9626_v32 }
  0xf6   : > { %v743_v60 = vsub.s32 4, %v9272_v1  ;;  %v838_v7 = vadd.s32 127, %v837_v27  ;;  %v18370_v37 = vand.u32 2147483647, %v8945_v5  ;;  %v7584_v30 = vmin.u32 %v931_v28, %v9543_v44  ;;  %v8404_v47 = vld [vmem:[%s8726_s8 + $0x10] sm:$0xff] }
  0xf7   : > { %vm1106_vm15 = vcmp.lt.s32.totalorder %v9550_v23, 2  ;;  %v1113_v63 = vsel %vm1105_vm10, %v9585_v52, %v9587_v14  ;;  %v1115_v62 = vsel %vm1107_vm11, %v1098_v11, %v1114_v41  ;;  %vm437_vm0 = vweird.f32 %v8403_v54 }
  0xf8   : > { %vm9605_vm14 = vcmp.le.f32.partialorder %v18370_v37, 0.7853982  ;;  %v834_v27 = vshll.u32 %v9384_v42, %v9539_v48  ;;  %v835_v49 = vshrl.u32 %v817_v24, %v833_v55  ;;  %v1117_v21 = vsel %vm1105_vm10, %v9587_v14, %v1098_v11 }
  0xf9   : > { %v1119_v6 = vsel %vm1107_vm11, %v1101_v50, %v1118_v31  ;;  %vm541_vm1 = vweird.f32 %v8404_v47  ;;  %v547_v9 = vsel %vm545_vm6, %v9441_v0, %v546_v57  ;;  %v1030_v42 = vadd.s32 536870912, %v9598_v16 }
  0xfa   : > { %v9635_v24 = vshll.u32 %v1081_v33, 8  ;;  %vm1188_vm2 = vcmp.gt.s32.totalorder %v1187_v2, 0  ;;  %v653_v48 = vxor.u32 2147483648, %v9582_v56  ;;  %v744_v50 = vsel %vm659_vm8, %v743_v60, %v9272_v1 }
  0xfb   : > { %v839_v35 = vshll.u32 %v838_v7, 23  ;;  %v1116_v28 = vsel %vm1106_vm15, %v1113_v63, %v1115_v62  ;;  %v650_v40 = vxor.u32 2147483648, %v9589_v13  ;;  %v739_v55 = vcvt.s32.f32 %v732_v26 }
  0xfc   : > { %v933_v41 = vclz %v7584_v30  ;;  %v1120_v0 = vsel %vm1106_vm15, %v1117_v21, %v1119_v6  ;;  %v737_v57 = vand.u32 2147483647, %v736_v45  ;;  %v836_v33 = vor.u32 %v835_v49, %v834_v27 }
  0xfd   : > { %v1189_v31 = vsel %vm1188_vm2, %v1187_v2, 0  ;;  %v1284_v37 = vand.u32 2139095040, %v9626_v32  ;;  %v9647_v46 = vshrl.u32 %v1030_v42, 30  ;;  %v1089_v1 = vshrl.u32 %v18204_v22, %v9523_v25 }
  0xfe   : > { %v9652_v60 = vmul.u32.u64.low %v9635_v24, %v1116_v28  ;;  %v9653_v7 = vmul.u32.u64.high %v9635_v24, %v1116_v28, %v9652_v60  ;;  %v840_v26 = vor.u32 4788187, %v839_v35  ;;  %v1110_v30 = vsel %vm1108_vm9, %v1098_v11, 2102212464 }
  0xff   : > { %v9659_v45 = vmul.u32.u64.low %v9635_v24, %v1120_v0  ;;  %v9660_v63 = vmul.u32.u64.high %v9635_v24, %v1120_v0, %v9659_v45  ;;  %vm648_vm3 = vcmp.lt.s32.totalorder %v9520_v12, 2  ;;  %vm649_vm4 = vcmp.eq.s32.totalorder %v9520_v12, 0 }
 0x100   : > { %v7585_v2 = vadd.s32 4294967294, %v933_v41  ;;  %v1191_v25 = vand.u32 31, %v1189_v31  ;;  %v551_v62 = vsel %vm544_vm12, %v547_v9, %v9534_v8  ;;  %v654_v27 = vsel %vm652_vm13, %v653_v48, %v9589_v13 }
 0x101   : > { %v746_v11 = vsel %vm9605_vm14, 0, %v744_v50  ;;  %v1285_v49 = vshrl.u32 %v1284_v37, 23  ;;  %v740_v21 = vmul.f32 %v739_v55, %v737_v57  ;;  %v1032_v6 = vshll.u32 %v9647_v46, 30 }
 0x102   : > { %v1109_v42 = vsel %vm1105_vm10, %v1089_v1, %v9585_v52  ;;  %v1111_v10 = vsel %vm1107_vm11, %v9587_v14, %v1110_v30  ;;  %v651_v8 = vsel %vm649_vm4, %v9582_v56, %v650_v40  ;;  %v18374_v9 = vand.u32 2147483647, %v8979_v59  ;;  %v9692_v52 = vld [vmem:[%s8726_s8 + $0x28] sm:$0xff] }
 0x103   : > { %v841_v48 = vand.u32 2147483647, %v840_v26  ;;  %v843_v50 = vcvt.s32.f32 %v836_v33  ;;  %v847_v35 = vsub.s32 4, %v9337_v19  ;;  %v9689_v28 = vsel %vm437_vm0, nan, %v9513_v29 }
 0x104   : > { %vm9682_vm5 = vcmp.le.f32.partialorder %v18374_v9, 0.7853982  ;;  %18377 = vst [vmem:[#allocation13_spill] sm:$0xff] %v9689_v28  ;;  %vm763_vm6 = vcmp.lt.s32.totalorder %v9692_v52, 0  ;;  %vm7586_vm7 = vcmp.lt.s32.totalorder %v7585_v2, 0  ;;  %v9695_v56 = vsub.s32 32, %v1191_v25 }
 0x105   : > { %v9698_v59 = vsel %vm541_vm1, nan, %v551_v62  ;;  %v9700_v14 = vadd.s32 3, %v746_v11  ;;  %v1112_v40 = vsel %vm1106_vm15, %v1109_v42, %v1111_v10  ;;  %v7599_v55 = vadd.s32 4294967169, %v1285_v49 }
 0x106   : > { %18378 = vst [vmem:[#allocation14_spill] sm:$0xff] %v9698_v59  ;;  %v9706_v29 = vsel %vm648_vm3, %v651_v8, %v654_v27  ;;  %v741_v54 = vxor.u32 2147483648, %v740_v21  ;;  %v9709_v41 = vsub.s32 %v9598_v16, %v1032_v6  ;;  %v1131_v0 = vadd.s32 1, %v9653_v7 }
 0x107   : > { %v844_v57 = vmul.f32 %v843_v50, %v841_v48  ;;  %v848_v47 = vsel %vm763_vm6, %v847_v35, %v9337_v19  ;;  %v9715_v33 = vsel %vm7586_vm7, 0, %v7585_v2  ;;  %vm1130_vm9 = vc.u32 %v9660_v63, %v9652_v60 }
 0x108   : > { %v1128_v12 = vmul.u32 %v9635_v24, %v1112_v40  ;;  %v18197_v23 = vand.u32 2147483647, %v9494_v18  ;;  %v1203_v37 = vshll.u32 %v18200_v15, %v1191_v25  ;;  %v1204_v16 = vshrl.u32 %v18198_v17, %v9695_v56 }
 0x109   : > { %v9724_v1 = vshrl.u32 %v1189_v31, 5  ;;  %v1206_v26 = vshll.u32 %v18198_v17, %v1191_v25  ;;  %v18379_v19 = vmov 1326507024   ;;  %v1291_v45 = vadd.s32 1, %v7599_v55 }
 0x10a   : > { %v1207_v30 = vshrl.u32 %v18379_v19, %v9695_v56  ;;  %v1035_v2 = vsub.s32 0, %v9709_v41  ;;  %v1132_v62 = vsel %vm1130_vm9, %v1131_v0, %v9653_v7  ;;  %v1194_v24 = vshll.u32 %v18204_v22, %v1191_v25 }
 0x10b   : > { %v18380_v27 = vmov 2475754826   ;;  %vm645_vm10 = vweird.f32 %v9497_v36  ;;  %v1198_v49 = vshrl.u32 %v18369_v34, %v9695_v56  ;;  %v1200_v6 = vshll.u32 %v18369_v34, %v1191_v25 }
 0x10c   : > { %v1197_v11 = vshll.u32 %v18380_v27, %v1191_v25  ;;  %v1195_v31 = vshrl.u32 %v18380_v27, %v9695_v56  ;;  %v1201_v42 = vshrl.u32 %v18200_v15, %v9695_v56  ;;  %v742_v7 = vsel %vm659_vm8, %v741_v54, %v740_v21 }
 0x10d   : > { %v850_v10 = vsel %vm9682_vm5, 0, %v848_v47  ;;  %v941_v8 = vsub.s32 4294967266, %v9715_v33  ;;  %v1205_v9 = vor.u32 %v1204_v16, %v1203_v37  ;;  %v1184_v48 = vand.u32 8388607, %v18197_v23  ;;  %v9760_v16 = vld [vmem:[%s8726_s8 + $0x20] sm:$0xff] }
 0x10e   : > { %v1208_v50 = vor.u32 %v1207_v30, %v1206_v26  ;;  %vm1212_vm11 = vcmp.lt.s32.totalorder %v9724_v1, 4  ;;  %vm1292_vm12 = vcmp.gt.s32.totalorder %v1291_v45, 0  ;;  %v845_v25 = vxor.u32 2147483648, %v844_v57 }
 0x10f   : > { %v921_v35 = vadd.s32 %v9341_v3, %v9349_v43  ;;  %v7588_v5 = vmin.u32 %v1035_v2, %v9709_v41  ;;  %v9752_v21 = vadd.s32 %v1132_v62, %v1128_v12  ;;  %v937_v40 = vsub.s32 32, %v9715_v33 }
 0x110   : > { %v1196_v55 = vor.u32 %v1195_v31, %v1194_v24  ;;  %v1199_v54 = vor.u32 %v1198_v49, %v1197_v11  ;;  %v1202_v0 = vor.u32 %v1201_v42, %v1200_v6  ;;  %vm1209_vm8 = vcmp.lt.s32.totalorder %v9724_v1, 1 }
 0x111   : > { %vm1211_vm13 = vcmp.lt.s32.totalorder %v9724_v1, 3  ;;  %v1218_v47 = vsel %vm1212_vm11, %v1205_v9, 920167782  ;;  %v1293_v37 = vsel %vm1292_vm12, %v1291_v45, 0  ;;  %v745_v3 = vsel %vm9605_vm14, %v9760_v16, %v742_v7 }
 0x112   : > { %v942_v43 = vadd.s32 127, %v941_v8  ;;  %v1185_v12 = vor.u32 8388608, %v1184_v48  ;;  %v1222_v26 = vsel %vm1212_vm11, %v1208_v50, 1326507024  ;;  %v846_v30 = vsel %vm763_vm6, %v845_v25, %v844_v57  ;;  %v9808_v50 = vld [vmem:[%s8726_s8 + $0x58] sm:$0xff] }
 0x113   : > { %v854_v2 = vadd.s32 3, %v850_v10  ;;  %v1037_v62 = vclz %v7588_v5  ;;  %v1134_v24 = vadd.s32 536870912, %v9752_v21  ;;  %vm1210_vm15 = vcmp.lt.s32.totalorder %v9724_v1, 2  ;;  %18382 = vst [vmem:[#allocation16_spill] sm:$0xff] %v9808_v50 }
 0x114   : > { %v1217_v45 = vsel %vm1209_vm8, %v1196_v55, %v1199_v54  ;;  %v1219_v20 = vsel %vm1211_vm13, %v1202_v0, %v1218_v47  ;;  %v1295_v11 = vand.u32 31, %v1293_v37  ;;  %v938_v31 = vshll.u32 %v9543_v44, %v9715_v33 }
 0x115   : > { %v939_v49 = vshrl.u32 %v921_v35, %v937_v40  ;;  %v1221_v57 = vsel %vm1209_vm8, %v1199_v54, %v1202_v0  ;;  %v1223_v6 = vsel %vm1211_vm13, %v1205_v9, %v1222_v26  ;;  %8161 = vcosq.f32 %v745_v3 }
 0x116   : > { %v849_v42 = vsel %vm9682_vm5, %v9692_v52, %v846_v30  ;;  %v943_v7 = vshll.u32 %v942_v43, 23  ;;  %v9784_v10 = vshll.u32 %v1185_v12, 8  ;;  %v9789_v44 = vsel %vm645_vm10, nan, %v9706_v29 }
 0x117   : > { %18381 = vst [vmem:[#allocation15_spill] sm:$0xff] %v9789_v44  ;;  %8163 = vsinq.f32 %v745_v3  ;;  %v9792_v33 = vand.u32 3, %v9700_v14  ;;  %v1220_v8 = vsel %vm1210_vm15, %v1217_v45, %v1219_v20  ;;  %v7589_v9 = vadd.s32 4294967294, %v1037_v62 }
 0x118   : > { %v9796_v48 = vshrl.u32 %v1134_v24, 30  ;;  %v1224_v13 = vsel %vm1210_vm15, %v1221_v57, %v1223_v6  ;;  %v9800_v52 = vsub.s32 32, %v1295_v11  ;;  %8165 = vcosq.f32 %v849_v42 }
 0x119   : > { %v9802_v36 = vand.u32 3, %v854_v2  ;;  %v9804_v29 = vor.u32 %v939_v49, %v938_v31  ;;  %v951_v14 = vsub.s32 4, %v9482_v53  ;;  %v9810_v25 = vor.u32 4788187, %v943_v7  ;;  %v9831_v2 = vld [vmem:[%s8726_s8 + $0x30] sm:$0xff] }
 0x11a   : > { %v1193_v35 = vshrl.u32 %v18204_v22, %v9695_v56  ;;  %v9815_v5 = vmul.u32.u64.low %v9784_v10, %v1220_v8  ;;  %v9816_v40 = vmul.u32.u64.high %v9784_v10, %v1220_v8, %v9815_v5  ;;  %v1214_v47 = vsel %vm1212_vm11, %v1202_v0, 2102212464  ;;  %18383 = vst [vmem:[#allocation17_spill] sm:$0xff] %v9831_v2 }
 0x11b   : > { %v9822_v3 = vmul.u32.u64.low %v9784_v10, %v1224_v13  ;;  %v9823_v43 = vmul.u32.u64.high %v9784_v10, %v1224_v13, %v9822_v3  ;;  %v18202_v12 = vand.u32 2147483647, %v9626_v32  ;;  %vm7590_vm14 = vcmp.lt.s32.totalorder %v7589_v9, 0 }
 0x11c   : > { %v1136_v26 = vshll.u32 %v9796_v48, 30  ;;  %v1307_v30 = vshll.u32 %v18200_v15, %v1295_v11  ;;  %v1308_v56 = vshrl.u32 %v18198_v17, %v9800_v52  ;;  %vm867_vm0 = vcmp.lt.s32.totalorder %v9831_v2, 0 }
 0x11d   : > { %v9834_v62 = vshrl.u32 %v1293_v37, 5  ;;  %v1310_v0 = vshll.u32 %v18198_v17, %v1295_v11  ;;  %v1311_v24 = vshrl.u32 %v18379_v19, %v9800_v52  ;;  %v1388_v45 = vand.u32 2139095040, %v9808_v50 }
 0x11e   : > { %v1213_v20 = vsel %vm1209_vm8, %v1193_v35, %v1196_v55  ;;  %v1215_v31 = vsel %vm1211_vm13, %v1199_v54, %v1214_v47  ;;  %v1298_v49 = vshll.u32 %v18204_v22, %v1295_v11  ;;  %v1301_v57 = vshll.u32 %v18380_v27, %v1295_v11 }
 0x11f   : > { %vm753_vm1 = vcmp.eq.s32.totalorder %v9792_v33, 0  ;;  %vm756_vm2 = vcmp.eq.s32.totalorder %v9792_v33, 2  ;;  %v1299_v37 = vshrl.u32 %v18380_v27, %v9800_v52  ;;  %v1302_v6 = vshrl.u32 %v18369_v34, %v9800_v52  ;;  %v8162_v54 = vpop.eup %8161 }
 0x120   : > { %v1304_v7 = vshll.u32 %v18369_v34, %v1295_v11  ;;  %v1305_v55 = vshrl.u32 %v18200_v15, %v9800_v52  ;;  %8167 = vsinq.f32 %v849_v42  ;;  %v947_v8 = vcvt.s32.f32 %v9804_v29 }
 0x121   : > { %v9857_v13 = vsub.s32 %v9752_v21, %v1136_v26  ;;  %v1309_v35 = vor.u32 %v1308_v56, %v1307_v30  ;;  %v8164_v47 = vpop.eup %8163  ;;  %v1288_v3 = vand.u32 8388607, %v18202_v12  ;;  %v1312_v23 = vor.u32 %v1311_v24, %v1310_v0 }
 0x122   : > { %vm1316_vm3 = vcmp.lt.s32.totalorder %v9834_v62, 4  ;;  %v1389_v17 = vshrl.u32 %v1388_v45, 23  ;;  %v18384_v11 = vand.u32 2147483647, %v9059_v51  ;;  %v945_v42 = vand.u32 2147483647, %v9810_v25  ;;  %v9875_v30 = vpop.eup %8165 }
 0x123   : > { %v9870_v21 = vsel %vm7590_vm14, 0, %v7589_v9  ;;  %v1216_v29 = vsel %vm1210_vm15, %v1213_v20, %v1215_v31  ;;  %v1235_v26 = vadd.s32 1, %v9816_v40  ;;  %vm1234_vm5 = vc.u32 %v9823_v43, %v9815_v5 }
 0x124   : > { %vm9864_vm4 = vcmp.le.f32.partialorder %v18384_v11, 0.7853982  ;;  %v9879_v51 = vor.u32 %v1299_v37, %v1298_v49  ;;  %v9881_v56 = vor.u32 %v1302_v6, %v1301_v57  ;;  %v1306_v0 = vor.u32 %v1305_v55, %v1304_v7  ;;  %v9900_v6 = vld [vmem:[%s8726_s8 + $0x60] sm:$0xff] }
 0x125   : > { %vm752_vm6 = vcmp.lt.s32.totalorder %v9792_v33, 2  ;;  %v1139_v9 = vsub.s32 0, %v9857_v13  ;;  %vm1313_vm7 = vcmp.lt.s32.totalorder %v9834_v62, 1  ;;  %vm1315_vm9 = vcmp.lt.s32.totalorder %v9834_v62, 3  ;;  %18387 = vst [vmem:[#allocation18_spill] sm:$0xff] %v9900_v6 }
 0x126   : > { %v1322_v1 = vsel %vm1316_vm3, %v1309_v35, 920167782  ;;  %v1232_v25 = vmul.u32 %v9784_v10, %v1216_v29  ;;  %v1289_v24 = vor.u32 8388608, %v1288_v3  ;;  %v1326_v45 = vsel %vm1316_vm3, %v1312_v23, 1326507024 }
 0x127   : > { %v7603_v20 = vadd.s32 4294967169, %v1389_v17  ;;  %v754_v31 = vxor.u32 2147483648, %v8164_v47  ;;  %v757_v49 = vxor.u32 2147483648, %v8162_v54  ;;  %v952_v57 = vsel %vm867_vm0, %v951_v14, %v9482_v53 }
 0x128   : > { %v1236_v37 = vsel %vm1234_vm5, %v1235_v26, %v9816_v40  ;;  %v948_v7 = vmul.f32 %v947_v8, %v945_v42  ;;  %vm1314_vm10 = vcmp.lt.s32.totalorder %v9834_v62, 2  ;;  %v1321_v17 = vsel %vm1313_vm7, %v9879_v51, %v9881_v56 }
 0x129   : > { %v1323_v23 = vsel %vm1315_vm9, %v1306_v0, %v1322_v1  ;;  %vm749_vm11 = vweird.f32 %v9760_v16  ;;  %vm971_vm12 = vcmp.lt.s32.totalorder %v9204_v38, 0  ;;  %v1045_v53 = vsub.s32 4294967266, %v9870_v21 }
 0x12a   : > { %v7592_v10 = vmin.u32 %v1139_v9, %v9857_v13  ;;  %v1325_v14 = vsel %vm1313_vm7, %v9881_v56, %v1306_v0  ;;  %v1327_v40 = vsel %vm1315_vm9, %v1309_v35, %v1326_v45  ;;  %vm857_vm8 = vcmp.eq.s32.totalorder %v9802_v36, 0  ;;  %v8168_v11 = vpop.eup %8167 }
 0x12b   : > { %vm860_vm13 = vcmp.eq.s32.totalorder %v9802_v36, 2  ;;  %v9920_v55 = vadd.s32 %v1236_v37, %v1232_v25  ;;  %v9922_v8 = vshll.u32 %v1289_v24, 8  ;;  %v1395_v3 = vadd.s32 1, %v7603_v20 }
 0x12c   : > { %v755_v42 = vsel %vm753_vm1, %v8162_v54, %v754_v31  ;;  %v758_v29 = vsel %vm756_vm2, %v757_v49, %v8164_v47  ;;  %v1324_v26 = vsel %vm1314_vm10, %v1321_v17, %v1323_v23  ;;  %v1492_v35 = vand.u32 2139095040, %v9900_v6 }
 0x12d   : > { %v949_v9 = vxor.u32 2147483648, %v948_v7  ;;  %v954_v1 = vsel %vm9864_vm4, 0, %v952_v57  ;;  %v18388_v25 = vand.u32 2147483647, %v9204_v38  ;;  %v1025_v54 = vadd.s32 %v9505_v4, %v9518_v39 }
 0x12e   : > { %v1328_v47 = vsel %vm1314_vm10, %v1325_v14, %v1327_v40  ;;  %v1041_v45 = vsub.s32 32, %v9870_v21  ;;  %v1046_v20 = vadd.s32 127, %v1045_v53  ;;  %v1055_v31 = vsub.s32 4, %v9647_v46 }
 0x12f   : > { %vm9935_vm15 = vcmp.le.f32.partialorder %v18388_v25, 0.7853982  ;;  %v1141_v49 = vclz %v7592_v10  ;;  %v1238_v57 = vadd.s32 536870912, %v9920_v55  ;;  %vm1396_vm14 = vcmp.gt.s32.totalorder %v1395_v3, 0 }
 0x130   : > { %v9947_v37 = vmul.u32.u64.low %v9922_v8, %v1324_v26  ;;  %v9948_v17 = vmul.u32.u64.high %v9922_v8, %v1324_v26, %v9947_v37  ;;  %v1297_v4 = vshrl.u32 %v18204_v22, %v9800_v52  ;;  %v1493_v14 = vshrl.u32 %v1492_v35, 23 }
 0x131   : > { %v9954_v39 = vmul.u32.u64.low %v9922_v8, %v1328_v47  ;;  %v9955_v23 = vmul.u32.u64.high %v9922_v8, %v1328_v47, %v9954_v39  ;;  %v759_v53 = vsel %vm752_vm6, %v755_v42, %v758_v29  ;;  %v861_v10 = vxor.u32 2147483648, %v9875_v30 }
 0x132   : > { %v958_v40 = vadd.s32 3, %v954_v1  ;;  %v1318_v26 = vsel %vm1316_vm3, %v1306_v0, 2102212464  ;;  %v858_v25 = vxor.u32 2147483648, %v8168_v11  ;;  %v950_v12 = vsel %vm867_vm0, %v949_v9, %v948_v7 }
 0x133   : > { %v7593_v44 = vadd.s32 4294967294, %v1141_v49  ;;  %v1397_v52 = vsel %vm1396_vm14, %v1395_v3, 0  ;;  %v1042_v47 = vshll.u32 %v9709_v41, %v9870_v21  ;;  %v1043_v39 = vshrl.u32 %v1025_v54, %v1041_v45 }
 0x134   : > { %v1056_v33 = vsel %vm971_vm12, %v1055_v31, %v9647_v46  ;;  %v9969_v42 = vshrl.u32 %v1238_v57, 30  ;;  %v1047_v29 = vshll.u32 %v1046_v20, 23  ;;  %v1317_v0 = vsel %vm1313_vm7, %v1297_v4, %v9879_v51  ;;  %v10004_v31 = vld [vmem:[%s8726_s8 + $0x68] sm:$0xff] }
 0x135   : > { %v1319_v7 = vsel %vm1315_vm9, %v9881_v56, %v1318_v26  ;;  %v7607_v3 = vadd.s32 4294967169, %v1493_v14  ;;  %v9979_v41 = vsel %vm749_vm11, nan, %v759_v53  ;;  %vm856_vm0 = vcmp.lt.s32.totalorder %v9802_v36, 2  ;;  %18393 = vst [vmem:[#allocation21_spill] sm:$0xff] %v10004_v31 }
 0x136   : > { %18391 = vst [vmem:[#allocation19_spill] sm:$0xff] %v9969_v42  ;;  %18392 = vst [vmem:[#allocation20_spill] sm:$0xff] %v9979_v41  ;;  %v862_v46 = vsel %vm860_vm13, %v861_v10, %v8168_v11  ;;  %v1399_v21 = vand.u32 31, %v1397_v52  ;;  %v859_v35 = vsel %vm857_vm8, %v9875_v30, %v858_v25  ;;  %v953_v51 = vsel %vm9864_vm4, %v9831_v2, %v950_v12 }
 0x137   : > { %v1058_v16 = vsel %vm9935_vm15, 0, %v1056_v33  ;;  %vm7594_vm1 = vcmp.lt.s32.totalorder %v7593_v44, 0  ;;  %v1044_v56 = vor.u32 %v1043_v39, %v1042_v47  ;;  %v1240_v9 = vshll.u32 %v9969_v42, 30 }
 0x138   : > { %v1320_v11 = vsel %vm1314_vm10, %v1317_v0, %v1319_v7  ;;  %v1339_v1 = vadd.s32 1, %v9948_v17  ;;  %v9996_v54 = vand.u32 3, %v958_v40  ;;  %v1048_v30 = vor.u32 4788187, %v1047_v29 }
 0x139   : > { %vm1338_vm2 = vc.u32 %v9955_v23, %v9947_v37  ;;  %v1499_v15 = vadd.s32 1, %v7607_v3  ;;  %8169 = vcosq.f32 %v953_v51  ;;  %v1144_v12 = vsel %vm7594_vm1, 0, %v7593_v44 }
 0x13a   : > { %v18203_v45 = vand.u32 2147483647, %v9808_v50  ;;  %v10001_v20 = vsub.s32 32, %v1399_v21  ;;  %v10008_v62 = vsel %vm856_vm0, %v859_v35, %v862_v46  ;;  %8171 = vsinq.f32 %v953_v51 }
 0x13b   : > { %18394 = vst [vmem:[#allocation22_spill] sm:$0xff] %v10008_v62  ;;  %v1062_v49 = vadd.s32 3, %v1058_v16  ;;  %v1336_v57 = vmul.u32 %v9922_v8, %v1320_v11  ;;  %v1051_v4 = vcvt.s32.f32 %v1044_v56  ;;  %v1129_v14 = vadd.s32 %v9652_v60, %v9660_v63 }
 0x13c   : > { %v10014_v44 = vsub.s32 %v9920_v55, %v1240_v9  ;;  %v1340_v53 = vsel %vm1338_vm2, %v1339_v1, %v9948_v17  ;;  %v1049_v10 = vand.u32 2147483647, %v1048_v30  ;;  %v1145_v40 = vsub.s32 32, %v1144_v12 }
 0x13d   : > { %v1149_v26 = vsub.s32 4294967266, %v1144_v12  ;;  %vm1500_vm3 = vcmp.gt.s32.totalorder %v1499_v15, 0  ;;  %v1392_v36 = vand.u32 8388607, %v18203_v45  ;;  %v18395_v25 = vmov 2102212464  }
 0x13e   : > { %v1411_v47 = vshll.u32 %v18395_v25, %v1399_v21  ;;  %v18396_v8 = vmov 920167782   ;;  %v1596_v33 = vand.u32 2139095040, %v10004_v31  ;;  %v10023_v60 = vadd.s32 %v1340_v53, %v1336_v57 }
 0x13f   : > { %v1412_v39 = vshrl.u32 %v18396_v8, %v10001_v20  ;;  %v10025_v63 = vshrl.u32 %v1397_v52, 5  ;;  %v1414_v55 = vshll.u32 %v18396_v8, %v1399_v21  ;;  %v1415_v17 = vshrl.u32 %v18379_v19, %v10001_v20 }
 0x140   : > { %v1243_v29 = vsub.s32 0, %v10014_v44  ;;  %v1402_v0 = vshll.u32 %v18204_v22, %v1399_v21  ;;  %v1405_v7 = vshll.u32 %v18380_v27, %v1399_v21  ;;  %v1501_v3 = vsel %vm1500_vm3, %v1499_v15, 0 }
 0x141   : > { %v1403_v46 = vshrl.u32 %v18380_v27, %v10001_v20  ;;  %v1406_v35 = vshrl.u32 %v18369_v34, %v10001_v20  ;;  %v1408_v52 = vshll.u32 %v18369_v34, %v1399_v21  ;;  %v1409_v51 = vshrl.u32 %v18395_v25, %v10001_v20 }
 0x142   : > { %v10040_v16 = vmul.f32 %v1051_v4, %v1049_v10  ;;  %v10042_v56 = vand.u32 3, %v1062_v49  ;;  %v1413_v9 = vor.u32 %v1412_v39, %v1411_v47  ;;  %v1597_v11 = vshrl.u32 %v1596_v33, 23 }
 0x143   : > { %v1342_v1 = vadd.s32 536870912, %v10023_v60  ;;  %v1416_v30 = vor.u32 %v1415_v17, %v1414_v55  ;;  %vm1420_vm4 = vcmp.lt.s32.totalorder %v10025_v63, 4  ;;  %v1503_v15 = vand.u32 31, %v1501_v3  ;;  %v10046_v57 = vpop.eup %8169 }
 0x144   : > { %v1146_v53 = vshll.u32 %v9857_v13, %v1144_v12  ;;  %v1147_v21 = vshrl.u32 %v1129_v14, %v1145_v40  ;;  %v10049_v45 = vadd.s32 127, %v1149_v26  ;;  %v10052_v4 = vmin.u32 %v1243_v29, %v10014_v44  ;;  %v10054_v49 = vpop.eup %8171 }
 0x145   : > { %v1393_v10 = vor.u32 8388608, %v1392_v36  ;;  %v1404_v47 = vor.u32 %v1403_v46, %v1402_v0  ;;  %v1407_v39 = vor.u32 %v1406_v35, %v1405_v7  ;;  %v1410_v33 = vor.u32 %v1409_v51, %v1408_v52 }
 0x146   : > { %vm1417_vm5 = vcmp.lt.s32.totalorder %v10025_v63, 1  ;;  %vm1419_vm6 = vcmp.lt.s32.totalorder %v10025_v63, 3  ;;  %v1426_v55 = vsel %vm1420_vm4, %v1413_v9, 920167782  ;;  %v7611_v13 = vadd.s32 4294967169, %v1597_v11 }
 0x147   : > { %v10061_v14 = vshrl.u32 %v1342_v1, 30  ;;  %v1430_v40 = vsel %vm1420_vm4, %v1416_v30, 1326507024  ;;  %v10065_v26 = vsub.s32 32, %v1503_v15  ;;  %v10068_v17 = vor.u32 %v1147_v21, %v1146_v53 }
 0x148   : > { %v1151_v29 = vshll.u32 %v10049_v45, 23  ;;  %v1245_v0 = vclz %v10052_v4  ;;  %vm1418_vm7 = vcmp.lt.s32.totalorder %v10025_v63, 2  ;;  %v1425_v7 = vsel %vm1417_vm5, %v1404_v47, %v1407_v39  ;;  %v10091_v4 = vld [vmem:[%s8726_s8 + $0x70] sm:$0xff] }
 0x149   : > { %18397 = vst [vmem:[#allocation23_spill] sm:$0xff] %v10061_v14  ;;  %v1427_v46 = vsel %vm1419_vm6, %v1410_v33, %v1426_v55  ;;  %v10077_v35 = vshll.u32 %v1393_v10, 8  ;;  %v1429_v52 = vsel %vm1417_vm5, %v1407_v39, %v1410_v33  ;;  %v1431_v51 = vsel %vm1419_vm6, %v1413_v9, %v1430_v40 }
 0x14a   : > { %v1603_v11 = vadd.s32 1, %v7611_v13  ;;  %v1344_v1 = vshll.u32 %v10061_v14, 30  ;;  %v1401_v30 = vshrl.u32 %v18204_v22, %v10001_v20  ;;  %v1515_v53 = vshll.u32 %v18395_v25, %v1503_v15 }
 0x14b   : > { %v1516_v21 = vshrl.u32 %v18396_v8, %v10065_v26  ;;  %v1428_v10 = vsel %vm1418_vm7, %v1425_v7, %v1427_v46  ;;  %v10095_v55 = vshrl.u32 %v1501_v3, 5  ;;  %v1518_v9 = vshll.u32 %v18396_v8, %v1503_v15 }
 0x14c   : > { %v1519_v13 = vshrl.u32 %v18379_v19, %v10065_v26  ;;  %v1432_v20 = vsel %vm1418_vm7, %v1429_v52, %v1431_v51  ;;  %v1506_v40 = vshll.u32 %v18204_v22, %v1503_v15  ;;  %v1509_v12 = vshll.u32 %v18380_v27, %v1503_v15 }
 0x14d   : > { %v1512_v36 = vshll.u32 %v18369_v34, %v1503_v15  ;;  %v1507_v45 = vshrl.u32 %v18380_v27, %v10065_v26  ;;  %v1510_v3 = vshrl.u32 %v18369_v34, %v10065_v26  ;;  %v1513_v7 = vshrl.u32 %v18395_v25, %v10065_v26 }
 0x14e   : > { %vm1604_vm9 = vcmp.gt.s32.totalorder %v1603_v11, 0  ;;  %v10112_v46 = vmul.u32.u64.low %v10077_v35, %v1428_v10  ;;  %v10113_v41 = vmul.u32.u64.high %v10077_v35, %v1428_v10, %v10112_v46  ;;  %v1517_v52 = vor.u32 %v1516_v21, %v1515_v53 }
 0x14f   : > { %v1700_v51 = vand.u32 2139095040, %v10091_v4  ;;  %v10118_v15 = vsub.s32 %v10023_v60, %v1344_v1  ;;  %v18398_v22 = vand.u32 2147483647, %v9900_v6  ;;  %v1520_v28 = vor.u32 %v1519_v13, %v1518_v9 }
 0x150   : > { %vm1524_vm10 = vcmp.lt.s32.totalorder %v10095_v55, 4  ;;  %v1422_v61 = vsel %vm1420_vm4, %v1410_v33, 2102212464  ;;  %v10126_v50 = vmul.u32.u64.low %v10077_v35, %v1432_v20  ;;  %v10127_v10 = vmul.u32.u64.high %v10077_v35, %v1432_v20, %v10126_v50 }
 0x151   : > { %v1496_v59 = vand.u32 8388607, %v18398_v22  ;;  %v1605_v32 = vsel %vm1604_vm9, %v1603_v11, 0  ;;  %v1421_v53 = vsel %vm1417_vm5, %v1401_v30, %v1404_v47  ;;  %v10131_v21 = vor.u32 %v1507_v45, %v1506_v40 }
 0x152   : > { %v10133_v60 = vor.u32 %v1510_v3, %v1509_v12  ;;  %v1514_v1 = vor.u32 %v1513_v7, %v1512_v36  ;;  %vm1521_vm11 = vcmp.lt.s32.totalorder %v10095_v55, 1  ;;  %vm1523_vm8 = vcmp.lt.s32.totalorder %v10095_v55, 3  ;;  %v10215_v12 = vld [vmem:[%s8726_s8 + $0x38] sm:$0xff] }
 0x153   : > { %v1530_v22 = vsel %vm1524_vm10, %v1517_v52, 920167782  ;;  %v1701_v33 = vshrl.u32 %v1700_v51, 23  ;;  %v1423_v50 = vsel %vm1419_vm6, %v1407_v39, %v1422_v61  ;;  %v1497_v11 = vor.u32 8388608, %v1496_v59 }
 0x154   : > { %v1534_v47 = vsel %vm1524_vm10, %v1520_v28, 1326507024  ;;  %v1607_v45 = vand.u32 31, %v1605_v32  ;;  %v1152_v30 = vor.u32 4788187, %v1151_v29  ;;  %v7597_v36 = vadd.s32 4294967294, %v1245_v0 }
 0x155   : > { %v1347_v9 = vsub.s32 0, %v10118_v15  ;;  %vm1522_vm13 = vcmp.lt.s32.totalorder %v10095_v55, 2  ;;  %v1529_v61 = vsel %vm1521_vm11, %v10131_v21, %v10133_v60  ;;  %v1531_v59 = vsel %vm1523_vm8, %v1514_v1, %v1530_v22 }
 0x156   : > { %v1424_v28 = vsel %vm1418_vm7, %v1421_v53, %v1423_v50  ;;  %v1533_v39 = vsel %vm1521_vm11, %v10133_v60, %v1514_v1  ;;  %v1535_v29 = vsel %vm1523_vm8, %v1517_v52, %v1534_v47  ;;  %v7615_v0 = vadd.s32 4294967169, %v1701_v33 }
 0x157   : > { %v18399_v20 = vxor.u32 2147483648, %v10040_v16  ;;  %v1155_v3 = vcvt.s32.f32 %v10068_v17  ;;  %v10166_v7 = vshll.u32 %v1497_v11, 8  ;;  %v10168_v63 = vsub.s32 32, %v1607_v45 }
 0x158   : > { %v1153_v51 = vand.u32 2147483647, %v1152_v30  ;;  %vm7598_vm14 = vcmp.lt.s32.totalorder %v7597_v36, 0  ;;  %v7600_v53 = vmin.u32 %v1347_v9, %v10118_v15  ;;  %v1532_v52 = vsel %vm1522_vm13, %v1529_v61, %v1531_v59 }
 0x159   : > { %v1054_v40 = vsel %vm971_vm12, %v18399_v20, %v10040_v16  ;;  %v1440_v22 = vmul.u32 %v10077_v35, %v1424_v28  ;;  %v1443_v33 = vadd.s32 1, %v10113_v41  ;;  %v1536_v38 = vsel %vm1522_vm13, %v1533_v39, %v1535_v29 }
 0x15a   : > { %v18216_v16 = vand.u32 2147483647, %v10004_v31  ;;  %vm1442_vm12 = vc.u32 %v10127_v10, %v10112_v46  ;;  %v18400_v17 = vmov 683565275   ;;  %v1526_v11 = vsel %vm1524_vm10, %v1514_v1, 2102212464 }
 0x15b   : > { %v1505_v50 = vshrl.u32 %v18400_v17, %v10065_v26  ;;  %v1707_v47 = vadd.s32 1, %v7615_v0  ;;  %v10185_v35 = vmul.u32.u64.low %v10166_v7, %v1532_v52  ;;  %v10186_v30 = vmul.u32.u64.high %v10166_v7, %v1532_v52, %v10185_v35  ;;  %v10205_v52 = vld [vmem:[%s8726_s8 + $0x40] sm:$0xff] }
 0x15c   : > { %v1619_v9 = vshll.u32 %v18395_v25, %v1607_v45  ;;  %v1620_v61 = vshrl.u32 %v18396_v8, %v10168_v63  ;;  %v10193_v59 = vmul.u32.u64.low %v10166_v7, %v1536_v38  ;;  %v10194_v28 = vmul.u32.u64.high %v10166_v7, %v1536_v38, %v10193_v59 }
 0x15d   : > { %18401 = vst [vmem:[#allocation24_spill] sm:$0xff] %v10185_v35  ;;  %v10196_v26 = vshrl.u32 %v1605_v32, 5  ;;  %v1610_v1 = vshll.u32 %v18400_v17, %v1607_v45  ;;  %v1613_v39 = vshll.u32 %v18380_v27, %v1607_v45  ;;  %v1616_v29 = vshll.u32 %v18369_v34, %v1607_v45 }
 0x15e   : > { %v1622_v0 = vshll.u32 %v18396_v8, %v1607_v45  ;;  %v1623_v20 = vshrl.u32 %v18379_v19, %v10168_v63  ;;  %vm1075_vm0 = vcmp.lt.s32.totalorder %v10205_v52, 0  ;;  %v1611_v38 = vshrl.u32 %v18380_v27, %v10168_v63 }
 0x15f   : > { %v1614_v32 = vshrl.u32 %v18369_v34, %v10168_v63  ;;  %v1617_v59 = vshrl.u32 %v18395_v25, %v10168_v63  ;;  %vm1708_vm1 = vcmp.gt.s32.totalorder %v1707_v47, 0  ;;  %v1057_v45 = vsel %vm9935_vm15, %v10215_v12, %v1054_v40 }
 0x160   : > { %v1444_v13 = vsel %vm1442_vm12, %v1443_v33, %v10113_v41  ;;  %v1600_v6 = vand.u32 8388607, %v18216_v16  ;;  %v1621_v62 = vor.u32 %v1620_v61, %v1619_v9  ;;  %v1156_v14 = vmul.f32 %v1155_v3, %v1153_v51 }
 0x161   : > { %v10227_v2 = vsel %vm7598_vm14, 0, %v7597_v36  ;;  %v1349_v42 = vclz %v7600_v53  ;;  %vm1628_vm2 = vcmp.lt.s32.totalorder %v10196_v26, 4  ;;  %v1525_v24 = vsel %vm1521_vm11, %v1505_v50, %v10131_v21 }
 0x162   : > { %v1527_v40 = vsel %vm1523_vm8, %v10133_v60, %v1526_v11  ;;  %v1624_v41 = vor.u32 %v1623_v20, %v1622_v0  ;;  %v1709_v33 = vsel %vm1708_vm1, %v1707_v47, 0  ;;  %v10236_v31 = vadd.s32 %v1444_v13, %v1440_v22 }
 0x163   : > { %v10238_v9 = vor.u32 %v1611_v38, %v1610_v1  ;;  %v10240_v3 = vor.u32 %v1614_v32, %v1613_v39  ;;  %v1618_v36 = vor.u32 %v1617_v59, %v1616_v29  ;;  %v1601_v51 = vor.u32 8388608, %v1600_v6 }
 0x164   : > { %vm1625_vm15 = vcmp.lt.s32.totalorder %v10196_v26, 1  ;;  %vm1627_vm3 = vcmp.lt.s32.totalorder %v10196_v26, 3  ;;  %v1634_v21 = vsel %vm1628_vm2, %v1621_v62, 920167782  ;;  %v1157_v53 = vxor.u32 2147483648, %v1156_v14 }
 0x165   : > { %v1528_v60 = vsel %vm1522_vm13, %v1525_v24, %v1527_v40  ;;  %v1547_v13 = vadd.s32 1, %v10186_v30  ;;  %v1711_v22 = vand.u32 31, %v1709_v33  ;;  %v18402_v50 = vand.u32 2147483647, %v9334_v58 }
 0x166   : > { %v1253_v6 = vsub.s32 4294967266, %v10227_v2  ;;  %v7601_v47 = vadd.s32 4294967294, %v1349_v42  ;;  %vm1546_vm5 = vc.u32 %v10194_v28, %v10185_v35  ;;  %v1638_v61 = vsel %vm1628_vm2, %v1624_v41, 1326507024 }
 0x167   : > { %vm10251_vm4 = vcmp.le.f32.partialorder %v18402_v50, 0.7853982  ;;  %v1446_v55 = vadd.s32 536870912, %v10236_v31  ;;  %vm1626_vm6 = vcmp.lt.s32.totalorder %v10196_v26, 2  ;;  %v1633_v58 = vsel %vm1625_vm15, %v10238_v9, %v10240_v3 }
 0x168   : > { %v1635_v1 = vsel %vm1627_vm3, %v1618_v36, %v1634_v21  ;;  %8173 = vcosq.f32 %v1057_v45  ;;  %v18405_v42 = vsub.s32 4, %v9796_v48  ;;  %v1544_v29 = vmul.u32 %v10166_v7, %v1528_v60 }
 0x169   : > { %v10276_v0 = vshll.u32 %v1601_v51, 8  ;;  %v1548_v20 = vsel %vm1546_vm5, %v1547_v13, %v10186_v30  ;;  %v1637_v38 = vsel %vm1625_vm15, %v10240_v3, %v1618_v36  ;;  %v1639_v32 = vsel %vm1627_vm3, %v1621_v62, %v1638_v61 }
 0x16a   : > { %v10273_v39 = vsel %vm1075_vm0, %v18405_v42, %v9796_v48  ;;  %v10284_v59 = vsub.s32 32, %v1711_v22  ;;  %8175 = vsinq.f32 %v1057_v45  ;;  %v1158_v48 = vsel %vm1075_vm0, %v1157_v53, %v1156_v14 }
 0x16b   : > { %v1233_v7 = vadd.s32 %v9815_v5, %v9823_v43  ;;  %v1636_v24 = vsel %vm1626_vm6, %v1633_v58, %v1635_v1  ;;  %v1249_v30 = vsub.s32 32, %v10227_v2  ;;  %v10293_v40 = vadd.s32 127, %v1253_v6 }
 0x16c   : > { %vm7602_vm7 = vcmp.lt.s32.totalorder %v7601_v47, 0  ;;  %v10295_v41 = vshrl.u32 %v1446_v55, 30  ;;  %v10297_v62 = vadd.s32 %v1548_v20, %v1544_v29  ;;  %v1609_v45 = vshrl.u32 %v18400_v17, %v10168_v63 }
 0x16d   : > { %v1640_v14 = vsel %vm1626_vm6, %v1637_v38, %v1639_v32  ;;  %v18218_v5 = vand.u32 2147483647, %v10091_v4  ;;  %v10305_v43 = vmul.u32.u64.low %v10276_v0, %v1636_v24  ;;  %v10306_v51 = vmul.u32.u64.high %v10276_v0, %v1636_v24, %v10305_v43 }
 0x16e   : > { %v1723_v21 = vshll.u32 %v18395_v25, %v1711_v22  ;;  %v1724_v53 = vshrl.u32 %v18396_v8, %v10284_v59  ;;  %v1630_v60 = vsel %vm1628_vm2, %v1618_v36, 2102212464  ;;  %v10314_v13 = vshrl.u32 %v1709_v33, 5 }
 0x16f   : > { %v1726_v63 = vshll.u32 %v18396_v8, %v1711_v22  ;;  %v1727_v50 = vshrl.u32 %v18379_v19, %v10284_v59  ;;  %v10320_v6 = vmul.u32.u64.low %v10276_v0, %v1640_v14  ;;  %v10321_v61 = vmul.u32.u64.high %v10276_v0, %v1640_v14, %v10320_v6 }
 0x170   : > { %v1714_v55 = vshll.u32 %v18400_v17, %v1711_v22  ;;  %v1717_v58 = vshll.u32 %v18380_v27, %v1711_v22  ;;  %v1715_v1 = vshrl.u32 %v18380_v27, %v10284_v59  ;;  %v1718_v33 = vshrl.u32 %v18369_v34, %v10284_v59 }
 0x171   : > { %v1720_v36 = vshll.u32 %v18369_v34, %v1711_v22  ;;  %v1721_v42 = vshrl.u32 %v18395_v25, %v10284_v59  ;;  %v1161_v29 = vsel %vm10251_vm4, %v10205_v52, %v1158_v48  ;;  %v1250_v20 = vshll.u32 %v10014_v44, %v10227_v2 }
 0x172   : > { %v1448_v38 = vshll.u32 %v10295_v41, 30  ;;  %v1725_v32 = vor.u32 %v1724_v53, %v1723_v21  ;;  %v10338_v24 = vpop.eup %8173  ;;  %v1251_v14 = vshrl.u32 %v1233_v7, %v1249_v30  ;;  %v1704_v22 = vand.u32 8388607, %v18218_v5  ;;  %v10356_v7 = vld [vmem:[%s8726_s8 + $0x78] sm:$0xff] }
 0x173   : > { %v1728_v6 = vor.u32 %v1727_v50, %v1726_v63  ;;  %vm1732_vm9 = vcmp.lt.s32.totalorder %v10314_v13, 4  ;;  %v1255_v16 = vshll.u32 %v10293_v40, 23  ;;  %v10345_v35 = vsel %vm7602_vm7, 0, %v7601_v47 }
 0x174   : > { %v1629_v2 = vsel %vm1625_vm15, %v1609_v45, %v10238_v9  ;;  %v1631_v44 = vsel %vm1627_vm3, %v10240_v3, %v1630_v60  ;;  %v10353_v48 = vpop.eup %8175  ;;  %v1550_v30 = vadd.s32 536870912, %v10297_v62  ;;  %v10359_v21 = vor.u32 %v1715_v1, %v1714_v55 }
 0x175   : > { %v10361_v40 = vor.u32 %v1718_v33, %v1717_v58  ;;  %v1722_v47 = vor.u32 %v1721_v42, %v1720_v36  ;;  %v10364_v53 = vsub.s32 %v10236_v31, %v1448_v38  ;;  %vm1729_vm10 = vcmp.lt.s32.totalorder %v10314_v13, 1 }
 0x176   : > { %vm1731_vm11 = vcmp.lt.s32.totalorder %v10314_v13, 3  ;;  %v1738_v9 = vsel %vm1732_vm9, %v1725_v32, 920167782  ;;  %v1632_v3 = vsel %vm1626_vm6, %v1629_v2, %v1631_v44  ;;  %v1651_v45 = vadd.s32 1, %v10306_v51 }
 0x177   : > { %v1705_v60 = vor.u32 8388608, %v1704_v22  ;;  %v1742_v63 = vsel %vm1732_vm9, %v1728_v6, 1326507024  ;;  %vm961_vm8 = vcmp.eq.s32.totalorder %v9996_v54, 0  ;;  %vm964_vm13 = vcmp.eq.s32.totalorder %v9996_v54, 2 }
 0x178   : > { %v10377_v31 = vor.u32 %v1251_v14, %v1250_v20  ;;  %v1357_v50 = vsub.s32 4294967266, %v10345_v35  ;;  %vm1650_vm14 = vc.u32 %v10321_v61, %v10305_v43  ;;  %v1804_v26 = vand.u32 2139095040, %v10356_v7 }
 0x179   : > { %v10383_v55 = vshrl.u32 %v1550_v30, 30  ;;  %vm1730_vm12 = vcmp.lt.s32.totalorder %v10314_v13, 2  ;;  %v1737_v58 = vsel %vm1729_vm10, %v10359_v21, %v10361_v40  ;;  %v1739_v1 = vsel %vm1731_vm11, %v1722_v47, %v1738_v9 }
 0x17a   : > { %v1451_v33 = vsub.s32 0, %v10364_v53  ;;  %v1648_v36 = vmul.u32 %v10276_v0, %v1632_v3  ;;  %v1741_v42 = vsel %vm1729_vm10, %v10361_v40, %v1722_v47  ;;  %v1743_v20 = vsel %vm1731_vm11, %v1725_v32, %v1742_v63 }
 0x17b   : > { %vm960_vm0 = vcmp.lt.s32.totalorder %v9996_v54, 2  ;;  %v1162_v38 = vsel %vm10251_vm4, 0, %v10273_v39  ;;  %v1256_v14 = vor.u32 4788187, %v1255_v16  ;;  %v1652_v22 = vsel %vm1650_vm14, %v1651_v45, %v10306_v51 }
 0x17c   : > { %v10404_v6 = vshll.u32 %v1705_v60, 8  ;;  %vm1065_vm1 = vcmp.eq.s32.totalorder %v10042_v56, 0  ;;  %8177 = vcosq.f32 %v1161_v29  ;;  %v1337_v0 = vadd.s32 %v9947_v37, %v9955_v23  ;;  %v10420_v37 = vld [vmem:[%s8726_s8 + $0x48] sm:$0xff] }
 0x17d   : > { %v1740_v32 = vsel %vm1730_vm12, %v1737_v58, %v1739_v1  ;;  %v1805_v2 = vshrl.u32 %v1804_v26, 23  ;;  %v1353_v44 = vsub.s32 32, %v10345_v35  ;;  %v1358_v11 = vadd.s32 127, %v1357_v50 }
 0x17e   : > { %v1552_v16 = vshll.u32 %v10383_v55, 30  ;;  %v1744_v39 = vsel %vm1730_vm12, %v1741_v42, %v1743_v20  ;;  %8179 = vsinq.f32 %v1161_v29  ;;  %v1259_v51 = vcvt.s32.f32 %v10377_v31 }
 0x17f   : > { %v7604_v30 = vmin.u32 %v1451_v33, %v10364_v53  ;;  %v10417_v9 = vadd.s32 %v1652_v22, %v1648_v36  ;;  %vm1179_vm2 = vcmp.lt.s32.totalorder %v10420_v37, 0  ;;  %v1257_v23 = vand.u32 2147483647, %v1256_v14  ;;  %v10463_v22 = vld [vmem:[%s8726_s8 + $0x50] sm:$0xff] }
 0x180   : > { %v1354_v3 = vshll.u32 %v10118_v15, %v10345_v35  ;;  %v10426_v45 = vmul.u32.u64.low %v10404_v6, %v1740_v32  ;;  %v10427_v60 = vmul.u32.u64.high %v10404_v6, %v1740_v32, %v10426_v45  ;;  %v1713_v29 = vshrl.u32 %v18400_v17, %v10284_v59  ;;  %v18411_v32 = vld [vmem:[#allocation19_spill] sm:$0xff] }
 0x181   : > { %v10433_v63 = vmul.u32.u64.low %v10404_v6, %v1744_v39  ;;  %v10434_v31 = vmul.u32.u64.high %v10404_v6, %v1744_v39, %v10433_v63  ;;  %v7619_v50 = vadd.s32 4294967169, %v1805_v2  ;;  %vm1064_vm15 = vcmp.lt.s32.totalorder %v10042_v56, 2 }
 0x182   : > { %v1355_v26 = vshrl.u32 %v1337_v0, %v1353_v44  ;;  %v1359_v58 = vshll.u32 %v1358_v11, 23  ;;  %v10438_v15 = vsub.s32 %v10297_v62, %v1552_v16  ;;  %v1734_v35 = vsel %vm1732_vm9, %v1722_v47, 2102212464  ;;  %v8412_v0 = vld [vmem:[%s8726_s8 + $0x28] sm:$0xff] }
 0x183   : > { %vm1068_vm3 = vcmp.eq.s32.totalorder %v10042_v56, 2  ;;  %v1166_v59 = vadd.s32 3, %v1162_v38  ;;  %v18406_v1 = vand.u32 2147483647, %v9494_v18  ;;  %v1453_v36 = vclz %v7604_v30 }
 0x184   : > { %v1654_v42 = vadd.s32 536870912, %v10417_v9  ;;  %v18409_v20 = vxor.u32 2147483648, %v10054_v49  ;;  %v18410_v47 = vxor.u32 2147483648, %v10046_v57  ;;  %v1066_v18 = vxor.u32 2147483648, %v10353_v48 }
 0x185   : > { %vm10445_vm4 = vcmp.le.f32.partialorder %v18406_v1, 0.7853982  ;;  %v1069_v14 = vxor.u32 2147483648, %v10338_v24  ;;  %vm1283_vm5 = vcmp.lt.s32.totalorder %v10463_v22, 0  ;;  %vm853_vm6 = vweird.f32 %v8412_v0  ;;  %v18412_v1 = vld [vmem:[#allocation17_spill] sm:$0xff] }
 0x186   : > { %v963_v62 = vsel %vm961_vm8, %v10046_v57, %v18409_v20  ;;  %v966_v38 = vsel %vm964_vm13, %v18410_v47, %v10054_v49  ;;  %v1263_v2 = vsub.s32 4, %v18411_v32  ;;  %v1733_v44 = vsel %vm1729_vm10, %v1713_v29, %v10359_v21  ;;  %v8178_v63 = vpop.eup %8177 }
 0x187   : > { %v1735_v57 = vsel %vm1731_vm11, %v10361_v40, %v1734_v35  ;;  %v1811_v49 = vadd.s32 1, %v7619_v50  ;;  %v1260_v11 = vmul.f32 %v1259_v51, %v1257_v23  ;;  %v1356_v16 = vor.u32 %v1355_v26, %v1354_v3  ;;  %v18413_v26 = vld [vmem:[#allocation23_spill] sm:$0xff] }
 0x188   : > { %v1360_v39 = vor.u32 4788187, %v1359_v58  ;;  %v1555_v30 = vsub.s32 0, %v10438_v15  ;;  %vm957_vm7 = vweird.f32 %v18412_v1  ;;  %v967_v20 = vsel %vm960_vm0, %v963_v62, %v966_v38  ;;  %v8180_v3 = vpop.eup %8179 }
 0x189   : > { %vm1061_vm9 = vweird.f32 %v10215_v12  ;;  %v1167_v47 = vand.u32 3, %v1166_v59  ;;  %v7605_v21 = vadd.s32 4294967294, %v1453_v36  ;;  %v10479_v29 = vshrl.u32 %v1654_v42, 30 }
 0x18a   : > { %v1067_v40 = vsel %vm1065_vm1, %v10338_v24, %v1066_v18  ;;  %v1070_v51 = vsel %vm1068_vm3, %v1069_v14, %v10353_v48  ;;  %v1736_v23 = vsel %vm1730_vm12, %v1733_v44, %v1735_v57  ;;  %v1755_v54 = vadd.s32 1, %v10427_v60 }
 0x18b   : > { %v1264_v50 = vsel %vm1179_vm2, %v1263_v2, %v18411_v32  ;;  %v1367_v58 = vsub.s32 4, %v18413_v26  ;;  %vm1754_vm10 = vc.u32 %v10434_v31, %v10426_v45  ;;  %vm1812_vm11 = vcmp.gt.s32.totalorder %v1811_v49, 0 }
 0x18c   : > { %v1261_v24 = vxor.u32 2147483648, %v1260_v11  ;;  %v1361_v35 = vand.u32 2147483647, %v1360_v39  ;;  %v1363_v59 = vcvt.s32.f32 %v1356_v16  ;;  %v7608_v48 = vmin.u32 %v1555_v30, %v10438_v15  ;;  %v18414_v30 = vld [vmem:[#allocation22_spill] sm:$0xff] }
 0x18d   : > { %vm1169_vm8 = vcmp.eq.s32.totalorder %v1167_v47, 0  ;;  %vm7606_vm13 = vcmp.lt.s32.totalorder %v7605_v21, 0  ;;  %v1656_v13 = vshll.u32 %v10479_v29, 30  ;;  %v1752_v36 = vmul.u32 %v10404_v6, %v1736_v23  ;;  %v18416_v23 = vld [vmem:[#allocation12_spill] sm:$0xff] }
 0x18e   : > { %v1173_v42 = vxor.u32 2147483648, %v8178_v63  ;;  %v1266_v62 = vsel %vm10445_vm4, 0, %v1264_v50  ;;  %v1756_v38 = vsel %vm1754_vm10, %v1755_v54, %v10427_v60  ;;  %v1813_v18 = vsel %vm1812_vm11, %v1811_v49, 0 }
 0x18f   : > { %v1071_v14 = vsel %vm1064_vm15, %v1067_v40, %v1070_v51  ;;  %v1170_v32 = vxor.u32 2147483648, %v8180_v3  ;;  %vm1172_vm14 = vcmp.eq.s32.totalorder %v1167_v47, 2  ;;  %v1368_v2 = vsel %vm1283_vm5, %v1367_v58, %v18413_v26 }
 0x190   : > { %v1262_v6 = vsel %vm1179_vm2, %v1261_v24, %v1260_v11  ;;  %v1364_v44 = vmul.f32 %v1363_v59, %v1361_v35  ;;  %v10509_v57 = vsel %vm7606_vm13, 0, %v7605_v21  ;;  %v1557_v16 = vclz %v7608_v48  ;;  %v10527_v21 = vld [vmem:[%s8726_s8 + $0x80] sm:$0xff] }
 0x191   : > { %v1270_v39 = vadd.s32 3, %v1266_v62  ;;  %v10512_v60 = vsub.s32 %v10417_v9, %v1656_v13  ;;  %v10514_v56 = vadd.s32 %v1756_v38, %v1752_v36  ;;  %v1815_v49 = vand.u32 31, %v1813_v18 }
 0x192   : > { %v10518_v40 = vsel %vm853_vm6, nan, %v18414_v30  ;;  %vm1168_vm12 = vcmp.lt.s32.totalorder %v1167_v47, 2  ;;  %v1174_v51 = vsel %vm1172_vm14, %v1173_v42, %v8180_v3  ;;  %v18417_v54 = vand.u32 2147483647, %v18416_v23 }
 0x193   : > { %18415 = vst [vmem:[#allocation19_spill] sm:$0xff] %v10518_v40  ;;  %v1171_v9 = vsel %vm1169_vm8, %v8178_v63, %v1170_v32  ;;  %v1265_v50 = vsel %vm10445_vm4, %v10420_v37, %v1262_v6  ;;  %v1461_v26 = vsub.s32 4294967266, %v10509_v57  ;;  %v10538_v3 = vsel %vm957_vm7, nan, %v967_v20 }
 0x194   : > { %vm10522_vm0 = vcmp.le.f32.partialorder %v18417_v54, 0.7853982  ;;  %18420 = vst [vmem:[#allocation17_spill] sm:$0xff] %v10538_v3  ;;  %v10542_v58 = vsel %vm1061_vm9, nan, %v1071_v14  ;;  %v1365_v24 = vxor.u32 2147483648, %v1364_v44  ;;  %v7609_v35 = vadd.s32 4294967294, %v1557_v16 }
 0x195   : > { %v1370_v0 = vsel %vm10522_vm0, 0, %v1368_v2  ;;  %18421 = vst [vmem:[#allocation23_spill] sm:$0xff] %v10542_v58  ;;  %v10544_v63 = vand.u32 3, %v1270_v39  ;;  %v1659_v33 = vsub.s32 0, %v10512_v60  ;;  %v1758_v59 = vadd.s32 536870912, %v10514_v56 }
 0x196   : > { %v10548_v48 = vsub.s32 32, %v1815_v49  ;;  %v10551_v13 = vsel %vm1168_vm12, %v1171_v9, %v1174_v51  ;;  %8181 = vcosq.f32 %v1265_v50  ;;  %v10553_v1 = vadd.s32 3, %v1370_v0 }
 0x197   : > { %v1908_v12 = vand.u32 2139095040, %v10527_v21  ;;  %8183 = vsinq.f32 %v1265_v50  ;;  %v1441_v20 = vadd.s32 %v10112_v46, %v10127_v10  ;;  %v1457_v36 = vsub.s32 32, %v10509_v57  ;;  %v10571_v10 = vld [vmem:[%s8726_s8 + $0x58] sm:$0xff] }
 0x198   : > { %v1462_v42 = vadd.s32 127, %v1461_v26  ;;  %v1366_v62 = vsel %vm1283_vm5, %v1365_v24, %v1364_v44  ;;  %v1458_v47 = vshll.u32 %v10364_v53, %v10509_v57  ;;  %vm7610_vm1 = vcmp.lt.s32.totalorder %v7609_v35, 0 }
 0x199   : > { %v18219_v38 = vand.u32 2147483647, %v10356_v7  ;;  %v7612_v14 = vmin.u32 %v1659_v33, %v10512_v60  ;;  %v10565_v32 = vshrl.u32 %v1758_v59, 30  ;;  %v1827_v2 = vshll.u32 %v18395_v25, %v1815_v49 }
 0x19a   : > { %v1828_v46 = vshrl.u32 %v18396_v8, %v10548_v48  ;;  %vm1387_vm2 = vcmp.lt.s32.totalorder %v10571_v10, 0  ;;  %v10574_v6 = vshrl.u32 %v1813_v18, 5  ;;  %v1830_v53 = vshll.u32 %v18396_v8, %v1815_v49 }
 0x19b   : > { %v1831_v44 = vshrl.u32 %v18379_v19, %v10548_v48  ;;  %v1909_v57 = vshrl.u32 %v1908_v12, 23  ;;  %v1459_v16 = vshrl.u32 %v1441_v20, %v1457_v36  ;;  %v1463_v39 = vshll.u32 %v1462_v42, 23  ;;  %v18422_v20 = vld [vmem:[#allocation16_spill] sm:$0xff] }
 0x19c   : > { %v1818_v30 = vshll.u32 %v18400_v17, %v1815_v49  ;;  %v1821_v51 = vshll.u32 %v18380_v27, %v1815_v49  ;;  %v1819_v23 = vshrl.u32 %v18380_v27, %v10548_v48  ;;  %v1822_v54 = vshrl.u32 %v18369_v34, %v10548_v48 }
 0x19d   : > { %v1824_v18 = vshll.u32 %v18369_v34, %v1815_v49  ;;  %v1825_v9 = vshrl.u32 %v18395_v25, %v10548_v48  ;;  %v10589_v50 = vsel %vm7610_vm1, 0, %v7609_v35  ;;  %v1760_v0 = vshll.u32 %v10565_v32, 30 }
 0x19e   : > { %v1808_v26 = vand.u32 8388607, %v18219_v38  ;;  %v1829_v24 = vor.u32 %v1828_v46, %v1827_v2  ;;  %v1661_v33 = vclz %v7612_v14  ;;  %v1832_v59 = vor.u32 %v1831_v44, %v1830_v53 }
 0x19f   : > { %vm1836_vm15 = vcmp.lt.s32.totalorder %v10574_v6, 4  ;;  %v7623_v12 = vadd.s32 4294967169, %v1909_v57  ;;  %v1369_v49 = vsel %vm10522_vm0, %v10463_v22, %v1366_v62  ;;  %v18423_v36 = vand.u32 2147483647, %v18422_v20 }
 0x1a0   : > { %v1460_v42 = vor.u32 %v1459_v16, %v1458_v47  ;;  %v1464_v5 = vor.u32 4788187, %v1463_v39  ;;  %v1471_v38 = vsub.s32 4, %v10295_v41  ;;  %v8182_v2 = vpop.eup %8181  ;;  %v1565_v14 = vsub.s32 4294967266, %v10589_v50 }
 0x1a1   : > { %vm10600_vm3 = vcmp.le.f32.partialorder %v18423_v36, 0.7853982  ;;  %v1820_v46 = vor.u32 %v1819_v23, %v1818_v30  ;;  %v1823_v53 = vor.u32 %v1822_v54, %v1821_v51  ;;  %v1826_v44 = vor.u32 %v1825_v9, %v1824_v18  ;;  %v8184_v57 = vpop.eup %8183  ;;  %v18426_v54 = vld [vmem:[#allocation24_spill] sm:$0xff] }
 0x1a2   : > { %v10607_v11 = vsub.s32 %v10514_v56, %v1760_v0  ;;  %vm1833_vm4 = vcmp.lt.s32.totalorder %v10574_v6, 1  ;;  %vm1835_vm5 = vcmp.lt.s32.totalorder %v10574_v6, 3  ;;  %v1842_v62 = vsel %vm1836_vm15, %v1829_v24, 920167782 }
 0x1a3   : > { %vm1165_vm6 = vweird.f32 %v10205_v52  ;;  %vm1273_vm7 = vcmp.eq.s32.totalorder %v10544_v63, 0  ;;  %vm1276_vm9 = vcmp.eq.s32.totalorder %v10544_v63, 2  ;;  %v7613_v47 = vadd.s32 4294967294, %v1661_v33 }
 0x1a4   : > { %v1809_v16 = vor.u32 8388608, %v1808_v26  ;;  %v1846_v39 = vsel %vm1836_vm15, %v1832_v59, 1326507024  ;;  %v1915_v56 = vadd.s32 1, %v7623_v12  ;;  %8185 = vcosq.f32 %v1369_v49 }
 0x1a5   : > { %v1465_v30 = vand.u32 2147483647, %v1464_v5  ;;  %v1467_v51 = vcvt.s32.f32 %v1460_v42  ;;  %v1472_v23 = vsel %vm1387_vm2, %v1471_v38, %v10295_v41  ;;  %v1545_v18 = vadd.s32 %v18426_v54, %v10194_v28 }
 0x1a6   : > { %vm1834_vm10 = vcmp.lt.s32.totalorder %v10574_v6, 2  ;;  %v1841_v9 = vsel %vm1833_vm4, %v1820_v46, %v1823_v53  ;;  %v1843_v0 = vsel %vm1835_vm5, %v1826_v44, %v1842_v62  ;;  %v1561_v26 = vsub.s32 32, %v10589_v50 }
 0x1a7   : > { %v1763_v5 = vsub.s32 0, %v10607_v11  ;;  %v1845_v33 = vsel %vm1833_vm4, %v1823_v53, %v1826_v44  ;;  %v1847_v41 = vsel %vm1835_vm5, %v1829_v24, %v1846_v39  ;;  %v1566_v38 = vadd.s32 127, %v1565_v14 }
 0x1a8   : > { %vm7614_vm11 = vcmp.lt.s32.totalorder %v7613_v47, 0  ;;  %v10634_v28 = vshll.u32 %v1809_v16, 8  ;;  %vm1916_vm8 = vcmp.gt.s32.totalorder %v1915_v56, 0  ;;  %v1274_v59 = vxor.u32 2147483648, %v8184_v57 }
 0x1a9   : > { %v1277_v12 = vxor.u32 2147483648, %v8182_v2  ;;  %v1468_v20 = vmul.f32 %v1467_v51, %v1465_v30  ;;  %v1844_v36 = vsel %vm1834_vm10, %v1841_v9, %v1843_v0  ;;  %8187 = vsinq.f32 %v1369_v49 }
 0x1aa   : > { %v1474_v42 = vsel %vm10600_vm3, 0, %v1472_v23  ;;  %v1562_v62 = vshll.u32 %v10438_v15, %v10589_v50  ;;  %v1848_v24 = vsel %vm1834_vm10, %v1845_v33, %v1847_v41  ;;  %v1563_v14 = vshrl.u32 %v1545_v18, %v1561_v26 }
 0x1ab   : > { %v10644_v16 = vsel %vm7614_vm11, 0, %v7613_v47  ;;  %v7616_v39 = vmin.u32 %v1763_v5, %v10607_v11  ;;  %v1917_v54 = vsel %vm1916_vm8, %v1915_v56, 0  ;;  %v1567_v30 = vshll.u32 %v1566_v38, 23 }
 0x1ac   : > { %v1817_v51 = vshrl.u32 %v18400_v17, %v10548_v48  ;;  %v10650_v49 = vmul.u32.u64.low %v10634_v28, %v1844_v36  ;;  %v10651_v9 = vmul.u32.u64.high %v10634_v28, %v1844_v36, %v10650_v49  ;;  %v1469_v23 = vxor.u32 2147483648, %v1468_v20 }
 0x1ad   : > { %v1838_v15 = vsel %vm1836_vm15, %v1826_v44, 2102212464  ;;  %v10657_v50 = vmul.u32.u64.low %v10634_v28, %v1848_v24  ;;  %v10658_v47 = vmul.u32.u64.high %v10634_v28, %v1848_v24, %v10657_v50  ;;  %vm1272_vm13 = vcmp.lt.s32.totalorder %v10544_v63, 2 }
 0x1ae   : > { %v1478_v56 = vadd.s32 3, %v1474_v42  ;;  %v1669_v18 = vsub.s32 4294967266, %v10644_v16  ;;  %v1919_v48 = vand.u32 31, %v1917_v54  ;;  %v10662_v0 = vpop.eup %8185  ;;  %v10667_v26 = vsel %vm1165_vm6, nan, %v10551_v13  ;;  %v10683_v13 = vld [vmem:[%s8726_s8 + $0x60] sm:$0xff] }
 0x1af   : > { %18427 = vst [vmem:[#allocation22_spill] sm:$0xff] %v10667_v26  ;;  %v1275_v44 = vsel %vm1273_vm7, %v8182_v2, %v1274_v59  ;;  %v1278_v5 = vsel %vm1276_vm9, %v1277_v12, %v8184_v57  ;;  %v1765_v33 = vclz %v7616_v39  ;;  %v1564_v41 = vor.u32 %v1563_v14, %v1562_v62 }
 0x1b0   : > { %v1568_v38 = vor.u32 4788187, %v1567_v30  ;;  %v1837_v36 = vsel %vm1833_vm4, %v1817_v51, %v1820_v46  ;;  %v1839_v42 = vsel %vm1835_vm5, %v1823_v53, %v1838_v15  ;;  %v10678_v24 = vand.u32 3, %v10553_v1  ;;  %v10708_v51 = vld [vmem:[%s8726_s8 + $0x88] sm:$0xff] }
 0x1b1   : > { %v1470_v52 = vsel %vm1387_vm2, %v1469_v23, %v1468_v20  ;;  %vm1491_vm14 = vcmp.lt.s32.totalorder %v10683_v13, 0  ;;  %v1649_v2 = vadd.s32 %v10305_v43, %v10321_v61  ;;  %v1665_v57 = vsub.s32 32, %v10644_v16  ;;  %18428 = vst [vmem:[#allocation12_spill] sm:$0xff] %v10708_v51 }
 0x1b2   : > { %v10691_v46 = vsel %vm1272_vm13, %v1275_v44, %v1278_v5  ;;  %v10693_v53 = vand.u32 3, %v1478_v56  ;;  %v1670_v1 = vadd.s32 127, %v1669_v18  ;;  %v10695_v59 = vsub.s32 32, %v1919_v48 }
 0x1b3   : > { %v1575_v20 = vsub.s32 4, %v10383_v55  ;;  %v7617_v62 = vadd.s32 4294967294, %v1765_v33  ;;  %v1840_v14 = vsel %vm1834_vm10, %v1837_v36, %v1839_v42  ;;  %v10701_v43 = vpop.eup %8187  ;;  %v1473_v61 = vsel %vm10600_vm3, %v10571_v10, %v1470_v52 }
 0x1b4   : > { %v1569_v63 = vand.u32 2147483647, %v1568_v38  ;;  %v1571_v39 = vcvt.s32.f32 %v1564_v41  ;;  %v1859_v30 = vadd.s32 1, %v10651_v9  ;;  %v1666_v23 = vshll.u32 %v10512_v60, %v10644_v16 }
 0x1b5   : > { %v1667_v15 = vshrl.u32 %v1649_v2, %v1665_v57  ;;  %vm1858_vm12 = vc.u32 %v10658_v47, %v10650_v49  ;;  %v18220_v6 = vand.u32 2147483647, %v10527_v21  ;;  %v1671_v50 = vshll.u32 %v1670_v1, 23 }
 0x1b6   : > { %v1856_v56 = vmul.u32 %v10634_v28, %v1840_v14  ;;  %v1931_v10 = vshll.u32 %v18395_v25, %v1919_v48  ;;  %v1932_v35 = vshrl.u32 %v18396_v8, %v10695_v59  ;;  %vm7618_vm0 = vcmp.lt.s32.totalorder %v7617_v62, 0 }
 0x1b7   : > { %v10719_v18 = vshrl.u32 %v1917_v54, 5  ;;  %v1934_v44 = vshll.u32 %v18396_v8, %v1919_v48  ;;  %v1935_v60 = vshrl.u32 %v18379_v19, %v10695_v59  ;;  %v1860_v16 = vsel %vm1858_vm12, %v1859_v30, %v10651_v9 }
 0x1b8   : > { %v1922_v5 = vshll.u32 %v18400_v17, %v1919_v48  ;;  %v1925_v33 = vshll.u32 %v18380_v27, %v1919_v48  ;;  %v2012_v28 = vand.u32 2139095040, %v10708_v51  ;;  %vm1269_vm1 = vweird.f32 %v10420_v37 }
 0x1b9   : > { %vm1380_vm2 = vcmp.eq.s32.totalorder %v10678_v24, 2  ;;  %v1923_v54 = vshrl.u32 %v18380_v27, %v10695_v59  ;;  %v1926_v41 = vshrl.u32 %v18369_v34, %v10695_v59  ;;  %v1928_v38 = vshll.u32 %v18369_v34, %v1919_v48 }
 0x1ba   : > { %v1929_v9 = vshrl.u32 %v18395_v25, %v10695_v59  ;;  %vm1377_vm15 = vcmp.eq.s32.totalorder %v10678_v24, 0  ;;  %v1378_v36 = vxor.u32 2147483648, %v10701_v43  ;;  %v10742_v42 = vsel %vm1491_vm14, %v1575_v20, %v10383_v55 }
 0x1bb   : > { %v1912_v52 = vand.u32 8388607, %v18220_v6  ;;  %v1933_v2 = vor.u32 %v1932_v35, %v1931_v10  ;;  %v10747_v57 = vsel %vm7618_vm0, 0, %v7617_v62  ;;  %v10749_v48 = vadd.s32 %v1860_v16, %v1856_v56 }
 0x1bc   : > { %v1936_v1 = vor.u32 %v1935_v60, %v1934_v44  ;;  %vm1940_vm3 = vcmp.lt.s32.totalorder %v10719_v18, 4  ;;  %8189 = vcosq.f32 %v1473_v61  ;;  %v1572_v14 = vmul.f32 %v1571_v39, %v1569_v63 }
 0x1bd   : > { %v1668_v30 = vor.u32 %v1667_v15, %v1666_v23  ;;  %v2013_v12 = vshrl.u32 %v2012_v28, 23  ;;  %v1672_v26 = vor.u32 4788187, %v1671_v50  ;;  %v10752_v58 = vor.u32 %v1923_v54, %v1922_v5  ;;  %v10787_v28 = vld [vmem:[%s8726_s8 + $0x68] sm:$0xff] }
 0x1be   : > { %v10754_v55 = vor.u32 %v1926_v41, %v1925_v33  ;;  %v1930_v20 = vor.u32 %v1929_v9, %v1928_v38  ;;  %v1773_v10 = vsub.s32 4294967266, %v10747_v57  ;;  %vm1937_vm4 = vcmp.lt.s32.totalorder %v10719_v18, 1  ;;  %v10795_v38 = vld [vmem:[%s8726_s8 + $0x90] sm:$0xff] }
 0x1bf   : > { %vm1939_vm5 = vcmp.lt.s32.totalorder %v10719_v18, 3  ;;  %v1946_v62 = vsel %vm1940_vm3, %v1933_v2, 920167782  ;;  %vm1376_vm6 = vcmp.lt.s32.totalorder %v10678_v24, 2  ;;  %8191 = vsinq.f32 %v1473_v61  ;;  %18433 = vst [vmem:[#allocation16_spill] sm:$0xff] %v10795_v38 }
 0x1c0   : > { %v1862_v63 = vadd.s32 536870912, %v10749_v48  ;;  %v1913_v39 = vor.u32 8388608, %v1912_v52  ;;  %v1950_v23 = vsel %vm1940_vm3, %v1936_v1, 1326507024  ;;  %v1573_v15 = vxor.u32 2147483648, %v1572_v14 }
 0x1c1   : > { %v1675_v50 = vcvt.s32.f32 %v1668_v30  ;;  %v1753_v56 = vadd.s32 %v10426_v45, %v10434_v31  ;;  %v7627_v35 = vadd.s32 4294967169, %v2013_v12  ;;  %v1673_v44 = vand.u32 2147483647, %v1672_v26  ;;  %v18429_v31 = vld [vmem:[#allocation18_spill] sm:$0xff] }
 0x1c2   : > { %vm1938_vm7 = vcmp.lt.s32.totalorder %v10719_v18, 2  ;;  %v1945_v61 = vsel %vm1937_vm4, %v10752_v58, %v10754_v55  ;;  %v1947_v60 = vsel %vm1939_vm5, %v1930_v20, %v1946_v62  ;;  %v1769_v16 = vsub.s32 32, %v10747_v57 }
 0x1c3   : > { %v1774_v5 = vadd.s32 127, %v1773_v10  ;;  %v1949_v33 = vsel %vm1937_vm4, %v10754_v55, %v1930_v20  ;;  %v1951_v45 = vsel %vm1939_vm5, %v1933_v2, %v1950_v23  ;;  %v18430_v26 = vand.u32 2147483647, %v18429_v31 }
 0x1c4   : > { %vm1595_vm10 = vcmp.lt.s32.totalorder %v10787_v28, 0  ;;  %v10790_v54 = vshrl.u32 %v1862_v63, 30  ;;  %v10792_v41 = vshll.u32 %v1913_v39, 8  ;;  %v10800_v9 = vsel %vm1269_vm1, nan, %v10691_v46  ;;  %v18436_v63 = vld [vmem:[#allocation21_spill] sm:$0xff] }
 0x1c5   : > { %vm10782_vm9 = vcmp.le.f32.partialorder %v18430_v26, 0.7853982  ;;  %18434 = vst [vmem:[#allocation24_spill] sm:$0xff] %v10800_v9  ;;  %v18435_v52 = vxor.u32 2147483648, %v10662_v0  ;;  %v1948_v1 = vsel %vm1938_vm7, %v1945_v61, %v1947_v60  ;;  %v2019_v30 = vadd.s32 1, %v7627_v35 }
 0x1c6   : > { %vm1373_vm11 = vweird.f32 %v10463_v22  ;;  %v1379_v10 = vsel %vm1377_vm15, %v10662_v0, %v1378_v36  ;;  %v1574_v37 = vsel %vm1491_vm14, %v1573_v15, %v1572_v14  ;;  %v1578_v46 = vsel %vm10782_vm9, 0, %v10742_v42  ;;  %v8190_v62 = vpop.eup %8189 }
 0x1c7   : > { %v1382_v2 = vsel %vm1380_vm2, %v18435_v52, %v10701_v43  ;;  %v1952_v43 = vsel %vm1938_vm7, %v1949_v33, %v1951_v45  ;;  %vm1481_vm8 = vcmp.eq.s32.totalorder %v10693_v53, 0  ;;  %v18437_v39 = vand.u32 2147483647, %v18436_v63 }
 0x1c8   : > { %v1676_v0 = vmul.f32 %v1675_v50, %v1673_v44  ;;  %v1770_v36 = vshll.u32 %v10607_v11, %v10747_v57  ;;  %v1771_v14 = vshrl.u32 %v1753_v56, %v1769_v16  ;;  %v1775_v15 = vshll.u32 %v1774_v5, 23 }
 0x1c9   : > { %vm10823_vm13 = vcmp.le.f32.partialorder %v18437_v39, 0.7853982  ;;  %v1864_v42 = vshll.u32 %v10790_v54, 30  ;;  %v10831_v35 = vmul.u32.u64.low %v10792_v41, %v1948_v1  ;;  %v10832_v61 = vmul.u32.u64.high %v10792_v41, %v1948_v1, %v10831_v35  ;;  %v8192_v11 = vpop.eup %8191 }
 0x1ca   : > { %v2116_v60 = vand.u32 2139095040, %v10795_v38  ;;  %v1921_v33 = vshrl.u32 %v18400_v17, %v10695_v59  ;;  %v10839_v45 = vmul.u32.u64.low %v10792_v41, %v1952_v43  ;;  %v10840_v50 = vmul.u32.u64.high %v10792_v41, %v1952_v43, %v10839_v45 }
 0x1cb   : > { %vm2020_vm14 = vcmp.gt.s32.totalorder %v2019_v30, 0  ;;  %vm1480_vm12 = vcmp.lt.s32.totalorder %v10693_v53, 2  ;;  %vm1484_vm0 = vcmp.eq.s32.totalorder %v10693_v53, 2  ;;  %v1577_v57 = vsel %vm10782_vm9, %v10683_v13, %v1574_v37 }
 0x1cc   : > { %v1679_v56 = vsub.s32 4, %v10479_v29  ;;  %v1942_v44 = vsel %vm1940_vm3, %v1930_v20, 2102212464  ;;  %v1383_v59 = vsel %vm1376_vm6, %v1379_v10, %v1382_v2  ;;  %v1677_v16 = vxor.u32 2147483648, %v1676_v0 }
 0x1cd   : > { %v1772_v5 = vor.u32 %v1771_v14, %v1770_v36  ;;  %v1776_v31 = vor.u32 4788187, %v1775_v15  ;;  %v1582_v26 = vadd.s32 3, %v1578_v46  ;;  %v10853_v52 = vsub.s32 %v10749_v48, %v1864_v42  ;;  %v10878_v15 = vld [vmem:[%s8726_s8 + $0x70] sm:$0xff] }
 0x1ce   : > { %v2021_v1 = vsel %vm2020_vm14, %v2019_v30, 0  ;;  %v2117_v43 = vshrl.u32 %v2116_v60, 23  ;;  %v1485_v63 = vxor.u32 2147483648, %v8190_v62  ;;  %8193 = vcosq.f32 %v1577_v57 }
 0x1cf   : > { %v1941_v12 = vsel %vm1937_vm4, %v1921_v33, %v10752_v58  ;;  %v1943_v24 = vsel %vm1939_vm5, %v10754_v55, %v1942_v44  ;;  %v1482_v20 = vxor.u32 2147483648, %v8192_v11  ;;  %8195 = vsinq.f32 %v1577_v57 }
 0x1d0   : > { %v1680_v48 = vsel %vm1595_vm10, %v1679_v56, %v10479_v29  ;;  %v1783_v2 = vsub.s32 4, %v10565_v32  ;;  %v1678_v30 = vsel %vm1595_vm10, %v1677_v16, %v1676_v0  ;;  %v1777_v10 = vand.u32 2147483647, %v1776_v31 }
 0x1d1   : > { %v1779_v37 = vcvt.s32.f32 %v1772_v5  ;;  %v2023_v46 = vand.u32 31, %v2021_v1  ;;  %v1867_v58 = vsub.s32 0, %v10853_v52  ;;  %v1944_v39 = vsel %vm1938_vm7, %v1941_v12, %v1943_v24  ;;  %v10916_v5 = vld [vmem:[%s8726_s8 + $0x98] sm:$0xff] }
 0x1d2   : > { %v1963_v55 = vadd.s32 1, %v10832_v61  ;;  %v7631_v36 = vadd.s32 4294967169, %v2117_v43  ;;  %v10873_v14 = vsel %vm1373_vm11, nan, %v1383_v59  ;;  %v10875_v29 = vand.u32 3, %v1582_v26  ;;  %18445 = vst [vmem:[#allocation25_spill] sm:$0xff] %v10916_v5 }
 0x1d3   : > { %18440 = vst [vmem:[#allocation18_spill] sm:$0xff] %v10873_v14  ;;  %vm1699_vm1 = vcmp.lt.s32.totalorder %v10878_v15, 0  ;;  %vm1962_vm2 = vc.u32 %v10840_v50, %v10831_v35  ;;  %v1483_v18 = vsel %vm1481_vm8, %v8190_v62, %v1482_v20  ;;  %v1486_v0 = vsel %vm1484_vm0, %v1485_v63, %v8192_v11 }
 0x1d4   : > { %v1681_v22 = vsel %vm10823_vm13, %v10787_v28, %v1678_v30  ;;  %v1682_v42 = vsel %vm10823_vm13, 0, %v1680_v48  ;;  %v1780_v60 = vmul.f32 %v1779_v37, %v1777_v10  ;;  %v1784_v33 = vsel %vm1699_vm1, %v1783_v2, %v10565_v32 }
 0x1d5   : > { %v1960_v45 = vmul.u32 %v10792_v41, %v1944_v39  ;;  %v10896_v57 = vsub.s32 32, %v2023_v46  ;;  %v18441_v62 = vand.u32 2147483647, %v10091_v4  ;;  %v7620_v56 = vmin.u32 %v1867_v58, %v10853_v52 }
 0x1d6   : > { %v1964_v23 = vsel %vm1962_vm2, %v1963_v55, %v10832_v61  ;;  %v2123_v44 = vadd.s32 1, %v7631_v36  ;;  %v10908_v59 = vsel %vm1480_vm12, %v1483_v18, %v1486_v0  ;;  %vm1585_vm3 = vcmp.eq.s32.totalorder %v10875_v29, 0 }
 0x1d7   : > { %vm10900_vm15 = vcmp.le.f32.partialorder %v18441_v62, 0.7853982  ;;  %18444 = vst [vmem:[#allocation21_spill] sm:$0xff] %v10908_v59  ;;  %vm1588_vm4 = vcmp.eq.s32.totalorder %v10875_v29, 2  ;;  %8197 = vcosq.f32 %v1681_v22  ;;  %v1686_v4 = vadd.s32 3, %v1682_v42 }
 0x1d8   : > { %8199 = vsinq.f32 %v1681_v22  ;;  %v1786_v32 = vsel %vm10900_vm15, 0, %v1784_v33  ;;  %v18221_v41 = vand.u32 2147483647, %v10708_v51  ;;  %v8194_v16 = vpop.eup %8193  ;;  %v1781_v61 = vxor.u32 2147483648, %v1780_v60 }
 0x1d9   : > { %v10918_v31 = vadd.s32 %v1964_v23, %v1960_v45  ;;  %v2035_v53 = vshll.u32 %v18395_v25, %v2023_v46  ;;  %v2036_v26 = vshrl.u32 %v18396_v8, %v10896_v57  ;;  %v8196_v43 = vpop.eup %8195  ;;  %v1869_v63 = vclz %v7620_v56 }
 0x1da   : > { %v10923_v12 = vshrl.u32 %v2021_v1, 5  ;;  %v2026_v24 = vshll.u32 %v18400_v17, %v2023_v46  ;;  %vm2124_vm5 = vcmp.gt.s32.totalorder %v2123_v44, 0  ;;  %v2027_v20 = vshrl.u32 %v18380_v27, %v10896_v57 }
 0x1db   : > { %v2029_v48 = vshll.u32 %v18380_v27, %v2023_v46  ;;  %v2038_v2 = vshll.u32 %v18396_v8, %v2023_v46  ;;  %v2039_v30 = vshrl.u32 %v18379_v19, %v10896_v57  ;;  %v2030_v10 = vshrl.u32 %v18369_v34, %v10896_v57 }
 0x1dc   : > { %v2032_v37 = vshll.u32 %v18369_v34, %v2023_v46  ;;  %v2033_v1 = vshrl.u32 %v18395_v25, %v10896_v57  ;;  %v2220_v58 = vand.u32 2139095040, %v10916_v5  ;;  %v1589_v39 = vxor.u32 2147483648, %v8194_v16 }
 0x1dd   : > { %v1966_v55 = vadd.s32 536870912, %v10918_v31  ;;  %v2037_v36 = vor.u32 %v2036_v26, %v2035_v53  ;;  %v2125_v18 = vsel %vm2124_vm5, %v2123_v44, 0  ;;  %v1586_v0 = vxor.u32 2147483648, %v8196_v43 }
 0x1de   : > { %v1790_v22 = vadd.s32 3, %v1786_v32  ;;  %v2016_v42 = vand.u32 8388607, %v18221_v41  ;;  %vm2044_vm6 = vcmp.lt.s32.totalorder %v10923_v12, 4  ;;  %v1782_v46 = vsel %vm1699_vm1, %v1781_v61, %v1780_v60  ;;  %v11029_v41 = vld [vmem:[%s8726_s8 + $0xa0] sm:$0xff] }
 0x1df   : > { %v7621_v33 = vadd.s32 4294967294, %v1869_v63  ;;  %v10944_v45 = vor.u32 %v2027_v20, %v2026_v24  ;;  %v2040_v62 = vor.u32 %v2039_v30, %v2038_v2  ;;  %v10946_v56 = vor.u32 %v2030_v10, %v2029_v48 }
 0x1e0   : > { %v2034_v23 = vor.u32 %v2033_v1, %v2032_v37  ;;  %v2127_v6 = vand.u32 31, %v2125_v18  ;;  %v2221_v53 = vshrl.u32 %v2220_v58, 23  ;;  %v10950_v32 = vshrl.u32 %v1966_v55, 30 }
 0x1e1   : > { %v10948_v44 = vpop.eup %8197  ;;  %vm2041_vm7 = vcmp.lt.s32.totalorder %v10923_v12, 1  ;;  %vm2043_vm9 = vcmp.lt.s32.totalorder %v10923_v12, 3  ;;  %v2050_v60 = vsel %vm2044_vm6, %v2037_v36, 920167782  ;;  %v10960_v26 = vsel %vm1585_vm3, %v8194_v16, %v1586_v0 }
 0x1e2   : > { %v10956_v61 = vpop.eup %8199  ;;  %18446 = vst [vmem:[#allocation26_spill] sm:$0xff] %v10960_v26  ;;  %v10964_v63 = vsel %vm1588_vm4, %v1589_v39, %v8196_v43  ;;  %v10966_v24 = vand.u32 3, %v1686_v4  ;;  %v2017_v20 = vor.u32 8388608, %v2016_v42  ;;  %v10971_v48 = vsel %vm10900_vm15, %v10878_v15, %v1782_v46 }
 0x1e3   : > { %18447 = vst [vmem:[#allocation27_spill] sm:$0xff] %v10964_v63  ;;  %vm7622_vm10 = vcmp.lt.s32.totalorder %v7621_v33, 0  ;;  %vm2042_vm11 = vcmp.lt.s32.totalorder %v10923_v12, 2  ;;  %v2054_v2 = vsel %vm2044_vm6, %v2040_v62, 1326507024  ;;  %v2049_v16 = vsel %vm2041_vm7, %v10944_v45, %v10946_v56 }
 0x1e4   : > { %v2051_v4 = vsel %vm2043_vm9, %v2034_v23, %v2050_v60  ;;  %v10982_v43 = vsub.s32 32, %v2127_v6  ;;  %v7635_v30 = vadd.s32 4294967169, %v2221_v53  ;;  %v10985_v10 = vand.u32 3, %v1790_v22 }
 0x1e5   : > { %v10989_v37 = vadd.s32 %v10650_v49, %v10658_v47  ;;  %v1968_v1 = vshll.u32 %v10950_v32, 30  ;;  %v2053_v39 = vsel %vm2041_vm7, %v10946_v56, %v2034_v23  ;;  %v2055_v55 = vsel %vm2043_vm9, %v2037_v36, %v2054_v2 }
 0x1e6   : > { %v10998_v0 = vshll.u32 %v2017_v20, 8  ;;  %8201 = vcosq.f32 %v10971_v48  ;;  %v11002_v22 = vsel %vm7622_vm10, 0, %v7621_v33  ;;  %v2052_v49 = vsel %vm2042_vm11, %v2049_v16, %v2051_v4 }
 0x1e7   : > { %v2139_v47 = vshll.u32 %v18395_v25, %v2127_v6  ;;  %v2140_v42 = vshrl.u32 %v18396_v8, %v10982_v43  ;;  %v2142_v46 = vshll.u32 %v18396_v8, %v2127_v6  ;;  %v2143_v36 = vshrl.u32 %v18379_v19, %v10982_v43 }
 0x1e8   : > { %v2227_v62 = vadd.s32 1, %v7635_v30  ;;  %vm1692_vm8 = vcmp.eq.s32.totalorder %v10966_v24, 2  ;;  %v11014_v53 = vsub.s32 %v10918_v31, %v1968_v1  ;;  %v2056_v33 = vsel %vm2042_vm11, %v2053_v39, %v2055_v55 }
 0x1e9   : > { %v11019_v20 = vshrl.u32 %v2125_v18, 5  ;;  %v11022_v2 = vmul.u32.u64.low %v10998_v0, %v2052_v49  ;;  %v11023_v16 = vmul.u32.u64.high %v10998_v0, %v2052_v49, %v11022_v2  ;;  %v2130_v4 = vshll.u32 %v18400_v17, %v2127_v6 }
 0x1ea   : > { %v2133_v30 = vshll.u32 %v18380_v27, %v2127_v6  ;;  %v2131_v31 = vshrl.u32 %v18380_v27, %v10982_v43  ;;  %v2134_v1 = vshrl.u32 %v18369_v34, %v10982_v43  ;;  %v2136_v18 = vshll.u32 %v18369_v34, %v2127_v6 }
 0x1eb   : > { %18448 = vst [vmem:[#allocation28_spill] sm:$0xff] %v11022_v2  ;;  %v2137_v39 = vshrl.u32 %v18395_v25, %v10982_v43  ;;  %v2025_v55 = vshrl.u32 %v18400_v17, %v10896_v57  ;;  %v2141_v49 = vor.u32 %v2140_v42, %v2139_v47  ;;  %v2144_v58 = vor.u32 %v2143_v36, %v2142_v46 }
 0x1ec   : > { %vm2228_vm13 = vcmp.gt.s32.totalorder %v2227_v62, 0  ;;  %v11041_v11 = vmul.u32.u64.low %v10998_v0, %v2056_v33  ;;  %v11042_v60 = vmul.u32.u64.high %v10998_v0, %v2056_v33, %v11041_v11  ;;  %v18450_v14 = vand.u32 2147483647, %v10795_v38 }
 0x1ed   : > { %vm2148_vm14 = vcmp.lt.s32.totalorder %v11019_v20, 4  ;;  %v1877_v6 = vsub.s32 4294967266, %v11002_v22  ;;  %v1971_v3 = vsub.s32 0, %v11014_v53  ;;  %v2046_v40 = vsel %vm2044_vm6, %v2034_v23, 2102212464 }
 0x1ee   : > { %18449 = vst [vmem:[#allocation29_spill] sm:$0xff] %v11042_v60  ;;  %v2120_v9 = vand.u32 8388607, %v18450_v14  ;;  %v2324_v57 = vand.u32 2139095040, %v11029_v41  ;;  %v2132_v47 = vor.u32 %v2131_v31, %v2130_v4  ;;  %v2135_v42 = vor.u32 %v2134_v1, %v2133_v30 }
 0x1ef   : > { %v2138_v46 = vor.u32 %v2137_v39, %v2136_v18  ;;  %v2229_v36 = vsel %vm2228_vm13, %v2227_v62, 0  ;;  %vm2145_vm12 = vcmp.lt.s32.totalorder %v11019_v20, 1  ;;  %vm2147_vm0 = vcmp.lt.s32.totalorder %v11019_v20, 3 }
 0x1f0   : > { %v2154_v14 = vsel %vm2148_vm14, %v2141_v49, 920167782  ;;  %v2158_v11 = vsel %vm2148_vm14, %v2144_v58, 1326507024  ;;  %v11058_v33 = vpop.eup %8201  ;;  %v1873_v23 = vsub.s32 32, %v11002_v22  ;;  %v2045_v4 = vsel %vm2041_vm7, %v2025_v55, %v10944_v45 }
 0x1f1   : > { %v2047_v62 = vsel %vm2043_vm9, %v10946_v56, %v2046_v40  ;;  %v2121_v30 = vor.u32 8388608, %v2120_v9  ;;  %v11067_v31 = vadd.s32 127, %v1877_v6  ;;  %vm2146_vm1 = vcmp.lt.s32.totalorder %v11019_v20, 2 }
 0x1f2   : > { %v2231_v1 = vand.u32 31, %v2229_v36  ;;  %v2325_v58 = vshrl.u32 %v2324_v57, 23  ;;  %v2153_v18 = vsel %vm2145_vm12, %v2132_v47, %v2135_v42  ;;  %v2155_v39 = vsel %vm2147_vm0, %v2138_v46, %v2154_v14  ;;  %v11091_v14 = vld [vmem:[%s8726_s8 + $0x78] sm:$0xff] }
 0x1f3   : > { %v2157_v45 = vsel %vm2145_vm12, %v2135_v42, %v2138_v46  ;;  %v2159_v55 = vsel %vm2147_vm0, %v2141_v49, %v2158_v11  ;;  %v18451_v40 = vxor.u32 2147483648, %v10948_v44  ;;  %v7624_v56 = vmin.u32 %v1971_v3, %v11014_v53 }
 0x1f4   : > { %v2048_v6 = vsel %vm2042_vm11, %v2045_v4, %v2047_v62  ;;  %v2067_v57 = vadd.s32 1, %v11023_v16  ;;  %8203 = vsinq.f32 %v10971_v48  ;;  %vm1803_vm2 = vcmp.lt.s32.totalorder %v11091_v14, 0 }
 0x1f5   : > { %v11083_v9 = vsel %vm1692_vm8, %v18451_v40, %v10956_v61  ;;  %v1887_v49 = vsub.s32 4, %v10790_v54  ;;  %vm2066_vm15 = vc.u32 %v11042_v60, %v11022_v2  ;;  %v11097_v11 = vshll.u32 %v2121_v30, 8 }
 0x1f6   : > { %18452 = vst [vmem:[#allocation30_spill] sm:$0xff] %v11083_v9  ;;  %v2156_v3 = vsel %vm2146_vm1, %v2153_v18, %v2155_v39  ;;  %v2160_v12 = vsel %vm2146_vm1, %v2157_v45, %v2159_v55  ;;  %v11103_v4 = vsub.s32 32, %v2231_v1  ;;  %v7639_v48 = vadd.s32 4294967169, %v2325_v58 }
 0x1f7   : > { %v1874_v62 = vshll.u32 %v10853_v52, %v11002_v22  ;;  %v1875_v40 = vshrl.u32 %v10989_v37, %v1873_v23  ;;  %v1879_v38 = vshll.u32 %v11067_v31, 23  ;;  %v2064_v51 = vmul.u32 %v10998_v0, %v2048_v6 }
 0x1f8   : > { %v1973_v30 = vclz %v7624_v56  ;;  %v2068_v2 = vsel %vm2066_vm15, %v2067_v57, %v11023_v16  ;;  %v2129_v18 = vshrl.u32 %v18400_v17, %v10982_v43  ;;  %v2150_v39 = vsel %vm2148_vm14, %v2138_v46, 2102212464 }
 0x1f9   : > { %v11116_v58 = vmul.u32.u64.low %v11097_v11, %v2160_v12  ;;  %v11117_v45 = vmul.u32.u64.high %v11097_v11, %v2160_v12, %v11116_v58  ;;  %v11120_v52 = vmul.u32.u64.low %v11097_v11, %v2156_v3  ;;  %v11121_v37 = vmul.u32.u64.high %v11097_v11, %v2156_v3, %v11120_v52 }
 0x1fa   : > { %v18226_v0 = vand.u32 2147483647, %v10916_v5  ;;  %v2243_v22 = vshll.u32 %v18395_v25, %v2231_v1  ;;  %v2244_v16 = vshrl.u32 %v18396_v8, %v11103_v4  ;;  %v2331_v43 = vadd.s32 1, %v7639_v48 }
 0x1fb   : > { %18453 = vst [vmem:[#allocation31_spill] sm:$0xff] %v11117_v45  ;;  %18454 = vst [vmem:[#allocation32_spill] sm:$0xff] %v11120_v52  ;;  %vm1689_vm3 = vcmp.eq.s32.totalorder %v10966_v24, 0  ;;  %v11129_v46 = vadd.s32 %v2068_v2, %v2064_v51  ;;  %v11131_v23 = vshrl.u32 %v2229_v36, 5  ;;  %v2246_v31 = vshll.u32 %v18396_v8, %v2231_v1 }
 0x1fc   : > { %v2247_v55 = vshrl.u32 %v18379_v19, %v11103_v4  ;;  %v2149_v56 = vsel %vm2145_vm12, %v2129_v18, %v2132_v47  ;;  %v2151_v6 = vsel %vm2147_vm0, %v2135_v42, %v2150_v39  ;;  %v2234_v57 = vshll.u32 %v18400_v17, %v2231_v1 }
 0x1fd   : > { %v2237_v3 = vshll.u32 %v18380_v27, %v2231_v1  ;;  %v2235_v51 = vshrl.u32 %v18380_v27, %v11103_v4  ;;  %v2238_v2 = vshrl.u32 %v18369_v34, %v11103_v4  ;;  %v2240_v36 = vshll.u32 %v18369_v34, %v2231_v1 }
 0x1fe   : > { %v2241_v12 = vshrl.u32 %v18395_v25, %v11103_v4  ;;  %vm1796_vm4 = vcmp.eq.s32.totalorder %v10985_v10, 2  ;;  %v1797_v47 = vxor.u32 2147483648, %v11058_v33  ;;  %v18455_v42 = vand.u32 2147483647, %v10356_v7  ;;  %v11162_v1 = vpop.eup %8203 }
 0x1ff   : > { %v11160_v18 = vsel %vm1803_vm2, %v1887_v49, %v10790_v54  ;;  %v2245_v39 = vor.u32 %v2244_v16, %v2243_v22  ;;  %vm2332_vm6 = vcmp.gt.s32.totalorder %v2331_v43, 0  ;;  %v2070_v58 = vadd.s32 536870912, %v11129_v46 }
 0x200   : > { %vm11153_vm5 = vcmp.le.f32.partialorder %v18455_v42, 0.7853982  ;;  %v2224_v60 = vand.u32 8388607, %v18226_v0  ;;  %v2248_v59 = vor.u32 %v2247_v55, %v2246_v31  ;;  %vm2252_vm7 = vcmp.lt.s32.totalorder %v11131_v23, 4 }
 0x201   : > { %v1876_v7 = vor.u32 %v1875_v40, %v1874_v62  ;;  %v1880_v42 = vor.u32 4788187, %v1879_v38  ;;  %v7625_v9 = vadd.s32 4294967294, %v1973_v30  ;;  %v2152_v26 = vsel %vm2146_vm1, %v2149_v56, %v2151_v6 }
 0x202   : > { %v11170_v54 = vor.u32 %v2235_v51, %v2234_v57  ;;  %v11172_v49 = vor.u32 %v2238_v2, %v2237_v3  ;;  %v2242_v22 = vor.u32 %v2241_v12, %v2240_v36  ;;  %v2333_v16 = vsel %vm2332_vm6, %v2331_v43, 0  ;;  %v11207_v3 = vld [vmem:[%s8726_s8 + $0xa8] sm:$0xff] }
 0x203   : > { %v2171_v63 = vadd.s32 1, %v11121_v37  ;;  %vm2249_vm9 = vcmp.lt.s32.totalorder %v11131_v23, 1  ;;  %vm2251_vm10 = vcmp.lt.s32.totalorder %v11131_v23, 3  ;;  %v2258_v62 = vsel %vm2252_vm7, %v2245_v39, 920167782  ;;  %18460 = vst [vmem:[#allocation34_spill] sm:$0xff] %v11207_v3 }
 0x204   : > { %v11179_v38 = vshrl.u32 %v2070_v58, 30  ;;  %vm2170_vm11 = vc.u32 %v11117_v45, %v11120_v52  ;;  %v2225_v20 = vor.u32 8388608, %v2224_v60  ;;  %v2262_v40 = vsel %vm2252_vm7, %v2248_v59, 1326507024 }
 0x205   : > { %v1881_v30 = vand.u32 2147483647, %v1880_v42  ;;  %v1883_v43 = vcvt.s32.f32 %v1876_v7  ;;  %vm7626_vm8 = vcmp.lt.s32.totalorder %v7625_v9, 0  ;;  %v2335_v31 = vand.u32 31, %v2333_v16 }
 0x206   : > { %18458 = vst [vmem:[#allocation33_spill] sm:$0xff] %v11179_v38  ;;  %v2168_v55 = vmul.u32 %v11097_v11, %v2152_v26  ;;  %vm2250_vm13 = vcmp.lt.s32.totalorder %v11131_v23, 2  ;;  %v2257_v56 = vsel %vm2249_vm9, %v11170_v54, %v11172_v49  ;;  %v2259_v6 = vsel %vm2251_vm10, %v2242_v22, %v2258_v62 }
 0x207   : > { %v18459_v60 = vxor.u32 2147483648, %v10956_v61  ;;  %v2172_v57 = vsel %vm2170_vm11, %v2171_v63, %v11121_v37  ;;  %v2261_v26 = vsel %vm2249_vm9, %v11172_v49, %v2242_v22  ;;  %v2263_v11 = vsel %vm2251_vm10, %v2245_v39, %v2262_v40  ;;  %v11274_v63 = vld [vmem:[%s8726_s8 + $0x80] sm:$0xff] }
 0x208   : > { %v11212_v51 = vsel %vm7626_vm8, 0, %v7625_v9  ;;  %v11215_v2 = vshll.u32 %v2225_v20, 8  ;;  %v1961_v37 = vadd.s32 %v10831_v35, %v10840_v50  ;;  %v2260_v36 = vsel %vm2250_vm13, %v2257_v56, %v2259_v6  ;;  %18461 = vst [vmem:[#allocation35_spill] sm:$0xff] %v11274_v63 }
 0x209   : > { %v11198_v59 = vsel %vm1689_vm3, %v10948_v44, %v18459_v60  ;;  %v2072_v44 = vshll.u32 %v11179_v38, 30  ;;  %v11222_v12 = vsub.s32 32, %v2335_v31  ;;  %v11227_v39 = vsel %vm1796_vm4, %v1797_v47, %v11162_v1 }
 0x20a   : > { %v11229_v9 = vmul.f32 %v1883_v43, %v1881_v30  ;;  %v11231_v58 = vadd.s32 %v2172_v57, %v2168_v55  ;;  %v2264_v7 = vsel %vm2250_vm13, %v2261_v26, %v2263_v11  ;;  %v1977_v42 = vsub.s32 32, %v11212_v51 }
 0x20b   : > { %v1981_v35 = vsub.s32 4294967266, %v11212_v51  ;;  %v2428_v62 = vand.u32 2139095040, %v11207_v3  ;;  %v11240_v20 = vsub.s32 %v11129_v46, %v2072_v44  ;;  %v2347_v56 = vshll.u32 %v18395_v25, %v2335_v31 }
 0x20c   : > { %v11243_v47 = vmul.u32.u64.low %v11215_v2, %v2260_v36  ;;  %v11244_v40 = vmul.u32.u64.high %v11215_v2, %v2260_v36, %v11243_v47  ;;  %v11249_v43 = vmul.u32.u64.low %v11215_v2, %v2264_v7  ;;  %v11250_v55 = vmul.u32.u64.high %v11215_v2, %v2264_v7, %v11249_v43 }
 0x20d   : > { %v2348_v6 = vshrl.u32 %v18396_v8, %v11222_v12  ;;  %v2174_v46 = vadd.s32 536870912, %v11231_v58  ;;  %v11256_v60 = vshrl.u32 %v2333_v16, 5  ;;  %v2350_v57 = vshll.u32 %v18396_v8, %v2335_v31 }
 0x20e   : > { %v2351_v26 = vshrl.u32 %v18379_v19, %v11222_v12  ;;  %v2233_v11 = vshrl.u32 %v18400_v17, %v11103_v4  ;;  %v2338_v44 = vshll.u32 %v18400_v17, %v2335_v31  ;;  %v2341_v36 = vshll.u32 %v18380_v27, %v2335_v31 }
 0x20f   : > { %v2429_v7 = vshrl.u32 %v2428_v62, 23  ;;  %v2339_v43 = vshrl.u32 %v18380_v27, %v11222_v12  ;;  %v2342_v16 = vshrl.u32 %v18369_v34, %v11222_v12  ;;  %v2344_v0 = vshll.u32 %v18369_v34, %v2335_v31 }
 0x210   : > { %v2345_v61 = vshrl.u32 %v18395_v25, %v11222_v12  ;;  %vm1793_vm14 = vcmp.eq.s32.totalorder %v10985_v10, 0  ;;  %vm1907_vm12 = vcmp.lt.s32.totalorder %v11274_v63, 0  ;;  %v1978_v4 = vshll.u32 %v11014_v53, %v11212_v51 }
 0x211   : > { %v2075_v62 = vsub.s32 0, %v11240_v20  ;;  %v2254_v50 = vsel %vm2252_vm7, %v2242_v22, 2102212464  ;;  %v2349_v30 = vor.u32 %v2348_v6, %v2347_v56  ;;  %v1982_v5 = vadd.s32 127, %v1981_v35 }
 0x212   : > { %v18462_v31 = vand.u32 2147483647, %v11029_v41  ;;  %v2352_v45 = vor.u32 %v2351_v26, %v2350_v57  ;;  %vm2356_vm0 = vcmp.lt.s32.totalorder %v11256_v60, 4  ;;  %v1979_v38 = vshrl.u32 %v1961_v37, %v1977_v42 }
 0x213   : > { %v11285_v34 = vshrl.u32 %v2174_v46, 30  ;;  %v2253_v53 = vsel %vm2249_vm9, %v2233_v11, %v11170_v54  ;;  %v7643_v51 = vadd.s32 4294967169, %v2429_v7  ;;  %v18463_v19 = vand.u32 2147483647, %v10527_v21 }
 0x214   : > { %v2328_v52 = vand.u32 8388607, %v18462_v31  ;;  %v2255_v35 = vsel %vm2251_vm10, %v11172_v49, %v2254_v50  ;;  %v11299_v56 = vor.u32 %v2339_v43, %v2338_v44  ;;  %v11301_v37 = vor.u32 %v2342_v16, %v2341_v36 }
 0x215   : > { %vm11292_vm1 = vcmp.le.f32.partialorder %v18463_v19, 0.7853982  ;;  %v2346_v42 = vor.u32 %v2345_v61, %v2344_v0  ;;  %v7628_v6 = vmin.u32 %v2075_v62, %v11240_v20  ;;  %vm2353_vm15 = vcmp.lt.s32.totalorder %v11256_v60, 1  ;;  %v8419_v61 = vld [vmem:[%s8726_s8 + $0x58] sm:$0xff] }
 0x216   : > { %vm2355_vm3 = vcmp.lt.s32.totalorder %v11256_v60, 3  ;;  %v2362_v19 = vsel %vm2356_vm0, %v2349_v30, 920167782  ;;  %vm1584_vm4 = vcmp.lt.s32.totalorder %v10875_v29, 2  ;;  %vm1688_vm6 = vcmp.lt.s32.totalorder %v10966_v24, 2 }
 0x217   : > { %v1885_v21 = vxor.u32 2147483648, %v11229_v9  ;;  %v1983_v54 = vshll.u32 %v1982_v5, 23  ;;  %v2329_v49 = vor.u32 8388608, %v2328_v52  ;;  %v2366_v0 = vsel %vm2356_vm0, %v2352_v45, 1326507024  ;;  %v11329_v52 = vld [vmem:[%s8726_s8 + $0xb0] sm:$0xff] }
 0x218   : > { %vm1477_vm7 = vweird.f32 %v8419_v61  ;;  %v2176_v50 = vshll.u32 %v11285_v34, 30  ;;  %v2256_v46 = vsel %vm2250_vm13, %v2253_v53, %v2255_v35  ;;  %v2275_v57 = vadd.s32 1, %v11244_v40  ;;  %18466 = vst [vmem:[#allocation36_spill] sm:$0xff] %v11329_v52 }
 0x219   : > { %v2435_v26 = vadd.s32 1, %v7643_v51  ;;  %vm2274_vm10 = vc.u32 %v11250_v55, %v11243_v47  ;;  %vm2354_vm11 = vcmp.lt.s32.totalorder %v11256_v60, 2  ;;  %v2361_v5 = vsel %vm2353_vm15, %v11299_v56, %v11301_v37 }
 0x21a   : > { %v2363_v45 = vsel %vm2355_vm3, %v2346_v42, %v2362_v19  ;;  %vm1581_vm8 = vweird.f32 %v10683_v13  ;;  %vm1685_vm13 = vweird.f32 %v10787_v28  ;;  %v1980_v23 = vor.u32 %v1979_v38, %v1978_v4 }
 0x21b   : > { %v2077_v11 = vclz %v7628_v6  ;;  %v2365_v44 = vsel %vm2353_vm15, %v11301_v37, %v2346_v42  ;;  %v2367_v36 = vsel %vm2355_vm3, %v2349_v30, %v2366_v0  ;;  %vm1789_vm9 = vweird.f32 %v10878_v15  ;;  %v18481_v15 = vld [vmem:[#allocation28_spill] sm:$0xff] }
 0x21c   : > { %v1886_v7 = vsel %vm1803_vm2, %v1885_v21, %v11229_v9  ;;  %v18467_v43 = vsub.s32 4, %v10950_v32  ;;  %v2272_v16 = vmul.u32 %v11215_v2, %v2256_v46  ;;  %v11348_v4 = vshll.u32 %v2329_v49, 8 }
 0x21d   : > { %v1984_v62 = vor.u32 4788187, %v1983_v54  ;;  %v2276_v30 = vsel %vm2274_vm10, %v2275_v57, %v11244_v40  ;;  %v2364_v31 = vsel %vm2354_vm11, %v2361_v5, %v2363_v45  ;;  %vm2436_vm2 = vcmp.gt.s32.totalorder %v2435_v26, 0  ;;  %v18469_v45 = vld [vmem:[#allocation27_spill] sm:$0xff] }
 0x21e   : > { %v1992_v38 = vsel %vm1907_vm12, %v18467_v43, %v10950_v32  ;;  %v18468_v9 = vxor.u32 2147483648, %v11162_v1  ;;  %v11362_v2 = vsub.s32 %v11231_v58, %v2176_v50  ;;  %v2368_v53 = vsel %vm2354_vm11, %v2365_v44, %v2367_v36  ;;  %v18473_v43 = vld [vmem:[#allocation21_spill] sm:$0xff] }
 0x21f   : > { %v2532_v51 = vand.u32 2139095040, %v11329_v52  ;;  %v1889_v40 = vsel %vm11153_vm5, %v11091_v14, %v1886_v7  ;;  %v1987_v35 = vcvt.s32.f32 %v1980_v23  ;;  %v1994_v1 = vsel %vm11292_vm1, 0, %v1992_v38  ;;  %v18470_v23 = vld [vmem:[#allocation26_spill] sm:$0xff] }
 0x220   : > { %v1795_v32 = vsel %vm1793_vm14, %v11058_v33, %v18468_v9  ;;  %v7629_v6 = vadd.s32 4294967294, %v2077_v11  ;;  %v11372_v19 = vadd.s32 %v2276_v30, %v2272_v16  ;;  %v2437_v21 = vsel %vm2436_vm2, %v2435_v26, 0  ;;  %v18471_v11 = vld [vmem:[#allocation30_spill] sm:$0xff] }
 0x221   : > { %v11375_v33 = vmul.u32.u64.low %v11348_v4, %v2364_v31  ;;  %v11376_v58 = vmul.u32.u64.high %v11348_v4, %v2364_v31, %v11375_v33  ;;  %v1985_v54 = vand.u32 2147483647, %v1984_v62  ;;  %v2337_v49 = vshrl.u32 %v18400_v17, %v11222_v12 }
 0x222   : > { %v11382_v0 = vmul.u32.u64.low %v11348_v4, %v2368_v53  ;;  %v11383_v50 = vmul.u32.u64.high %v11348_v4, %v2368_v53, %v11382_v0  ;;  %8205 = vcosq.f32 %v1889_v40  ;;  %v2179_v46 = vsub.s32 0, %v11362_v2  ;;  %v18480_v53 = vld [vmem:[#allocation29_spill] sm:$0xff] }
 0x223   : > { %v2358_v57 = vsel %vm2356_vm0, %v2346_v42, 2102212464  ;;  %v2533_v5 = vshrl.u32 %v2532_v51, 23  ;;  %v1591_v26 = vsel %vm1584_vm4, %v18470_v23, %v18469_v45  ;;  %v1695_v12 = vsel %vm1688_vm6, %v11198_v59, %v18471_v11 }
 0x224   : > { %v18472_v44 = vsel %vm11153_vm5, 0, %v11160_v18  ;;  %v2439_v7 = vand.u32 31, %v2437_v21  ;;  %v11402_v42 = vsel %vm1477_vm7, nan, %v18473_v43  ;;  %vm18475_vm14 = vcmp.lt.s32.totalorder %v10985_v10, 2 }
 0x225   : > { %v1894_v36 = vadd.s32 3, %v18472_v44  ;;  %18474 = vst [vmem:[#allocation27_spill] sm:$0xff] %v11402_v42  ;;  %v1799_v29 = vsel %vm18475_vm14, %v1795_v32, %v11227_v39  ;;  %vm7630_vm0 = vcmp.lt.s32.totalorder %v7629_v6, 0  ;;  %v2278_v38 = vadd.s32 536870912, %v11372_v19 }
 0x226   : > { %v1988_v16 = vmul.f32 %v1987_v35, %v1985_v54  ;;  %v1998_v24 = vadd.s32 3, %v1994_v1  ;;  %v2357_v48 = vsel %vm2353_vm15, %v2337_v49, %v11299_v56  ;;  %v2359_v18 = vsel %vm2355_vm3, %v11301_v37, %v2358_v57 }
 0x227   : > { %v11416_v59 = vsel %vm1581_vm8, nan, %v1591_v26  ;;  %v11420_v10 = vsel %vm1685_vm13, nan, %v1695_v12  ;;  %v7632_v39 = vmin.u32 %v2179_v46, %v11362_v2  ;;  %v7647_v61 = vadd.s32 4294967169, %v2533_v5 }
 0x228   : > { %18476 = vst [vmem:[#allocation26_spill] sm:$0xff] %v11416_v59  ;;  %18477 = vst [vmem:[#allocation30_spill] sm:$0xff] %v11420_v10  ;;  %v11425_v62 = vsel %vm1789_vm9, nan, %v1799_v29  ;;  %v11427_v56 = vand.u32 3, %v1894_v36  ;;  %v2080_v30 = vsel %vm7630_vm0, 0, %v7629_v6  ;;  %v11429_v31 = vsub.s32 32, %v2439_v7 }
 0x229   : > { %18478 = vst [vmem:[#allocation21_spill] sm:$0xff] %v11425_v62  ;;  %8207 = vsinq.f32 %v1889_v40  ;;  %v11431_v13 = vshrl.u32 %v2278_v38, 30  ;;  %v2360_v28 = vsel %vm2354_vm11, %v2357_v48, %v2359_v18  ;;  %v2379_v37 = vadd.s32 1, %v11376_v58 }
 0x22a   : > { %v1989_v9 = vxor.u32 2147483648, %v1988_v16  ;;  %v11436_v32 = vand.u32 3, %v1998_v24  ;;  %v2065_v51 = vadd.s32 %v18481_v15, %v18480_v53  ;;  %vm2378_vm5 = vc.u32 %v11383_v50, %v11375_v33 }
 0x22b   : > { %18479 = vst [vmem:[#allocation37_spill] sm:$0xff] %v11431_v13  ;;  %v2081_v35 = vsub.s32 32, %v2080_v30  ;;  %v2085_v1 = vsub.s32 4294967266, %v2080_v30  ;;  %v2181_v6 = vclz %v7632_v39  ;;  %v2539_v40 = vadd.s32 1, %v7647_v61 }
 0x22c   : > { %v2376_v54 = vmul.u32 %v11348_v4, %v2360_v28  ;;  %v18234_v60 = vand.u32 2147483647, %v11207_v3  ;;  %v2451_v49 = vshll.u32 %v18395_v25, %v2439_v7  ;;  %v2452_v0 = vshrl.u32 %v18396_v8, %v11429_v31  ;;  %v11447_v46 = vpop.eup %8205 }
 0x22d   : > { %v2280_v57 = vshll.u32 %v11431_v13, 30  ;;  %v2380_v5 = vsel %vm2378_vm5, %v2379_v37, %v11376_v58  ;;  %v11451_v45 = vshrl.u32 %v2437_v21, 5  ;;  %v2442_v23 = vshll.u32 %v18400_v17, %v2439_v7  ;;  %v11572_v13 = vld [vmem:[%s8726_s8 + $0x88] sm:$0xff] }
 0x22e   : > { %v2443_v4 = vshrl.u32 %v18380_v27, %v11429_v31  ;;  %v2445_v26 = vshll.u32 %v18380_v27, %v2439_v7  ;;  %v2454_v11 = vshll.u32 %v18396_v8, %v2439_v7  ;;  %v18482_v12 = vmov 1326507024  }
 0x22f   : > { %v2455_v44 = vshrl.u32 %v18482_v12, %v11429_v31  ;;  %v18483_v36 = vmov 2131351028   ;;  %v2449_v58 = vshrl.u32 %v18395_v25, %v11429_v31  ;;  %vm2540_vm15 = vcmp.gt.s32.totalorder %v2539_v40, 0 }
 0x230   : > { %v2446_v43 = vshrl.u32 %v18483_v36, %v11429_v31  ;;  %v2448_v29 = vshll.u32 %v18483_v36, %v2439_v7  ;;  %v1990_v38 = vsel %vm1907_vm12, %v1989_v9, %v1988_v16  ;;  %v11468_v24 = vadd.s32 %v2380_v5, %v2376_v54  ;;  %v18484_v5 = vld [vmem:[#allocation33_spill] sm:$0xff] }
 0x231   : > { %v2453_v48 = vor.u32 %v2452_v0, %v2451_v49  ;;  %v2082_v18 = vshll.u32 %v11240_v20, %v2080_v30  ;;  %v7633_v39 = vadd.s32 4294967294, %v2181_v6  ;;  %v2432_v61 = vand.u32 8388607, %v18234_v60 }
 0x232   : > { %vm2460_vm3 = vcmp.lt.s32.totalorder %v11451_v45, 4  ;;  %v2083_v7 = vshrl.u32 %v2065_v51, %v2081_v35  ;;  %v2086_v28 = vadd.s32 127, %v2085_v1  ;;  %v2456_v37 = vor.u32 %v2455_v44, %v2454_v11 }
 0x233   : > { %v2541_v53 = vsel %vm2540_vm15, %v2539_v40, 0  ;;  %v11474_v15 = vpop.eup %8207  ;;  %v11477_v21 = vsub.s32 %v11372_v19, %v2280_v57  ;;  %v2444_v16 = vor.u32 %v2443_v4, %v2442_v23  ;;  %v2447_v9 = vor.u32 %v2446_v43, %v2445_v26 }
 0x234   : > { %v2450_v54 = vor.u32 %v2449_v58, %v2448_v29  ;;  %v2382_v20 = vadd.s32 536870912, %v11468_v24  ;;  %vm2457_vm12 = vcmp.lt.s32.totalorder %v11451_v45, 1  ;;  %vm2459_vm4 = vcmp.lt.s32.totalorder %v11451_v45, 3 }
 0x235   : > { %v2466_v30 = vsel %vm2460_vm3, %v2453_v48, 920167782  ;;  %v11487_v51 = vsel %vm11292_vm1, %v11274_v63, %v1990_v38  ;;  %vm7634_vm6 = vcmp.lt.s32.totalorder %v7633_v39, 0  ;;  %v2433_v19 = vor.u32 8388608, %v2432_v61  ;;  %v18487_v61 = vld [vmem:[#allocation32_spill] sm:$0xff] }
 0x236   : > { %v2543_v35 = vand.u32 31, %v2541_v53  ;;  %v11490_v6 = vor.u32 %v2083_v7, %v2082_v18  ;;  %v2087_v40 = vshll.u32 %v2086_v28, 23  ;;  %v2470_v49 = vsel %vm2460_vm3, %v2456_v37, 1326507024  ;;  %v18486_v18 = vld [vmem:[#allocation31_spill] sm:$0xff]  ;;  %v11520_v28 = vld [vmem:[%s8726_s8 + $0xb8] sm:$0xff] }
 0x237   : > { %v2283_v0 = vsub.s32 0, %v11477_v21  ;;  %vm2458_vm7 = vcmp.lt.s32.totalorder %v11451_v45, 2  ;;  %v2465_v22 = vsel %vm2457_vm12, %v2444_v16, %v2447_v9  ;;  %v2467_v57 = vsel %vm2459_vm4, %v2450_v54, %v2466_v30  ;;  %18488 = vst [vmem:[#allocation28_spill] sm:$0xff] %v11520_v28 }
 0x238   : > { %8209 = vcosq.f32 %v11487_v51  ;;  %v11502_v4 = vsel %vm7634_vm6, 0, %v7633_v39  ;;  %v11504_v26 = vshrl.u32 %v2382_v20, 30  ;;  %v2469_v11 = vsel %vm2457_vm12, %v2447_v9, %v2450_v54 }
 0x239   : > { %v2471_v44 = vsel %vm2459_vm4, %v2453_v48, %v2470_v49  ;;  %v11510_v43 = vshll.u32 %v2433_v19, 8  ;;  %v11512_v29 = vsub.s32 32, %v2543_v35  ;;  %v2088_v58 = vor.u32 4788187, %v2087_v40 }
 0x23a   : > { %18485 = vst [vmem:[#allocation29_spill] sm:$0xff] %v11504_v26  ;;  %v2091_v38 = vcvt.s32.f32 %v11490_v6  ;;  %v2169_v7 = vadd.s32 %v18487_v61, %v18486_v18  ;;  %v2468_v39 = vsel %vm2458_vm7, %v2465_v22, %v2467_v57  ;;  %v2185_v37 = vsub.s32 32, %v11502_v4 }
 0x23b   : > { %v2189_v20 = vsub.s32 4294967266, %v11502_v4  ;;  %v7636_v48 = vmin.u32 %v2283_v0, %v11477_v21  ;;  %v2384_v19 = vshll.u32 %v11504_v26, 30  ;;  %v2441_v6 = vshrl.u32 %v18400_v17, %v11429_v31 }
 0x23c   : > { %v2462_v40 = vsel %vm2460_vm3, %v2450_v54, 2102212464  ;;  %v2472_v49 = vsel %vm2458_vm7, %v2469_v11, %v2471_v44  ;;  %v11534_v22 = vmul.u32.u64.low %v11510_v43, %v2468_v39  ;;  %v11535_v57 = vmul.u32.u64.high %v11510_v43, %v2468_v39, %v11534_v22 }
 0x23d   : > { %v2555_v0 = vshll.u32 %v18395_v25, %v2543_v35  ;;  %v2556_v18 = vshrl.u32 %v18396_v8, %v11512_v29  ;;  %v11541_v61 = vshrl.u32 %v2541_v53, 5  ;;  %v2558_v31 = vshll.u32 %v18396_v8, %v2543_v35 }
 0x23e   : > { %v2559_v54 = vshrl.u32 %v18482_v12, %v11512_v29  ;;  %v2636_v60 = vand.u32 2139095040, %v11520_v28  ;;  %v11548_v11 = vmul.u32.u64.low %v11510_v43, %v2472_v49  ;;  %v11549_v44 = vmul.u32.u64.high %v11510_v43, %v2472_v49, %v11548_v11 }
 0x23f   : > { %v2546_v39 = vshll.u32 %v18400_v17, %v2543_v35  ;;  %v2549_v23 = vshll.u32 %v18380_v27, %v2543_v35  ;;  %vm1897_vm1 = vcmp.eq.s32.totalorder %v11427_v56, 0  ;;  %vm1900_vm9 = vcmp.eq.s32.totalorder %v11427_v56, 2 }
 0x240   : > { %v2547_v53 = vshrl.u32 %v18380_v27, %v11512_v29  ;;  %v2550_v1 = vshrl.u32 %v18483_v36, %v11512_v29  ;;  %v2552_v30 = vshll.u32 %v18483_v36, %v2543_v35  ;;  %v2553_v49 = vshrl.u32 %v18395_v25, %v11512_v29 }
 0x241   : > { %v2089_v11 = vand.u32 2147483647, %v2088_v58  ;;  %v2461_v62 = vsel %vm2457_vm12, %v2441_v6, %v2444_v16  ;;  %v2463_v10 = vsel %vm2459_vm4, %v2447_v9, %v2462_v40  ;;  %v2557_v59 = vor.u32 %v2556_v18, %v2555_v0 }
 0x242   : > { %v11566_v42 = vpop.eup %8209  ;;  %v18489_v3 = vand.u32 2147483647, %v11329_v52  ;;  %v2560_v26 = vor.u32 %v2559_v54, %v2558_v31  ;;  %vm2564_vm10 = vcmp.lt.s32.totalorder %v11541_v61, 4  ;;  %v2637_v35 = vshrl.u32 %v2636_v60, 23  ;;  %v11622_v31 = vld [vmem:[%s8726_s8 + $0xc0] sm:$0xff] }
 0x243   : > { %vm2011_vm11 = vcmp.lt.s32.totalorder %v11572_v13, 0  ;;  %v2186_v16 = vshll.u32 %v11362_v2, %v11502_v4  ;;  %v2187_v58 = vshrl.u32 %v2169_v7, %v2185_v37  ;;  %v2190_v6 = vadd.s32 127, %v2189_v20  ;;  %v11611_v20 = vld [vmem:[%s8726_s8 + $0x90] sm:$0xff] }
 0x244   : > { %v2536_v63 = vand.u32 8388607, %v18489_v3  ;;  %v2285_v9 = vclz %v7636_v48  ;;  %v11578_v40 = vsub.s32 %v11468_v24, %v2384_v19  ;;  %v11580_v0 = vor.u32 %v2547_v53, %v2546_v39  ;;  %18494 = vst [vmem:[#allocation33_spill] sm:$0xff] %v11611_v20 }
 0x245   : > { %v11582_v3 = vor.u32 %v2550_v1, %v2549_v23  ;;  %v2554_v18 = vor.u32 %v2553_v49, %v2552_v30  ;;  %v2464_v60 = vsel %vm2458_vm7, %v2461_v62, %v2463_v10  ;;  %vm2561_vm8 = vcmp.lt.s32.totalorder %v11541_v61, 1  ;;  %v18490_v10 = vld [vmem:[#allocation12_spill] sm:$0xff] }
 0x246   : > { %vm2563_vm13 = vcmp.lt.s32.totalorder %v11541_v61, 3  ;;  %v2570_v2 = vsel %vm2564_vm10, %v2557_v59, 920167782  ;;  %v2483_v4 = vadd.s32 1, %v11535_v57  ;;  %v2537_v24 = vor.u32 8388608, %v2536_v63 }
 0x247   : > { %v2574_v7 = vsel %vm2564_vm10, %v2560_v26, 1326507024  ;;  %v7651_v1 = vadd.s32 4294967169, %v2637_v35  ;;  %vm1896_vm2 = vcmp.lt.s32.totalorder %v11427_v56, 2  ;;  %8211 = vsinq.f32 %v11487_v51 }
 0x248   : > { %v18491_v62 = vand.u32 2147483647, %v18490_v10  ;;  %v2092_v23 = vmul.f32 %v2091_v38, %v2089_v11  ;;  %v2191_v37 = vshll.u32 %v2190_v6, 23  ;;  %vm2482_vm0 = vc.u32 %v11549_v44, %v11534_v22 }
 0x249   : > { %v7637_v63 = vadd.s32 4294967294, %v2285_v9  ;;  %vm2562_vm5 = vcmp.lt.s32.totalorder %v11541_v61, 2  ;;  %v2569_v26 = vsel %vm2561_vm8, %v11580_v0, %v11582_v3  ;;  %v2571_v51 = vsel %vm2563_vm13, %v2554_v18, %v2570_v2 }
 0x24a   : > { %vm11597_vm14 = vcmp.le.f32.partialorder %v18491_v62, 0.7853982  ;;  %vm2115_vm15 = vcmp.lt.s32.totalorder %v11611_v20, 0  ;;  %v2387_v38 = vsub.s32 0, %v11578_v40  ;;  %v2480_v48 = vmul.u32 %v11510_v43, %v2464_v60 }
 0x24b   : > { %v2573_v30 = vsel %vm2561_vm8, %v11582_v3, %v2554_v18  ;;  %v2575_v19 = vsel %vm2563_vm13, %v2557_v59, %v2574_v7  ;;  %v2188_v54 = vor.u32 %v2187_v58, %v2186_v16  ;;  %v2484_v39 = vsel %vm2482_vm0, %v2483_v4, %v11535_v57 }
 0x24c   : > { %v11625_v53 = vshll.u32 %v2537_v24, 8  ;;  %v2643_v49 = vadd.s32 1, %v7651_v1  ;;  %v18495_v11 = vxor.u32 2147483648, %v11474_v15  ;;  %v18496_v35 = vxor.u32 2147483648, %v11447_v46 }
 0x24d   : > { %v2192_v6 = vor.u32 4788187, %v2191_v37  ;;  %v2572_v16 = vsel %vm2562_vm5, %v2569_v26, %v2571_v51  ;;  %v2093_v57 = vxor.u32 2147483648, %v2092_v23  ;;  %v18497_v58 = vsub.s32 4, %v18484_v5 }
 0x24e   : > { %v1899_v43 = vsel %vm1897_vm1, %v11447_v46, %v18495_v11  ;;  %v1902_v59 = vsel %vm1900_vm9, %v18496_v35, %v11474_v15  ;;  %v2199_v60 = vsub.s32 4, %v11285_v34  ;;  %v2576_v2 = vsel %vm2562_vm5, %v2573_v30, %v2575_v19  ;;  %v18498_v46 = vld [vmem:[#allocation16_spill] sm:$0xff] }
 0x24f   : > { %v2096_v9 = vsel %vm2011_vm11, %v18497_v58, %v18484_v5  ;;  %vm1893_vm3 = vweird.f32 %v11091_v14  ;;  %v18499_v15 = vand.u32 2147483647, %v18498_v46  ;;  %vm7638_vm4 = vcmp.lt.s32.totalorder %v7637_v63, 0 }
 0x250   : > { %v7640_v24 = vmin.u32 %v2387_v38, %v11578_v40  ;;  %v11655_v7 = vadd.s32 %v2484_v39, %v2480_v48  ;;  %v2740_v5 = vand.u32 2139095040, %v11622_v31  ;;  %v2195_v1 = vcvt.s32.f32 %v2188_v54 }
 0x251   : > { %vm11650_vm12 = vcmp.le.f32.partialorder %v18499_v15, 0.7853982  ;;  %v11659_v10 = vmul.u32.u64.low %v11625_v53, %v2572_v16  ;;  %v11660_v62 = vmul.u32.u64.high %v11625_v53, %v2572_v16, %v11659_v10  ;;  %vm2644_vm6 = vcmp.gt.s32.totalorder %v2643_v49, 0  ;;  %v8212_v54 = vpop.eup %8211 }
 0x252   : > { %v2193_v37 = vand.u32 2147483647, %v2192_v6  ;;  %v2545_v26 = vshrl.u32 %v18400_v17, %v11512_v29  ;;  %v11666_v51 = vmul.u32.u64.low %v11625_v53, %v2576_v2  ;;  %v11667_v30 = vmul.u32.u64.high %v11625_v53, %v2576_v2, %v11666_v51 }
 0x253   : > { %vm2001_vm7 = vcmp.eq.s32.totalorder %v11436_v32, 0  ;;  %v2098_v38 = vsel %vm11597_vm14, 0, %v2096_v9  ;;  %v11672_v48 = vsel %vm7638_vm4, 0, %v7637_v63  ;;  %v2566_v19 = vsel %vm2564_vm10, %v2554_v18, 2102212464 }
 0x254   : > { %v2389_v39 = vclz %v7640_v24  ;;  %v2486_v11 = vadd.s32 536870912, %v11655_v7  ;;  %v2645_v35 = vsel %vm2644_vm6, %v2643_v49, 0  ;;  %v2741_v29 = vshrl.u32 %v2740_v5, 23 }
 0x255   : > { %v1903_v6 = vsel %vm1896_vm2, %v1899_v43, %v1902_v59  ;;  %vm2004_vm1 = vcmp.eq.s32.totalorder %v11436_v32, 2  ;;  %v2094_v16 = vsel %vm2011_vm11, %v2093_v57, %v2092_v23  ;;  %v2200_v63 = vsel %vm2115_vm15, %v2199_v60, %v11285_v34 }
 0x256   : > { %v2196_v58 = vmul.f32 %v2195_v1, %v2193_v37  ;;  %v2293_v18 = vsub.s32 4294967266, %v11672_v48  ;;  %v2565_v49 = vsel %vm2561_vm8, %v2545_v26, %v11580_v0  ;;  %v2567_v56 = vsel %vm2563_vm13, %v11582_v3, %v2566_v19 }
 0x257   : > { %v2002_v43 = vxor.u32 2147483648, %v8212_v54  ;;  %v2005_v59 = vxor.u32 2147483648, %v11566_v42  ;;  %v2102_v9 = vadd.s32 3, %v2098_v38  ;;  %v2647_v23 = vand.u32 31, %v2645_v35 }
 0x258   : > { %v11696_v34 = vsel %vm11597_vm14, %v11572_v13, %v2094_v16  ;;  %v7641_v57 = vadd.s32 4294967294, %v2389_v39  ;;  %v11698_v60 = vshrl.u32 %v2486_v11, 30  ;;  %v7655_v2 = vadd.s32 4294967169, %v2741_v29 }
 0x259   : > { %v2202_v0 = vsel %vm11650_vm12, 0, %v2200_v63  ;;  %v2273_v3 = vadd.s32 %v11243_v47, %v11250_v55  ;;  %v2568_v46 = vsel %vm2562_vm5, %v2565_v49, %v2567_v56  ;;  %v2587_v15 = vadd.s32 1, %v11660_v62 }
 0x25a   : > { %18502 = vst [vmem:[#allocation31_spill] sm:$0xff] %v11698_v60  ;;  %v2197_v24 = vxor.u32 2147483648, %v2196_v58  ;;  %v2289_v45 = vsub.s32 32, %v11672_v48  ;;  %v2294_v5 = vadd.s32 127, %v2293_v18  ;;  %vm2586_vm9 = vc.u32 %v11667_v30, %v11659_v10 }
 0x25b   : > { %v11712_v1 = vsel %vm1893_vm3, nan, %v1903_v6  ;;  %v11716_v37 = vsel %vm2004_vm1, %v2005_v59, %v8212_v54  ;;  %v11718_v47 = vand.u32 3, %v2102_v9  ;;  %v11720_v55 = vsub.s32 32, %v2647_v23 }
 0x25c   : > { %18503 = vst [vmem:[#allocation32_spill] sm:$0xff] %v11712_v1  ;;  %vm7642_vm10 = vcmp.lt.s32.totalorder %v7641_v57, 0  ;;  %v2488_v61 = vshll.u32 %v11698_v60, 30  ;;  %v2584_v26 = vmul.u32 %v11625_v53, %v2568_v46  ;;  %v2747_v51 = vadd.s32 1, %v7655_v2 }
 0x25d   : > { %v11727_v14 = vsel %vm2001_vm7, %v11566_v42, %v2002_v43  ;;  %8213 = vcosq.f32 %v11696_v34  ;;  %v2206_v38 = vadd.s32 3, %v2202_v0  ;;  %v2588_v19 = vsel %vm2586_vm9, %v2587_v15, %v11660_v62 }
 0x25e   : > { %v2198_v54 = vsel %vm2115_vm15, %v2197_v24, %v2196_v58  ;;  %v2290_v39 = vshll.u32 %v11477_v21, %v11672_v48  ;;  %v2291_v11 = vshrl.u32 %v2273_v3, %v2289_v45  ;;  %v2295_v29 = vshll.u32 %v2294_v5, 23 }
 0x25f   : > { %v11735_v53 = vsel %vm7642_vm10, 0, %v7641_v57  ;;  %v18242_v6 = vand.u32 2147483647, %v11520_v28  ;;  %v2659_v42 = vshll.u32 %v18395_v25, %v2647_v23  ;;  %v2660_v16 = vshrl.u32 %v18396_v8, %v11720_v55 }
 0x260   : > { %v11742_v63 = vsub.s32 %v11655_v7, %v2488_v61  ;;  %v11744_v62 = vadd.s32 %v2588_v19, %v2584_v26  ;;  %v11746_v58 = vshrl.u32 %v2645_v35, 5  ;;  %vm2748_vm11 = vcmp.gt.s32.totalorder %v2747_v51, 0 }
 0x261   : > { %v2650_v21 = vshll.u32 %v18400_v17, %v2647_v23  ;;  %v2653_v48 = vshll.u32 %v18380_v27, %v2647_v23  ;;  %v2662_v18 = vshll.u32 %v18396_v8, %v2647_v23  ;;  %v2663_v49 = vshrl.u32 %v18482_v12, %v11720_v55 }
 0x262   : > { %v2651_v56 = vshrl.u32 %v18380_v27, %v11720_v55  ;;  %v2654_v7 = vshrl.u32 %v18483_v36, %v11720_v55  ;;  %v2656_v43 = vshll.u32 %v18483_v36, %v2647_v23  ;;  %v2657_v35 = vshrl.u32 %v18395_v25, %v11720_v55 }
 0x263   : > { %v11763_v59 = vsel %vm11650_vm12, %v11611_v20, %v2198_v54  ;;  %v2377_v9 = vadd.s32 %v11375_v33, %v11383_v50  ;;  %v2661_v57 = vor.u32 %v2660_v16, %v2659_v42  ;;  %v2749_v2 = vsel %vm2748_vm11, %v2747_v51, 0 }
 0x264   : > { %v11767_v0 = vor.u32 %v2291_v11, %v2290_v39  ;;  %v2397_v3 = vsub.s32 4294967266, %v11735_v53  ;;  %v2640_v23 = vand.u32 8388607, %v18242_v6  ;;  %vm2668_vm8 = vcmp.lt.s32.totalorder %v11746_v58, 4 }
 0x265   : > { %v11773_v46 = vor.u32 4788187, %v2295_v29  ;;  %v2491_v4 = vsub.s32 0, %v11742_v63  ;;  %v2590_v15 = vadd.s32 536870912, %v11744_v62  ;;  %v2664_v24 = vor.u32 %v2663_v49, %v2662_v18 }
 0x266   : > { %v11777_v45 = vor.u32 %v2651_v56, %v2650_v21  ;;  %v11779_v33 = vor.u32 %v2654_v7, %v2653_v48  ;;  %v2658_v50 = vor.u32 %v2657_v35, %v2656_v43  ;;  %v2751_v5 = vand.u32 31, %v2749_v2 }
 0x267   : > { %v11781_v61 = vpop.eup %8213  ;;  %v2393_v26 = vsub.s32 32, %v11735_v53  ;;  %vm2665_vm13 = vcmp.lt.s32.totalorder %v11746_v58, 1  ;;  %vm2667_vm2 = vcmp.lt.s32.totalorder %v11746_v58, 3  ;;  %v2674_v51 = vsel %vm2668_vm8, %v2661_v57, 920167782 }
 0x268   : > { %8215 = vsinq.f32 %v11696_v34  ;;  %v11789_v19 = vand.u32 3, %v2206_v38  ;;  %v2398_v54 = vadd.s32 127, %v2397_v3  ;;  %v2641_v39 = vor.u32 8388608, %v2640_v23 }
 0x269   : > { %8217 = vcosq.f32 %v11763_v59  ;;  %v7644_v11 = vmin.u32 %v2491_v4, %v11742_v63  ;;  %v11793_v29 = vshrl.u32 %v2590_v15, 30  ;;  %v2678_v42 = vsel %vm2668_vm8, %v2664_v24, 1326507024  ;;  %v11829_v4 = vld [vmem:[%s8726_s8 + $0xc8] sm:$0xff] }
 0x26a   : > { %vm2666_vm14 = vcmp.lt.s32.totalorder %v11746_v58, 2  ;;  %v2673_v34 = vsel %vm2665_vm13, %v11777_v45, %v11779_v33  ;;  %v2675_v38 = vsel %vm2667_vm2, %v2658_v50, %v2674_v51  ;;  %v11804_v16 = vsub.s32 32, %v2751_v5 }
 0x26b   : > { %18504 = vst [vmem:[#allocation12_spill] sm:$0xff] %v11793_v29  ;;  %v2297_v21 = vand.u32 2147483647, %v11773_v46  ;;  %v2299_v48 = vcvt.s32.f32 %v11767_v0  ;;  %v2394_v18 = vshll.u32 %v11578_v40, %v11735_v53  ;;  %v2395_v49 = vshrl.u32 %v2377_v9, %v2393_v26 }
 0x26c   : > { %v2399_v56 = vshll.u32 %v2398_v54, 23  ;;  %v2677_v7 = vsel %vm2665_vm13, %v11779_v33, %v2658_v50  ;;  %v2679_v43 = vsel %vm2667_vm2, %v2661_v57, %v2678_v42  ;;  %v11815_v35 = vshll.u32 %v2641_v39, 8 }
 0x26d   : > { %v2493_v3 = vclz %v7644_v11  ;;  %v2592_v23 = vshll.u32 %v11793_v29, 30  ;;  %v2676_v0 = vsel %vm2666_vm14, %v2673_v34, %v2675_v38  ;;  %v2649_v40 = vshrl.u32 %v18400_v17, %v11720_v55 }
 0x26e   : > { %v2670_v53 = vsel %vm2668_vm8, %v2658_v50, 2102212464  ;;  %v2763_v9 = vshll.u32 %v18395_v25, %v2751_v5  ;;  %v2764_v57 = vshrl.u32 %v18396_v8, %v11804_v16  ;;  %v2680_v15 = vsel %vm2666_vm14, %v2677_v7, %v2679_v43 }
 0x26f   : > { %v11833_v24 = vshrl.u32 %v2749_v2, 5  ;;  %v2766_v26 = vshll.u32 %v18396_v8, %v2751_v5  ;;  %v2767_v55 = vshrl.u32 %v18482_v12, %v11804_v16  ;;  %vm2000_vm0 = vcmp.lt.s32.totalorder %v11436_v32, 2 }
 0x270   : > { %v11840_v50 = vmul.u32.u64.low %v11815_v35, %v2676_v0  ;;  %v11841_v51 = vmul.u32.u64.high %v11815_v35, %v2676_v0, %v11840_v50  ;;  %v2754_v54 = vshll.u32 %v18400_v17, %v2751_v5  ;;  %v2757_v39 = vshll.u32 %v18380_v27, %v2751_v5 }
 0x271   : > { %v2755_v2 = vshrl.u32 %v18380_v27, %v11804_v16  ;;  %v2758_v11 = vshrl.u32 %v18483_v36, %v11804_v16  ;;  %v2760_v42 = vshll.u32 %v18483_v36, %v2751_v5  ;;  %v2761_v34 = vshrl.u32 %v18395_v25, %v11804_v16 }
 0x272   : > { %v11853_v38 = vpop.eup %8215  ;;  %v11856_v7 = vmul.u32.u64.low %v11815_v35, %v2680_v15  ;;  %v11857_v43 = vmul.u32.u64.high %v11815_v35, %v2680_v15, %v11856_v7  ;;  %v2765_v0 = vor.u32 %v2764_v57, %v2763_v9  ;;  %v2844_v6 = vand.u32 2139095040, %v11829_v4  ;;  %v11873_v57 = vld [vmem:[%s8726_s8 + $0x98] sm:$0xff] }
 0x273   : > { %v11860_v46 = vpop.eup %8217  ;;  %v2396_v1 = vor.u32 %v2395_v49, %v2394_v18  ;;  %v18505_v28 = vand.u32 2147483647, %v11622_v31  ;;  %v2768_v5 = vor.u32 %v2767_v55, %v2766_v26  ;;  %vm2772_vm5 = vcmp.lt.s32.totalorder %v11833_v24, 4 }
 0x274   : > { %vm2108_vm15 = vcmp.eq.s32.totalorder %v11718_v47, 2  ;;  %v2400_v29 = vor.u32 4788187, %v2399_v56  ;;  %v7645_v20 = vadd.s32 4294967294, %v2493_v3  ;;  %v11867_v60 = vsub.s32 %v11744_v62, %v2592_v23 }
 0x275   : > { %v2744_v52 = vand.u32 8388607, %v18505_v28  ;;  %v2669_v9 = vsel %vm2665_vm13, %v2649_v40, %v11777_v45  ;;  %vm2219_vm3 = vcmp.lt.s32.totalorder %v11873_v57, 0  ;;  %v2671_v28 = vsel %vm2667_vm2, %v11779_v33, %v2670_v53  ;;  %v18506_v40 = vld [vmem:[#allocation25_spill] sm:$0xff] }
 0x276   : > { %v11879_v18 = vor.u32 %v2755_v2, %v2754_v54  ;;  %v11881_v49 = vor.u32 %v2758_v11, %v2757_v39  ;;  %v2762_v56 = vor.u32 %v2761_v34, %v2760_v42  ;;  %vm2105_vm12 = vcmp.eq.s32.totalorder %v11718_v47, 0  ;;  %v11899_v39 = vld [vmem:[%s8726_s8 + $0xa0] sm:$0xff] }
 0x277   : > { %vm2769_vm4 = vcmp.lt.s32.totalorder %v11833_v24, 1  ;;  %vm2771_vm6 = vcmp.lt.s32.totalorder %v11833_v24, 3  ;;  %v2778_v62 = vsel %vm2772_vm5, %v2765_v0, 920167782  ;;  %v2845_v45 = vshrl.u32 %v2844_v6, 23 }
 0x278   : > { %8219 = vsinq.f32 %v11763_v59  ;;  %v2300_v3 = vmul.f32 %v2299_v48, %v2297_v21  ;;  %v2745_v33 = vor.u32 8388608, %v2744_v52  ;;  %v2782_v23 = vsel %vm2772_vm5, %v2768_v5, 1326507024 }
 0x279   : > { %v18507_v53 = vand.u32 2147483647, %v18506_v40  ;;  %v2401_v26 = vand.u32 2147483647, %v2400_v29  ;;  %v2403_v55 = vcvt.s32.f32 %v2396_v1  ;;  %vm7646_vm1 = vcmp.lt.s32.totalorder %v7645_v20, 0 }
 0x27a   : > { %v2595_v54 = vsub.s32 0, %v11867_v60  ;;  %vm2323_vm9 = vcmp.lt.s32.totalorder %v11899_v39, 0  ;;  %v2672_v52 = vsel %vm2666_vm14, %v2669_v9, %v2671_v28  ;;  %vm2770_vm10 = vcmp.lt.s32.totalorder %v11833_v24, 2  ;;  %v18514_v9 = vld [vmem:[#allocation29_spill] sm:$0xff] }
 0x27b   : > { %vm11893_vm7 = vcmp.le.f32.partialorder %v18507_v53, 0.7853982  ;;  %v2777_v6 = vsel %vm2769_vm4, %v11879_v18, %v11881_v49  ;;  %v2779_v1 = vsel %vm2771_vm6, %v2762_v56, %v2778_v62  ;;  %v2691_v59 = vadd.s32 1, %v11841_v51 }
 0x27c   : > { %v2781_v29 = vsel %vm2769_vm4, %v11881_v49, %v2762_v56  ;;  %v2783_v58 = vsel %vm2771_vm6, %v2765_v0, %v2782_v23  ;;  %v7659_v21 = vadd.s32 4294967169, %v2845_v45  ;;  %v11921_v48 = vsel %vm2000_vm0, %v11727_v14, %v11716_v37  ;;  %v18513_v14 = vld [vmem:[#allocation37_spill] sm:$0xff] }
 0x27d   : > { %v2109_v2 = vxor.u32 2147483648, %v11781_v61  ;;  %vm2690_vm11 = vc.u32 %v11857_v43, %v11840_v50  ;;  %v11926_v11 = vshll.u32 %v2745_v33, 8  ;;  %v2106_v42 = vxor.u32 2147483648, %v11853_v38 }
 0x27e   : > { %v2301_v34 = vxor.u32 2147483648, %v2300_v3  ;;  %v18510_v7 = vand.u32 2147483647, %v11029_v41  ;;  %v11936_v32 = vsel %vm7646_vm1, 0, %v7645_v20  ;;  %v2780_v37 = vsel %vm2770_vm10, %v2777_v6, %v2779_v1  ;;  %v18515_v1 = vld [vmem:[#allocation35_spill] sm:$0xff] }
 0x27f   : > { %vm2104_vm13 = vcmp.lt.s32.totalorder %v11718_v47, 2  ;;  %v2303_v5 = vsub.s32 4, %v18513_v14  ;;  %v2407_v28 = vsub.s32 4, %v18514_v9  ;;  %v2688_v62 = vmul.u32 %v11815_v35, %v2672_v52 }
 0x280   : > { %vm11931_vm8 = vcmp.le.f32.partialorder %v18510_v7, 0.7853982  ;;  %v2784_v41 = vsel %vm2770_vm10, %v2781_v29, %v2783_v58  ;;  %vm2209_vm2 = vcmp.eq.s32.totalorder %v11789_v19, 0  ;;  %vm2212_vm14 = vcmp.eq.s32.totalorder %v11789_v19, 2 }
 0x281   : > { %v2404_v20 = vmul.f32 %v2403_v55, %v2401_v26  ;;  %v7648_v45 = vmin.u32 %v2595_v54, %v11867_v60  ;;  %v2692_v33 = vsel %vm2690_vm11, %v2691_v59, %v11841_v51  ;;  %v2851_v23 = vadd.s32 1, %v7659_v21 }
 0x282   : > { %v2110_v35 = vsel %vm2108_vm15, %v2109_v2, %v11853_v38  ;;  %v2501_v40 = vsub.s32 4294967266, %v11936_v32  ;;  %v11958_v53 = vmul.u32.u64.low %v11926_v11, %v2780_v37  ;;  %v11959_v52 = vmul.u32.u64.high %v11926_v11, %v2780_v37, %v11958_v53  ;;  %v8220_v6 = vpop.eup %8219 }
 0x283   : > { %v2302_v26 = vsel %vm2219_vm3, %v2301_v34, %v2300_v3  ;;  %v2753_v55 = vshrl.u32 %v18400_v17, %v11804_v16  ;;  %v11967_v51 = vmul.u32.u64.low %v11926_v11, %v2784_v41  ;;  %v11968_v54 = vmul.u32.u64.high %v11926_v11, %v2784_v41, %v11967_v51 }
 0x284   : > { %vm1997_vm0 = vweird.f32 %v18515_v1  ;;  %vm2101_vm15 = vweird.f32 %v11572_v13  ;;  %v2107_v38 = vsel %vm2105_vm12, %v11781_v61, %v2106_v42  ;;  %v2304_v3 = vsel %vm2219_vm3, %v2303_v5, %v18513_v14 }
 0x285   : > { %v11978_v59 = vadd.s32 %v2692_v33, %v2688_v62  ;;  %v2774_v16 = vsel %vm2772_vm5, %v2762_v56, 2102212464  ;;  %v2405_v29 = vxor.u32 2147483648, %v2404_v20  ;;  %v2408_v58 = vsel %vm2323_vm9, %v2407_v28, %v18514_v9  ;;  %v12011_v33 = vld [vmem:[%s8726_s8 + $0xd0] sm:$0xff] }
 0x286   : > { %v2597_v21 = vclz %v7648_v45  ;;  %vm2852_vm1 = vcmp.gt.s32.totalorder %v2851_v23, 0  ;;  %v2305_v61 = vsel %vm11893_vm7, %v11873_v57, %v2302_v26  ;;  %v2481_v2 = vadd.s32 %v11534_v22, %v11549_v44  ;;  %18516 = vst [vmem:[#allocation16_spill] sm:$0xff] %v12011_v33 }
 0x287   : > { %v2497_v42 = vsub.s32 32, %v11936_v32  ;;  %v2502_v34 = vadd.s32 127, %v2501_v40  ;;  %v2213_v7 = vxor.u32 2147483648, %v11860_v46  ;;  %v2306_v56 = vsel %vm11893_vm7, 0, %v2304_v3 }
 0x288   : > { %v2773_v37 = vsel %vm2769_vm4, %v2753_v55, %v11879_v18  ;;  %v2775_v14 = vsel %vm2771_vm6, %v11881_v49, %v2774_v16  ;;  %v2210_v5 = vxor.u32 2147483648, %v8220_v6  ;;  %v2410_v22 = vsel %vm11931_vm8, 0, %v2408_v58 }
 0x289   : > { %v2694_v44 = vadd.s32 536870912, %v11978_v59  ;;  %v2853_v9 = vsel %vm2852_vm1, %v2851_v23, 0  ;;  %8221 = vcosq.f32 %v2305_v61  ;;  %v2406_v15 = vsel %vm2323_vm9, %v2405_v29, %v2404_v20 }
 0x28a   : > { %v2498_v28 = vshll.u32 %v11742_v63, %v11936_v32  ;;  %v7649_v62 = vadd.s32 4294967294, %v2597_v21  ;;  %v2499_v18 = vshrl.u32 %v2481_v2, %v2497_v42  ;;  %v2503_v41 = vshll.u32 %v2502_v34, 23 }
 0x28b   : > { %v2776_v49 = vsel %vm2770_vm10, %v2773_v37, %v2775_v14  ;;  %v2795_v45 = vadd.s32 1, %v11959_v52  ;;  %v2111_v23 = vsel %vm2104_vm13, %v2107_v38, %v2110_v35  ;;  %vm2208_vm5 = vcmp.lt.s32.totalorder %v11789_v19, 2 }
 0x28c   : > { %vm2794_vm3 = vc.u32 %v11968_v54, %v11958_v53  ;;  %v2855_v20 = vand.u32 31, %v2853_v9  ;;  %v2211_v63 = vsel %vm2209_vm2, %v11860_v46, %v2210_v5  ;;  %v2214_v24 = vsel %vm2212_vm14, %v2213_v7, %v8220_v6 }
 0x28d   : > { %v2310_v32 = vadd.s32 3, %v2306_v56  ;;  %v12023_v40 = vshrl.u32 %v2694_v44, 30  ;;  %v2409_v47 = vsel %vm11931_vm8, %v11899_v39, %v2406_v15  ;;  %v2414_v35 = vadd.s32 3, %v2410_v22 }
 0x28e   : > { %vm7650_vm12 = vcmp.lt.s32.totalorder %v7649_v62, 0  ;;  %v2792_v26 = vmul.u32 %v11926_v11, %v2776_v49  ;;  %v2500_v55 = vor.u32 %v2499_v18, %v2498_v28  ;;  %v2504_v51 = vor.u32 4788187, %v2503_v41  ;;  %v12083_v41 = vld [vmem:[%s8726_s8 + $0xa8] sm:$0xff] }
 0x28f   : > { %v2796_v38 = vsel %vm2794_vm3, %v2795_v45, %v11959_v52  ;;  %v2948_v46 = vand.u32 2139095040, %v12011_v33  ;;  %v12034_v6 = vsel %vm1997_vm0, nan, %v11921_v48  ;;  %v12038_v3 = vsel %vm2101_vm15, nan, %v2111_v23 }
 0x290   : > { %18517 = vst [vmem:[#allocation25_spill] sm:$0xff] %v12034_v6  ;;  %18518 = vst [vmem:[#allocation37_spill] sm:$0xff] %v12038_v3  ;;  %8223 = vsinq.f32 %v2305_v61  ;;  %v12040_v0 = vsub.s32 32, %v2855_v20  ;;  %v12044_v11 = vsel %vm2208_vm5, %v2211_v63, %v2214_v24  ;;  %v12046_v16 = vand.u32 3, %v2310_v32 }
 0x291   : > { %v2600_v52 = vsel %vm7650_vm12, 0, %v7649_v62  ;;  %v2696_v29 = vshll.u32 %v12023_v40, 30  ;;  %8225 = vcosq.f32 %v2409_v47  ;;  %v12049_v1 = vand.u32 3, %v2414_v35 }
 0x292   : > { %v2585_v13 = vadd.s32 %v11659_v10, %v11667_v30  ;;  %v12053_v48 = vadd.s32 %v2796_v38, %v2792_v26  ;;  %v2505_v58 = vand.u32 2147483647, %v2504_v51  ;;  %v2507_v21 = vcvt.s32.f32 %v2500_v55 }
 0x293   : > { %v18251_v61 = vand.u32 2147483647, %v11829_v4  ;;  %v2949_v19 = vshrl.u32 %v2948_v46, 23  ;;  %v12056_v2 = vpop.eup %8221  ;;  %v2601_v42 = vsub.s32 32, %v2600_v52  ;;  %v2605_v34 = vsub.s32 4294967266, %v2600_v52 }
 0x294   : > { %v2867_v7 = vshll.u32 %v18395_v25, %v2855_v20  ;;  %v2868_v56 = vshrl.u32 %v18396_v8, %v12040_v0  ;;  %v12062_v37 = vsub.s32 %v11978_v59, %v2696_v29  ;;  %v12064_v10 = vshrl.u32 %v2853_v9, 5 }
 0x295   : > { %v2870_v30 = vshll.u32 %v18396_v8, %v2855_v20  ;;  %v2871_v14 = vshrl.u32 %v18482_v12, %v12040_v0  ;;  %vm2313_vm4 = vcmp.eq.s32.totalorder %v12046_v16, 0  ;;  %vm2316_vm6 = vcmp.eq.s32.totalorder %v12046_v16, 2 }
 0x296   : > { %v2798_v5 = vadd.s32 536870912, %v12053_v48  ;;  %v2858_v22 = vshll.u32 %v18400_v17, %v2855_v20  ;;  %v2861_v44 = vshll.u32 %v18380_v27, %v2855_v20  ;;  %v2864_v59 = vshll.u32 %v18483_v36, %v2855_v20 }
 0x297   : > { %v2859_v9 = vshrl.u32 %v18380_v27, %v12040_v0  ;;  %v2862_v15 = vshrl.u32 %v18483_v36, %v12040_v0  ;;  %v2865_v28 = vshrl.u32 %v18395_v25, %v12040_v0  ;;  %v7663_v62 = vadd.s32 4294967169, %v2949_v19  ;;  %v12278_v19 = vld [vmem:[%s8726_s8 + $0xe0] sm:$0xff] }
 0x298   : > { %v2317_v18 = vxor.u32 2147483648, %v12056_v2  ;;  %8227 = vsinq.f32 %v2409_v47  ;;  %vm2427_vm7 = vcmp.lt.s32.totalorder %v12083_v41, 0  ;;  %v2606_v49 = vadd.s32 127, %v2605_v34 }
 0x299   : > { %v2869_v45 = vor.u32 %v2868_v56, %v2867_v7  ;;  %v2508_v23 = vmul.f32 %v2507_v21, %v2505_v58  ;;  %v2848_v20 = vand.u32 8388607, %v18251_v61  ;;  %v2872_v63 = vor.u32 %v2871_v14, %v2870_v30  ;;  %v18519_v58 = vld [vmem:[#allocation34_spill] sm:$0xff]  ;;  %v18525_v14 = vld [vmem:[#allocation33_spill] sm:$0xff] }
 0x29a   : > { %vm2876_vm9 = vcmp.lt.s32.totalorder %v12064_v10, 4  ;;  %v8224_v24 = vpop.eup %8223  ;;  %v2602_v32 = vshll.u32 %v11867_v60, %v2600_v52  ;;  %v2603_v35 = vshrl.u32 %v2585_v13, %v2601_v42  ;;  %v2699_v47 = vsub.s32 0, %v12062_v37  ;;  %v12106_v52 = vld [vmem:[%s8726_s8 + $0xd8] sm:$0xff]  ;;  %v18524_v42 = vld [vmem:[#allocation31_spill] sm:$0xff]  ;;  %18532 = vst [vmem:[#allocation34_spill] sm:$0xff] %v12278_v19 }
 0x29b   : > { %v12091_v26 = vshrl.u32 %v2798_v5, 30  ;;  %v2860_v55 = vor.u32 %v2859_v9, %v2858_v22  ;;  %v2863_v51 = vor.u32 %v2862_v15, %v2861_v44  ;;  %v2866_v38 = vor.u32 %v2865_v28, %v2864_v59  ;;  %v12093_v29 = vpop.eup %8225  ;;  %18523 = vst [vmem:[#allocation29_spill] sm:$0xff] %v12106_v52  ;;  %v12122_v28 = vld [vmem:[%s8726_s8 + $0xb0] sm:$0xff] }
 0x29c   : > { %v2955_v46 = vadd.s32 1, %v7663_v62  ;;  %v18520_v21 = vand.u32 2147483647, %v18519_v58  ;;  %v2607_v34 = vshll.u32 %v2606_v49, 23  ;;  %vm2873_vm11 = vcmp.lt.s32.totalorder %v12064_v10, 1 }
 0x29d   : > { %vm2875_vm8 = vcmp.lt.s32.totalorder %v12064_v10, 3  ;;  %v2882_v60 = vsel %vm2876_vm9, %v2869_v45, 920167782  ;;  %v2314_v13 = vxor.u32 2147483648, %v8224_v24  ;;  %v2511_v7 = vsub.s32 4, %v18524_v42 }
 0x29e   : > { %vm12097_vm10 = vcmp.le.f32.partialorder %v18520_v21, 0.7853982  ;;  %v2849_v56 = vor.u32 8388608, %v2848_v20  ;;  %v2886_v30 = vsel %vm2876_vm9, %v2872_v63, 1326507024  ;;  %vm2205_vm13 = vweird.f32 %v18525_v14 }
 0x29f   : > { %v2509_v5 = vxor.u32 2147483648, %v2508_v23  ;;  %v2604_v22 = vor.u32 %v2603_v35, %v2602_v32  ;;  %v7652_v44 = vmin.u32 %v2699_v47, %v12062_v37  ;;  %v2800_v59 = vshll.u32 %v12091_v26, 30 }
 0x2a0   : > { %vm2312_vm2 = vcmp.lt.s32.totalorder %v12046_v16, 2  ;;  %vm2874_vm14 = vcmp.lt.s32.totalorder %v12064_v10, 2  ;;  %v2881_v9 = vsel %vm2873_vm11, %v2860_v55, %v2863_v51  ;;  %v2883_v15 = vsel %vm2875_vm8, %v2866_v38, %v2882_v60 }
 0x2a1   : > { %vm2956_vm0 = vcmp.gt.s32.totalorder %v2955_v46, 0  ;;  %vm2417_vm15 = vcmp.eq.s32.totalorder %v12049_v1, 0  ;;  %vm2531_vm1 = vcmp.lt.s32.totalorder %v12122_v28, 0  ;;  %v2608_v62 = vor.u32 4788187, %v2607_v34 }
 0x2a2   : > { %v2885_v49 = vsel %vm2873_vm11, %v2863_v51, %v2866_v38  ;;  %v2887_v20 = vsel %vm2875_vm8, %v2869_v45, %v2886_v30  ;;  %v3052_v63 = vand.u32 2139095040, %v12106_v52  ;;  %v2315_v32 = vsel %vm2313_vm4, %v12056_v2, %v2314_v13  ;;  %v8228_v58 = vpop.eup %8227  ;;  %v18526_v13 = vld [vmem:[#allocation12_spill] sm:$0xff] }
 0x2a3   : > { %v2318_v35 = vsel %vm2316_vm6, %v2317_v18, %v8224_v24  ;;  %vm2420_vm5 = vcmp.eq.s32.totalorder %v12049_v1, 2  ;;  %v12136_v47 = vshll.u32 %v2849_v56, 8  ;;  %v2512_v21 = vsel %vm2427_vm7, %v2511_v7, %v18524_v42 }
 0x2a4   : > { %v2701_v34 = vclz %v7652_v44  ;;  %v2884_v45 = vsel %vm2874_vm14, %v2881_v9, %v2883_v15  ;;  %v2957_v60 = vsel %vm2956_vm0, %v2955_v46, 0  ;;  %v2510_v2 = vsel %vm2427_vm7, %v2509_v5, %v2508_v23 }
 0x2a5   : > { %v2615_v18 = vsub.s32 4, %v18526_v13  ;;  %v12148_v24 = vsub.s32 %v12053_v48, %v2800_v59  ;;  %v2888_v56 = vsel %vm2874_vm14, %v2885_v49, %v2887_v20  ;;  %v2609_v30 = vand.u32 2147483647, %v2608_v62 }
 0x2a6   : > { %v2611_v61 = vcvt.s32.f32 %v2604_v22  ;;  %v2857_v42 = vshrl.u32 %v18400_v17, %v12040_v0  ;;  %v3053_v7 = vshrl.u32 %v3052_v63, 23  ;;  %v2878_v46 = vsel %vm2876_vm9, %v2866_v38, 2102212464 }
 0x2a7   : > { %v12157_v44 = vmul.u32.u64.low %v12136_v47, %v2884_v45  ;;  %v12158_v23 = vmul.u32.u64.high %v12136_v47, %v2884_v45, %v12157_v44  ;;  %v2959_v5 = vand.u32 31, %v2957_v60  ;;  %v2421_v48 = vxor.u32 2147483648, %v12093_v29 }
 0x2a8   : > { %v7653_v59 = vadd.s32 4294967294, %v2701_v34  ;;  %v12163_v9 = vmul.u32.u64.low %v12136_v47, %v2888_v56  ;;  %v12164_v15 = vmul.u32.u64.high %v12136_v47, %v2888_v56, %v12163_v9  ;;  %v2418_v22 = vxor.u32 2147483648, %v8228_v58  ;;  %v18528_v56 = vld [vmem:[#allocation36_spill] sm:$0xff] }
 0x2a9   : > { %v2513_v0 = vsel %vm12097_vm10, %v12083_v41, %v2510_v2  ;;  %v2514_v38 = vsel %vm12097_vm10, 0, %v2512_v21  ;;  %v2803_v62 = vsub.s32 0, %v12148_v24  ;;  %v2612_v49 = vmul.f32 %v2611_v61, %v2609_v30 }
 0x2aa   : > { %v2877_v20 = vsel %vm2873_vm11, %v2857_v42, %v2860_v55  ;;  %v2879_v63 = vsel %vm2875_vm8, %v2863_v51, %v2878_v46  ;;  %v7667_v34 = vadd.s32 4294967169, %v3053_v7  ;;  %v12179_v45 = vsel %vm2205_vm13, nan, %v12044_v11 }
 0x2ab   : > { %18527 = vst [vmem:[#allocation35_spill] sm:$0xff] %v12179_v45  ;;  %v18529_v2 = vand.u32 2147483647, %v18528_v56  ;;  %v2616_v61 = vsel %vm2531_vm1, %v2615_v18, %v18526_v13  ;;  %v12190_v55 = vsub.s32 32, %v2959_v5  ;;  %v12194_v51 = vsel %vm2312_vm2, %v2315_v32, %v2318_v35 }
 0x2ac   : > { %v2422_v11 = vsel %vm2420_vm5, %v2421_v48, %v8228_v58  ;;  %v2518_v14 = vadd.s32 3, %v2514_v38  ;;  %vm7654_vm12 = vcmp.lt.s32.totalorder %v7653_v59, 0  ;;  %vm2416_vm4 = vcmp.lt.s32.totalorder %v12049_v1, 2 }
 0x2ad   : > { %vm12183_vm3 = vcmp.le.f32.partialorder %v18529_v2, 0.7853982  ;;  %v2419_v21 = vsel %vm2417_vm15, %v12093_v29, %v2418_v22  ;;  %8229 = vcosq.f32 %v2513_v0  ;;  %v7656_v13 = vmin.u32 %v2803_v62, %v12148_v24 }
 0x2ae   : > { %v2880_v18 = vsel %vm2874_vm14, %v2877_v20, %v2879_v63  ;;  %8231 = vsinq.f32 %v2513_v0  ;;  %v2613_v16 = vxor.u32 2147483648, %v2612_v49  ;;  %v2618_v32 = vsel %vm12183_vm3, 0, %v2616_v61 }
 0x2af   : > { %v3059_v35 = vadd.s32 1, %v7667_v34  ;;  %v12207_v58 = vsel %vm7654_vm12, 0, %v7653_v59  ;;  %v2899_v30 = vadd.s32 1, %v12158_v23  ;;  %v2971_v42 = vshll.u32 %v18395_v25, %v2959_v5 }
 0x2b0   : > { %v2972_v29 = vshrl.u32 %v18396_v8, %v12190_v55  ;;  %v2896_v7 = vmul.u32 %v12136_v47, %v2880_v18  ;;  %vm2898_vm6 = vc.u32 %v12164_v15, %v12157_v44  ;;  %v18252_v10 = vand.u32 2147483647, %v12011_v33 }
 0x2b1   : > { %v12217_v46 = vshrl.u32 %v2957_v60, 5  ;;  %v2805_v48 = vclz %v7656_v13  ;;  %v2962_v59 = vshll.u32 %v18400_v17, %v2959_v5  ;;  %v2965_v9 = vshll.u32 %v18380_v27, %v2959_v5 }
 0x2b2   : > { %v2968_v22 = vshll.u32 %v18483_v36, %v2959_v5  ;;  %v2963_v0 = vshrl.u32 %v18380_v27, %v12190_v55  ;;  %v2966_v47 = vshrl.u32 %v18483_v36, %v12190_v55  ;;  %v2969_v38 = vshrl.u32 %v18395_v25, %v12190_v55 }
 0x2b3   : > { %vm3060_vm7 = vcmp.gt.s32.totalorder %v3059_v35, 0  ;;  %v2900_v60 = vsel %vm2898_vm6, %v2899_v30, %v12158_v23  ;;  %v2973_v62 = vor.u32 %v2972_v29, %v2971_v42  ;;  %v2974_v20 = vshll.u32 %v18396_v8, %v2959_v5 }
 0x2b4   : > { %v2975_v63 = vshrl.u32 %v18482_v12, %v12190_v55  ;;  %v2614_v34 = vsel %vm2531_vm1, %v2613_v16, %v2612_v49  ;;  %v2689_v56 = vadd.s32 %v11840_v50, %v11857_v43  ;;  %v2952_v2 = vand.u32 8388607, %v18252_v10 }
 0x2b5   : > { %vm2980_vm9 = vcmp.lt.s32.totalorder %v12217_v46, 4  ;;  %v2705_v61 = vsub.s32 32, %v12207_v58  ;;  %v2709_v23 = vsub.s32 4294967266, %v12207_v58  ;;  %v7657_v13 = vadd.s32 4294967294, %v2805_v48 }
 0x2b6   : > { %v3061_v5 = vsel %vm3060_vm7, %v3059_v35, 0  ;;  %v12241_v18 = vadd.s32 %v2900_v60, %v2896_v7  ;;  %v12243_v30 = vor.u32 %v2963_v0, %v2962_v59  ;;  %v12245_v42 = vor.u32 %v2966_v47, %v2965_v9 }
 0x2b7   : > { %v2970_v49 = vor.u32 %v2969_v38, %v2968_v22  ;;  %v12247_v16 = vpop.eup %8229  ;;  %v2976_v50 = vor.u32 %v2975_v63, %v2974_v20  ;;  %vm2977_vm10 = vcmp.lt.s32.totalorder %v12217_v46, 1  ;;  %vm2979_vm11 = vcmp.lt.s32.totalorder %v12217_v46, 3 }
 0x2b8   : > { %v2986_v43 = vsel %vm2980_vm9, %v2973_v62, 920167782  ;;  %v12253_v29 = vpop.eup %8231  ;;  %v12257_v35 = vsel %vm2416_vm4, %v2419_v21, %v2422_v11  ;;  %v12259_v7 = vand.u32 3, %v2518_v14  ;;  %v2953_v48 = vor.u32 8388608, %v2952_v2 }
 0x2b9   : > { %v3063_v59 = vand.u32 31, %v3061_v5  ;;  %v12264_v9 = vsel %vm12183_vm3, %v12122_v28, %v2614_v34  ;;  %v12266_v22 = vadd.s32 3, %v2618_v32  ;;  %v2706_v0 = vshll.u32 %v12062_v37, %v12207_v58 }
 0x2ba   : > { %vm7658_vm8 = vcmp.lt.s32.totalorder %v7657_v13, 0  ;;  %v2707_v47 = vshrl.u32 %v2689_v56, %v2705_v61  ;;  %vm2978_vm13 = vcmp.lt.s32.totalorder %v12217_v46, 2  ;;  %v2985_v1 = vsel %vm2977_vm10, %v12243_v30, %v12245_v42 }
 0x2bb   : > { %v2987_v11 = vsel %vm2979_vm11, %v2970_v49, %v2986_v43  ;;  %v2710_v21 = vadd.s32 127, %v2709_v23  ;;  %v2902_v32 = vadd.s32 536870912, %v12241_v18  ;;  %v2990_v37 = vsel %vm2980_vm9, %v2976_v50, 1326507024 }
 0x2bc   : > { %v12285_v38 = vsel %vm7658_vm8, 0, %v7657_v13  ;;  %v12287_v60 = vshll.u32 %v2953_v48, 8  ;;  %v12289_v20 = vsub.s32 32, %v3063_v59  ;;  %8233 = vcosq.f32 %v12264_v9 }
 0x2bd   : > { %v2793_v34 = vadd.s32 %v11958_v53, %v11968_v54  ;;  %v2988_v56 = vsel %vm2978_vm13, %v2985_v1, %v2987_v11  ;;  %v12297_v2 = vor.u32 %v2707_v47, %v2706_v0  ;;  %v2989_v61 = vsel %vm2977_vm10, %v12245_v42, %v2970_v49 }
 0x2be   : > { %v2991_v23 = vsel %vm2979_vm11, %v2973_v62, %v2990_v37  ;;  %v3156_v13 = vand.u32 2139095040, %v12278_v19  ;;  %v2711_v50 = vshll.u32 %v2710_v21, 23  ;;  %v2813_v43 = vsub.s32 4294967266, %v12285_v38 }
 0x2bf   : > { %v12306_v48 = vshrl.u32 %v2902_v32, 30  ;;  %v12310_v54 = vmul.u32.u64.low %v12287_v60, %v2988_v56  ;;  %v12311_v0 = vmul.u32.u64.high %v12287_v60, %v2988_v56, %v12310_v54  ;;  %v3075_v47 = vshll.u32 %v18395_v25, %v3063_v59 }
 0x2c0   : > { %v3076_v1 = vshrl.u32 %v18396_v8, %v12289_v20  ;;  %v2992_v62 = vsel %vm2978_vm13, %v2989_v61, %v2991_v23  ;;  %v12319_v11 = vshrl.u32 %v3061_v5, 5  ;;  %v3078_v21 = vshll.u32 %v18396_v8, %v3063_v59 }
 0x2c1   : > { %v3079_v32 = vshrl.u32 %v18482_v12, %v12289_v20  ;;  %v2961_v37 = vshrl.u32 %v18400_v17, %v12190_v55  ;;  %v3066_v56 = vshll.u32 %v18400_v17, %v3063_v59  ;;  %v3069_v10 = vshll.u32 %v18380_v27, %v3063_v59 }
 0x2c2   : > { %v3157_v63 = vshrl.u32 %v3156_v13, 23  ;;  %v3067_v14 = vshrl.u32 %v18380_v27, %v12289_v20  ;;  %v3070_v5 = vshrl.u32 %v18483_v36, %v12289_v20  ;;  %v3072_v61 = vshll.u32 %v18483_v36, %v3063_v59 }
 0x2c3   : > { %v3073_v23 = vshrl.u32 %v18395_v25, %v12289_v20  ;;  %v2982_v55 = vsel %vm2980_vm9, %v2970_v49, 2102212464  ;;  %v12338_v58 = vmul.u32.u64.low %v12287_v60, %v2992_v62  ;;  %v12339_v53 = vmul.u32.u64.high %v12287_v60, %v2992_v62, %v12338_v58  ;;  %v12354_v62 = vld [vmem:[%s8726_s8 + $0xb8] sm:$0xff] }
 0x2c4   : > { %v3077_v13 = vor.u32 %v3076_v1, %v3075_v47  ;;  %vm2521_vm2 = vcmp.eq.s32.totalorder %v12259_v7, 0  ;;  %vm2524_vm14 = vcmp.eq.s32.totalorder %v12259_v7, 2  ;;  %v2904_v45 = vshll.u32 %v12306_v48, 30 }
 0x2c5   : > { %v18533_v59 = vand.u32 2147483647, %v12106_v52  ;;  %v3080_v6 = vor.u32 %v3079_v32, %v3078_v21  ;;  %vm3084_vm0 = vcmp.lt.s32.totalorder %v12319_v11, 4  ;;  %v2809_v33 = vsub.s32 32, %v12285_v38 }
 0x2c6   : > { %v2814_v49 = vadd.s32 127, %v2813_v43  ;;  %v2981_v58 = vsel %vm2977_vm10, %v2961_v37, %v12243_v30  ;;  %v7671_v47 = vadd.s32 4294967169, %v3157_v63  ;;  %v12351_v1 = vpop.eup %8233  ;;  %vm2635_vm15 = vcmp.lt.s32.totalorder %v12354_v62, 0 }
 0x2c7   : > { %v3056_v3 = vand.u32 8388607, %v18533_v59  ;;  %v2983_v21 = vsel %vm2979_vm11, %v12245_v42, %v2982_v55  ;;  %v12360_v32 = vor.u32 %v3067_v14, %v3066_v56  ;;  %v12362_v59 = vor.u32 %v3070_v5, %v3069_v10 }
 0x2c8   : > { %v3074_v43 = vor.u32 %v3073_v23, %v3072_v61  ;;  %v2712_v52 = vor.u32 4788187, %v2711_v50  ;;  %vm3081_vm1 = vcmp.lt.s32.totalorder %v12319_v11, 1  ;;  %vm3083_vm5 = vcmp.lt.s32.totalorder %v12319_v11, 3 }
 0x2c9   : > { %v3090_v30 = vsel %vm3084_vm0, %v3077_v13, 920167782  ;;  %vm2309_vm3 = vweird.f32 %v11873_v57  ;;  %v2810_v63 = vshll.u32 %v12148_v24, %v12285_v38  ;;  %v12372_v42 = vsub.s32 %v12241_v18, %v2904_v45 }
 0x2ca   : > { %v3057_v14 = vor.u32 8388608, %v3056_v3  ;;  %v3094_v10 = vsel %vm3084_vm0, %v3080_v6, 1326507024  ;;  %vm2413_vm12 = vweird.f32 %v11899_v39  ;;  %vm2520_vm4 = vcmp.lt.s32.totalorder %v12259_v7, 2 }
 0x2cb   : > { %v2811_v50 = vshrl.u32 %v2793_v34, %v2809_v33  ;;  %v2815_v37 = vshll.u32 %v2814_v49, 23  ;;  %v2984_v56 = vsel %vm2978_vm13, %v2981_v58, %v2983_v21  ;;  %v3163_v5 = vadd.s32 1, %v7671_v47  ;;  %v18534_v33 = vld [vmem:[#allocation28_spill] sm:$0xff] }
 0x2cc   : > { %v3003_v24 = vadd.s32 1, %v12311_v0  ;;  %vm3082_vm6 = vcmp.lt.s32.totalorder %v12319_v11, 2  ;;  %v3089_v6 = vsel %vm3081_vm1, %v12360_v32, %v12362_v59  ;;  %v3091_v3 = vsel %vm3083_vm5, %v3074_v43, %v3090_v30  ;;  %v12403_v34 = vld [vmem:[%s8726_s8 + $0xe8] sm:$0xff] }
 0x2cd   : > { %8235 = vsinq.f32 %v12264_v9  ;;  %v18535_v45 = vand.u32 2147483647, %v18534_v33  ;;  %vm3002_vm9 = vc.u32 %v12339_v53, %v12310_v54  ;;  %v3093_v18 = vsel %vm3081_vm1, %v12362_v59, %v3074_v43 }
 0x2ce   : > { %v3095_v38 = vsel %vm3083_vm5, %v3077_v13, %v3094_v10  ;;  %vm2517_vm10 = vweird.f32 %v12083_v41  ;;  %v12407_v9 = vand.u32 3, %v12266_v22  ;;  %v2715_v61 = vcvt.s32.f32 %v12297_v2 }
 0x2cf   : > { %vm12391_vm7 = vcmp.le.f32.partialorder %v18535_v45, 0.7853982  ;;  %v2907_v23 = vsub.s32 0, %v12372_v42  ;;  %v12411_v55 = vshll.u32 %v3057_v14, 8  ;;  %v2713_v49 = vand.u32 2147483647, %v2712_v52 }
 0x2d0   : > { %v3000_v58 = vmul.u32 %v12287_v60, %v2984_v56  ;;  %v3092_v47 = vsel %vm3082_vm6, %v3089_v6, %v3091_v3  ;;  %vm3164_vm11 = vcmp.gt.s32.totalorder %v3163_v5, 0  ;;  %v2812_v13 = vor.u32 %v2811_v50, %v2810_v63 }
 0x2d1   : > { %v2816_v21 = vor.u32 4788187, %v2815_v37  ;;  %v3004_v30 = vsel %vm3002_vm9, %v3003_v24, %v12311_v0  ;;  %v3096_v22 = vsel %vm3082_vm6, %v3093_v18, %v3095_v38  ;;  %v18538_v2 = vxor.u32 2147483648, %v12253_v29 }
 0x2d2   : > { %v18539_v60 = vxor.u32 2147483648, %v12247_v16  ;;  %v18540_v63 = vsub.s32 4, %v12023_v40  ;;  %v3260_v10 = vand.u32 2139095040, %v12403_v34  ;;  %v7660_v50 = vmin.u32 %v2907_v23, %v12372_v42 }
 0x2d3   : > { %v2523_v52 = vsel %vm2521_vm2, %v12247_v16, %v18538_v2  ;;  %v12437_v37 = vmul.u32.u64.low %v12411_v55, %v3092_v47  ;;  %v12438_v56 = vmul.u32.u64.high %v12411_v55, %v3092_v47, %v12437_v37  ;;  %v3165_v24 = vsel %vm3164_vm11, %v3163_v5, 0  ;;  %v12457_v5 = vld [vmem:[%s8726_s8 + $0xc0] sm:$0xff] }
 0x2d4   : > { %v2526_v14 = vsel %vm2524_vm14, %v18539_v60, %v12253_v29  ;;  %v2720_v0 = vsel %vm2635_vm15, %v18540_v63, %v12023_v40  ;;  %v12441_v16 = vadd.s32 %v3004_v30, %v3000_v58  ;;  %v3065_v29 = vshrl.u32 %v18400_v17, %v12289_v20 }
 0x2d5   : > { %v12446_v6 = vmul.u32.u64.low %v12411_v55, %v3096_v22  ;;  %v12447_v3 = vmul.u32.u64.high %v12411_v55, %v3096_v22, %v12446_v6  ;;  %v2716_v40 = vmul.f32 %v2715_v61, %v2713_v49  ;;  %v2817_v33 = vand.u32 2147483647, %v2816_v21 }
 0x2d6   : > { %v2819_v45 = vcvt.s32.f32 %v2812_v13  ;;  %v3086_v18 = vsel %vm3084_vm0, %v3074_v43, 2102212464  ;;  %v12454_v38 = vsel %vm2309_vm3, nan, %v12194_v51  ;;  %vm2739_vm8 = vcmp.lt.s32.totalorder %v12457_v5, 0 }
 0x2d7   : > { %18541 = vst [vmem:[#allocation31_spill] sm:$0xff] %v12454_v38  ;;  %v3167_v20 = vand.u32 31, %v3165_v24  ;;  %v3261_v23 = vshrl.u32 %v3260_v10, 23  ;;  %v12463_v61 = vsel %vm2413_vm12, nan, %v12257_v35  ;;  %v2527_v49 = vsel %vm2520_vm4, %v2523_v52, %v2526_v14  ;;  %v8236_v51 = vpop.eup %8235 }
 0x2d8   : > { %18542 = vst [vmem:[#allocation33_spill] sm:$0xff] %v12463_v61  ;;  %v2629_v43 = vxor.u32 2147483648, %v12351_v1  ;;  %v2722_v57 = vsel %vm12391_vm7, 0, %v2720_v0  ;;  %v2909_v58 = vclz %v7660_v50  ;;  %v3006_v47 = vadd.s32 536870912, %v12441_v16 }
 0x2d9   : > { %v3085_v13 = vsel %vm3081_vm1, %v3065_v29, %v12360_v32  ;;  %v3087_v39 = vsel %vm3083_vm5, %v12362_v59, %v3086_v18  ;;  %vm2628_vm13 = vcmp.eq.s32.totalorder %v12407_v9, 2  ;;  %v2717_v35 = vxor.u32 2147483648, %v2716_v40 }
 0x2da   : > { %v2820_v7 = vmul.f32 %v2819_v45, %v2817_v33  ;;  %v2823_v21 = vsub.s32 4, %v12091_v26  ;;  %v12481_v30 = vsel %vm2517_vm10, nan, %v2527_v49  ;;  %vm2625_vm2 = vcmp.eq.s32.totalorder %v12407_v9, 0 }
 0x2db   : > { %18543 = vst [vmem:[#allocation12_spill] sm:$0xff] %v12481_v30  ;;  %v12484_v22 = vsub.s32 32, %v3167_v20  ;;  %v7675_v2 = vadd.s32 4294967169, %v3261_v23  ;;  %v2626_v32 = vxor.u32 2147483648, %v8236_v51  ;;  %v2726_v52 = vadd.s32 3, %v2722_v57 }
 0x2dc   : > { %v18544_v60 = vand.u32 2147483647, %v11622_v31  ;;  %v3088_v14 = vsel %vm3082_vm6, %v3085_v13, %v3087_v39  ;;  %v3107_v41 = vadd.s32 1, %v12438_v56  ;;  %v2630_v63 = vsel %vm2628_vm13, %v2629_v43, %v8236_v51 }
 0x2dd   : > { %v7661_v0 = vadd.s32 4294967294, %v2909_v58  ;;  %v12495_v10 = vshrl.u32 %v3006_v47, 30  ;;  %vm3106_vm0 = vc.u32 %v12447_v3, %v12437_v37  ;;  %vm2624_vm1 = vcmp.lt.s32.totalorder %v12407_v9, 2 }
 0x2de   : > { %vm12488_vm14 = vcmp.le.f32.partialorder %v18544_v60, 0.7853982  ;;  %v2718_v31 = vsel %vm2635_vm15, %v2717_v35, %v2716_v40  ;;  %v2821_v50 = vxor.u32 2147483648, %v2820_v7  ;;  %v2824_v11 = vsel %vm2739_vm8, %v2823_v21, %v12091_v26 }
 0x2df   : > { %v18255_v29 = vand.u32 2147483647, %v12278_v19  ;;  %v3104_v6 = vmul.u32 %v12411_v55, %v3088_v14  ;;  %v3179_v33 = vshll.u32 %v18395_v25, %v3167_v20  ;;  %v3180_v45 = vshrl.u32 %v18396_v8, %v12484_v22 }
 0x2e0   : > { %v3267_v18 = vadd.s32 1, %v7675_v2  ;;  %v3108_v23 = vsel %vm3106_vm0, %v3107_v41, %v12438_v56  ;;  %v12511_v49 = vshrl.u32 %v3165_v24, 5  ;;  %v3182_v40 = vshll.u32 %v18396_v8, %v3167_v20 }
 0x2e1   : > { %v3183_v43 = vshrl.u32 %v18482_v12, %v12484_v22  ;;  %vm7662_vm15 = vcmp.lt.s32.totalorder %v7661_v0, 0  ;;  %v3008_v26 = vshll.u32 %v12495_v10, 30  ;;  %v3170_v55 = vshll.u32 %v18400_v17, %v3167_v20 }
 0x2e2   : > { %v3173_v57 = vshll.u32 %v18380_v27, %v3167_v20  ;;  %v3171_v51 = vshrl.u32 %v18380_v27, %v12484_v22  ;;  %v3174_v56 = vshrl.u32 %v18483_v36, %v12484_v22  ;;  %v3176_v24 = vshll.u32 %v18483_v36, %v3167_v20 }
 0x2e3   : > { %v3177_v58 = vshrl.u32 %v18395_v25, %v12484_v22  ;;  %v2627_v47 = vsel %vm2625_vm2, %v12351_v1, %v2626_v32  ;;  %v12529_v13 = vadd.s32 %v3108_v23, %v3104_v6  ;;  %v3181_v39 = vor.u32 %v3180_v45, %v3179_v33 }
 0x2e4   : > { %vm3268_vm5 = vcmp.gt.s32.totalorder %v3267_v18, 0  ;;  %v2721_v35 = vsel %vm12391_vm7, %v12354_v62, %v2718_v31  ;;  %v3160_v21 = vand.u32 8388607, %v18255_v29  ;;  %v3184_v2 = vor.u32 %v3183_v43, %v3182_v40 }
 0x2e5   : > { %vm3188_vm3 = vcmp.lt.s32.totalorder %v12511_v49, 4  ;;  %v2822_v20 = vsel %vm2739_vm8, %v2821_v50, %v2820_v7  ;;  %v2826_v1 = vsel %vm12488_vm14, 0, %v2824_v11  ;;  %v12542_v32 = vsel %vm7662_vm15, 0, %v7661_v0 }
 0x2e6   : > { %v12545_v60 = vsub.s32 %v12441_v16, %v3008_v26  ;;  %v12547_v46 = vor.u32 %v3171_v51, %v3170_v55  ;;  %v12549_v14 = vor.u32 %v3174_v56, %v3173_v57  ;;  %v3178_v41 = vor.u32 %v3177_v58, %v3176_v24 }
 0x2e7   : > { %v3269_v31 = vsel %vm3268_vm5, %v3267_v18, 0  ;;  %v3110_v6 = vadd.s32 536870912, %v12529_v13  ;;  %vm3185_vm12 = vcmp.lt.s32.totalorder %v12511_v49, 1  ;;  %vm3187_vm4 = vcmp.lt.s32.totalorder %v12511_v49, 3 }
 0x2e8   : > { %v3194_v7 = vsel %vm3188_vm3, %v3181_v39, 920167782  ;;  %v12556_v0 = vand.u32 3, %v2726_v52  ;;  %v2830_v16 = vadd.s32 3, %v2826_v1  ;;  %v3161_v50 = vor.u32 8388608, %v3160_v21 }
 0x2e9   : > { %v3198_v11 = vsel %vm3188_vm3, %v3184_v2, 1326507024  ;;  %v12562_v33 = vsel %vm2624_vm1, %v2627_v47, %v2630_v63  ;;  %8237 = vcosq.f32 %v2721_v35  ;;  %v2825_v45 = vsel %vm12488_vm14, %v12457_v5, %v2822_v20  ;;  %v12576_v63 = vld [vmem:[%s8726_s8 + $0xf0] sm:$0xff] }
 0x2ea   : > { %v3271_v18 = vand.u32 31, %v3269_v31  ;;  %v2917_v23 = vsub.s32 4294967266, %v12542_v32  ;;  %vm3186_vm6 = vcmp.lt.s32.totalorder %v12511_v49, 2  ;;  %v3193_v52 = vsel %vm3185_vm12, %v12547_v46, %v12549_v14  ;;  %18547 = vst [vmem:[#allocation36_spill] sm:$0xff] %v12576_v63 }
 0x2eb   : > { %v3195_v9 = vsel %vm3187_vm4, %v3178_v41, %v3194_v7  ;;  %v3011_v40 = vsub.s32 0, %v12545_v60  ;;  %v12579_v43 = vshrl.u32 %v3110_v6, 30  ;;  %v3197_v59 = vsel %vm3185_vm12, %v12549_v14, %v3178_v41 }
 0x2ec   : > { %v3199_v26 = vsel %vm3187_vm4, %v3181_v39, %v3198_v11  ;;  %8239 = vsinq.f32 %v2721_v35  ;;  %v12586_v55 = vand.u32 3, %v2830_v16  ;;  %v2897_v57 = vadd.s32 %v12157_v44, %v12164_v15 }
 0x2ed   : > { %18548 = vst [vmem:[#allocation28_spill] sm:$0xff] %v12579_v43  ;;  %v12590_v51 = vshll.u32 %v3161_v50, 8  ;;  %8241 = vcosq.f32 %v2825_v45  ;;  %v3196_v24 = vsel %vm3186_vm6, %v3193_v52, %v3195_v9  ;;  %v12595_v58 = vsub.s32 32, %v3271_v18 }
 0x2ee   : > { %8243 = vsinq.f32 %v2825_v45  ;;  %v2913_v47 = vsub.s32 32, %v12542_v32  ;;  %v3200_v39 = vsel %vm3186_vm6, %v3197_v59, %v3199_v26  ;;  %v3364_v35 = vand.u32 2139095040, %v12576_v63 }
 0x2ef   : > { %v12601_v21 = vadd.s32 127, %v2917_v23  ;;  %v7664_v44 = vmin.u32 %v3011_v40, %v12545_v60  ;;  %v3112_v15 = vshll.u32 %v12579_v43, 30  ;;  %v18260_v2 = vand.u32 2147483647, %v12403_v34 }
 0x2f0   : > { %v3169_v20 = vshrl.u32 %v18400_v17, %v12484_v22  ;;  %v3190_v1 = vsel %vm3188_vm3, %v3178_v41, 2102212464  ;;  %v12611_v6 = vmul.u32.u64.low %v12590_v51, %v3196_v24  ;;  %v12612_v7 = vmul.u32.u64.high %v12590_v51, %v3196_v24, %v12611_v6 }
 0x2f1   : > { %v12616_v16 = vmul.u32.u64.low %v12590_v51, %v3200_v39  ;;  %v12617_v50 = vmul.u32.u64.high %v12590_v51, %v3200_v39, %v12616_v16  ;;  %v3283_v11 = vshll.u32 %v18395_v25, %v3271_v18  ;;  %v3284_v45 = vshrl.u32 %v18396_v8, %v12595_v58 }
 0x2f2   : > { %v12622_v23 = vshrl.u32 %v3269_v31, 5  ;;  %v3286_v22 = vshll.u32 %v18396_v8, %v3271_v18  ;;  %v3287_v41 = vshrl.u32 %v18482_v12, %v12595_v58  ;;  %v3365_v52 = vshrl.u32 %v3364_v35, 23 }
 0x2f3   : > { %v12627_v9 = vpop.eup %8237  ;;  %v3013_v40 = vclz %v7664_v44  ;;  %v12630_v59 = vsub.s32 %v12529_v13, %v3112_v15  ;;  %v3274_v26 = vshll.u32 %v18400_v17, %v3271_v18  ;;  %v3277_v24 = vshll.u32 %v18380_v27, %v3271_v18  ;;  %v12645_v13 = vld [vmem:[%s8726_s8 + $0xc8] sm:$0xff] }
 0x2f4   : > { %vm2621_vm7 = vweird.f32 %v12122_v28  ;;  %v3275_v31 = vshrl.u32 %v18380_v27, %v12595_v58  ;;  %v3278_v39 = vshrl.u32 %v18483_v36, %v12595_v58  ;;  %v3280_v35 = vshll.u32 %v18483_v36, %v3271_v18 }
 0x2f5   : > { %v3281_v44 = vshrl.u32 %v18395_v25, %v12595_v58  ;;  %vm2729_vm9 = vcmp.eq.s32.totalorder %v12556_v0, 0  ;;  %vm2732_vm10 = vcmp.eq.s32.totalorder %v12556_v0, 2  ;;  %vm2843_vm11 = vcmp.lt.s32.totalorder %v12645_v13, 0 }
 0x2f6   : > { %v2914_v15 = vshll.u32 %v12372_v42, %v12542_v32  ;;  %v3189_v16 = vsel %vm3185_vm12, %v3169_v20, %v12547_v46  ;;  %v3191_v18 = vsel %vm3187_vm4, %v12549_v14, %v3190_v1  ;;  %v3285_v29 = vor.u32 %v3284_v45, %v3283_v11  ;;  %v8240_v56 = vpop.eup %8239 }
 0x2f7   : > { %v3264_v30 = vand.u32 8388607, %v18260_v2  ;;  %v3288_v61 = vor.u32 %v3287_v41, %v3286_v22  ;;  %vm3292_vm8 = vcmp.lt.s32.totalorder %v12622_v23, 4  ;;  %v7679_v38 = vadd.s32 4294967169, %v3365_v52  ;;  %v12659_v19 = vpop.eup %8241 }
 0x2f8   : > { %v2915_v42 = vshrl.u32 %v2897_v57, %v2913_v47  ;;  %v2919_v32 = vshll.u32 %v12601_v21, 23  ;;  %v7665_v43 = vadd.s32 4294967294, %v3013_v40  ;;  %v3115_v46 = vsub.s32 0, %v12630_v59  ;;  %v12663_v20 = vpop.eup %8243 }
 0x2f9   : > { %v18549_v14 = vand.u32 2147483647, %v11829_v4  ;;  %v3192_v11 = vsel %vm3186_vm6, %v3189_v16, %v3191_v18  ;;  %v12673_v45 = vor.u32 %v3275_v31, %v3274_v26  ;;  %v12675_v22 = vor.u32 %v3278_v39, %v3277_v24 }
 0x2fa   : > { %v3282_v57 = vor.u32 %v3281_v44, %v3280_v35  ;;  %v3211_v47 = vadd.s32 1, %v12612_v7  ;;  %vm3289_vm2 = vcmp.lt.s32.totalorder %v12622_v23, 1  ;;  %vm3291_vm14 = vcmp.lt.s32.totalorder %v12622_v23, 3 }
 0x2fb   : > { %vm12667_vm13 = vcmp.le.f32.partialorder %v18549_v14, 0.7853982  ;;  %v3298_v4 = vsel %vm3292_vm8, %v3285_v29, 920167782  ;;  %vm2728_vm0 = vcmp.lt.s32.totalorder %v12556_v0, 2  ;;  %vm3210_vm1 = vc.u32 %v12617_v50, %v12611_v6 }
 0x2fc   : > { %v3265_v49 = vor.u32 8388608, %v3264_v30  ;;  %v3302_v21 = vsel %vm3292_vm8, %v3288_v61, 1326507024  ;;  %v3371_v41 = vadd.s32 1, %v7679_v38  ;;  %v2730_v52 = vxor.u32 2147483648, %v8240_v56 }
 0x2fd   : > { %v2733_v40 = vxor.u32 2147483648, %v12627_v9  ;;  %v2916_v26 = vor.u32 %v2915_v42, %v2914_v15  ;;  %vm7666_vm15 = vcmp.lt.s32.totalorder %v7665_v43, 0  ;;  %v3208_v24 = vmul.u32 %v12590_v51, %v3192_v11  ;;  %v12723_v42 = vld [vmem:[%s8726_s8 + $0xf8] sm:$0xff] }
 0x2fe   : > { %vm3290_vm5 = vcmp.lt.s32.totalorder %v12622_v23, 2  ;;  %v3297_v31 = vsel %vm3289_vm2, %v12673_v45, %v12675_v22  ;;  %v3299_v30 = vsel %vm3291_vm14, %v3282_v57, %v3298_v4  ;;  %vm2725_vm3 = vweird.f32 %v12354_v62  ;;  %18554 = vst [vmem:[#allocation39_spill] sm:$0xff] %v12723_v42 }
 0x2ff   : > { %v2920_v38 = vor.u32 4788187, %v2919_v32  ;;  %v3212_v61 = vsel %vm3210_vm1, %v3211_v47, %v12612_v7  ;;  %v3301_v51 = vsel %vm3289_vm2, %v12675_v22, %v3282_v57  ;;  %v3303_v39 = vsel %vm3291_vm14, %v3285_v29, %v3302_v21 }
 0x300   : > { %v18552_v35 = vsub.s32 4, %v12306_v48  ;;  %v7668_v15 = vmin.u32 %v3115_v46, %v12630_v59  ;;  %v12709_v16 = vshll.u32 %v3265_v49, 8  ;;  %vm3372_vm12 = vcmp.gt.s32.totalorder %v3371_v41, 0 }
 0x301   : > { %v12714_v7 = vsel %vm2621_vm7, nan, %v12562_v33  ;;  %vm2833_vm4 = vcmp.eq.s32.totalorder %v12586_v55, 0  ;;  %v12718_v29 = vsel %vm7666_vm15, 0, %v7665_v43  ;;  %v3300_v18 = vsel %vm3290_vm5, %v3297_v31, %v3299_v30 }
 0x302   : > { %v2928_v44 = vsel %vm2843_vm11, %v18552_v35, %v12306_v48  ;;  %18553 = vst [vmem:[#allocation38_spill] sm:$0xff] %v12714_v7  ;;  %v2731_v48 = vsel %vm2729_vm9, %v12627_v9, %v2730_v52  ;;  %v2734_v32 = vsel %vm2732_vm10, %v2733_v40, %v8240_v56  ;;  %v12730_v28 = vadd.s32 %v3212_v61, %v3208_v24 }
 0x303   : > { %v3304_v33 = vsel %vm3290_vm5, %v3301_v51, %v3303_v39  ;;  %v2921_v46 = vand.u32 2147483647, %v2920_v38  ;;  %v2923_v43 = vcvt.s32.f32 %v2916_v26  ;;  %v2930_v14 = vsel %vm12667_vm13, 0, %v2928_v44 }
 0x304   : > { %v3373_v11 = vsel %vm3372_vm12, %v3371_v41, 0  ;;  %v3021_v47 = vsub.s32 4294967266, %v12718_v29  ;;  %v3117_v4 = vclz %v7668_v15  ;;  %v3273_v56 = vshrl.u32 %v18400_v17, %v12595_v58 }
 0x305   : > { %v12738_v49 = vmul.u32.u64.low %v12709_v16, %v3300_v18  ;;  %v12739_v9 = vmul.u32.u64.high %v12709_v16, %v3300_v18, %v12738_v49  ;;  %v12745_v21 = vmul.u32.u64.low %v12709_v16, %v3304_v33  ;;  %v12746_v52 = vmul.u32.u64.high %v12709_v16, %v3304_v33, %v12745_v21 }
 0x306   : > { %v3468_v40 = vand.u32 2139095040, %v12723_v42  ;;  %v2934_v26 = vadd.s32 3, %v2930_v14  ;;  %v3214_v41 = vadd.s32 536870912, %v12730_v28  ;;  %v3294_v24 = vsel %vm3292_vm8, %v3282_v57, 2102212464  ;;  %v12762_v57 = vld [vmem:[%s8726_s8 + $0xd0] sm:$0xff] }
 0x307   : > { %v3375_v31 = vand.u32 31, %v3373_v11  ;;  %v2735_v30 = vsel %vm2728_vm0, %v2731_v48, %v2734_v32  ;;  %vm2832_vm6 = vcmp.lt.s32.totalorder %v12586_v55, 2  ;;  %v2834_v58 = vxor.u32 2147483648, %v12663_v20  ;;  %18555 = vst [vmem:[#allocation40_spill] sm:$0xff] %v12762_v57 }
 0x308   : > { %v2837_v38 = vxor.u32 2147483648, %v12659_v19  ;;  %v2924_v61 = vmul.f32 %v2923_v43, %v2921_v46  ;;  %vm2836_vm7 = vcmp.eq.s32.totalorder %v12586_v55, 2  ;;  %v3001_v51 = vadd.s32 %v12310_v54, %v12339_v53 }
 0x309   : > { %v3017_v39 = vsub.s32 32, %v12718_v29  ;;  %v3022_v35 = vadd.s32 127, %v3021_v47  ;;  %vm2947_vm9 = vcmp.lt.s32.totalorder %v12762_v57, 0  ;;  %v7669_v0 = vadd.s32 4294967294, %v3117_v4 }
 0x30a   : > { %v3293_v44 = vsel %vm3289_vm2, %v3273_v56, %v12673_v45  ;;  %v3295_v15 = vsel %vm3291_vm14, %v12675_v22, %v3294_v24  ;;  %v3469_v18 = vshrl.u32 %v3468_v40, 23  ;;  %v12773_v53 = vsel %vm2725_vm3, nan, %v2735_v30  ;;  %v18557_v56 = vld [vmem:[#allocation16_spill] sm:$0xff] }
 0x30b   : > { %18556 = vst [vmem:[#allocation41_spill] sm:$0xff] %v12773_v53  ;;  %v12775_v54 = vand.u32 3, %v2934_v26  ;;  %v12777_v48 = vshrl.u32 %v3214_v41, 30  ;;  %v12779_v32 = vsub.s32 32, %v3375_v31  ;;  %v2835_v33 = vsel %vm2833_vm4, %v12659_v19, %v2834_v58 }
 0x30c   : > { %v2838_v45 = vsel %vm2836_vm7, %v2837_v38, %v12663_v20  ;;  %v2925_v22 = vxor.u32 2147483648, %v2924_v61  ;;  %v3031_v46 = vsub.s32 4, %v12495_v10  ;;  %v3018_v62 = vshll.u32 %v12545_v60, %v12718_v29 }
 0x30d   : > { %v3019_v43 = vshrl.u32 %v3001_v51, %v3017_v39  ;;  %v3296_v14 = vsel %vm3290_vm5, %v3293_v44, %v3295_v15  ;;  %v3315_v47 = vadd.s32 1, %v12739_v9  ;;  %v3023_v4 = vshll.u32 %v3022_v35, 23 }
 0x30e   : > { %vm7670_vm10 = vcmp.lt.s32.totalorder %v7669_v0, 0  ;;  %vm3314_vm8 = vc.u32 %v12746_v52, %v12738_v49  ;;  %v7683_v19 = vadd.s32 4294967169, %v3469_v18  ;;  %v18558_v20 = vand.u32 2147483647, %v18557_v56 }
 0x30f   : > { %v3216_v60 = vshll.u32 %v12777_v48, 30  ;;  %v18259_v29 = vand.u32 2147483647, %v12576_v63  ;;  %v3387_v23 = vshll.u32 %v18395_v25, %v3375_v31  ;;  %v3388_v40 = vshrl.u32 %v18396_v8, %v12779_v32 }
 0x310   : > { %vm12797_vm2 = vcmp.le.f32.partialorder %v18558_v20, 0.7853982  ;;  %v3312_v26 = vmul.u32 %v12709_v16, %v3296_v14  ;;  %v12807_v41 = vshrl.u32 %v3373_v11, 5  ;;  %v3390_v24 = vshll.u32 %v18396_v8, %v3375_v31 }
 0x311   : > { %v3391_v30 = vshrl.u32 %v18482_v12, %v12779_v32  ;;  %vm2829_vm14 = vweird.f32 %v12457_v5  ;;  %v3316_v58 = vsel %vm3314_vm8, %v3315_v47, %v12739_v9  ;;  %v3378_v38 = vshll.u32 %v18400_v17, %v3375_v31 }
 0x312   : > { %v3381_v51 = vshll.u32 %v18380_v27, %v3375_v31  ;;  %v3384_v39 = vshll.u32 %v18483_v36, %v3375_v31  ;;  %v3379_v16 = vshrl.u32 %v18380_v27, %v12779_v32  ;;  %v3382_v11 = vshrl.u32 %v18483_v36, %v12779_v32 }
 0x313   : > { %v3385_v35 = vshrl.u32 %v18395_v25, %v12779_v32  ;;  %v3475_v44 = vadd.s32 1, %v7683_v19  ;;  %v2839_v15 = vsel %vm2832_vm6, %v2835_v33, %v2838_v45  ;;  %v3032_v9 = vsel %vm2947_vm9, %v3031_v46, %v12495_v10 }
 0x314   : > { %v12829_v18 = vsub.s32 %v12730_v28, %v3216_v60  ;;  %v3389_v31 = vor.u32 %v3388_v40, %v3387_v23  ;;  %v2926_v14 = vsel %vm2843_vm11, %v2925_v22, %v2924_v61  ;;  %v3368_v47 = vand.u32 8388607, %v18259_v29 }
 0x315   : > { %v3392_v56 = vor.u32 %v3391_v30, %v3390_v24  ;;  %vm3396_vm0 = vcmp.lt.s32.totalorder %v12807_v41, 4  ;;  %v3020_v55 = vor.u32 %v3019_v43, %v3018_v62  ;;  %v3024_v33 = vor.u32 4788187, %v3023_v4  ;;  %v12847_v62 = vld [vmem:[%s8726_s8 + $0x100] sm:$0xff] }
 0x316   : > { %v12837_v45 = vsel %vm7670_vm10, 0, %v7669_v0  ;;  %v12839_v10 = vadd.s32 %v3316_v58, %v3312_v26  ;;  %v3380_v28 = vor.u32 %v3379_v16, %v3378_v38  ;;  %v3383_v46 = vor.u32 %v3382_v11, %v3381_v51  ;;  %18561 = vst [vmem:[#allocation16_spill] sm:$0xff] %v12847_v62 }
 0x317   : > { %v3386_v19 = vor.u32 %v3385_v35, %v3384_v39  ;;  %vm3476_vm1 = vcmp.gt.s32.totalorder %v3475_v44, 0  ;;  %v3219_v61 = vsub.s32 0, %v12829_v18  ;;  %vm3393_vm11 = vcmp.lt.s32.totalorder %v12807_v41, 1 }
 0x318   : > { %vm3395_vm15 = vcmp.lt.s32.totalorder %v12807_v41, 3  ;;  %v3402_v22 = vsel %vm3396_vm0, %v3389_v31, 920167782  ;;  %v2929_v0 = vsel %vm12667_vm13, %v12645_v13, %v2926_v14  ;;  %v3034_v43 = vsel %vm12797_vm2, 0, %v3032_v9 }
 0x319   : > { %v3369_v4 = vor.u32 8388608, %v3368_v47  ;;  %v3406_v20 = vsel %vm3396_vm0, %v3392_v56, 1326507024  ;;  %v3025_v60 = vand.u32 2147483647, %v3024_v33  ;;  %v3027_v23 = vcvt.s32.f32 %v3020_v55 }
 0x31a   : > { %v3125_v40 = vsub.s32 4294967266, %v12837_v45  ;;  %v3477_v26 = vsel %vm3476_vm1, %v3475_v44, 0  ;;  %v3318_v24 = vadd.s32 536870912, %v12839_v10  ;;  %vm3394_vm5 = vcmp.lt.s32.totalorder %v12807_v41, 2 }
 0x31b   : > { %v3401_v1 = vsel %vm3393_vm11, %v3380_v28, %v3383_v46  ;;  %v3403_v30 = vsel %vm3395_vm15, %v3386_v19, %v3402_v22  ;;  %v7672_v58 = vmin.u32 %v3219_v61, %v12829_v18  ;;  %v3405_v38 = vsel %vm3393_vm11, %v3383_v46, %v3386_v19 }
 0x31c   : > { %v3407_v51 = vsel %vm3395_vm15, %v3389_v31, %v3406_v20  ;;  %v3572_v39 = vand.u32 2139095040, %v12847_v62  ;;  %v12871_v16 = vsel %vm2829_vm14, nan, %v2839_v15  ;;  %8245 = vcosq.f32 %v2929_v0 }
 0x31d   : > { %18562 = vst [vmem:[#allocation42_spill] sm:$0xff] %v12871_v16  ;;  %v12873_v11 = vshll.u32 %v3369_v4, 8  ;;  %v3479_v35 = vand.u32 31, %v3477_v26  ;;  %8247 = vsinq.f32 %v2929_v0  ;;  %v3038_v44 = vadd.s32 3, %v3034_v43 }
 0x31e   : > { %v3105_v9 = vadd.s32 %v12437_v37, %v12447_v3  ;;  %v3404_v14 = vsel %vm3394_vm5, %v3401_v1, %v3403_v30  ;;  %v12879_v47 = vmul.f32 %v3027_v23, %v3025_v60  ;;  %v3121_v31 = vsub.s32 32, %v12837_v45 }
 0x31f   : > { %v12882_v56 = vshrl.u32 %v3318_v24, 30  ;;  %v3408_v5 = vsel %vm3394_vm5, %v3405_v38, %v3407_v51  ;;  %v3126_v15 = vadd.s32 127, %v3125_v40  ;;  %v3221_v55 = vclz %v7672_v58 }
 0x320   : > { %v3377_v33 = vshrl.u32 %v18400_v17, %v12779_v32  ;;  %v3573_v61 = vshrl.u32 %v3572_v39, 23  ;;  %v3398_v37 = vsel %vm3396_vm0, %v3386_v19, 2102212464  ;;  %v12895_v0 = vsub.s32 32, %v3479_v35  ;;  %v18566_v19 = vld [vmem:[#allocation28_spill] sm:$0xff] }
 0x321   : > { %18563 = vst [vmem:[#allocation43_spill] sm:$0xff] %v12882_v56  ;;  %v12891_v3 = vmul.u32.u64.low %v12873_v11, %v3404_v14  ;;  %v12892_v22 = vmul.u32.u64.high %v12873_v11, %v3404_v14, %v12891_v3  ;;  %v12897_v43 = vand.u32 3, %v3038_v44  ;;  %v3029_v32 = vxor.u32 2147483648, %v12879_v47 }
 0x322   : > { %v12900_v4 = vmul.u32.u64.low %v12873_v11, %v3408_v5  ;;  %v12901_v20 = vmul.u32.u64.high %v12873_v11, %v3408_v5, %v12900_v4  ;;  %v7687_v60 = vadd.s32 4294967169, %v3573_v61  ;;  %v3122_v23 = vshll.u32 %v12630_v59, %v12837_v45 }
 0x323   : > { %18564 = vst [vmem:[#allocation44_spill] sm:$0xff] %v12891_v3  ;;  %v3320_v24 = vshll.u32 %v12882_v56, 30  ;;  %v3123_v1 = vshrl.u32 %v3105_v9, %v3121_v31  ;;  %v3127_v30 = vshll.u32 %v3126_v15, 23  ;;  %v3397_v58 = vsel %vm3393_vm11, %v3377_v33, %v3380_v28 }
 0x324   : > { %18565 = vst [vmem:[#allocation45_spill] sm:$0xff] %v12901_v20  ;;  %v3399_v38 = vsel %vm3395_vm15, %v3383_v46, %v3398_v37  ;;  %v7673_v51 = vadd.s32 4294967294, %v3221_v55  ;;  %v3491_v39 = vshll.u32 %v18395_v25, %v3479_v35  ;;  %v3492_v44 = vshrl.u32 %v18396_v8, %v12895_v0 }
 0x325   : > { %v3579_v14 = vadd.s32 1, %v7687_v60  ;;  %v18261_v59 = vand.u32 2147483647, %v12723_v42  ;;  %v12916_v45 = vshrl.u32 %v3477_v26, 5  ;;  %v3494_v9 = vshll.u32 %v18396_v8, %v3479_v35 }
 0x326   : > { %v3495_v28 = vshrl.u32 %v18482_v12, %v12895_v0  ;;  %v12921_v31 = vpop.eup %8245  ;;  %v12924_v46 = vsub.s32 %v12839_v10, %v3320_v24  ;;  %v3400_v5 = vsel %vm3394_vm5, %v3397_v58, %v3399_v38  ;;  %v3482_v15 = vshll.u32 %v18400_v17, %v3479_v35  ;;  %v12941_v24 = vld [vmem:[%s8726_s8 + $0xd8] sm:$0xff] }
 0x327   : > { %v3485_v55 = vshll.u32 %v18380_v27, %v3479_v35  ;;  %v12930_v26 = vpop.eup %8247  ;;  %v3483_v33 = vshrl.u32 %v18380_v27, %v12895_v0  ;;  %v3486_v61 = vshrl.u32 %v18483_v36, %v12895_v0  ;;  %v3488_v37 = vshll.u32 %v18483_v36, %v3479_v35  ;;  %v12950_v35 = vld [vmem:[%s8726_s8 + $0x108] sm:$0xff] }
 0x328   : > { %v3489_v10 = vshrl.u32 %v18395_v25, %v12895_v0  ;;  %v3124_v41 = vor.u32 %v3123_v1, %v3122_v23  ;;  %v3419_v4 = vadd.s32 1, %v12892_v22  ;;  %v3493_v60 = vor.u32 %v3492_v44, %v3491_v39 }
 0x329   : > { %vm3580_vm13 = vcmp.gt.s32.totalorder %v3579_v14, 0  ;;  %vm3051_vm3 = vcmp.lt.s32.totalorder %v12941_v24, 0  ;;  %vm3418_vm12 = vc.u32 %v12901_v20, %v12891_v3  ;;  %v3472_v58 = vand.u32 8388607, %v18261_v59 }
 0x32a   : > { %v3496_v38 = vor.u32 %v3495_v28, %v3494_v9  ;;  %vm3500_vm4 = vcmp.lt.s32.totalorder %v12916_v45, 4  ;;  %v3128_v23 = vor.u32 4788187, %v3127_v30  ;;  %vm7674_vm6 = vcmp.lt.s32.totalorder %v7673_v51, 0 }
 0x32b   : > { %v3323_v1 = vsub.s32 0, %v12924_v46  ;;  %v3416_v39 = vmul.u32 %v12873_v11, %v3400_v5  ;;  %v12954_v44 = vor.u32 %v3483_v33, %v3482_v15  ;;  %v12956_v29 = vor.u32 %v3486_v61, %v3485_v55 }
 0x32c   : > { %v3490_v2 = vor.u32 %v3489_v10, %v3488_v37  ;;  %v3581_v40 = vsel %vm3580_vm13, %v3579_v14, 0  ;;  %v3420_v16 = vsel %vm3418_vm12, %v3419_v4, %v12892_v22  ;;  %vm3497_vm7 = vcmp.lt.s32.totalorder %v12916_v45, 1 }
 0x32d   : > { %vm3499_vm10 = vcmp.lt.s32.totalorder %v12916_v45, 3  ;;  %v3506_v30 = vsel %vm3500_vm4, %v3493_v60, 920167782  ;;  %v12963_v9 = vsel %vm7674_vm6, 0, %v7673_v51  ;;  %v3473_v28 = vor.u32 8388608, %v3472_v58 }
 0x32e   : > { %v3510_v11 = vsel %vm3500_vm4, %v3496_v38, 1326507024  ;;  %v3676_v5 = vand.u32 2139095040, %v12950_v35  ;;  %v3030_v14 = vsel %vm2947_vm9, %v3029_v32, %v12879_v47  ;;  %v3129_v22 = vand.u32 2147483647, %v3128_v23 }
 0x32f   : > { %v3131_v15 = vcvt.s32.f32 %v3124_v41  ;;  %v3583_v55 = vand.u32 31, %v3581_v40  ;;  %v12971_v33 = vadd.s32 %v3420_v16, %v3416_v39  ;;  %vm3498_vm8 = vcmp.lt.s32.totalorder %v12916_v45, 2 }
 0x330   : > { %v3505_v51 = vsel %vm3497_vm7, %v12954_v44, %v12956_v29  ;;  %v3507_v61 = vsel %vm3499_vm10, %v3490_v2, %v3506_v30  ;;  %v3229_v37 = vsub.s32 4294967266, %v12963_v9  ;;  %v7676_v10 = vmin.u32 %v3323_v1, %v12924_v46 }
 0x331   : > { %v3509_v47 = vsel %vm3497_vm7, %v12956_v29, %v3490_v2  ;;  %v3511_v16 = vsel %vm3499_vm10, %v3493_v60, %v3510_v11  ;;  %v12989_v4 = vshll.u32 %v3473_v28, 8  ;;  %v3677_v58 = vshrl.u32 %v3676_v5, 23 }
 0x332   : > { %v12994_v38 = vsel %vm12797_vm2, %v12762_v57, %v3030_v14  ;;  %v18567_v23 = vsub.s32 4, %v18566_v19  ;;  %v3508_v60 = vsel %vm3498_vm8, %v3505_v51, %v3507_v61  ;;  %v13005_v39 = vsub.s32 32, %v3583_v55 }
 0x333   : > { %v13007_v30 = vmul.f32 %v3131_v15, %v3129_v22  ;;  %v3209_v28 = vadd.s32 %v12611_v6, %v12617_v50  ;;  %v3422_v21 = vadd.s32 536870912, %v12971_v33  ;;  %v3512_v11 = vsel %vm3498_vm8, %v3509_v47, %v3511_v16 }
 0x334   : > { %v13001_v1 = vsel %vm3051_vm3, %v18567_v23, %v18566_v19  ;;  %v3225_v5 = vsub.s32 32, %v12963_v9  ;;  %v13015_v14 = vadd.s32 127, %v3229_v37  ;;  %v3325_v19 = vclz %v7676_v10 }
 0x335   : > { %v3481_v51 = vshrl.u32 %v18400_v17, %v12895_v0  ;;  %v13021_v22 = vmul.u32.u64.low %v12989_v4, %v3508_v60  ;;  %v13022_v15 = vmul.u32.u64.high %v12989_v4, %v3508_v60, %v13021_v22  ;;  %v7691_v6 = vadd.s32 4294967169, %v3677_v58 }
 0x336   : > { %v13026_v50 = vmul.u32.u64.low %v12989_v4, %v3512_v11  ;;  %v13027_v61 = vmul.u32.u64.high %v12989_v4, %v3512_v11, %v13026_v50  ;;  %v3595_v47 = vshll.u32 %v18395_v25, %v3583_v55  ;;  %v3596_v37 = vshrl.u32 %v18396_v8, %v13005_v39 }
 0x337   : > { %18568 = vst [vmem:[#allocation28_spill] sm:$0xff] %v13021_v22  ;;  %v13032_v10 = vshrl.u32 %v3422_v21, 30  ;;  %v13034_v16 = vshrl.u32 %v3581_v40, 5  ;;  %v3598_v0 = vshll.u32 %v18396_v8, %v3583_v55  ;;  %v3599_v60 = vshrl.u32 %v18482_v12, %v13005_v39 }
 0x338   : > { %v3502_v58 = vsel %vm3500_vm4, %v3490_v2, 2102212464  ;;  %v3586_v11 = vshll.u32 %v18400_v17, %v3583_v55  ;;  %v3589_v50 = vshll.u32 %v18380_v27, %v3583_v55  ;;  %v3592_v59 = vshll.u32 %v18483_v36, %v3583_v55  ;;  %v18569_v55 = vld [vmem:[#allocation29_spill] sm:$0xff] }
 0x339   : > { %vm2940_vm9 = vcmp.eq.s32.totalorder %v12775_v54, 2  ;;  %v3587_v40 = vshrl.u32 %v18380_v27, %v13005_v39  ;;  %v3590_v21 = vshrl.u32 %v18483_v36, %v13005_v39  ;;  %v3593_v32 = vshrl.u32 %v18395_v25, %v13005_v39 }
 0x33a   : > { %v3683_v41 = vadd.s32 1, %v7691_v6  ;;  %v3133_v2 = vxor.u32 2147483648, %v13007_v30  ;;  %v3226_v23 = vshll.u32 %v12829_v18, %v12963_v9  ;;  %v3227_v53 = vshrl.u32 %v3209_v28, %v3225_v5 }
 0x33b   : > { %v3597_v7 = vor.u32 %v3596_v37, %v3595_v47  ;;  %v18570_v42 = vand.u32 2147483647, %v18569_v55  ;;  %v18573_v3 = vand.u32 2147483647, %v12847_v62  ;;  %v3600_v57 = vor.u32 %v3599_v60, %v3598_v0 }
 0x33c   : > { %vm3604_vm14 = vcmp.lt.s32.totalorder %v13034_v16, 4  ;;  %vm3684_vm0 = vcmp.gt.s32.totalorder %v3683_v41, 0  ;;  %v3231_v6 = vshll.u32 %v13015_v14, 23  ;;  %v3424_v56 = vshll.u32 %v13032_v10, 30 }
 0x33d   : > { %vm13056_vm2 = vcmp.le.f32.partialorder %v18570_v42, 0.7853982  ;;  %v3576_v20 = vand.u32 8388607, %v18573_v3  ;;  %v3501_v18 = vsel %vm3497_vm7, %v3481_v51, %v12954_v44  ;;  %v3503_v42 = vsel %vm3499_vm10, %v12956_v29, %v3502_v58 }
 0x33e   : > { %v7677_v9 = vadd.s32 4294967294, %v3325_v19  ;;  %v3588_v28 = vor.u32 %v3587_v40, %v3586_v11  ;;  %v3591_v5 = vor.u32 %v3590_v21, %v3589_v50  ;;  %v3594_v3 = vor.u32 %v3593_v32, %v3592_v59  ;;  %v13181_v21 = vld [vmem:[%s8726_s8 + $0x110] sm:$0xff] }
 0x33f   : > { %vm3601_vm1 = vcmp.lt.s32.totalorder %v13034_v16, 1  ;;  %vm3603_vm11 = vcmp.lt.s32.totalorder %v13034_v16, 3  ;;  %v3610_v14 = vsel %vm3604_vm14, %v3597_v7, 920167782  ;;  %v3685_v47 = vsel %vm3684_vm0, %v3683_v41, 0 }
 0x340   : > { %v3504_v37 = vsel %vm3498_vm8, %v3501_v18, %v3503_v42  ;;  %v3523_v44 = vadd.s32 1, %v13022_v15  ;;  %v3577_v51 = vor.u32 8388608, %v3576_v20  ;;  %v3614_v29 = vsel %vm3604_vm14, %v3600_v57, 1326507024 }
 0x341   : > { %8249 = vcosq.f32 %v12994_v38  ;;  %v3228_v59 = vor.u32 %v3227_v53, %v3226_v23  ;;  %v13082_v32 = vsub.s32 %v12971_v33, %v3424_v56  ;;  %vm3522_vm15 = vc.u32 %v13027_v61, %v13021_v22 }
 0x342   : > { %vm3602_vm5 = vcmp.lt.s32.totalorder %v13034_v16, 2  ;;  %v3609_v45 = vsel %vm3601_vm1, %v3588_v28, %v3591_v5  ;;  %v3611_v20 = vsel %vm3603_vm11, %v3594_v3, %v3610_v14  ;;  %v3687_v41 = vand.u32 31, %v3685_v47 }
 0x343   : > { %vm7678_vm13 = vcmp.lt.s32.totalorder %v7677_v9, 0  ;;  %v3520_v57 = vmul.u32 %v12989_v4, %v3504_v37  ;;  %v3613_v53 = vsel %vm3601_vm1, %v3591_v5, %v3594_v3  ;;  %v3615_v56 = vsel %vm3603_vm11, %v3597_v7, %v3614_v29  ;;  %v18575_v7 = vld [vmem:[#allocation34_spill] sm:$0xff] }
 0x344   : > { %v3134_v33 = vsel %vm3051_vm3, %v3133_v2, %v13007_v30  ;;  %v3232_v19 = vor.u32 4788187, %v3231_v6  ;;  %v3524_v23 = vsel %vm3522_vm15, %v3523_v44, %v13022_v15  ;;  %v13100_v0 = vshll.u32 %v3577_v51, 8 }
 0x345   : > { %v18574_v60 = vxor.u32 2147483648, %v12921_v31  ;;  %8251 = vsinq.f32 %v12994_v38  ;;  %v3612_v30 = vsel %vm3602_vm5, %v3609_v45, %v3611_v20  ;;  %v13115_v58 = vsel %vm7678_vm13, 0, %v7677_v9 }
 0x346   : > { %v3427_v15 = vsub.s32 0, %v13082_v32  ;;  %v3616_v11 = vsel %vm3602_vm5, %v3613_v53, %v3615_v56  ;;  %v13120_v50 = vsub.s32 32, %v3687_v41  ;;  %v13125_v38 = vsel %vm13056_vm2, %v12941_v24, %v3134_v33  ;;  %v13158_v56 = vld [vmem:[%s8726_s8 + $0xe0] sm:$0xff] }
 0x347   : > { %v13107_v4 = vsel %vm2940_vm9, %v18574_v60, %v12930_v26  ;;  %v3235_v40 = vcvt.s32.f32 %v3228_v59  ;;  %v13128_v2 = vadd.s32 %v3524_v23, %v3520_v57  ;;  %v3233_v55 = vand.u32 2147483647, %v3232_v19 }
 0x348   : > { %v3585_v6 = vshrl.u32 %v18400_v17, %v13005_v39  ;;  %v13133_v18 = vmul.u32.u64.low %v13100_v0, %v3612_v30  ;;  %v13134_v42 = vmul.u32.u64.high %v13100_v0, %v3612_v30, %v13133_v18  ;;  %v3333_v9 = vsub.s32 4294967266, %v13115_v58 }
 0x349   : > { %v3606_v14 = vsel %vm3604_vm14, %v3594_v3, 2102212464  ;;  %v13141_v37 = vmul.u32.u64.low %v13100_v0, %v3616_v11  ;;  %v13142_v44 = vmul.u32.u64.high %v13100_v0, %v3616_v11, %v13141_v37  ;;  %v7680_v51 = vmin.u32 %v3427_v15, %v13082_v32 }
 0x34a   : > { %v3699_v39 = vshll.u32 %v18395_v25, %v3687_v41  ;;  %v3700_v59 = vshrl.u32 %v18396_v8, %v13120_v50  ;;  %v3526_v20 = vadd.s32 536870912, %v13128_v2  ;;  %v13152_v57 = vshrl.u32 %v3685_v47, 5 }
 0x34b   : > { %v13149_v45 = vpop.eup %8249  ;;  %v3702_v3 = vshll.u32 %v18396_v8, %v3687_v41  ;;  %v3703_v53 = vshrl.u32 %v18482_v12, %v13120_v50  ;;  %vm3155_vm3 = vcmp.lt.s32.totalorder %v13158_v56, 0  ;;  %v3605_v33 = vsel %vm3601_vm1, %v3585_v6, %v3588_v28 }
 0x34c   : > { %v3607_v19 = vsel %vm3603_vm11, %v3591_v5, %v3606_v14  ;;  %v3690_v23 = vshll.u32 %v18400_v17, %v3687_v41  ;;  %v3693_v47 = vshll.u32 %v18380_v27, %v3687_v41  ;;  %v3691_v60 = vshrl.u32 %v18380_v27, %v13120_v50 }
 0x34d   : > { %v3694_v30 = vshrl.u32 %v18483_v36, %v13120_v50  ;;  %v3696_v15 = vshll.u32 %v18483_v36, %v3687_v41  ;;  %v3697_v11 = vshrl.u32 %v18395_v25, %v13120_v50  ;;  %vm2937_vm12 = vcmp.eq.s32.totalorder %v12775_v54, 0 }
 0x34e   : > { %v3236_v28 = vmul.f32 %v3235_v40, %v3233_v55  ;;  %v3313_v5 = vadd.s32 %v12738_v49, %v12746_v52  ;;  %v3329_v6 = vsub.s32 32, %v13115_v58  ;;  %v3701_v14 = vor.u32 %v3700_v59, %v3699_v39 }
 0x34f   : > { %v13178_v37 = vpop.eup %8251  ;;  %v18576_v29 = vand.u32 2147483647, %v18575_v7  ;;  %v13189_v62 = vshrl.u32 %v3526_v20, 30  ;;  %v18579_v40 = vand.u32 2147483647, %v12950_v35  ;;  %v3704_v22 = vor.u32 %v3703_v53, %v3702_v3 }
 0x350   : > { %vm3708_vm6 = vcmp.lt.s32.totalorder %v13152_v57, 4  ;;  %v3334_v49 = vadd.s32 127, %v3333_v9  ;;  %v3429_v52 = vclz %v7680_v51  ;;  %v3608_v39 = vsel %vm3602_vm5, %v3605_v33, %v3607_v19 }
 0x351   : > { %vm13185_vm4 = vcmp.le.f32.partialorder %v18576_v29, 0.7853982  ;;  %v3680_v55 = vand.u32 8388607, %v18579_v40  ;;  %v3627_v59 = vadd.s32 1, %v13134_v42  ;;  %vm3626_vm7 = vc.u32 %v13142_v44, %v13133_v18  ;;  %v13243_v40 = vld [vmem:[%s8726_s8 + $0xe8] sm:$0xff] }
 0x352   : > { %v13199_v7 = vor.u32 %v3691_v60, %v3690_v23  ;;  %v13201_v29 = vor.u32 %v3694_v30, %v3693_v47  ;;  %v3698_v20 = vor.u32 %v3697_v11, %v3696_v15  ;;  %vm3705_vm10 = vcmp.lt.s32.totalorder %v13152_v57, 1 }
 0x353   : > { %vm3707_vm8 = vcmp.lt.s32.totalorder %v13152_v57, 3  ;;  %v3714_v9 = vsel %vm3708_vm6, %v3701_v14, 920167782  ;;  %v3780_v16 = vand.u32 2139095040, %v13181_v21  ;;  %vm2936_vm9 = vcmp.lt.s32.totalorder %v12775_v54, 2 }
 0x354   : > { %v3237_v51 = vxor.u32 2147483648, %v3236_v28  ;;  %v3528_v3 = vshll.u32 %v13189_v62, 30  ;;  %v3681_v53 = vor.u32 8388608, %v3680_v55  ;;  %v3718_v33 = vsel %vm3708_vm6, %v3704_v22, 1326507024 }
 0x355   : > { %v3330_v19 = vshll.u32 %v12924_v46, %v13115_v58  ;;  %v3331_v23 = vshrl.u32 %v3313_v5, %v3329_v6  ;;  %v7681_v47 = vadd.s32 4294967294, %v3429_v52  ;;  %v3624_v60 = vmul.u32 %v13100_v0, %v3608_v39 }
 0x356   : > { %v3628_v30 = vsel %vm3626_vm7, %v3627_v59, %v13134_v42  ;;  %vm3706_vm14 = vcmp.lt.s32.totalorder %v13152_v57, 2  ;;  %v3713_v22 = vsel %vm3705_vm10, %v13199_v7, %v13201_v29  ;;  %v3715_v46 = vsel %vm3707_vm8, %v3698_v20, %v3714_v9 }
 0x357   : > { %vm3044_vm0 = vcmp.eq.s32.totalorder %v12897_v43, 2  ;;  %v3335_v58 = vshll.u32 %v3334_v49, 23  ;;  %v3717_v0 = vsel %vm3705_vm10, %v13201_v29, %v3698_v20  ;;  %v3719_v42 = vsel %vm3707_vm8, %v3701_v14, %v3718_v33 }
 0x358   : > { %v3781_v15 = vshrl.u32 %v3780_v16, 23  ;;  %8253 = vcosq.f32 %v13125_v38  ;;  %v3238_v11 = vsel %vm3155_vm3, %v3237_v51, %v3236_v28  ;;  %v13236_v5 = vsub.s32 %v13128_v2, %v3528_v3 }
 0x359   : > { %v13238_v6 = vshll.u32 %v3681_v53, 8  ;;  %vm3041_vm1 = vcmp.eq.s32.totalorder %v12897_v43, 0  ;;  %8255 = vsinq.f32 %v13125_v38  ;;  %vm3259_vm11 = vcmp.lt.s32.totalorder %v13243_v40, 0 }
 0x35a   : > { %vm7682_vm15 = vcmp.lt.s32.totalorder %v7681_v47, 0  ;;  %v13246_v14 = vadd.s32 %v3628_v30, %v3624_v60  ;;  %v3716_v55 = vsel %vm3706_vm14, %v3713_v22, %v3715_v46  ;;  %v18580_v28 = vxor.u32 2147483648, %v12930_v26  ;;  %v18586_v22 = vld [vmem:[#allocation43_spill] sm:$0xff] }
 0x35b   : > { %v18581_v38 = vsel %vm13056_vm2, 0, %v13001_v1  ;;  %v18582_v52 = vsub.s32 4, %v12777_v48  ;;  %v3720_v59 = vsel %vm3706_vm14, %v3717_v0, %v3719_v42  ;;  %v3241_v26 = vsel %vm13185_vm4, %v13158_v56, %v3238_v11 }
 0x35c   : > { %v2939_v2 = vsel %vm2937_vm12, %v12921_v31, %v18580_v28  ;;  %v3142_v49 = vadd.s32 3, %v18581_v38  ;;  %v3332_v9 = vor.u32 %v3331_v23, %v3330_v19  ;;  %v3336_v31 = vor.u32 4788187, %v3335_v58 }
 0x35d   : > { %v3240_v39 = vsel %vm3155_vm3, %v18582_v52, %v12777_v48  ;;  %v7695_v16 = vadd.s32 4294967169, %v3781_v15  ;;  %v13269_v63 = vsel %vm7682_vm15, 0, %v7681_v47  ;;  %v3531_v1 = vsub.s32 0, %v13236_v5  ;;  %v18587_v52 = vld [vmem:[#allocation40_spill] sm:$0xff] }
 0x35e   : > { %v13273_v51 = vmul.u32.u64.low %v13238_v6, %v3716_v55  ;;  %v13274_v3 = vmul.u32.u64.high %v13238_v6, %v3716_v55, %v13273_v51  ;;  %vm2933_vm2 = vweird.f32 %v12645_v13  ;;  %v18583_v48 = vand.u32 2147483647, %v12403_v34 }
 0x35f   : > { %v3630_v33 = vadd.s32 536870912, %v13246_v14  ;;  %v3689_v19 = vshrl.u32 %v18400_v17, %v13120_v50  ;;  %v13288_v23 = vmul.u32.u64.low %v13238_v6, %v3720_v59  ;;  %v13289_v47 = vmul.u32.u64.high %v13238_v6, %v3720_v59, %v13288_v23 }
 0x360   : > { %vm13280_vm5 = vcmp.le.f32.partialorder %v18583_v48, 0.7853982  ;;  %v3045_v60 = vxor.u32 2147483648, %v13149_v45  ;;  %v13292_v30 = vand.u32 3, %v3142_v49  ;;  %v3343_v46 = vsub.s32 4, %v18586_v22 }
 0x361   : > { %v3710_v34 = vsel %vm3708_vm6, %v3698_v20, 2102212464  ;;  %v2943_v58 = vsel %vm2936_vm9, %v2939_v2, %v13107_v4  ;;  %vm3040_vm13 = vcmp.lt.s32.totalorder %v12897_v43, 2  ;;  %8257 = vcosq.f32 %v3241_v26 }
 0x362   : > { %v3437_v50 = vsub.s32 4294967266, %v13269_v63  ;;  %v3787_v0 = vadd.s32 1, %v7695_v16  ;;  %v3042_v42 = vxor.u32 2147483648, %v13178_v37  ;;  %v3242_v15 = vsel %vm13185_vm4, 0, %v3240_v39  ;;  %v8254_v2 = vpop.eup %8253  ;;  %v18589_v39 = vld [vmem:[#allocation44_spill] sm:$0xff] }
 0x363   : > { %v3337_v11 = vand.u32 2147483647, %v3336_v31  ;;  %v3339_v55 = vcvt.s32.f32 %v3332_v9  ;;  %v7684_v28 = vmin.u32 %v3531_v1, %v13236_v5  ;;  %v13306_v20 = vshrl.u32 %v3630_v33, 30  ;;  %v8256_v49 = vpop.eup %8255 }
 0x364   : > { %v3709_v54 = vsel %vm3705_vm10, %v3689_v19, %v13199_v7  ;;  %v3711_v4 = vsel %vm3707_vm8, %v13201_v29, %v3710_v34  ;;  %v3046_v41 = vsel %vm3044_vm0, %v3045_v60, %v13178_v37  ;;  %vm3148_vm3 = vcmp.eq.s32.totalorder %v13292_v30, 2  ;;  %v18588_v7 = vld [vmem:[#allocation45_spill] sm:$0xff] }
 0x365   : > { %8259 = vsinq.f32 %v3241_v26  ;;  %v3344_v38 = vsel %vm3259_vm11, %v3343_v46, %v18586_v22  ;;  %vm3037_vm12 = vweird.f32 %v18587_v52  ;;  %v3417_v59 = vadd.s32 %v18589_v39, %v18588_v7 }
 0x366   : > { %v3433_v29 = vsub.s32 32, %v13269_v63  ;;  %v3438_v9 = vadd.s32 127, %v3437_v50  ;;  %vm3788_vm4 = vcmp.gt.s32.totalorder %v3787_v0, 0  ;;  %v3043_v37 = vsel %vm3041_vm1, %v13149_v45, %v3042_v42 }
 0x367   : > { %v3246_v31 = vadd.s32 3, %v3242_v15  ;;  %v3712_v26 = vsel %vm3706_vm14, %v3709_v54, %v3711_v4  ;;  %v3731_v16 = vadd.s32 1, %v13274_v3  ;;  %v3340_v1 = vmul.f32 %v3339_v55, %v3337_v11 }
 0x368   : > { %v3533_v48 = vclz %v7684_v28  ;;  %v3632_v33 = vshll.u32 %v13306_v20, 30  ;;  %vm3730_vm6 = vc.u32 %v13289_v47, %v13273_v51  ;;  %v3146_v19 = vxor.u32 2147483648, %v8256_v49  ;;  %v13358_v28 = vld [vmem:[%s8726_s8 + $0x118] sm:$0xff] }
 0x369   : > { %v3149_v23 = vxor.u32 2147483648, %v8254_v2  ;;  %v3346_v60 = vsel %vm13280_vm5, 0, %v3344_v38  ;;  %v3789_v22 = vsel %vm3788_vm4, %v3787_v0, 0  ;;  %v3434_v45 = vshll.u32 %v13082_v32, %v13269_v63  ;;  %18591 = vst [vmem:[#allocation34_spill] sm:$0xff] %v13358_v28 }
 0x36a   : > { %v3435_v57 = vshrl.u32 %v3417_v59, %v3433_v29  ;;  %v3439_v46 = vshll.u32 %v3438_v9, 23  ;;  %v3728_v34 = vmul.u32 %v13238_v6, %v3712_v26  ;;  %v13341_v50 = vsel %vm2933_vm2, nan, %v2943_v58 }
 0x36b   : > { %18590 = vst [vmem:[#allocation29_spill] sm:$0xff] %v13341_v50  ;;  %vm3145_vm7 = vcmp.eq.s32.totalorder %v13292_v30, 0  ;;  %v13344_v42 = vand.u32 3, %v3246_v31  ;;  %v3732_v15 = vsel %vm3730_vm6, %v3731_v16, %v13274_v3  ;;  %v13347_v11 = vpop.eup %8257  ;;  %v3341_v0 = vxor.u32 2147483648, %v3340_v1 }
 0x36c   : > { %v7685_v32 = vadd.s32 4294967294, %v3533_v48  ;;  %v13350_v63 = vsub.s32 %v13246_v14, %v3632_v33  ;;  %v3791_v55 = vand.u32 31, %v3789_v22  ;;  %v3047_v13 = vsel %vm3040_vm13, %v3043_v37, %v3046_v41  ;;  %v13367_v14 = vld [vmem:[%s8726_s8 + $0xf0] sm:$0xff] }
 0x36d   : > { %vm3144_vm10 = vcmp.lt.s32.totalorder %v13292_v30, 2  ;;  %v3150_v6 = vsel %vm3148_vm3, %v3149_v23, %v8256_v49  ;;  %v3350_v58 = vadd.s32 3, %v3346_v60  ;;  %v3147_v3 = vsel %vm3145_vm7, %v8254_v2, %v3146_v19 }
 0x36e   : > { %v3436_v54 = vor.u32 %v3435_v57, %v3434_v45  ;;  %v3440_v4 = vor.u32 4788187, %v3439_v46  ;;  %v13360_v38 = vadd.s32 %v3732_v15, %v3728_v34  ;;  %vm3252_vm8 = vcmp.eq.s32.totalorder %v13344_v42, 2  ;;  %v18593_v57 = vld [vmem:[#allocation36_spill] sm:$0xff] }
 0x36f   : > { %v13362_v7 = vpop.eup %8259  ;;  %v3253_v43 = vxor.u32 2147483648, %v13347_v11  ;;  %vm3363_vm9 = vcmp.lt.s32.totalorder %v13367_v14, 0  ;;  %v3447_v41 = vsub.s32 4, %v13032_v10  ;;  %v3342_v49 = vsel %vm3259_vm11, %v3341_v0, %v3340_v1 }
 0x370   : > { %vm7686_vm14 = vcmp.lt.s32.totalorder %v7685_v32, 0  ;;  %v3635_v2 = vsub.s32 0, %v13350_v63  ;;  %v13374_v39 = vsub.s32 32, %v3791_v55  ;;  %v13378_v59 = vsel %vm3037_vm12, nan, %v3047_v13 }
 0x371   : > { %18592 = vst [vmem:[#allocation43_spill] sm:$0xff] %v13378_v59  ;;  %v13382_v29 = vsel %vm3144_vm10, %v3147_v3, %v3150_v6  ;;  %v13384_v9 = vand.u32 3, %v3350_v58  ;;  %v3884_v37 = vand.u32 2139095040, %v13358_v28  ;;  %v3250_v31 = vxor.u32 2147483648, %v13362_v7 }
 0x372   : > { %v3441_v26 = vand.u32 2147483647, %v3440_v4  ;;  %v3443_v16 = vcvt.s32.f32 %v3436_v54  ;;  %v3734_v1 = vadd.s32 536870912, %v13360_v38  ;;  %vm3249_vm0 = vcmp.eq.s32.totalorder %v13344_v42, 0 }
 0x373   : > { %v13393_v52 = vsel %vm3252_vm8, %v3253_v43, %v13362_v7  ;;  %v3345_v30 = vsel %vm13280_vm5, %v13243_v40, %v3342_v49  ;;  %v13401_v48 = vsel %vm3363_vm9, %v3447_v41, %v13032_v10  ;;  %v13403_v33 = vsel %vm7686_vm14, 0, %v7685_v32 }
 0x374   : > { %v7688_v19 = vmin.u32 %v3635_v2, %v13350_v63  ;;  %v18274_v23 = vand.u32 2147483647, %v13181_v21  ;;  %v3803_v60 = vshll.u32 %v18395_v25, %v3791_v55  ;;  %v3804_v45 = vshrl.u32 %v18396_v8, %v13374_v39 }
 0x375   : > { %v18594_v46 = vand.u32 2147483647, %v18593_v57  ;;  %v13416_v34 = vshrl.u32 %v3789_v22, 5  ;;  %v3806_v10 = vshll.u32 %v18396_v8, %v3791_v55  ;;  %v3807_v15 = vshrl.u32 %v18482_v12, %v13374_v39  ;;  %v18598_v57 = vld [vmem:[#allocation39_spill] sm:$0xff] }
 0x376   : > { %v3885_v0 = vshrl.u32 %v3884_v37, 23  ;;  %v3444_v32 = vmul.f32 %v3443_v16, %v3441_v26  ;;  %v13421_v13 = vshrl.u32 %v3734_v1, 30  ;;  %v3794_v6 = vshll.u32 %v18400_v17, %v3791_v55  ;;  %v18597_v16 = vld [vmem:[#allocation28_spill] sm:$0xff] }
 0x377   : > { %vm13412_vm1 = vcmp.le.f32.partialorder %v18594_v46, 0.7853982  ;;  %v3797_v58 = vshll.u32 %v18380_v27, %v3791_v55  ;;  %vm3141_vm11 = vweird.f32 %v12941_v24  ;;  %vm3248_vm15 = vcmp.lt.s32.totalorder %v13344_v42, 2 }
 0x378   : > { %v3795_v22 = vshrl.u32 %v18380_v27, %v13374_v39  ;;  %v3798_v3 = vshrl.u32 %v18483_v36, %v13374_v39  ;;  %v3800_v54 = vshll.u32 %v18483_v36, %v3791_v55  ;;  %v3801_v4 = vshrl.u32 %v18395_v25, %v13374_v39 }
 0x379   : > { %8261 = vcosq.f32 %v3345_v30  ;;  %v3541_v7 = vsub.s32 4294967266, %v13403_v33  ;;  %v3637_v43 = vclz %v7688_v19  ;;  %v3805_v41 = vor.u32 %v3804_v45, %v3803_v60 }
 0x37a   : > { %v3784_v49 = vand.u32 8388607, %v18274_v23  ;;  %v3808_v2 = vor.u32 %v3807_v15, %v3806_v10  ;;  %vm3812_vm2 = vcmp.lt.s32.totalorder %v13416_v34, 4  ;;  %v7699_v37 = vadd.s32 4294967169, %v3885_v0 }
 0x37b   : > { %8263 = vsinq.f32 %v3345_v30  ;;  %v3445_v26 = vxor.u32 2147483648, %v3444_v32  ;;  %v3521_v55 = vadd.s32 %v18597_v16, %v13027_v61  ;;  %v3537_v1 = vsub.s32 32, %v13403_v33  ;;  %v13489_v16 = vld [vmem:[%s8726_s8 + $0x120] sm:$0xff] }
 0x37c   : > { %vm3467_vm5 = vcmp.lt.s32.totalorder %v18598_v57, 0  ;;  %v3736_v46 = vshll.u32 %v13421_v13, 30  ;;  %v13443_v19 = vor.u32 %v3795_v22, %v3794_v6  ;;  %v13445_v60 = vor.u32 %v3798_v3, %v3797_v58  ;;  %18602 = vst [vmem:[#allocation40_spill] sm:$0xff] %v13489_v16 }
 0x37d   : > { %v3802_v45 = vor.u32 %v3801_v4, %v3800_v54  ;;  %v3542_v10 = vadd.s32 127, %v3541_v7  ;;  %vm3809_vm13 = vcmp.lt.s32.totalorder %v13416_v34, 1  ;;  %vm3811_vm3 = vcmp.lt.s32.totalorder %v13416_v34, 3 }
 0x37e   : > { %v3818_v30 = vsel %vm3812_vm2, %v3805_v41, 920167782  ;;  %vm3245_vm12 = vweird.f32 %v13158_v56  ;;  %v7689_v61 = vadd.s32 4294967294, %v3637_v43  ;;  %v3785_v15 = vor.u32 8388608, %v3784_v49 }
 0x37f   : > { %v3822_v0 = vsel %vm3812_vm2, %v3808_v2, 1326507024  ;;  %v3891_v6 = vadd.s32 1, %v7699_v37  ;;  %v3251_v58 = vsel %vm3249_vm0, %v13347_v11, %v3250_v31  ;;  %v3446_v22 = vsel %vm3363_vm9, %v3445_v26, %v3444_v32 }
 0x380   : > { %v3450_v3 = vsel %vm13412_vm1, 0, %v13401_v48  ;;  %v3551_v54 = vsub.s32 4, %v13189_v62  ;;  %v13464_v4 = vsub.s32 %v13360_v38, %v3736_v46  ;;  %vm3810_vm4 = vcmp.lt.s32.totalorder %v13416_v34, 2 }
 0x381   : > { %v3817_v11 = vsel %vm3809_vm13, %v13443_v19, %v13445_v60  ;;  %v3819_v31 = vsel %vm3811_vm3, %v3802_v45, %v3818_v30  ;;  %v18599_v32 = vand.u32 2147483647, %v18598_v57  ;;  %v3538_v38 = vshll.u32 %v13236_v5, %v13403_v33 }
 0x382   : > { %v3539_v7 = vshrl.u32 %v3521_v55, %v3537_v1  ;;  %v3821_v43 = vsel %vm3809_vm13, %v13445_v60, %v3802_v45  ;;  %v3823_v49 = vsel %vm3811_vm3, %v3805_v41, %v3822_v0  ;;  %v3543_v2 = vshll.u32 %v3542_v10, 23 }
 0x383   : > { %vm13475_vm6 = vcmp.le.f32.partialorder %v18599_v32, 0.7853982  ;;  %vm7690_vm7 = vcmp.lt.s32.totalorder %v7689_v61, 0  ;;  %v13486_v37 = vshll.u32 %v3785_v15, 8  ;;  %vm3892_vm10 = vcmp.gt.s32.totalorder %v3891_v6, 0  ;;  %v8262_v26 = vpop.eup %8261 }
 0x384   : > { %v13494_v5 = vsel %vm3141_vm11, nan, %v13382_v29  ;;  %v3255_v33 = vsel %vm3248_vm15, %v3251_v58, %v13393_v52  ;;  %vm3353_vm8 = vcmp.eq.s32.totalorder %v13384_v9, 0  ;;  %v3820_v41 = vsel %vm3810_vm4, %v3817_v11, %v3819_v31 }
 0x385   : > { %18603 = vst [vmem:[#allocation45_spill] sm:$0xff] %v13494_v5  ;;  %v3449_v55 = vsel %vm13412_vm1, %v13367_v14, %v3446_v22  ;;  %v3454_v1 = vadd.s32 3, %v3450_v3  ;;  %v3739_v46 = vsub.s32 0, %v13464_v4  ;;  %v3824_v24 = vsel %vm3810_vm4, %v3821_v43, %v3823_v49  ;;  %v8264_v29 = vpop.eup %8263 }
 0x386   : > { %v3540_v10 = vor.u32 %v3539_v7, %v3538_v38  ;;  %v3552_v42 = vsel %vm3467_vm5, %v3551_v54, %v13189_v62  ;;  %v13512_v52 = vsel %vm7690_vm7, 0, %v7689_v61  ;;  %v3893_v30 = vsel %vm3892_vm10, %v3891_v6, 0 }
 0x387   : > { %v3544_v15 = vor.u32 4788187, %v3543_v2  ;;  %v13515_v53 = vmul.u32.u64.low %v13486_v37, %v3820_v41  ;;  %v13516_v0 = vmul.u32.u64.high %v13486_v37, %v3820_v41, %v13515_v53  ;;  %v3988_v58 = vand.u32 2139095040, %v13489_v16 }
 0x388   : > { %8265 = vcosq.f32 %v3449_v55  ;;  %v3793_v22 = vshrl.u32 %v18400_v17, %v13374_v39  ;;  %v13523_v3 = vmul.u32.u64.low %v13486_v37, %v3824_v24  ;;  %v13524_v11 = vmul.u32.u64.high %v13486_v37, %v3824_v24, %v13523_v3 }
 0x389   : > { %v3645_v62 = vsub.s32 4294967266, %v13512_v52  ;;  %v7692_v61 = vmin.u32 %v3739_v46, %v13464_v4  ;;  %v3814_v6 = vsel %vm3812_vm2, %v3802_v45, 2102212464  ;;  %v3895_v54 = vand.u32 31, %v3893_v30 }
 0x38a   : > { %v13532_v31 = vsel %vm3245_vm12, nan, %v3255_v33  ;;  %vm3352_vm9 = vcmp.lt.s32.totalorder %v13384_v9, 2  ;;  %v3354_v32 = vxor.u32 2147483648, %v8264_v29  ;;  %vm3356_vm14 = vcmp.eq.s32.totalorder %v13384_v9, 2 }
 0x38b   : > { %18604 = vst [vmem:[#allocation44_spill] sm:$0xff] %v13532_v31  ;;  %v3357_v39 = vxor.u32 2147483648, %v8262_v26  ;;  %v3545_v38 = vand.u32 2147483647, %v3544_v15  ;;  %v3547_v7 = vcvt.s32.f32 %v3540_v10  ;;  %v3554_v43 = vsel %vm13475_vm6, 0, %v3552_v42 }
 0x38c   : > { %v3989_v49 = vshrl.u32 %v3988_v58, 23  ;;  %v3625_v45 = vadd.s32 %v13133_v18, %v13142_v44  ;;  %v3641_v2 = vsub.s32 32, %v13512_v52  ;;  %v3813_v56 = vsel %vm3809_vm13, %v3793_v22, %v13443_v19 }
 0x38d   : > { %v3815_v33 = vsel %vm3811_vm3, %v13445_v60, %v3814_v6  ;;  %v13547_v41 = vand.u32 3, %v3454_v1  ;;  %v3646_v46 = vadd.s32 127, %v3645_v62  ;;  %v3741_v24 = vclz %v7692_v61 }
 0x38e   : > { %v13549_v10 = vsub.s32 32, %v3895_v54  ;;  %v3355_v42 = vsel %vm3353_vm8, %v8262_v26, %v3354_v32  ;;  %v3358_v18 = vsel %vm3356_vm14, %v3357_v39, %v8264_v29  ;;  %8267 = vsinq.f32 %v3449_v55 }
 0x38f   : > { %v3558_v44 = vadd.s32 3, %v3554_v43  ;;  %v3548_v15 = vmul.f32 %v3547_v7, %v3545_v38  ;;  %v3816_v19 = vsel %vm3810_vm4, %v3813_v56, %v3815_v33  ;;  %v3835_v60 = vadd.s32 1, %v13516_v0  ;;  %v13591_v33 = vld [vmem:[%s8726_s8 + $0x128] sm:$0xff] }
 0x390   : > { %v7703_v1 = vadd.s32 4294967169, %v3989_v49  ;;  %v3642_v58 = vshll.u32 %v13350_v63, %v13512_v52  ;;  %v3643_v22 = vshrl.u32 %v3625_v45, %v3641_v2  ;;  %vm3834_vm0 = vc.u32 %v13524_v11, %v13515_v53  ;;  %18605 = vst [vmem:[#allocation36_spill] sm:$0xff] %v13591_v33 }
 0x391   : > { %v18273_v26 = vand.u32 2147483647, %v13358_v28  ;;  %v3647_v3 = vshll.u32 %v3646_v46, 23  ;;  %v7693_v29 = vadd.s32 4294967294, %v3741_v24  ;;  %v3907_v55 = vshll.u32 %v18395_v25, %v3895_v54 }
 0x392   : > { %v3908_v34 = vshrl.u32 %v18396_v8, %v13549_v10  ;;  %v8266_v62 = vpop.eup %8265  ;;  %v3832_v61 = vmul.u32 %v13486_v37, %v3816_v19  ;;  %v13567_v6 = vshrl.u32 %v3893_v30, 5  ;;  %v3910_v63 = vshll.u32 %v18396_v8, %v3895_v54 }
 0x393   : > { %v3911_v52 = vshrl.u32 %v18482_v12, %v13549_v10  ;;  %v3836_v32 = vsel %vm3834_vm0, %v3835_v60, %v13516_v0  ;;  %v3898_v39 = vshll.u32 %v18400_v17, %v3895_v54  ;;  %v3901_v38 = vshll.u32 %v18380_v27, %v3895_v54 }
 0x394   : > { %v3995_v7 = vadd.s32 1, %v7703_v1  ;;  %vm3457_vm1 = vcmp.eq.s32.totalorder %v13547_v41, 0  ;;  %vm3460_vm11 = vcmp.eq.s32.totalorder %v13547_v41, 2  ;;  %v3899_v37 = vshrl.u32 %v18380_v27, %v13549_v10 }
 0x395   : > { %v3902_v30 = vshrl.u32 %v18483_v36, %v13549_v10  ;;  %v3904_v43 = vshll.u32 %v18483_v36, %v3895_v54  ;;  %v3905_v0 = vshrl.u32 %v18395_v25, %v13549_v10  ;;  %v13586_v49 = vsel %vm3352_vm9, %v3355_v42, %v3358_v18 }
 0x396   : > { %v3461_v45 = vxor.u32 2147483648, %v8266_v62  ;;  %v13588_v2 = vand.u32 3, %v3558_v44  ;;  %v3909_v56 = vor.u32 %v3908_v34, %v3907_v55  ;;  %v13593_v46 = vadd.s32 %v3836_v32, %v3832_v61 }
 0x397   : > { %v3888_v24 = vand.u32 8388607, %v18273_v26  ;;  %v3912_v19 = vor.u32 %v3911_v52, %v3910_v63  ;;  %vm3916_vm15 = vcmp.lt.s32.totalorder %v13567_v6, 4  ;;  %v3549_v54 = vxor.u32 2147483648, %v3548_v15 }
 0x398   : > { %v3644_v60 = vor.u32 %v3643_v22, %v3642_v58  ;;  %v3648_v1 = vor.u32 4788187, %v3647_v3  ;;  %vm3996_vm2 = vcmp.gt.s32.totalorder %v3995_v7, 0  ;;  %v8268_v9 = vpop.eup %8267  ;;  %vm7694_vm13 = vcmp.lt.s32.totalorder %v7693_v29, 0 }
 0x399   : > { %v3900_v42 = vor.u32 %v3899_v37, %v3898_v39  ;;  %v3903_v18 = vor.u32 %v3902_v30, %v3901_v38  ;;  %v3906_v44 = vor.u32 %v3905_v0, %v3904_v43  ;;  %vm3913_vm3 = vcmp.lt.s32.totalorder %v13567_v6, 1 }
 0x39a   : > { %vm3915_vm12 = vcmp.lt.s32.totalorder %v13567_v6, 3  ;;  %v3922_v55 = vsel %vm3916_vm15, %v3909_v56, 920167782  ;;  %v4092_v34 = vand.u32 2139095040, %v13591_v33  ;;  %v3838_v61 = vadd.s32 536870912, %v13593_v46 }
 0x39b   : > { %v3889_v58 = vor.u32 8388608, %v3888_v24  ;;  %v3926_v22 = vsel %vm3916_vm15, %v3912_v19, 1326507024  ;;  %v3997_v3 = vsel %vm3996_vm2, %v3995_v7, 0  ;;  %v3458_v63 = vxor.u32 2147483648, %v8268_v9 }
 0x39c   : > { %v3550_v52 = vsel %vm3467_vm5, %v3549_v54, %v3548_v15  ;;  %v3651_v32 = vcvt.s32.f32 %v3644_v60  ;;  %v3744_v39 = vsel %vm7694_vm13, 0, %v7693_v29  ;;  %v3649_v38 = vand.u32 2147483647, %v3648_v1  ;;  %v13618_v15 = vld [vmem:[%s8726_s8 + $0xf8] sm:$0xff] }
 0x39d   : > { %vm3914_vm4 = vcmp.lt.s32.totalorder %v13567_v6, 2  ;;  %v3921_v37 = vsel %vm3913_vm3, %v3900_v42, %v3903_v18  ;;  %v3923_v30 = vsel %vm3915_vm12, %v3906_v44, %v3922_v55  ;;  %v3925_v43 = vsel %vm3913_vm3, %v3903_v18, %v3906_v44  ;;  %18606 = vst [vmem:[#allocation28_spill] sm:$0xff] %v13618_v15 }
 0x39e   : > { %v3927_v7 = vsel %vm3915_vm12, %v3909_v56, %v3926_v22  ;;  %v3999_v0 = vand.u32 31, %v3997_v3  ;;  %v4093_v57 = vshrl.u32 %v4092_v34, 23  ;;  %v13623_v29 = vsel %vm13475_vm6, %v13618_v15, %v3550_v52 }
 0x39f   : > { %v3749_v24 = vsub.s32 4294967266, %v3744_v39  ;;  %v13625_v19 = vshrl.u32 %v3838_v61, 30  ;;  %v13627_v54 = vshll.u32 %v3889_v58, 8  ;;  %v13631_v60 = vsel %vm3457_vm1, %v8266_v62, %v3458_v63 }
 0x3a0   : > { %v13635_v56 = vsel %vm3460_vm11, %v3461_v45, %v8268_v9  ;;  %v3897_v1 = vshrl.u32 %v18400_v17, %v13549_v10  ;;  %v3924_v48 = vsel %vm3914_vm4, %v3921_v37, %v3923_v30  ;;  %v3729_v55 = vadd.s32 %v13273_v51, %v13289_v47  ;;  %v13657_v51 = vld [vmem:[%s8726_s8 + $0x100] sm:$0xff] }
 0x3a1   : > { %v3745_v34 = vsub.s32 32, %v3744_v39  ;;  %v3918_v61 = vsel %vm3916_vm15, %v3906_v44, 2102212464  ;;  %v3928_v62 = vsel %vm3914_vm4, %v3925_v43, %v3927_v7  ;;  %8269 = vcosq.f32 %v13623_v29  ;;  %18607 = vst [vmem:[#allocation39_spill] sm:$0xff] %v13657_v51 }
 0x3a2   : > { %v3652_v45 = vmul.f32 %v3651_v32, %v3649_v38  ;;  %v13648_v9 = vsub.s32 32, %v3999_v0  ;;  %v7707_v58 = vadd.s32 4294967169, %v4093_v57  ;;  %v3750_v10 = vadd.s32 127, %v3749_v24 }
 0x3a3   : > { %v3840_v22 = vshll.u32 %v13625_v19, 30  ;;  %v13652_v63 = vmul.u32.u64.low %v13627_v54, %v3924_v48  ;;  %v13653_v52 = vmul.u32.u64.high %v13627_v54, %v3924_v48, %v13652_v63  ;;  %vm3571_vm5 = vcmp.lt.s32.totalorder %v13657_v51, 0 }
 0x3a4   : > { %v3917_v47 = vsel %vm3913_vm3, %v3897_v1, %v3900_v42  ;;  %v3919_v44 = vsel %vm3915_vm12, %v3903_v18, %v3918_v61  ;;  %v13665_v32 = vmul.u32.u64.low %v13627_v54, %v3928_v62  ;;  %v13666_v38 = vmul.u32.u64.high %v13627_v54, %v3928_v62, %v13665_v32 }
 0x3a5   : > { %v3746_v37 = vshll.u32 %v13464_v4, %v3744_v39  ;;  %v3747_v30 = vshrl.u32 %v3729_v55, %v3745_v34  ;;  %v18275_v43 = vand.u32 2147483647, %v13489_v16  ;;  %v4099_v7 = vadd.s32 1, %v7707_v58 }
 0x3a6   : > { %v4011_v57 = vshll.u32 %v18395_v25, %v3999_v0  ;;  %v4012_v24 = vshrl.u32 %v18396_v8, %v13648_v9  ;;  %v4014_v42 = vshll.u32 %v18396_v8, %v3999_v0  ;;  %v4015_v18 = vshrl.u32 %v18482_v12, %v13648_v9 }
 0x3a7   : > { %v3751_v1 = vshll.u32 %v3750_v10, 23  ;;  %v13677_v48 = vsub.s32 %v13593_v46, %v3840_v22  ;;  %v3920_v4 = vsel %vm3914_vm4, %v3917_v47, %v3919_v44  ;;  %v13681_v39 = vshrl.u32 %v3997_v3, 5 }
 0x3a8   : > { %v4002_v55 = vshll.u32 %v18400_v17, %v3999_v0  ;;  %v4005_v34 = vshll.u32 %v18380_v27, %v3999_v0  ;;  %v4008_v61 = vshll.u32 %v18483_v36, %v3999_v0  ;;  %vm4100_vm6 = vcmp.gt.s32.totalorder %v4099_v7, 0 }
 0x3a9   : > { %v4003_v62 = vshrl.u32 %v18380_v27, %v13648_v9  ;;  %v4006_v58 = vshrl.u32 %v18483_v36, %v13648_v9  ;;  %v4009_v46 = vshrl.u32 %v18395_v25, %v13648_v9  ;;  %v4101_v6 = vsel %vm4100_vm6, %v4099_v7, 0 }
 0x3aa   : > { %v3653_v10 = vxor.u32 2147483648, %v3652_v45  ;;  %v4013_v3 = vor.u32 %v4012_v24, %v4011_v57  ;;  %v4016_v22 = vor.u32 %v4015_v18, %v4014_v42  ;;  %v4103_v47 = vand.u32 31, %v4101_v6 }
 0x3ab   : > { %v13692_v44 = vor.u32 %v3747_v30, %v3746_v37  ;;  %v3939_v32 = vadd.s32 1, %v13653_v52  ;;  %v3992_v0 = vand.u32 8388607, %v18275_v43  ;;  %vm4020_vm7 = vcmp.lt.s32.totalorder %v13681_v39, 4  ;;  %v13698_v26 = vpop.eup %8269 }
 0x3ac   : > { %v13700_v23 = vor.u32 4788187, %v3751_v1  ;;  %v3843_v31 = vsub.s32 0, %v13677_v48  ;;  %v3936_v7 = vmul.u32 %v13627_v54, %v3920_v4  ;;  %vm3938_vm10 = vc.u32 %v13666_v38, %v13652_v63 }
 0x3ad   : > { %v13706_v37 = vor.u32 %v4003_v62, %v4002_v55  ;;  %v13708_v30 = vor.u32 %v4006_v58, %v4005_v34  ;;  %v4010_v57 = vor.u32 %v4009_v46, %v4008_v61  ;;  %vm4017_vm8 = vcmp.lt.s32.totalorder %v13681_v39, 1  ;;  %v18608_v55 = vld [vmem:[#allocation16_spill] sm:$0xff] }
 0x3ae   : > { %vm4019_vm9 = vcmp.lt.s32.totalorder %v13681_v39, 3  ;;  %v4026_v24 = vsel %vm4020_vm7, %v4013_v3, 920167782  ;;  %v4030_v42 = vsel %vm4020_vm7, %v4016_v22, 1326507024  ;;  %v13716_v18 = vsub.s32 32, %v4103_v47 }
 0x3af   : > { %8271 = vsinq.f32 %v13623_v29  ;;  %v3654_v54 = vsel %vm3571_vm5, %v3653_v10, %v3652_v45  ;;  %v3940_v1 = vsel %vm3938_vm10, %v3939_v32, %v13653_v52  ;;  %v3993_v4 = vor.u32 8388608, %v3992_v0  ;;  %v13750_v32 = vld [vmem:[%s8726_s8 + $0x130] sm:$0xff] }
 0x3b0   : > { %v18609_v34 = vand.u32 2147483647, %v18608_v55  ;;  %v3753_v62 = vand.u32 2147483647, %v13700_v23  ;;  %v3755_v58 = vcvt.s32.f32 %v13692_v44  ;;  %v7696_v46 = vmin.u32 %v3843_v31, %v13677_v48  ;;  %18612 = vst [vmem:[#allocation16_spill] sm:$0xff] %v13750_v32 }
 0x3b1   : > { %vm4018_vm0 = vcmp.lt.s32.totalorder %v13681_v39, 2  ;;  %v4025_v29 = vsel %vm4017_vm8, %v13706_v37, %v13708_v30  ;;  %v4027_v45 = vsel %vm4019_vm9, %v4010_v57, %v4026_v24  ;;  %v4029_v52 = vsel %vm4017_vm8, %v13708_v30, %v4010_v57 }
 0x3b2   : > { %vm13724_vm14 = vcmp.le.f32.partialorder %v18609_v34, 0.7853982  ;;  %v4031_v23 = vsel %vm4019_vm9, %v4013_v3, %v4030_v42  ;;  %v13743_v10 = vadd.s32 %v3940_v1, %v3936_v7  ;;  %v4115_v22 = vshll.u32 %v18395_v25, %v4103_v47 }
 0x3b3   : > { %v4116_v44 = vshrl.u32 %v18396_v8, %v13716_v18  ;;  %v13752_v0 = vshll.u32 %v3993_v4, 8  ;;  %v13754_v24 = vshrl.u32 %v4101_v6, 5  ;;  %v4118_v55 = vshll.u32 %v18396_v8, %v4103_v47 }
 0x3b4   : > { %v4119_v3 = vshrl.u32 %v18482_v12, %v13716_v18  ;;  %vm3349_vm1 = vweird.f32 %v13243_v40  ;;  %v4028_v7 = vsel %vm4018_vm0, %v4025_v29, %v4027_v45  ;;  %v4032_v42 = vsel %vm4018_vm0, %v4029_v52, %v4031_v23 }
 0x3b5   : > { %v4106_v1 = vshll.u32 %v18400_v17, %v4103_v47  ;;  %v4109_v4 = vshll.u32 %v18380_v27, %v4103_v47  ;;  %v4107_v6 = vshrl.u32 %v18380_v27, %v13716_v18  ;;  %v4110_v34 = vshrl.u32 %v18483_v36, %v13716_v18 }
 0x3b6   : > { %v4112_v43 = vshll.u32 %v18483_v36, %v4103_v47  ;;  %v4113_v31 = vshrl.u32 %v18395_v25, %v13716_v18  ;;  %vm3456_vm11 = vcmp.lt.s32.totalorder %v13547_v41, 2  ;;  %v3845_v29 = vclz %v7696_v46 }
 0x3b7   : > { %v3942_v45 = vadd.s32 536870912, %v13743_v10  ;;  %v4117_v52 = vor.u32 %v4116_v44, %v4115_v22  ;;  %v4196_v23 = vand.u32 2139095040, %v13750_v32  ;;  %v4001_v5 = vshrl.u32 %v18400_v17, %v13648_v9 }
 0x3b8   : > { %v18613_v59 = vand.u32 2147483647, %v13591_v33  ;;  %v4120_v16 = vor.u32 %v4119_v3, %v4118_v55  ;;  %vm4124_vm15 = vcmp.lt.s32.totalorder %v13754_v24, 4  ;;  %v4022_v9 = vsel %vm4020_vm7, %v4010_v57, 2102212464 }
 0x3b9   : > { %v13782_v47 = vmul.u32.u64.low %v13752_v0, %v4032_v42  ;;  %v13783_v28 = vmul.u32.u64.high %v13752_v0, %v4032_v42, %v13782_v47  ;;  %v13786_v46 = vmul.u32.u64.low %v13752_v0, %v4028_v7  ;;  %v13787_v15 = vmul.u32.u64.high %v13752_v0, %v4028_v7, %v13786_v46  ;;  %v13790_v22 = vpop.eup %8271 }
 0x3ba   : > { %v4096_v50 = vand.u32 8388607, %v18613_v59  ;;  %v13794_v44 = vor.u32 %v4107_v6, %v4106_v1  ;;  %v13796_v59 = vor.u32 %v4110_v34, %v4109_v4  ;;  %v4114_v55 = vor.u32 %v4113_v31, %v4112_v43  ;;  %v13812_v43 = vld [vmem:[%s8726_s8 + $0x108] sm:$0xff] }
 0x3bb   : > { %vm4121_vm2 = vcmp.lt.s32.totalorder %v13754_v24, 1  ;;  %vm4123_vm13 = vcmp.lt.s32.totalorder %v13754_v24, 3  ;;  %v4130_v3 = vsel %vm4124_vm15, %v4117_v52, 920167782  ;;  %v4197_v7 = vshrl.u32 %v4196_v23, 23  ;;  %18614 = vst [vmem:[#allocation46_spill] sm:$0xff] %v13812_v43 }
 0x3bc   : > { %v3655_v42 = vsub.s32 4, %v13306_v20  ;;  %v13806_v47 = vsel %vm13724_vm14, %v13657_v51, %v3654_v54  ;;  %v4097_v57 = vor.u32 8388608, %v4096_v50  ;;  %v4134_v1 = vsel %vm4124_vm15, %v4120_v16, 1326507024 }
 0x3bd   : > { %vm3453_vm3 = vweird.f32 %v13367_v14  ;;  %vm3675_vm12 = vcmp.lt.s32.totalorder %v13812_v43, 0  ;;  %v3756_v31 = vmul.f32 %v3755_v58, %v3753_v62  ;;  %v7697_v4 = vadd.s32 4294967294, %v3845_v29 }
 0x3be   : > { %v4021_v6 = vsel %vm4017_vm8, %v4001_v5, %v13706_v37  ;;  %v7711_v34 = vadd.s32 4294967169, %v4197_v7  ;;  %v4023_v50 = vsel %vm4019_vm9, %v13708_v30, %v4022_v9  ;;  %vm4122_vm4 = vcmp.lt.s32.totalorder %v13754_v24, 2 }
 0x3bf   : > { %v4129_v16 = vsel %vm4121_vm2, %v13794_v44, %v13796_v59  ;;  %v4131_v54 = vsel %vm4123_vm13, %v4114_v55, %v4130_v3  ;;  %v13828_v62 = vshrl.u32 %v3942_v45, 30  ;;  %v4133_v5 = vsel %vm4121_vm2, %v13796_v59, %v4114_v55 }
 0x3c0   : > { %v4135_v37 = vsel %vm4123_vm13, %v4117_v52, %v4134_v1  ;;  %v4203_v30 = vadd.s32 1, %v7711_v34  ;;  %v13838_v58 = vsel %vm3349_vm1, nan, %v13586_v49  ;;  %vm3561_vm6 = vcmp.eq.s32.totalorder %v13588_v2, 0 }
 0x3c1   : > { %18615 = vst [vmem:[#allocation47_spill] sm:$0xff] %v13838_v58  ;;  %8273 = vcosq.f32 %v13806_v47  ;;  %v18616_v29 = vand.u32 2147483647, %v12950_v35  ;;  %v13848_v23 = vshll.u32 %v4097_v57, 8  ;;  %vm7698_vm10 = vcmp.lt.s32.totalorder %v7697_v4, 0 }
 0x3c2   : > { %v4024_v52 = vsel %vm4018_vm0, %v4021_v6, %v4023_v50  ;;  %v4043_v40 = vadd.s32 1, %v13787_v15  ;;  %v4132_v49 = vsel %vm4122_vm4, %v4129_v16, %v4131_v54  ;;  %v3463_v35 = vsel %vm3456_vm11, %v13631_v60, %v13635_v56  ;;  %v13885_v50 = vld [vmem:[%s8726_s8 + $0x138] sm:$0xff] }
 0x3c3   : > { %vm13844_vm7 = vcmp.le.f32.partialorder %v18616_v29, 0.7853982  ;;  %v3656_v9 = vsel %vm3571_vm5, %v3655_v42, %v13306_v20  ;;  %vm4042_vm8 = vc.u32 %v13783_v28, %v13786_v46  ;;  %v4136_v39 = vsel %vm4122_vm4, %v4133_v5, %v4135_v37 }
 0x3c4   : > { %vm3560_vm9 = vcmp.lt.s32.totalorder %v13588_v2, 2  ;;  %v3757_v3 = vxor.u32 2147483648, %v3756_v31  ;;  %v3759_v7 = vsub.s32 4, %v13421_v13  ;;  %v3944_v57 = vshll.u32 %v13828_v62, 30 }
 0x3c5   : > { %vm4204_vm0 = vcmp.gt.s32.totalorder %v4203_v30, 0  ;;  %v13869_v41 = vsel %vm7698_vm10, 0, %v7697_v4  ;;  %v4040_v60 = vmul.u32 %v13752_v0, %v4024_v52  ;;  %v4044_v42 = vsel %vm4042_vm8, %v4043_v40, %v13787_v15 }
 0x3c6   : > { %v13873_v20 = vmul.u32.u64.low %v13848_v23, %v4132_v49  ;;  %v13874_v56 = vmul.u32.u64.high %v13848_v23, %v4132_v49, %v13873_v20  ;;  %v4105_v1 = vshrl.u32 %v18400_v17, %v13716_v18  ;;  %v3562_v4 = vxor.u32 2147483648, %v13790_v22 }
 0x3c7   : > { %v13881_v6 = vmul.u32.u64.low %v13848_v23, %v4136_v39  ;;  %v13882_v34 = vmul.u32.u64.high %v13848_v23, %v4136_v39, %v13881_v6  ;;  %v3565_v0 = vxor.u32 2147483648, %v13698_v26  ;;  %v4126_v16 = vsel %vm4124_vm15, %v4114_v55, 2102212464 }
 0x3c8   : > { %v4205_v54 = vsel %vm4204_vm0, %v4203_v30, 0  ;;  %vm3564_vm5 = vcmp.eq.s32.totalorder %v13588_v2, 2  ;;  %v3658_v15 = vsel %vm13724_vm14, 0, %v3656_v9  ;;  %v3760_v18 = vsel %vm3675_vm12, %v3759_v7, %v13421_v13  ;;  %v13936_v9 = vld [vmem:[%s8726_s8 + $0x110] sm:$0xff] }
 0x3c9   : > { %v13898_v5 = vsub.s32 %v13743_v10, %v3944_v57  ;;  %v13902_v37 = vsel %vm3453_vm3, nan, %v3463_v35  ;;  %v3758_v55 = vsel %vm3675_vm12, %v3757_v3, %v3756_v31  ;;  %v3853_v30 = vsub.s32 4294967266, %v13869_v41 }
 0x3ca   : > { %18619 = vst [vmem:[#allocation48_spill] sm:$0xff] %v13902_v37  ;;  %v13907_v29 = vadd.s32 %v4044_v42, %v4040_v60  ;;  %v4125_v61 = vsel %vm4121_vm2, %v4105_v1, %v13794_v44  ;;  %v4127_v13 = vsel %vm4123_vm13, %v13796_v59, %v4126_v16  ;;  %v4207_v10 = vand.u32 31, %v4205_v54 }
 0x3cb   : > { %v4300_v14 = vand.u32 2139095040, %v13885_v50  ;;  %v13916_v52 = vpop.eup %8273  ;;  %v3563_v31 = vsel %vm3561_vm6, %v13698_v26, %v3562_v4  ;;  %v3566_v40 = vsel %vm3564_vm5, %v3565_v0, %v13790_v22  ;;  %v3662_v49 = vadd.s32 3, %v3658_v15 }
 0x3cc   : > { %v3762_v44 = vsel %vm13844_vm7, 0, %v3760_v18  ;;  %8275 = vsinq.f32 %v13806_v47  ;;  %v13930_v59 = vsel %vm13844_vm7, %v13812_v43, %v3758_v55  ;;  %v3833_v35 = vadd.s32 %v13515_v53, %v13524_v11 }
 0x3cd   : > { %v3947_v26 = vsub.s32 0, %v13898_v5  ;;  %vm3779_vm14 = vcmp.lt.s32.totalorder %v13936_v9, 0  ;;  %v3849_v22 = vsub.s32 32, %v13869_v41  ;;  %v3854_v39 = vadd.s32 127, %v3853_v30 }
 0x3ce   : > { %v4128_v47 = vsel %vm4122_vm4, %v4125_v61, %v4127_v13  ;;  %v4147_v3 = vadd.s32 1, %v13874_v56  ;;  %v4046_v45 = vadd.s32 536870912, %v13907_v29  ;;  %vm4146_vm1 = vc.u32 %v13882_v34, %v13873_v20 }
 0x3cf   : > { %v13946_v53 = vsub.s32 32, %v4207_v10  ;;  %v4301_v11 = vshrl.u32 %v4300_v14, 23  ;;  %v13950_v7 = vsel %vm3560_vm9, %v3563_v31, %v3566_v40  ;;  %v13952_v57 = vand.u32 3, %v3662_v49 }
 0x3d0   : > { %v13955_v24 = vadd.s32 3, %v3762_v44  ;;  %8277 = vcosq.f32 %v13930_v59  ;;  %v3863_v42 = vsub.s32 4, %v13625_v19  ;;  %v7700_v1 = vmin.u32 %v3947_v26, %v13898_v5 }
 0x3d1   : > { %v4144_v6 = vmul.u32 %v13848_v23, %v4128_v47  ;;  %v3850_v4 = vshll.u32 %v13677_v48, %v13869_v41  ;;  %v3851_v2 = vshrl.u32 %v3833_v35, %v3849_v22  ;;  %v3855_v0 = vshll.u32 %v3854_v39, 23 }
 0x3d2   : > { %v4148_v16 = vsel %vm4146_vm1, %v4147_v3, %v13874_v56  ;;  %v13964_v15 = vshrl.u32 %v4046_v45, 30  ;;  %v4219_v18 = vshll.u32 %v18395_v25, %v4207_v10  ;;  %v4220_v55 = vshrl.u32 %v18396_v8, %v13946_v53 }
 0x3d3   : > { %v7715_v30 = vadd.s32 4294967169, %v4301_v11  ;;  %v18620_v61 = vand.u32 2147483647, %v13181_v21  ;;  %v18280_v48 = vand.u32 2147483647, %v13750_v32  ;;  %v13976_v23 = vshrl.u32 %v4205_v54, 5 }
 0x3d4   : > { %v4222_v41 = vshll.u32 %v18396_v8, %v4207_v10  ;;  %v4223_v56 = vshrl.u32 %v18482_v12, %v13946_v53  ;;  %vm3668_vm15 = vcmp.eq.s32.totalorder %v13952_v57, 2  ;;  %v3949_v14 = vclz %v7700_v1 }
 0x3d5   : > { %vm13971_vm11 = vcmp.le.f32.partialorder %v18620_v61, 0.7853982  ;;  %v13982_v31 = vadd.s32 %v4148_v16, %v4144_v6  ;;  %v4210_v21 = vshll.u32 %v18400_v17, %v4207_v10  ;;  %v4213_v40 = vshll.u32 %v18380_v27, %v4207_v10 }
 0x3d6   : > { %vm3665_vm2 = vcmp.eq.s32.totalorder %v13952_v57, 0  ;;  %v4211_v54 = vshrl.u32 %v18380_v27, %v13946_v53  ;;  %v4214_v49 = vshrl.u32 %v18483_v36, %v13946_v53  ;;  %v4216_v44 = vshll.u32 %v18483_v36, %v4207_v10  ;;  %v8276_v26 = vpop.eup %8275 }
 0x3d7   : > { %v4217_v35 = vshrl.u32 %v18395_v25, %v13946_v53  ;;  %v3864_v22 = vsel %vm3779_vm14, %v3863_v42, %v13625_v19  ;;  %v4048_v39 = vshll.u32 %v13964_v15, 30  ;;  %v4221_v47 = vor.u32 %v4220_v55, %v4219_v18 }
 0x3d8   : > { %v4307_v3 = vadd.s32 1, %v7715_v30  ;;  %v3852_v45 = vor.u32 %v3851_v2, %v3850_v4  ;;  %v4200_v11 = vand.u32 8388607, %v18280_v48  ;;  %v4224_v1 = vor.u32 %v4223_v56, %v4222_v41  ;;  %v14108_v48 = vld [vmem:[%s8726_s8 + $0x140] sm:$0xff] }
 0x3d9   : > { %vm4228_vm13 = vcmp.lt.s32.totalorder %v13976_v23, 4  ;;  %v3856_v10 = vor.u32 4788187, %v3855_v0  ;;  %v7701_v6 = vadd.s32 4294967294, %v3949_v14  ;;  %v4150_v16 = vadd.s32 536870912, %v13982_v31 }
 0x3da   : > { %vm4308_vm3 = vcmp.gt.s32.totalorder %v4307_v3, 0  ;;  %v4212_v61 = vor.u32 %v4211_v54, %v4210_v21  ;;  %v4215_v60 = vor.u32 %v4214_v49, %v4213_v40  ;;  %v4218_v37 = vor.u32 %v4217_v35, %v4216_v44  ;;  %v14002_v42 = vpop.eup %8277 }
 0x3db   : > { %v4309_v19 = vsel %vm4308_vm3, %v4307_v3, 0  ;;  %v14005_v18 = vsub.s32 %v13907_v29, %v4048_v39  ;;  %vm4225_vm12 = vcmp.lt.s32.totalorder %v13976_v23, 1  ;;  %vm4227_vm4 = vcmp.lt.s32.totalorder %v13976_v23, 3 }
 0x3dc   : > { %v4234_v4 = vsel %vm4228_vm13, %v4221_v47, 920167782  ;;  %v3666_v2 = vxor.u32 2147483648, %v8276_v26  ;;  %8279 = vsinq.f32 %v13930_v59  ;;  %v4201_v0 = vor.u32 8388608, %v4200_v11 }
 0x3dd   : > { %v4238_v55 = vsel %vm4228_vm13, %v4224_v1, 1326507024  ;;  %v3859_v30 = vcvt.s32.f32 %v3852_v45  ;;  %v3866_v41 = vsel %vm13971_vm11, 0, %v3864_v22  ;;  %vm7702_vm6 = vcmp.lt.s32.totalorder %v7701_v6, 0 }
 0x3de   : > { %v4311_v29 = vand.u32 31, %v4309_v19  ;;  %v14016_v56 = vshrl.u32 %v4150_v16, 30  ;;  %vm4226_vm7 = vcmp.lt.s32.totalorder %v13976_v23, 2  ;;  %v4233_v14 = vsel %vm4225_vm12, %v4212_v61, %v4215_v60 }
 0x3df   : > { %v4235_v59 = vsel %vm4227_vm4, %v4218_v37, %v4234_v4  ;;  %v3857_v21 = vand.u32 2147483647, %v3856_v10  ;;  %v4051_v40 = vsub.s32 0, %v14005_v18  ;;  %v4237_v54 = vsel %vm4225_vm12, %v4215_v60, %v4218_v37 }
 0x3e0   : > { %18623 = vst [vmem:[#allocation49_spill] sm:$0xff] %v14016_v56  ;;  %v4239_v49 = vsel %vm4227_vm4, %v4221_v47, %v4238_v55  ;;  %v18624_v44 = vxor.u32 2147483648, %v13916_v52  ;;  %v14035_v22 = vand.u32 3, %v13955_v24  ;;  %v14037_v39 = vsel %vm7702_vm6, 0, %v7701_v6 }
 0x3e1   : > { %v14039_v3 = vshll.u32 %v4201_v0, 8  ;;  %v14044_v45 = vsel %vm3665_vm2, %v13916_v52, %v3666_v2  ;;  %v14046_v11 = vadd.s32 3, %v3866_v41  ;;  %v4236_v47 = vsel %vm4226_vm7, %v4233_v14, %v4235_v59 }
 0x3e2   : > { %v14032_v35 = vsel %vm3668_vm15, %v18624_v44, %v8276_v26  ;;  %v14050_v1 = vsub.s32 32, %v4311_v29  ;;  %v3937_v24 = vadd.s32 %v13652_v63, %v13666_v38  ;;  %v4152_v10 = vshll.u32 %v14016_v56, 30 }
 0x3e3   : > { %v4240_v6 = vsel %vm4226_vm7, %v4237_v54, %v4239_v49  ;;  %v14058_v16 = vmul.f32 %v3859_v30, %v3857_v21  ;;  %v3957_v52 = vsub.s32 4294967266, %v14037_v39  ;;  %v7704_v4 = vmin.u32 %v4051_v40, %v14005_v18 }
 0x3e4   : > { %v4209_v2 = vshrl.u32 %v18400_v17, %v13946_v53  ;;  %v4230_v0 = vsel %vm4228_vm13, %v4218_v37, 2102212464  ;;  %v14067_v55 = vmul.u32.u64.low %v14039_v3, %v4236_v47  ;;  %v14068_v63 = vmul.u32.u64.high %v14039_v3, %v4236_v47, %v14067_v55 }
 0x3e5   : > { %v18290_v38 = vand.u32 2147483647, %v13885_v50  ;;  %v14073_v30 = vmul.u32.u64.low %v14039_v3, %v4240_v6  ;;  %v14074_v41 = vmul.u32.u64.high %v14039_v3, %v4240_v6, %v14073_v30  ;;  %v4323_v14 = vshll.u32 %v18395_v25, %v4311_v29 }
 0x3e6   : > { %v4324_v59 = vshrl.u32 %v18396_v8, %v14050_v1  ;;  %v14079_v53 = vpop.eup %8279  ;;  %v14082_v37 = vsub.s32 %v13982_v31, %v4152_v10  ;;  %v14084_v21 = vshrl.u32 %v4309_v19, 5  ;;  %v4326_v40 = vshll.u32 %v18396_v8, %v4311_v29 }
 0x3e7   : > { %v4327_v54 = vshrl.u32 %v18482_v12, %v14050_v1  ;;  %vm3772_vm10 = vcmp.eq.s32.totalorder %v14035_v22, 2  ;;  %v4229_v49 = vsel %vm4225_vm12, %v4209_v2, %v4212_v61  ;;  %v4231_v44 = vsel %vm4227_vm4, %v4215_v60, %v4230_v0 }
 0x3e8   : > { %v4314_v47 = vshll.u32 %v18400_v17, %v4311_v29  ;;  %v4317_v31 = vshll.u32 %v18380_v27, %v4311_v29  ;;  %vm3769_vm8 = vcmp.eq.s32.totalorder %v14035_v22, 0  ;;  %v4315_v19 = vshrl.u32 %v18380_v27, %v14050_v1 }
 0x3e9   : > { %v4318_v10 = vshrl.u32 %v18483_v36, %v14050_v1  ;;  %v4320_v6 = vshll.u32 %v18483_v36, %v4311_v29  ;;  %v4321_v61 = vshrl.u32 %v18395_v25, %v14050_v1  ;;  %v3770_v2 = vxor.u32 2147483648, %v14079_v53 }
 0x3ea   : > { %v3861_v60 = vxor.u32 2147483648, %v14058_v16  ;;  %v3953_v0 = vsub.s32 32, %v14037_v39  ;;  %v4325_v30 = vor.u32 %v4324_v59, %v4323_v14  ;;  %v4053_v26 = vclz %v7704_v4 }
 0x3eb   : > { %v4304_v58 = vand.u32 8388607, %v18290_v38  ;;  %v4328_v32 = vor.u32 %v4327_v54, %v4326_v40  ;;  %vm4332_vm9 = vcmp.lt.s32.totalorder %v14084_v21, 4  ;;  %v3954_v29 = vshll.u32 %v13898_v5, %v14037_v39  ;;  %v18625_v39 = vld [vmem:[#allocation28_spill] sm:$0xff] }
 0x3ec   : > { %v3958_v56 = vadd.s32 127, %v3957_v52  ;;  %v4155_v33 = vsub.s32 0, %v14082_v37  ;;  %v4232_v43 = vsel %vm4226_vm7, %v4229_v49, %v4231_v44  ;;  %v4251_v14 = vadd.s32 1, %v14068_v63  ;;  %v14131_v49 = vld [vmem:[%s8726_s8 + $0x118] sm:$0xff] }
 0x3ed   : > { %v4316_v59 = vor.u32 %v4315_v19, %v4314_v47  ;;  %v4319_v4 = vor.u32 %v4318_v10, %v4317_v31  ;;  %v4322_v51 = vor.u32 %v4321_v61, %v4320_v6  ;;  %vm4329_vm0 = vcmp.lt.s32.totalorder %v14084_v21, 1  ;;  %v18627_v61 = vld [vmem:[#allocation34_spill] sm:$0xff] }
 0x3ee   : > { %vm4331_vm5 = vcmp.lt.s32.totalorder %v14084_v21, 3  ;;  %v4338_v40 = vsel %vm4332_vm9, %v4325_v30, 920167782  ;;  %v4404_v5 = vand.u32 2139095040, %v14108_v48  ;;  %vm3557_vm1 = vweird.f32 %v18625_v39 }
 0x3ef   : > { %vm3664_vm15 = vcmp.lt.s32.totalorder %v13952_v57, 2  ;;  %v7705_v23 = vadd.s32 4294967294, %v4053_v26  ;;  %vm4250_vm2 = vc.u32 %v14074_v41, %v14067_v55  ;;  %v4305_v52 = vor.u32 8388608, %v4304_v58 }
 0x3f0   : > { %v4342_v54 = vsel %vm4332_vm9, %v4328_v32, 1326507024  ;;  %vm3883_vm13 = vcmp.lt.s32.totalorder %v14131_v49, 0  ;;  %v3955_v44 = vshrl.u32 %v3937_v24, %v3953_v0  ;;  %v3959_v47 = vshll.u32 %v3958_v56, 23 }
 0x3f1   : > { %v7708_v31 = vmin.u32 %v4155_v33, %v14082_v37  ;;  %v4405_v19 = vshrl.u32 %v4404_v5, 23  ;;  %vm3768_vm3 = vcmp.lt.s32.totalorder %v14035_v22, 2  ;;  %v4248_v26 = vmul.u32 %v14039_v3, %v4232_v43 }
 0x3f2   : > { %vm4330_vm12 = vcmp.lt.s32.totalorder %v14084_v21, 2  ;;  %v4337_v58 = vsel %vm4329_vm0, %v4316_v59, %v4319_v4  ;;  %v4339_v32 = vsel %vm4331_vm5, %v4322_v51, %v4338_v40  ;;  %v4252_v10 = vsel %vm4250_vm2, %v4251_v14, %v14068_v63 }
 0x3f3   : > { %v4341_v56 = vsel %vm4329_vm0, %v4319_v4, %v4322_v51  ;;  %v4343_v33 = vsel %vm4331_vm5, %v4325_v30, %v4342_v54  ;;  %v7719_v24 = vadd.s32 4294967169, %v4405_v19  ;;  %v18626_v43 = vxor.u32 2147483648, %v14002_v42 }
 0x3f4   : > { %v3862_v6 = vsel %vm3779_vm14, %v3861_v60, %v14058_v16  ;;  %v18628_v0 = vand.u32 2147483647, %v18627_v61  ;;  %vm7706_vm6 = vcmp.lt.s32.totalorder %v7705_v23, 0  ;;  %v14161_v14 = vshll.u32 %v4305_v52, 8 }
 0x3f5   : > { %v3774_v3 = vsel %vm3772_vm10, %v18626_v43, %v14079_v53  ;;  %v3771_v30 = vsel %vm3769_vm8, %v14002_v42, %v3770_v2  ;;  %v3967_v40 = vsub.s32 4, %v13828_v62  ;;  %v4340_v53 = vsel %vm4330_vm12, %v4337_v58, %v4339_v32 }
 0x3f6   : > { %vm14157_vm4 = vcmp.le.f32.partialorder %v18628_v0, 0.7853982  ;;  %v4411_v5 = vadd.s32 1, %v7719_v24  ;;  %v3956_v16 = vor.u32 %v3955_v44, %v3954_v29  ;;  %v3960_v60 = vor.u32 4788187, %v3959_v47 }
 0x3f7   : > { %v14169_v54 = vadd.s32 %v4252_v10, %v4248_v26  ;;  %v4344_v19 = vsel %vm4330_vm12, %v4341_v56, %v4343_v33  ;;  %v3865_v52 = vsel %vm13971_vm11, %v13936_v9, %v3862_v6  ;;  %v14176_v43 = vsel %vm7706_vm6, 0, %v7705_v23 }
 0x3f8   : > { %v4157_v42 = vclz %v7708_v31  ;;  %vm4412_vm14 = vcmp.gt.s32.totalorder %v4411_v5, 0  ;;  %v4313_v2 = vshrl.u32 %v18400_v17, %v14050_v1  ;;  %v4334_v47 = vsel %vm4332_vm9, %v4322_v51, 2102212464 }
 0x3f9   : > { %v14181_v58 = vmul.u32.u64.low %v14161_v14, %v4340_v53  ;;  %v14182_v29 = vmul.u32.u64.high %v14161_v14, %v4340_v53, %v14181_v58  ;;  %v4413_v44 = vsel %vm4412_vm14, %v4411_v5, 0  ;;  %v3961_v31 = vand.u32 2147483647, %v3960_v60 }
 0x3fa   : > { %v14188_v13 = vmul.u32.u64.low %v14161_v14, %v4344_v19  ;;  %v14189_v26 = vmul.u32.u64.high %v14161_v14, %v4344_v19, %v14188_v13  ;;  %v4415_v23 = vand.u32 31, %v4413_v44  ;;  %v3963_v32 = vcvt.s32.f32 %v3956_v16 }
 0x3fb   : > { %v14194_v1 = vsel %vm3883_vm13, %v3967_v40, %v13828_v62  ;;  %v4254_v10 = vadd.s32 536870912, %v14169_v54  ;;  %v14200_v56 = vsel %vm3557_vm1, nan, %v13950_v7  ;;  %v14206_v51 = vsel %vm3664_vm15, %v14044_v45, %v14032_v35  ;;  %v14216_v7 = vld [vmem:[%s8726_s8 + $0x148] sm:$0xff] }
 0x3fc   : > { %18631 = vst [vmem:[#allocation28_spill] sm:$0xff] %v14200_v56  ;;  %v4061_v33 = vsub.s32 4294967266, %v14176_v43  ;;  %v7709_v24 = vadd.s32 4294967294, %v4157_v42  ;;  %8281 = vcosq.f32 %v3865_v52  ;;  %v4333_v62 = vsel %vm4329_vm0, %v4313_v2, %v4316_v59 }
 0x3fd   : > { %v4335_v6 = vsel %vm4331_vm5, %v4319_v4, %v4334_v47  ;;  %v14213_v61 = vsub.s32 32, %v4415_v23  ;;  %v14220_v39 = vsel %vm3768_vm3, %v3771_v30, %v3774_v3  ;;  %8283 = vsinq.f32 %v3865_v52 }
 0x3fe   : > { %v14223_v57 = vand.u32 3, %v14046_v11  ;;  %v3970_v35 = vsel %vm14157_vm4, 0, %v14194_v1  ;;  %v3964_v45 = vmul.f32 %v3963_v32, %v3961_v31  ;;  %v4041_v59 = vadd.s32 %v13786_v46, %v13783_v28 }
 0x3ff   : > { %v4057_v4 = vsub.s32 32, %v14176_v43  ;;  %v14231_v0 = vshrl.u32 %v4254_v10, 30  ;;  %v4062_v40 = vadd.s32 127, %v4061_v33  ;;  %vm7710_vm11 = vcmp.lt.s32.totalorder %v7709_v24, 0 }
 0x400   : > { %v4336_v22 = vsel %vm4330_vm12, %v4333_v62, %v4335_v6  ;;  %v18291_v11 = vand.u32 2147483647, %v14108_v48  ;;  %v4355_v3 = vadd.s32 1, %v14182_v29  ;;  %v4427_v30 = vshll.u32 %v18395_v25, %v4415_v23 }
 0x401   : > { %v4428_v53 = vshrl.u32 %v18396_v8, %v14213_v61  ;;  %v4508_v28 = vand.u32 2139095040, %v14216_v7  ;;  %vm4354_vm7 = vc.u32 %v14189_v26, %v14181_v58  ;;  %v14243_v46 = vshrl.u32 %v4413_v44, 5 }
 0x402   : > { %v4430_v5 = vshll.u32 %v18396_v8, %v4415_v23  ;;  %v4431_v21 = vshrl.u32 %v18482_v12, %v14213_v61  ;;  %v4256_v16 = vshll.u32 %v14231_v0, 30  ;;  %v4352_v60 = vmul.u32 %v14161_v14, %v4336_v22 }
 0x403   : > { %v4418_v19 = vshll.u32 %v18400_v17, %v4415_v23  ;;  %v4421_v52 = vshll.u32 %v18380_v27, %v4415_v23  ;;  %v4419_v42 = vshrl.u32 %v18380_v27, %v14213_v61  ;;  %v4422_v2 = vshrl.u32 %v18483_v36, %v14213_v61 }
 0x404   : > { %v4424_v44 = vshll.u32 %v18483_v36, %v4415_v23  ;;  %v4425_v47 = vshrl.u32 %v18395_v25, %v14213_v61  ;;  %v3965_v13 = vxor.u32 2147483648, %v3964_v45  ;;  %v4356_v31 = vsel %vm4354_vm7, %v4355_v3, %v14182_v29 }
 0x405   : > { %v4429_v32 = vor.u32 %v4428_v53, %v4427_v30  ;;  %v4509_v14 = vshrl.u32 %v4508_v28, 23  ;;  %v4058_v10 = vshll.u32 %v14005_v18, %v14176_v43  ;;  %v4408_v33 = vand.u32 8388607, %v18291_v11 }
 0x406   : > { %v4432_v62 = vor.u32 %v4431_v21, %v4430_v5  ;;  %vm4436_vm10 = vcmp.lt.s32.totalorder %v14243_v46, 4  ;;  %v14265_v6 = vpop.eup %8281  ;;  %v4059_v23 = vshrl.u32 %v4041_v59, %v4057_v4  ;;  %v4063_v22 = vshll.u32 %v4062_v40, 23  ;;  %v14286_v5 = vld [vmem:[%s8726_s8 + $0x120] sm:$0xff] }
 0x407   : > { %v4160_v38 = vsel %vm7710_vm11, 0, %v7709_v24  ;;  %v14269_v29 = vsub.s32 %v14169_v54, %v4256_v16  ;;  %v14271_v3 = vpop.eup %8283  ;;  %v14273_v30 = vadd.s32 %v4356_v31, %v4352_v60  ;;  %v4420_v18 = vor.u32 %v4419_v42, %v4418_v19 }
 0x408   : > { %v4423_v43 = vor.u32 %v4422_v2, %v4421_v52  ;;  %v4426_v53 = vor.u32 %v4425_v47, %v4424_v44  ;;  %vm4433_vm8 = vcmp.lt.s32.totalorder %v14243_v46, 1  ;;  %vm4435_vm9 = vcmp.lt.s32.totalorder %v14243_v46, 3 }
 0x409   : > { %v4442_v59 = vsel %vm4436_vm10, %v4429_v32, 920167782  ;;  %v7723_v4 = vadd.s32 4294967169, %v4509_v14  ;;  %v3966_v24 = vsel %vm3883_vm13, %v3965_v13, %v3964_v45  ;;  %v4145_v54 = vadd.s32 %v13873_v20, %v13882_v34 }
 0x40a   : > { %v4409_v40 = vor.u32 8388608, %v4408_v33  ;;  %v4446_v28 = vsel %vm4436_vm10, %v4432_v62, 1326507024  ;;  %vm3987_vm0 = vcmp.lt.s32.totalorder %v14286_v5, 0  ;;  %v4060_v21 = vor.u32 %v4059_v23, %v4058_v10 }
 0x40b   : > { %v4064_v16 = vor.u32 4788187, %v4063_v22  ;;  %v4161_v60 = vsub.s32 32, %v4160_v38  ;;  %v4165_v19 = vsub.s32 4294967266, %v4160_v38  ;;  %v4259_v52 = vsub.s32 0, %v14269_v29 }
 0x40c   : > { %vm4434_vm5 = vcmp.lt.s32.totalorder %v14243_v46, 2  ;;  %v4441_v45 = vsel %vm4433_vm8, %v4420_v18, %v4423_v43  ;;  %v4443_v20 = vsel %vm4435_vm9, %v4426_v53, %v4442_v59  ;;  %v4358_v34 = vadd.s32 536870912, %v14273_v30 }
 0x40d   : > { %v4445_v42 = vsel %vm4433_vm8, %v4423_v43, %v4426_v53  ;;  %v4447_v2 = vsel %vm4435_vm9, %v4429_v32, %v4446_v28  ;;  %v4515_v44 = vadd.s32 1, %v7723_v4  ;;  %v14305_v13 = vadd.s32 3, %v3970_v35 }
 0x40e   : > { %v4071_v31 = vsub.s32 4, %v13964_v15  ;;  %v14308_v14 = vshll.u32 %v4409_v40, 8  ;;  %v14313_v10 = vsel %vm14157_vm4, %v14131_v49, %v3966_v24  ;;  %v4067_v33 = vcvt.s32.f32 %v4060_v21 }
 0x40f   : > { %v4444_v32 = vsel %vm4434_vm5, %v4441_v45, %v4443_v20  ;;  %vm4516_vm1 = vcmp.gt.s32.totalorder %v4515_v44, 0  ;;  %v4065_v62 = vand.u32 2147483647, %v4064_v16  ;;  %v4162_v23 = vshll.u32 %v14082_v37, %v4160_v38 }
 0x410   : > { %v4163_v1 = vshrl.u32 %v4145_v54, %v4161_v60  ;;  %v4448_v35 = vsel %vm4434_vm5, %v4445_v42, %v4447_v2  ;;  %v4166_v22 = vadd.s32 127, %v4165_v19  ;;  %v7712_v59 = vmin.u32 %v4259_v52, %v14269_v29 }
 0x411   : > { %v14321_v4 = vshrl.u32 %v4358_v34, 30  ;;  %v4517_v63 = vsel %vm4516_vm1, %v4515_v44, 0  ;;  %v4417_v40 = vshrl.u32 %v18400_v17, %v14213_v61  ;;  %v4438_v38 = vsel %vm4436_vm10, %v4426_v53, 2102212464 }
 0x412   : > { %v14327_v28 = vmul.u32.u64.low %v14308_v14, %v4444_v32  ;;  %v14328_v21 = vmul.u32.u64.high %v14308_v14, %v4444_v32, %v14327_v28  ;;  %v14334_v37 = vmul.u32.u64.low %v14308_v14, %v4448_v35  ;;  %v14335_v54 = vmul.u32.u64.high %v14308_v14, %v4448_v35, %v14334_v37 }
 0x413   : > { %v4519_v16 = vand.u32 31, %v4517_v63  ;;  %8285 = vcosq.f32 %v14313_v10  ;;  %v4068_v60 = vmul.f32 %v4067_v33, %v4065_v62  ;;  %v14341_v61 = vsel %vm3987_vm0, %v4071_v31, %v13964_v15  ;;  %v18632_v33 = vld [vmem:[#allocation40_spill] sm:$0xff] }
 0x414   : > { %v4164_v19 = vor.u32 %v4163_v1, %v4162_v23  ;;  %v4167_v52 = vshll.u32 %v4166_v22, 23  ;;  %v4261_v45 = vclz %v7712_v59  ;;  %v4360_v20 = vshll.u32 %v14321_v4, 30 }
 0x415   : > { %v14344_v34 = vsub.s32 32, %v4519_v16  ;;  %v4437_v53 = vsel %vm4433_vm8, %v4417_v40, %v4420_v18  ;;  %v4439_v42 = vsel %vm4435_vm9, %v4423_v43, %v4438_v38  ;;  %v18292_v2 = vand.u32 2147483647, %v14216_v7 }
 0x416   : > { %v14351_v44 = vshrl.u32 %v4517_v63, 5  ;;  %v18633_v15 = vand.u32 2147483647, %v18632_v33  ;;  %v4522_v32 = vshll.u32 %v18400_v17, %v4519_v16  ;;  %v4525_v18 = vshll.u32 %v18380_v27, %v4519_v16 }
 0x417   : > { %v4523_v62 = vshrl.u32 %v18380_v27, %v14344_v34  ;;  %v4531_v23 = vshll.u32 %v18395_v25, %v4519_v16  ;;  %v4526_v43 = vshrl.u32 %v18483_v36, %v14344_v34  ;;  %v4528_v1 = vshll.u32 %v18483_v36, %v4519_v16 }
 0x418   : > { %vm14355_vm15 = vcmp.le.f32.partialorder %v18633_v15, 0.7853982  ;;  %v4529_v35 = vshrl.u32 %v18395_v25, %v14344_v34  ;;  %v4532_v22 = vshrl.u32 %v18396_v8, %v14344_v34  ;;  %vm3873_vm2 = vcmp.eq.s32.totalorder %v14223_v57, 0 }
 0x419   : > { %vm3876_vm13 = vcmp.eq.s32.totalorder %v14223_v57, 2  ;;  %v4069_v59 = vxor.u32 2147483648, %v4068_v60  ;;  %v4168_v63 = vor.u32 4788187, %v4167_v52  ;;  %v4171_v40 = vcvt.s32.f32 %v4164_v19 }
 0x41a   : > { %v14374_v38 = vsub.s32 %v14273_v30, %v4360_v20  ;;  %v7713_v37 = vadd.s32 4294967294, %v4261_v45  ;;  %v4440_v33 = vsel %vm4434_vm5, %v4437_v53, %v4439_v42  ;;  %v4512_v15 = vand.u32 8388607, %v18292_v2  ;;  %v14387_v30 = vld [vmem:[%s8726_s8 + $0x150] sm:$0xff] }
 0x41b   : > { %v4534_v11 = vshll.u32 %v18396_v8, %v4519_v16  ;;  %vm4458_vm3 = vc.u32 %v14335_v54, %v14327_v28  ;;  %v4459_v47 = vadd.s32 1, %v14328_v21  ;;  %v14384_v52 = vor.u32 %v4523_v62, %v4522_v32  ;;  %v14400_v32 = vld [vmem:[%s8726_s8 + $0x128] sm:$0xff] }
 0x41c   : > { %v4533_v19 = vor.u32 %v4532_v22, %v4531_v23  ;;  %v14389_v45 = vor.u32 %v4526_v43, %v4525_v18  ;;  %v4530_v46 = vor.u32 %v4529_v35, %v4528_v1  ;;  %v4535_v20 = vshrl.u32 %v18482_v12, %v14344_v34  ;;  %v18636_v1 = vld [vmem:[#allocation39_spill] sm:$0xff]  ;;  %v18637_v35 = vld [vmem:[#allocation46_spill] sm:$0xff] }
 0x41d   : > { %vm4540_vm12 = vcmp.lt.s32.totalorder %v14351_v44, 4  ;;  %v4169_v53 = vand.u32 2147483647, %v4168_v63  ;;  %v4363_v16 = vsub.s32 0, %v14374_v38  ;;  %vm4537_vm4 = vcmp.lt.s32.totalorder %v14351_v44, 1  ;;  %v14397_v42 = vpop.eup %8285 }
 0x41e   : > { %vm4539_vm6 = vcmp.lt.s32.totalorder %v14351_v44, 3  ;;  %vm4091_vm14 = vcmp.lt.s32.totalorder %v14400_v32, 0  ;;  %v4456_v62 = vmul.u32 %v14308_v14, %v4440_v33  ;;  %v4513_v18 = vor.u32 8388608, %v4512_v15 }
 0x41f   : > { %v4536_v23 = vor.u32 %v4535_v20, %v4534_v11  ;;  %v4546_v43 = vsel %vm4540_vm12, %v4533_v19, 920167782  ;;  %vm3661_vm11 = vweird.f32 %v18636_v1  ;;  %vm3765_vm7 = vweird.f32 %v18637_v35  ;;  %v18646_v35 = vld [vmem:[#allocation49_spill] sm:$0xff] }
 0x420   : > { %vm3872_vm10 = vcmp.lt.s32.totalorder %v14223_v57, 2  ;;  %v4070_v22 = vsel %vm3987_vm0, %v4069_v59, %v4068_v60  ;;  %vm7714_vm8 = vcmp.lt.s32.totalorder %v7713_v37, 0  ;;  %v4460_v14 = vsel %vm4458_vm3, %v4459_v47, %v14328_v21 }
 0x421   : > { %v4612_v11 = vand.u32 2139095040, %v14387_v30  ;;  %vm4538_vm9 = vcmp.lt.s32.totalorder %v14351_v44, 2  ;;  %v4545_v63 = vsel %vm4537_vm4, %v14384_v52, %v14389_v45  ;;  %v4547_v33 = vsel %vm4539_vm6, %v4530_v46, %v4546_v43 }
 0x422   : > { %v4550_v60 = vsel %vm4540_vm12, %v4536_v23, 1326507024  ;;  %v4172_v59 = vmul.f32 %v4171_v40, %v4169_v53  ;;  %v7716_v15 = vmin.u32 %v4363_v16, %v14374_v38  ;;  %v4549_v47 = vsel %vm4537_vm4, %v14389_v45, %v4530_v46 }
 0x423   : > { %v4551_v21 = vsel %vm4539_vm6, %v4533_v19, %v4550_v60  ;;  %v4073_v20 = vsel %vm14355_vm15, %v14286_v5, %v4070_v22  ;;  %v14434_v2 = vsel %vm7714_vm8, 0, %v7713_v37  ;;  %v14436_v43 = vadd.s32 %v4460_v14, %v4456_v62 }
 0x424   : > { %v14438_v24 = vshll.u32 %v4513_v18, 8  ;;  %vm3869_vm0 = vweird.f32 %v13936_v9  ;;  %8287 = vsinq.f32 %v14313_v10  ;;  %v14443_v40 = vand.u32 3, %v14305_v13 }
 0x425   : > { %v4548_v19 = vsel %vm4538_vm9, %v4545_v63, %v4547_v33  ;;  %v4613_v53 = vshrl.u32 %v4612_v11, 23  ;;  %v18638_v16 = vxor.u32 2147483648, %v14271_v3  ;;  %v18639_v62 = vxor.u32 2147483648, %v14265_v6 }
 0x426   : > { %v4074_v13 = vsel %vm14355_vm15, 0, %v14341_v61  ;;  %v4552_v10 = vsel %vm4538_vm9, %v4549_v47, %v4551_v21  ;;  %8289 = vcosq.f32 %v4073_v20  ;;  %v4173_v23 = vxor.u32 2147483648, %v4172_v59  ;;  %v18640_v47 = vld [vmem:[#allocation36_spill] sm:$0xff] }
 0x427   : > { %v3875_v37 = vsel %vm3873_vm2, %v14265_v6, %v18638_v16  ;;  %v3878_v18 = vsel %vm3876_vm13, %v18639_v62, %v14271_v3  ;;  %v4269_v22 = vsub.s32 4294967266, %v14434_v2  ;;  %v4365_v14 = vclz %v7716_v15 }
 0x428   : > { %8291 = vsinq.f32 %v4073_v20  ;;  %v4462_v11 = vadd.s32 536870912, %v14436_v43  ;;  %v14465_v6 = vmul.u32.u64.low %v14438_v24, %v4548_v19  ;;  %v14466_v63 = vmul.u32.u64.high %v14438_v24, %v4548_v19, %v14465_v6 }
 0x429   : > { %v4521_v3 = vshrl.u32 %v18400_v17, %v14344_v34  ;;  %v14472_v61 = vmul.u32.u64.low %v14438_v24, %v4552_v10  ;;  %v14473_v31 = vmul.u32.u64.high %v14438_v24, %v4552_v10, %v14472_v61  ;;  %v7727_v33 = vadd.s32 4294967169, %v4613_v53 }
 0x42a   : > { %v4078_v60 = vadd.s32 3, %v4074_v13  ;;  %v18641_v21 = vand.u32 2147483647, %v18640_v47  ;;  %v4249_v20 = vadd.s32 %v14067_v55, %v14074_v41  ;;  %v4542_v19 = vsel %vm4540_vm12, %v4530_v46, 2102212464 }
 0x42b   : > { %v4174_v34 = vsel %vm4091_vm14, %v4173_v23, %v4172_v59  ;;  %v4265_v16 = vsub.s32 32, %v14434_v2  ;;  %v4270_v62 = vadd.s32 127, %v4269_v22  ;;  %v7717_v53 = vadd.s32 4294967294, %v4365_v14  ;;  %v18648_v22 = vld [vmem:[#allocation16_spill] sm:$0xff] }
 0x42c   : > { %vm14477_vm5 = vcmp.le.f32.partialorder %v18641_v21, 0.7853982  ;;  %v14491_v13 = vsel %vm3661_vm11, nan, %v14206_v51  ;;  %v14496_v10 = vsel %vm3765_vm7, nan, %v14220_v39  ;;  %v3879_v55 = vsel %vm3872_vm10, %v3875_v37, %v3878_v18 }
 0x42d   : > { %18644 = vst [vmem:[#allocation34_spill] sm:$0xff] %v14491_v13  ;;  %18645 = vst [vmem:[#allocation40_spill] sm:$0xff] %v14496_v10  ;;  %vm3977_vm1 = vcmp.eq.s32.totalorder %v14443_v40, 0  ;;  %v14501_v41 = vshrl.u32 %v4462_v11, 30  ;;  %v4541_v46 = vsel %vm4537_vm4, %v4521_v3, %v14384_v52  ;;  %v4543_v51 = vsel %vm4539_vm6, %v14389_v45, %v4542_v19 }
 0x42e   : > { %v4619_v1 = vadd.s32 1, %v7727_v33  ;;  %vm3980_vm15 = vcmp.eq.s32.totalorder %v14443_v40, 2  ;;  %v14510_v39 = vand.u32 3, %v4078_v60  ;;  %v4175_v57 = vsub.s32 4, %v18646_v35  ;;  %v8288_v37 = vpop.eup %8287 }
 0x42f   : > { %v4177_v59 = vsel %vm14477_vm5, %v14400_v32, %v4174_v34  ;;  %vm3976_vm2 = vcmp.lt.s32.totalorder %v14443_v40, 2  ;;  %v4266_v52 = vshll.u32 %v14269_v29, %v14434_v2  ;;  %v4267_v18 = vshrl.u32 %v4249_v20, %v4265_v16  ;;  %v14531_v2 = vld [vmem:[%s8726_s8 + $0x158] sm:$0xff] }
 0x430   : > { %v4271_v45 = vshll.u32 %v4270_v62, 23  ;;  %vm7718_vm13 = vcmp.lt.s32.totalorder %v7717_v53, 0  ;;  %v14521_v23 = vsel %vm3869_vm0, nan, %v3879_v55  ;;  %vm4195_vm3 = vcmp.lt.s32.totalorder %v18648_v22, 0  ;;  %v8290_v3 = vpop.eup %8289 }
 0x431   : > { %18647 = vst [vmem:[#allocation39_spill] sm:$0xff] %v14521_v23  ;;  %v4544_v14 = vsel %vm4538_vm9, %v4541_v46, %v4543_v51  ;;  %v4563_v11 = vadd.s32 1, %v14466_v63  ;;  %8293 = vcosq.f32 %v4177_v59  ;;  %v4464_v61 = vshll.u32 %v14501_v41, 30 }
 0x432   : > { %vm4562_vm12 = vc.u32 %v14473_v31, %v14465_v6  ;;  %vm4620_vm4 = vcmp.gt.s32.totalorder %v4619_v1, 0  ;;  %v8292_v29 = vpop.eup %8291  ;;  %vm3973_vm6 = vweird.f32 %v14131_v49  ;;  %v3978_v9 = vxor.u32 2147483648, %v8288_v37 }
 0x433   : > { %v3981_v33 = vxor.u32 2147483648, %v14397_v42  ;;  %v4176_v44 = vsel %vm4091_vm14, %v4175_v57, %v18646_v35  ;;  %v18649_v60 = vand.u32 2147483647, %v18648_v22  ;;  %v4368_v21 = vsel %vm7718_vm13, 0, %v7717_v53 }
 0x434   : > { %vm4081_vm7 = vcmp.eq.s32.totalorder %v14510_v39, 0  ;;  %v4268_v20 = vor.u32 %v4267_v18, %v4266_v52  ;;  %v4272_v19 = vor.u32 4788187, %v4271_v45  ;;  %v4560_v34 = vmul.u32 %v14438_v24, %v4544_v14 }
 0x435   : > { %vm14540_vm11 = vcmp.le.f32.partialorder %v18649_v60, 0.7853982  ;;  %vm4084_vm10 = vcmp.eq.s32.totalorder %v14510_v39, 2  ;;  %v4279_v16 = vsub.s32 4, %v14231_v0  ;;  %v4564_v32 = vsel %vm4562_vm12, %v4563_v11, %v14466_v63 }
 0x436   : > { %v4621_v62 = vsel %vm4620_vm4, %v4619_v1, 0  ;;  %v4178_v53 = vsel %vm14477_vm5, 0, %v4176_v44  ;;  %v4373_v55 = vsub.s32 4294967266, %v4368_v21  ;;  %v14557_v46 = vsub.s32 %v14436_v43, %v4464_v61 }
 0x437   : > { %v4716_v24 = vand.u32 2139095040, %v14531_v2  ;;  %v3979_v51 = vsel %vm3977_vm1, %v14397_v42, %v3978_v9  ;;  %v3982_v35 = vsel %vm3980_vm15, %v3981_v33, %v8288_v37  ;;  %v4082_v57 = vxor.u32 2147483648, %v8292_v29 }
 0x438   : > { %v4085_v63 = vxor.u32 2147483648, %v8290_v3  ;;  %v4273_v52 = vand.u32 2147483647, %v4272_v19  ;;  %v4275_v1 = vcvt.s32.f32 %v4268_v20  ;;  %v14565_v18 = vadd.s32 %v4564_v32, %v4560_v34 }
 0x439   : > { %v4623_v15 = vand.u32 31, %v4621_v62  ;;  %v4182_v45 = vadd.s32 3, %v4178_v53  ;;  %v4280_v43 = vsel %vm4195_vm3, %v4279_v16, %v14231_v0  ;;  %v4353_v14 = vadd.s32 %v14181_v58, %v14189_v26 }
 0x43a   : > { %v4369_v11 = vsub.s32 32, %v4368_v21  ;;  %vm4080_vm14 = vcmp.lt.s32.totalorder %v14510_v39, 2  ;;  %v4374_v42 = vadd.s32 127, %v4373_v55  ;;  %v4467_v37 = vsub.s32 0, %v14557_v46 }
 0x43b   : > { %v4717_v61 = vshrl.u32 %v4716_v24, 23  ;;  %v3983_v9 = vsel %vm3976_vm2, %v3979_v51, %v3982_v35  ;;  %v4083_v33 = vsel %vm4081_vm7, %v8290_v3, %v4082_v57  ;;  %v4086_v44 = vsel %vm4084_vm10, %v4085_v63, %v8292_v29  ;;  %v14581_v0 = vpop.eup %8293 }
 0x43c   : > { %vm4299_vm8 = vcmp.lt.s32.totalorder %v13885_v50, 0  ;;  %v4276_v58 = vmul.f32 %v4275_v1, %v4273_v52  ;;  %v4282_v26 = vsel %vm14540_vm11, 0, %v4280_v43  ;;  %v4566_v60 = vadd.s32 536870912, %v14565_v18 }
 0x43d   : > { %v14586_v20 = vsub.s32 32, %v4623_v15  ;;  %8295 = vsinq.f32 %v4177_v59  ;;  %v14588_v40 = vand.u32 3, %v4182_v45  ;;  %v4370_v3 = vshll.u32 %v14374_v38, %v4368_v21 }
 0x43e   : > { %v4371_v19 = vshrl.u32 %v4353_v14, %v4369_v11  ;;  %v14593_v29 = vsel %vm3973_vm6, nan, %v3983_v9  ;;  %vm4077_vm9 = vweird.f32 %v14286_v5  ;;  %v4375_v34 = vshll.u32 %v4374_v42, 23 }
 0x43f   : > { %18652 = vst [vmem:[#allocation46_spill] sm:$0xff] %v14593_v29  ;;  %v7720_v16 = vmin.u32 %v4467_v37, %v14557_v46  ;;  %v7731_v32 = vadd.s32 4294967169, %v4717_v61  ;;  %v4087_v53 = vsel %vm4080_vm14, %v4083_v33, %v4086_v44  ;;  %v4189_v59 = vxor.u32 2147483648, %v14581_v0 }
 0x440   : > { %v4286_v55 = vadd.s32 3, %v4282_v26  ;;  %v4383_v24 = vsub.s32 4, %v14321_v4  ;;  %v4277_v38 = vxor.u32 2147483648, %v4276_v58  ;;  %v14601_v21 = vshrl.u32 %v4566_v60, 30 }
 0x441   : > { %v4638_v49 = vshll.u32 %v18396_v8, %v4623_v15  ;;  %v4639_v51 = vshrl.u32 %v18482_v12, %v14586_v20  ;;  %vm4188_vm0 = vcmp.eq.s32.totalorder %v14588_v40, 2  ;;  %v18653_v35 = vand.u32 2147483647, %v13885_v50 }
 0x442   : > { %v4372_v57 = vor.u32 %v4371_v19, %v4370_v3  ;;  %v18293_v63 = vand.u32 2147483647, %v14387_v30  ;;  %v14614_v52 = vshrl.u32 %v4621_v62, 5  ;;  %v4723_v1 = vadd.s32 1, %v7731_v32 }
 0x443   : > { %vm14609_vm5 = vcmp.le.f32.partialorder %v18653_v35, 0.7853982  ;;  %v4376_v45 = vor.u32 4788187, %v4375_v34  ;;  %v4469_v43 = vclz %v7720_v16  ;;  %v4635_v14 = vshll.u32 %v18395_v25, %v4623_v15 }
 0x444   : > { %v4636_v11 = vshrl.u32 %v18396_v8, %v14586_v20  ;;  %vm4185_vm1 = vcmp.eq.s32.totalorder %v14588_v40, 0  ;;  %v4629_v42 = vshll.u32 %v18380_v27, %v4623_v15  ;;  %v4630_v37 = vshrl.u32 %v18483_v36, %v14586_v20 }
 0x445   : > { %v4632_v61 = vshll.u32 %v18483_v36, %v4623_v15  ;;  %v4633_v62 = vshrl.u32 %v18395_v25, %v14586_v20  ;;  %v4384_v9 = vsel %vm4299_vm8, %v4383_v24, %v14321_v4  ;;  %v4568_v33 = vshll.u32 %v14601_v21, 30 }
 0x446   : > { %v4640_v44 = vor.u32 %v4639_v51, %v4638_v49  ;;  %vm4724_vm15 = vcmp.gt.s32.totalorder %v4723_v1, 0  ;;  %v4616_v26 = vand.u32 8388607, %v18293_v63  ;;  %v4626_v60 = vshll.u32 %v18400_v17, %v4623_v15 }
 0x447   : > { %v4627_v3 = vshrl.u32 %v18380_v27, %v14586_v20  ;;  %vm4644_vm2 = vcmp.lt.s32.totalorder %v14614_v52, 4  ;;  %v4278_v19 = vsel %vm4195_vm3, %v4277_v38, %v4276_v58  ;;  %v4379_v34 = vcvt.s32.f32 %v4372_v57  ;;  %v8296_v32 = vpop.eup %8295 }
 0x448   : > { %v4637_v16 = vor.u32 %v4636_v11, %v4635_v14  ;;  %v4725_v4 = vsel %vm4724_vm15, %v4723_v1, 0  ;;  %v4377_v24 = vand.u32 2147483647, %v4376_v45  ;;  %v7721_v49 = vadd.s32 4294967294, %v4469_v43  ;;  %v14652_v43 = vld [vmem:[%s8726_s8 + $0x130] sm:$0xff] }
 0x449   : > { %v14638_v51 = vor.u32 %v4630_v37, %v4629_v42  ;;  %v4634_v35 = vor.u32 %v4633_v62, %v4632_v61  ;;  %v14641_v15 = vsub.s32 %v14565_v18, %v4568_v33  ;;  %vm4641_vm13 = vcmp.lt.s32.totalorder %v14614_v52, 1 }
 0x44a   : > { %vm4643_vm12 = vcmp.lt.s32.totalorder %v14614_v52, 3  ;;  %v4654_v22 = vsel %vm4644_vm2, %v4640_v44, 1326507024  ;;  %v14649_v58 = vsel %vm4077_vm9, nan, %v4087_v53  ;;  %v4617_v38 = vor.u32 8388608, %v4616_v26 }
 0x44b   : > { %18656 = vst [vmem:[#allocation36_spill] sm:$0xff] %v14649_v58  ;;  %v4628_v57 = vor.u32 %v4627_v3, %v4626_v60  ;;  %v4727_v1 = vand.u32 31, %v4725_v4  ;;  %v4186_v45 = vxor.u32 2147483648, %v8296_v32  ;;  %v4281_v18 = vsel %vm14540_vm11, %v14652_v43, %v4278_v19  ;;  %v14693_v60 = vld [vmem:[%s8726_s8 + $0x160] sm:$0xff] }
 0x44c   : > { %v4386_v14 = vsel %vm14609_vm5, 0, %v4384_v9  ;;  %v4650_v11 = vsel %vm4644_vm2, %v4637_v16, 920167782  ;;  %v4380_v42 = vmul.f32 %v4379_v34, %v4377_v24  ;;  %vm4642_vm3 = vcmp.lt.s32.totalorder %v14614_v52, 2  ;;  %18657 = vst [vmem:[#allocation49_spill] sm:$0xff] %v14693_v60 }
 0x44d   : > { %v4653_v5 = vsel %vm4641_vm13, %v14638_v51, %v4634_v35  ;;  %v4655_v53 = vsel %vm4643_vm12, %v4637_v16, %v4654_v22  ;;  %v14669_v47 = vsel %vm4188_vm0, %v4189_v59, %v8296_v32  ;;  %v14671_v37 = vand.u32 3, %v4286_v55 }
 0x44e   : > { %vm7722_vm4 = vcmp.lt.s32.totalorder %v7721_v49, 0  ;;  %v4571_v61 = vsub.s32 0, %v14641_v15  ;;  %v4649_v62 = vsel %vm4641_vm13, %v4628_v57, %v14638_v51  ;;  %v4651_v9 = vsel %vm4643_vm12, %v4634_v35, %v4650_v11 }
 0x44f   : > { %v14679_v33 = vshll.u32 %v4617_v38, 8  ;;  %v14681_v44 = vsub.s32 32, %v4727_v1  ;;  %v14686_v59 = vsel %vm4185_vm1, %v14581_v0, %v4186_v45  ;;  %8297 = vcosq.f32 %v4281_v18 }
 0x450   : > { %v14688_v55 = vadd.s32 3, %v4386_v14  ;;  %v4656_v26 = vsel %vm4642_vm3, %v4653_v5, %v4655_v53  ;;  %8299 = vsinq.f32 %v4281_v18  ;;  %v4381_v3 = vxor.u32 2147483648, %v4380_v42 }
 0x451   : > { %v14695_v19 = vsel %vm7722_vm4, 0, %v7721_v49  ;;  %v18294_v34 = vand.u32 2147483647, %v14531_v2  ;;  %v7724_v16 = vmin.u32 %v4571_v61, %v14641_v15  ;;  %v4625_v0 = vshrl.u32 %v18400_v17, %v14586_v20 }
 0x452   : > { %v4646_v32 = vsel %vm4644_vm2, %v4634_v35, 2102212464  ;;  %v4652_v24 = vsel %vm4642_vm3, %v4649_v62, %v4651_v9  ;;  %v14706_v22 = vmul.u32.u64.low %v14679_v33, %v4656_v26  ;;  %v14707_v38 = vmul.u32.u64.high %v14679_v33, %v4656_v26, %v14706_v22 }
 0x453   : > { %v4739_v49 = vshll.u32 %v18395_v25, %v4727_v1  ;;  %v4740_v45 = vshrl.u32 %v18396_v8, %v14681_v44  ;;  %v14712_v18 = vshrl.u32 %v4725_v4, 5  ;;  %v4742_v14 = vshll.u32 %v18396_v8, %v4727_v1 }
 0x454   : > { %v4743_v20 = vshrl.u32 %v18482_v12, %v14681_v44  ;;  %v4820_v35 = vand.u32 2139095040, %v14693_v60  ;;  %v14719_v11 = vmul.u32.u64.low %v14679_v33, %v4652_v24  ;;  %v14720_v5 = vmul.u32.u64.high %v14679_v33, %v4652_v24, %v14719_v11 }
 0x455   : > { %v4730_v53 = vshll.u32 %v18400_v17, %v4727_v1  ;;  %v4733_v61 = vshll.u32 %v18380_v27, %v4727_v1  ;;  %vm4184_vm6 = vcmp.lt.s32.totalorder %v14588_v40, 2  ;;  %v4731_v4 = vshrl.u32 %v18380_v27, %v14681_v44 }
 0x456   : > { %v4734_v62 = vshrl.u32 %v18483_v36, %v14681_v44  ;;  %v4736_v9 = vshll.u32 %v18483_v36, %v4727_v1  ;;  %v4737_v26 = vshrl.u32 %v18395_v25, %v14681_v44  ;;  %v4457_v24 = vadd.s32 %v14327_v28, %v14335_v54 }
 0x457   : > { %v4477_v22 = vsub.s32 4294967266, %v14695_v19  ;;  %v4720_v63 = vand.u32 8388607, %v18294_v34  ;;  %v4741_v58 = vor.u32 %v4740_v45, %v4739_v49  ;;  %v4573_v29 = vclz %v7724_v16 }
 0x458   : > { %v4744_v23 = vor.u32 %v4743_v20, %v4742_v14  ;;  %vm4748_vm11 = vcmp.lt.s32.totalorder %v14712_v18, 4  ;;  %v4821_v10 = vshrl.u32 %v4820_v35, 23  ;;  %v4382_v1 = vsel %vm4299_vm8, %v4381_v3, %v4380_v42 }
 0x459   : > { %v4473_v13 = vsub.s32 32, %v14695_v19  ;;  %v4645_v56 = vsel %vm4641_vm13, %v4625_v0, %v4628_v57  ;;  %v4647_v28 = vsel %vm4643_vm12, %v14638_v51, %v4646_v32  ;;  %v14747_v54 = vpop.eup %8297  ;;  %v14749_v49 = vor.u32 %v4731_v4, %v4730_v53 }
 0x45a   : > { %v14751_v16 = vor.u32 %v4734_v62, %v4733_v61  ;;  %v4738_v45 = vor.u32 %v4737_v26, %v4736_v9  ;;  %v7735_v14 = vadd.s32 4294967169, %v4821_v10  ;;  %v14753_v20 = vpop.eup %8299  ;;  %v4478_v50 = vadd.s32 127, %v4477_v22  ;;  %v14800_v62 = vld [vmem:[%s8726_s8 + $0x168] sm:$0xff] }
 0x45b   : > { %vm4745_vm7 = vcmp.lt.s32.totalorder %v14712_v18, 1  ;;  %vm4747_vm10 = vcmp.lt.s32.totalorder %v14712_v18, 3  ;;  %v4754_v57 = vsel %vm4748_vm11, %v4741_v58, 920167782  ;;  %v7725_v42 = vadd.s32 4294967294, %v4573_v29  ;;  %18658 = vst [vmem:[#allocation16_spill] sm:$0xff] %v14800_v62 }
 0x45c   : > { %v4721_v51 = vor.u32 8388608, %v4720_v63  ;;  %v4758_v3 = vsel %vm4748_vm11, %v4744_v23, 1326507024  ;;  %v4827_v0 = vadd.s32 1, %v7735_v14  ;;  %vm4403_vm14 = vcmp.lt.s32.totalorder %v14108_v48, 0 }
 0x45d   : > { %v4474_v10 = vshll.u32 %v14557_v46, %v14695_v19  ;;  %v4648_v32 = vsel %vm4642_vm3, %v4645_v56, %v4647_v28  ;;  %vm4666_vm8 = vc.u32 %v14707_v38, %v14719_v11  ;;  %v4667_v35 = vadd.s32 1, %v14720_v5 }
 0x45e   : > { %vm4746_vm9 = vcmp.lt.s32.totalorder %v14712_v18, 2  ;;  %v4753_v23 = vsel %vm4745_vm7, %v14749_v49, %v14751_v16  ;;  %v4755_v29 = vsel %vm4747_vm10, %v4738_v45, %v4754_v57  ;;  %vm4828_vm0 = vcmp.gt.s32.totalorder %v4827_v0, 0 }
 0x45f   : > { %v4475_v46 = vshrl.u32 %v4457_v24, %v4473_v13  ;;  %v4479_v63 = vshll.u32 %v4478_v50, 23  ;;  %v4757_v56 = vsel %vm4745_vm7, %v14751_v16, %v4738_v45  ;;  %v4759_v52 = vsel %vm4747_vm10, %v4741_v58, %v4758_v3 }
 0x460   : > { %vm7726_vm1 = vcmp.lt.s32.totalorder %v7725_v42, 0  ;;  %v4664_v19 = vmul.u32 %v14679_v33, %v4648_v32  ;;  %v14782_v53 = vshll.u32 %v4721_v51, 8  ;;  %v4829_v61 = vsel %vm4828_vm0, %v4827_v0, 0 }
 0x461   : > { %v14788_v13 = vsel %vm4184_vm6, %v14686_v59, %v14669_v47  ;;  %v14791_v4 = vand.u32 3, %v14688_v55  ;;  %v4668_v58 = vsel %vm4666_vm8, %v4667_v35, %v14720_v5  ;;  %v4756_v33 = vsel %vm4746_vm9, %v4753_v23, %v4755_v29  ;;  %v14807_v59 = vld [vmem:[%s8726_s8 + $0x138] sm:$0xff] }
 0x462   : > { %v4487_v26 = vsub.s32 4, %v14501_v41  ;;  %v4760_v40 = vsel %vm4746_vm9, %v4757_v56, %v4759_v52  ;;  %v4831_v47 = vand.u32 31, %v4829_v61  ;;  %v14812_v55 = vsel %vm14609_vm5, %v14807_v59, %v4382_v1 }
 0x463   : > { %v4476_v5 = vor.u32 %v4475_v46, %v4474_v10  ;;  %v4480_v24 = vor.u32 4788187, %v4479_v63  ;;  %v14815_v22 = vsel %vm7726_vm1, 0, %v7725_v42  ;;  %v14817_v28 = vadd.s32 %v4668_v58, %v4664_v19 }
 0x464   : > { %v14820_v14 = vmul.u32.u64.low %v14782_v53, %v4756_v33  ;;  %v14821_v50 = vmul.u32.u64.high %v14782_v53, %v4756_v33, %v14820_v14  ;;  %v14824_v57 = vsub.s32 32, %v4831_v47  ;;  %v4729_v51 = vshrl.u32 %v18400_v17, %v14681_v44 }
 0x465   : > { %v14829_v39 = vmul.u32.u64.low %v14782_v53, %v4760_v40  ;;  %v14830_v1 = vmul.u32.u64.high %v14782_v53, %v4760_v40, %v14829_v39  ;;  %v4924_v3 = vand.u32 2139095040, %v14800_v62  ;;  %v4290_v42 = vxor.u32 2147483648, %v14753_v20 }
 0x466   : > { %8301 = vcosq.f32 %v14812_v55  ;;  %v14838_v0 = vsel %vm4403_vm14, %v4487_v26, %v14501_v41  ;;  %v4750_v10 = vsel %vm4748_vm11, %v4738_v45, 2102212464  ;;  %v4481_v32 = vand.u32 2147483647, %v4480_v24 }
 0x467   : > { %v4483_v44 = vcvt.s32.f32 %v4476_v5  ;;  %v4561_v35 = vadd.s32 %v14465_v6, %v14473_v31  ;;  %v4581_v23 = vsub.s32 4294967266, %v14815_v22  ;;  %v4670_v29 = vadd.s32 536870912, %v14817_v28 }
 0x468   : > { %v18296_v46 = vand.u32 2147483647, %v14693_v60  ;;  %v4843_v63 = vshll.u32 %v18395_v25, %v4831_v47  ;;  %v4844_v41 = vshrl.u32 %v18396_v8, %v14824_v57  ;;  %vm4289_vm5 = vcmp.eq.s32.totalorder %v14671_v37, 0 }
 0x469   : > { %vm4292_vm15 = vcmp.eq.s32.totalorder %v14671_v37, 2  ;;  %v4749_v45 = vsel %vm4745_vm7, %v4729_v51, %v14749_v49  ;;  %v4751_v6 = vsel %vm4747_vm10, %v14751_v16, %v4750_v10  ;;  %v14858_v31 = vshrl.u32 %v4829_v61, 5 }
 0x46a   : > { %v4925_v56 = vshrl.u32 %v4924_v3, 23  ;;  %v4834_v52 = vshll.u32 %v18400_v17, %v4831_v47  ;;  %v4837_v19 = vshll.u32 %v18380_v27, %v4831_v47  ;;  %v4846_v58 = vshll.u32 %v18396_v8, %v4831_v47 }
 0x46b   : > { %v4847_v33 = vshrl.u32 %v18482_v12, %v14824_v57  ;;  %v18659_v26 = vand.u32 2147483647, %v14108_v48  ;;  %v4835_v16 = vshrl.u32 %v18380_v27, %v14824_v57  ;;  %v4838_v61 = vshrl.u32 %v18483_v36, %v14824_v57 }
 0x46c   : > { %v4840_v40 = vshll.u32 %v18483_v36, %v4831_v47  ;;  %v4841_v5 = vshrl.u32 %v18395_v25, %v14824_v57  ;;  %v4484_v24 = vmul.f32 %v4483_v44, %v4481_v32  ;;  %v4752_v51 = vsel %vm4746_vm9, %v4749_v45, %v4751_v6 }
 0x46d   : > { %vm14867_vm2 = vcmp.le.f32.partialorder %v18659_v26, 0.7853982  ;;  %v4771_v39 = vadd.s32 1, %v14821_v50  ;;  %v4845_v3 = vor.u32 %v4844_v41, %v4843_v63  ;;  %v4577_v10 = vsub.s32 32, %v14815_v22 }
 0x46e   : > { %vm4770_vm13 = vc.u32 %v14830_v1, %v14820_v14  ;;  %v4824_v26 = vand.u32 8388607, %v18296_v46  ;;  %vm4852_vm12 = vcmp.lt.s32.totalorder %v14858_v31, 4  ;;  %v4582_v47 = vadd.s32 127, %v4581_v23 }
 0x46f   : > { %v14887_v34 = vshrl.u32 %v4670_v29, 30  ;;  %v4848_v32 = vor.u32 %v4847_v33, %v4846_v58  ;;  %v7739_v44 = vadd.s32 4294967169, %v4925_v56  ;;  %v4768_v18 = vmul.u32 %v14782_v53, %v4752_v51 }
 0x470   : > { %v4836_v45 = vor.u32 %v4835_v16, %v4834_v52  ;;  %v4839_v6 = vor.u32 %v4838_v61, %v4837_v19  ;;  %v4842_v63 = vor.u32 %v4841_v5, %v4840_v40  ;;  %v14890_v41 = vpop.eup %8301  ;;  %v4772_v9 = vsel %vm4770_vm13, %v4771_v39, %v14821_v50 }
 0x471   : > { %vm4849_vm3 = vcmp.lt.s32.totalorder %v14858_v31, 1  ;;  %vm4851_vm4 = vcmp.lt.s32.totalorder %v14858_v31, 3  ;;  %v4858_v23 = vsel %vm4852_vm12, %v4845_v3, 920167782  ;;  %v4485_v29 = vxor.u32 2147483648, %v4484_v24 }
 0x472   : > { %v4578_v56 = vshll.u32 %v14641_v15, %v14815_v22  ;;  %v4579_v58 = vshrl.u32 %v4561_v35, %v4577_v10  ;;  %v4825_v53 = vor.u32 8388608, %v4824_v26  ;;  %v4583_v52 = vshll.u32 %v4582_v47, 23 }
 0x473   : > { %v4672_v19 = vshll.u32 %v14887_v34, 30  ;;  %v4862_v33 = vsel %vm4852_vm12, %v4848_v32, 1326507024  ;;  %v4931_v50 = vadd.s32 1, %v7739_v44  ;;  %v14902_v16 = vadd.s32 %v4772_v9, %v4768_v18 }
 0x474   : > { %vm4850_vm6 = vcmp.lt.s32.totalorder %v14858_v31, 2  ;;  %v4857_v61 = vsel %vm4849_vm3, %v4836_v45, %v4839_v6  ;;  %v4859_v40 = vsel %vm4851_vm4, %v4842_v63, %v4858_v23  ;;  %v14914_v15 = vsel %vm4289_vm5, %v14747_v54, %v4290_v42 }
 0x475   : > { %v18662_v22 = vxor.u32 2147483648, %v14747_v54  ;;  %v4490_v35 = vsel %vm14867_vm2, 0, %v14838_v0  ;;  %vm4932_vm11 = vcmp.gt.s32.totalorder %v4931_v50, 0  ;;  %v4861_v5 = vsel %vm4849_vm3, %v4839_v6, %v4842_v63 }
 0x476   : > { %v4863_v51 = vsel %vm4851_vm4, %v4845_v3, %v4862_v33  ;;  %v14930_v42 = vshll.u32 %v4825_v53, 8  ;;  %v4933_v39 = vsel %vm4932_vm11, %v4931_v50, 0  ;;  %v4580_v10 = vor.u32 %v4579_v58, %v4578_v56  ;;  %v14959_v56 = vld [vmem:[%s8726_s8 + $0x140] sm:$0xff] }
 0x477   : > { %v14921_v9 = vsel %vm4292_vm15, %v18662_v22, %v14753_v20  ;;  %v4584_v54 = vor.u32 4788187, %v4583_v52  ;;  %v4860_v20 = vsel %vm4850_vm6, %v4857_v61, %v4859_v40  ;;  %v4935_v26 = vand.u32 31, %v4933_v39 }
 0x478   : > { %8303 = vsinq.f32 %v14812_v55  ;;  %v4486_v0 = vsel %vm4403_vm14, %v4485_v29, %v4484_v24  ;;  %v14938_v47 = vsub.s32 %v14817_v28, %v4672_v19  ;;  %v4774_v3 = vadd.s32 536870912, %v14902_v16 }
 0x479   : > { %v14941_v32 = vadd.s32 3, %v4490_v35  ;;  %v4833_v44 = vshrl.u32 %v18400_v17, %v14824_v57  ;;  %v4864_v18 = vsel %vm4850_vm6, %v4861_v5, %v4863_v51  ;;  %v18295_v23 = vand.u32 2147483647, %v14800_v62 }
 0x47a   : > { %v4854_v55 = vsel %vm4852_vm12, %v4842_v63, 2102212464  ;;  %v14951_v48 = vmul.u32.u64.low %v14930_v42, %v4860_v20  ;;  %v14952_v24 = vmul.u32.u64.high %v14930_v42, %v4860_v20, %v14951_v48  ;;  %v14955_v28 = vsub.s32 32, %v4935_v26 }
 0x47b   : > { %v4489_v57 = vsel %vm14867_vm2, %v14959_v56, %v4486_v0  ;;  %v4585_v58 = vand.u32 2147483647, %v4584_v54  ;;  %v4587_v53 = vcvt.s32.f32 %v4580_v10  ;;  %v4675_v52 = vsub.s32 0, %v14938_v47 }
 0x47c   : > { %v14965_v63 = vshrl.u32 %v4774_v3, 30  ;;  %v14968_v19 = vmul.u32.u64.low %v14930_v42, %v4864_v18  ;;  %v14969_v33 = vmul.u32.u64.high %v14930_v42, %v4864_v18, %v14968_v19  ;;  %v4853_v50 = vsel %vm4849_vm3, %v4833_v44, %v4836_v45 }
 0x47d   : > { %v4855_v61 = vsel %vm4851_vm4, %v4839_v6, %v4854_v55  ;;  %v4928_v49 = vand.u32 8388607, %v18295_v23  ;;  %v14977_v40 = vshrl.u32 %v4933_v39, 5  ;;  %v4938_v22 = vshll.u32 %v18400_v17, %v4935_v26 }
 0x47e   : > { %v4939_v35 = vshrl.u32 %v18380_v27, %v14955_v28  ;;  %v4941_v5 = vshll.u32 %v18380_v27, %v4935_v26  ;;  %v4942_v51 = vshrl.u32 %v18483_v36, %v14955_v28  ;;  %v4944_v45 = vshll.u32 %v18483_v36, %v4935_v26 }
 0x47f   : > { %v4945_v6 = vshrl.u32 %v18395_v25, %v14955_v28  ;;  %v4947_v10 = vshll.u32 %v18395_v25, %v4935_v26  ;;  %v4948_v39 = vshrl.u32 %v18396_v8, %v14955_v28  ;;  %8305 = vcosq.f32 %v4489_v57 }
 0x480   : > { %v7728_v54 = vmin.u32 %v4675_v52, %v14938_v47  ;;  %v4776_v20 = vshll.u32 %v14965_v63, 30  ;;  %v4950_v0 = vshll.u32 %v18396_v8, %v4935_v26  ;;  %vm4396_vm7 = vcmp.eq.s32.totalorder %v14791_v4, 2  ;;  %v15003_v26 = vld [vmem:[%s8726_s8 + $0x148] sm:$0xff] }
 0x481   : > { %v4588_v3 = vmul.f32 %v4587_v53, %v4585_v58  ;;  %v4856_v44 = vsel %vm4850_vm6, %v4853_v50, %v4855_v61  ;;  %v4949_v18 = vor.u32 %v4948_v39, %v4947_v10  ;;  %v4951_v55 = vshrl.u32 %v18482_v12, %v14955_v28 }
 0x482   : > { %v8304_v19 = vpop.eup %8303  ;;  %vm4393_vm10 = vcmp.eq.s32.totalorder %v14791_v4, 0  ;;  %v4875_v23 = vadd.s32 1, %v14952_v24  ;;  %v4929_v52 = vor.u32 8388608, %v4928_v49  ;;  %v4940_v46 = vor.u32 %v4939_v35, %v4938_v22  ;;  %v15018_v35 = vld [vmem:[%s8726_s8 + $0x170] sm:$0xff] }
 0x483   : > { %v4943_v29 = vor.u32 %v4942_v51, %v4941_v5  ;;  %vm4288_vm14 = vcmp.lt.s32.totalorder %v14671_v37, 2  ;;  %vm4507_vm8 = vcmp.lt.s32.totalorder %v15003_v26, 0  ;;  %v4946_v31 = vor.u32 %v4945_v6, %v4944_v45  ;;  %18663 = vst [vmem:[#allocation50_spill] sm:$0xff] %v15018_v35 }
 0x484   : > { %v4952_v58 = vor.u32 %v4951_v55, %v4950_v0  ;;  %vm4953_vm9 = vcmp.lt.s32.totalorder %v14977_v40, 1  ;;  %vm4956_vm0 = vcmp.lt.s32.totalorder %v14977_v40, 4  ;;  %v4677_v53 = vclz %v7728_v54 }
 0x485   : > { %v15009_v50 = vsub.s32 %v14902_v16, %v4776_v20  ;;  %vm4874_vm1 = vc.u32 %v14969_v33, %v14951_v48  ;;  %vm4955_vm5 = vcmp.lt.s32.totalorder %v14977_v40, 3  ;;  %v4394_v61 = vxor.u32 2147483648, %v8304_v19 }
 0x486   : > { %8307 = vsinq.f32 %v4489_v57  ;;  %v4591_v49 = vsub.s32 4, %v14601_v21  ;;  %v4962_v22 = vsel %vm4956_vm0, %v4949_v18, 920167782  ;;  %v18664_v5 = vand.u32 2147483647, %v14216_v7 }
 0x487   : > { %v4872_v16 = vmul.u32 %v14930_v42, %v4856_v44  ;;  %vm4954_vm2 = vcmp.lt.s32.totalorder %v14977_v40, 2  ;;  %v4961_v57 = vsel %vm4953_vm9, %v4940_v46, %v4943_v29  ;;  %v15030_v45 = vshll.u32 %v4929_v52, 8 }
 0x488   : > { %vm15022_vm15 = vcmp.le.f32.partialorder %v18664_v5, 0.7853982  ;;  %v4876_v6 = vsel %vm4874_vm1, %v4875_v23, %v14952_v24  ;;  %v4963_v10 = vsel %vm4955_vm5, %v4946_v31, %v4962_v22  ;;  %v4965_v7 = vsel %vm4953_vm9, %v4943_v29, %v4946_v31 }
 0x489   : > { %v4966_v39 = vsel %vm4956_vm0, %v4952_v58, 1326507024  ;;  %v4589_v54 = vxor.u32 2147483648, %v4588_v3  ;;  %v7729_v42 = vadd.s32 4294967294, %v4677_v53  ;;  %v4779_v20 = vsub.s32 0, %v15009_v50  ;;  %v15049_v52 = vpop.eup %8305 }
 0x48a   : > { %v4937_v0 = vshrl.u32 %v18400_v17, %v14955_v28  ;;  %v4958_v44 = vsel %vm4956_vm0, %v4946_v31, 2102212464  ;;  %v4964_v23 = vsel %vm4954_vm2, %v4961_v57, %v4963_v10  ;;  %v4967_v24 = vsel %vm4955_vm5, %v4949_v18, %v4966_v39 }
 0x48b   : > { %v5028_v55 = vand.u32 2139095040, %v15018_v35  ;;  %v15051_v58 = vadd.s32 %v4876_v6, %v4872_v16  ;;  %v4968_v53 = vsel %vm4954_vm2, %v4965_v7, %v4967_v24  ;;  %v15061_v31 = vand.u32 3, %v14941_v32 }
 0x48c   : > { %v15056_v28 = vmul.u32.u64.low %v15030_v45, %v4964_v23  ;;  %v15057_v22 = vmul.u32.u64.high %v15030_v45, %v4964_v23, %v15056_v28  ;;  %v15064_v5 = vmul.u32.u64.low %v15030_v45, %v4968_v53  ;;  %v15065_v18 = vmul.u32.u64.high %v15030_v45, %v4968_v53, %v15064_v5 }
 0x48d   : > { %v5029_v57 = vshrl.u32 %v5028_v55, 23  ;;  %vm4392_vm13 = vcmp.lt.s32.totalorder %v14791_v4, 2  ;;  %v18667_v16 = vxor.u32 2147483648, %v14890_v41  ;;  %v4957_v10 = vsel %vm4953_vm9, %v4937_v0, %v4940_v46 }
 0x48e   : > { %v4959_v7 = vsel %vm4955_vm5, %v4943_v29, %v4958_v44  ;;  %v4395_v32 = vsel %vm4393_vm10, %v14890_v41, %v4394_v61  ;;  %v4592_v39 = vsel %vm4507_vm8, %v4591_v49, %v14601_v21  ;;  %v7732_v23 = vmin.u32 %v4779_v20, %v15009_v50 }
 0x48f   : > { %v4398_v6 = vsel %vm4396_vm7, %v18667_v16, %v8304_v19  ;;  %v7743_v24 = vadd.s32 4294967169, %v5029_v57  ;;  %v15087_v19 = vsel %vm4288_vm14, %v14914_v15, %v14921_v9  ;;  %v4590_v46 = vsel %vm4507_vm8, %v4589_v54, %v4588_v3 }
 0x490   : > { %vm7730_vm12 = vcmp.lt.s32.totalorder %v7729_v42, 0  ;;  %v4878_v29 = vadd.s32 536870912, %v15051_v58  ;;  %v15092_v41 = vpop.eup %8307  ;;  %vm4500_vm3 = vcmp.eq.s32.totalorder %v15061_v31, 2  ;;  %v4960_v21 = vsel %vm4954_vm2, %v4957_v10, %v4959_v7 }
 0x491   : > { %v4979_v61 = vadd.s32 1, %v15057_v22  ;;  %v5035_v49 = vadd.s32 1, %v7743_v24  ;;  %v15100_v37 = vsel %vm4392_vm13, %v4395_v32, %v4398_v6  ;;  %v4501_v15 = vxor.u32 2147483648, %v15049_v52 }
 0x492   : > { %v4594_v9 = vsel %vm15022_vm15, 0, %v4592_v39  ;;  %vm4978_vm4 = vc.u32 %v15065_v18, %v15056_v28  ;;  %v4593_v40 = vsel %vm15022_vm15, %v15003_v26, %v4590_v46  ;;  %v15110_v3 = vsel %vm7730_vm12, 0, %v7729_v42  ;;  %v15138_v39 = vld [vmem:[%s8726_s8 + $0x178] sm:$0xff] }
 0x493   : > { %v4781_v54 = vclz %v7732_v23  ;;  %vm5036_vm6 = vcmp.gt.s32.totalorder %v5035_v49, 0  ;;  %v15112_v20 = vshrl.u32 %v4878_v29, 30  ;;  %v4976_v4 = vmul.u32 %v15030_v45, %v4960_v21 }
 0x494   : > { %v18297_v0 = vand.u32 2147483647, %v15018_v35  ;;  %v5037_v44 = vsel %vm5036_vm6, %v5035_v49, 0  ;;  %v15116_v55 = vadd.s32 3, %v4594_v9  ;;  %v4665_v53 = vadd.s32 %v14719_v11, %v14707_v38 }
 0x495   : > { %18668 = vst [vmem:[#allocation51_spill] sm:$0xff] %v15112_v20  ;;  %v4980_v51 = vsel %vm4978_vm4, %v4979_v61, %v15057_v22  ;;  %v5039_v5 = vand.u32 31, %v5037_v44  ;;  %v15125_v57 = vsel %vm4500_vm3, %v4501_v15, %v15092_v41  ;;  %8309 = vcosq.f32 %v4593_v40 }
 0x496   : > { %v4681_v16 = vsub.s32 32, %v15110_v3  ;;  %v4685_v6 = vsub.s32 4294967266, %v15110_v3  ;;  %v7733_v10 = vadd.s32 4294967294, %v4781_v54  ;;  %v4880_v38 = vshll.u32 %v15112_v20, 30 }
 0x497   : > { %v5040_v7 = vsub.s32 32, %v5039_v5  ;;  %v15131_v11 = vadd.s32 %v4980_v51, %v4976_v4  ;;  %v5032_v22 = vand.u32 8388607, %v18297_v0  ;;  %v15135_v32 = vshrl.u32 %v5037_v44, 5 }
 0x498   : > { %v5042_v23 = vshll.u32 %v18400_v17, %v5039_v5  ;;  %v5045_v46 = vshll.u32 %v18380_v27, %v5039_v5  ;;  %v5048_v29 = vshll.u32 %v18483_v36, %v5039_v5  ;;  %v5051_v49 = vshll.u32 %v18395_v25, %v5039_v5 }
 0x499   : > { %v5043_v24 = vshrl.u32 %v18380_v27, %v5040_v7  ;;  %v5046_v21 = vshrl.u32 %v18483_v36, %v5040_v7  ;;  %v5049_v61 = vshrl.u32 %v18395_v25, %v5040_v7  ;;  %v5052_v15 = vshrl.u32 %v18396_v8, %v5040_v7 }
 0x49a   : > { %vm4497_vm11 = vcmp.eq.s32.totalorder %v15061_v31, 0  ;;  %8311 = vsinq.f32 %v4593_v40  ;;  %v4682_v9 = vshll.u32 %v14938_v47, %v15110_v3  ;;  %v4686_v54 = vadd.s32 127, %v4685_v6  ;;  %v15159_v40 = vld [vmem:[%s8726_s8 + $0x150] sm:$0xff] }
 0x49b   : > { %v5054_v4 = vshll.u32 %v18396_v8, %v5039_v5  ;;  %vm7734_vm7 = vcmp.lt.s32.totalorder %v7733_v10, 0  ;;  %v15153_v44 = vsub.s32 %v15051_v58, %v4880_v38  ;;  %v5033_v51 = vor.u32 8388608, %v5032_v22 }
 0x49c   : > { %v5132_v0 = vand.u32 2139095040, %v15138_v39  ;;  %v4982_v45 = vadd.s32 536870912, %v15131_v11  ;;  %v5044_v42 = vor.u32 %v5043_v24, %v5042_v23  ;;  %v5047_v35 = vor.u32 %v5046_v21, %v5045_v46 }
 0x49d   : > { %v5055_v62 = vshrl.u32 %v18482_v12, %v5040_v7  ;;  %vm4611_vm10 = vcmp.lt.s32.totalorder %v15159_v40, 0  ;;  %v4683_v47 = vshrl.u32 %v4665_v53, %v4681_v16  ;;  %v5050_v3 = vor.u32 %v5049_v61, %v5048_v29  ;;  %v8446_v29 = vld [vmem:[%s8726_s8 + $0x128] sm:$0xff] }
 0x49e   : > { %v5053_v5 = vor.u32 %v5052_v15, %v5051_v49  ;;  %vm5057_vm14 = vcmp.lt.s32.totalorder %v15135_v32, 1  ;;  %vm4496_vm8 = vcmp.lt.s32.totalorder %v15061_v31, 2  ;;  %v4687_v58 = vshll.u32 %v4686_v54, 23 }
 0x49f   : > { %v15165_v6 = vsel %vm7734_vm7, 0, %v7733_v10  ;;  %v5041_v38 = vshrl.u32 %v18400_v17, %v5040_v7  ;;  %v5056_v22 = vor.u32 %v5055_v62, %v5054_v4  ;;  %v15168_v23 = vpop.eup %8309  ;;  %v4883_v24 = vsub.s32 0, %v15153_v44 }
 0x4a0   : > { %vm5059_vm9 = vcmp.lt.s32.totalorder %v15135_v32, 3  ;;  %vm5060_vm0 = vcmp.lt.s32.totalorder %v15135_v32, 4  ;;  %v5133_v53 = vshrl.u32 %v5132_v0, 23  ;;  %v18669_v16 = vand.u32 2147483647, %v14387_v30 }
 0x4a1   : > { %v15179_v10 = vshrl.u32 %v4982_v45, 30  ;;  %vm5058_vm5 = vcmp.lt.s32.totalorder %v15135_v32, 2  ;;  %v5065_v62 = vsel %vm5057_vm14, %v5044_v42, %v5047_v35  ;;  %v5073_v7 = vshll.u32 %v5033_v51, 8 }
 0x4a2   : > { %vm15175_vm1 = vcmp.le.f32.partialorder %v18669_v16, 0.7853982  ;;  %vm4181_vm15 = vweird.f32 %v8446_v29  ;;  %vm4285_vm2 = vweird.f32 %v14652_v43  ;;  %v4789_v0 = vsub.s32 4294967266, %v15165_v6 }
 0x4a3   : > { %v5062_v30 = vsel %vm5060_vm0, %v5050_v3, 2102212464  ;;  %v5066_v21 = vsel %vm5060_vm0, %v5053_v5, 920167782  ;;  %v5069_v45 = vsel %vm5057_vm14, %v5047_v35, %v5050_v3  ;;  %vm4389_vm13 = vweird.f32 %v14807_v59 }
 0x4a4   : > { %vm4493_vm12 = vweird.f32 %v14959_v56  ;;  %v5061_v61 = vsel %vm5057_vm14, %v5041_v38, %v5044_v42  ;;  %v5063_v49 = vsel %vm5059_vm9, %v5047_v35, %v5062_v30  ;;  %v5067_v15 = vsel %vm5059_vm9, %v5050_v3, %v5066_v21  ;;  %v15208_v60 = vpop.eup %8311 }
 0x4a5   : > { %v5070_v54 = vsel %vm5060_vm0, %v5056_v22, 1326507024  ;;  %v7736_v4 = vmin.u32 %v4883_v24, %v15153_v44  ;;  %v5068_v51 = vsel %vm5058_vm5, %v5065_v62, %v5067_v15  ;;  %v7747_v20 = vadd.s32 4294967169, %v5133_v53 }
 0x4a6   : > { %v5071_v16 = vsel %vm5059_vm9, %v5053_v5, %v5070_v54  ;;  %v4984_v42 = vshll.u32 %v15179_v10, 30  ;;  %v15213_v3 = vmul.u32.u64.low %v5073_v7, %v5068_v51  ;;  %v15214_v38 = vmul.u32.u64.high %v5073_v7, %v5068_v51, %v15213_v3 }
 0x4a7   : > { %v5072_v35 = vsel %vm5058_vm5, %v5069_v45, %v5071_v16  ;;  %v18672_v22 = vxor.u32 2147483648, %v15092_v41  ;;  %v5064_v5 = vsel %vm5058_vm5, %v5061_v61, %v5063_v49  ;;  %v4684_v30 = vor.u32 %v4683_v47, %v4682_v9 }
 0x4a8   : > { %v15224_v53 = vmul.u32.u64.low %v5073_v7, %v5072_v35  ;;  %v15225_v62 = vmul.u32.u64.high %v5073_v7, %v5072_v35, %v15224_v53  ;;  %v4688_v21 = vor.u32 4788187, %v4687_v58  ;;  %v18673_v45 = vsub.s32 4, %v14887_v34 }
 0x4a9   : > { %v4499_v24 = vsel %vm4497_vm11, %v15049_v52, %v18672_v22  ;;  %v4769_v41 = vadd.s32 %v14820_v14, %v14830_v1  ;;  %v4785_v54 = vsub.s32 32, %v15165_v6  ;;  %v4790_v52 = vadd.s32 127, %v4789_v0 }
 0x4aa   : > { %v4696_v15 = vsel %vm4611_vm10, %v18673_v45, %v14887_v34  ;;  %v4885_v51 = vclz %v7736_v4  ;;  %v5139_v32 = vadd.s32 1, %v7747_v20  ;;  %v15236_v61 = vand.u32 3, %v15116_v55 }
 0x4ab   : > { %v15239_v9 = vsub.s32 %v15131_v11, %v4984_v42  ;;  %v5080_v47 = vmul.u32 %v5073_v7, %v5064_v5  ;;  %v5083_v58 = vadd.s32 1, %v15214_v38  ;;  %v4503_v34 = vsel %vm4496_vm8, %v4499_v24, %v15125_v57 }
 0x4ac   : > { %v4698_v14 = vsel %vm15175_vm1, 0, %v4696_v15  ;;  %vm5082_vm3 = vc.u32 %v15225_v62, %v15213_v3  ;;  %vm5140_vm4 = vcmp.gt.s32.totalorder %v5139_v32, 0  ;;  %v4689_v1 = vand.u32 2147483647, %v4688_v21 }
 0x4ad   : > { %v4691_v20 = vcvt.s32.f32 %v4684_v30  ;;  %v4786_v55 = vshll.u32 %v15009_v50, %v15165_v6  ;;  %v5084_v11 = vsel %vm5082_vm3, %v5083_v58, %v15214_v38  ;;  %v4787_v7 = vshrl.u32 %v4769_v41, %v4785_v54 }
 0x4ae   : > { %v4791_v0 = vshll.u32 %v4790_v52, 23  ;;  %v7737_v49 = vadd.s32 4294967294, %v4885_v51  ;;  %v5141_v4 = vsel %vm5140_vm4, %v5139_v32, 0  ;;  %v15254_v31 = vsel %vm4181_vm15, nan, %v14788_v13 }
 0x4af   : > { %v15259_v57 = vsel %vm4285_vm2, nan, %v15087_v19  ;;  %v4987_v16 = vsub.s32 0, %v15239_v9  ;;  %v15262_v42 = vadd.s32 %v5084_v11, %v5080_v47  ;;  %v15267_v50 = vsel %vm4389_vm13, nan, %v15100_v37  ;;  %v15302_v47 = vld [vmem:[%s8726_s8 + $0x158] sm:$0xff] }
 0x4b0   : > { %18674 = vst [vmem:[#allocation52_spill] sm:$0xff] %v15259_v57  ;;  %18675 = vst [vmem:[#allocation53_spill] sm:$0xff] %v15267_v50  ;;  %v15271_v6 = vsel %vm4493_vm12, nan, %v4503_v34  ;;  %vm4604_vm6 = vcmp.eq.s32.totalorder %v15236_v61, 2  ;;  %v5143_v13 = vand.u32 31, %v5141_v4  ;;  %v4602_v43 = vxor.u32 2147483648, %v15208_v60 }
 0x4b1   : > { %18676 = vst [vmem:[#allocation54_spill] sm:$0xff] %v15271_v6  ;;  %v4605_v19 = vxor.u32 2147483648, %v15168_v23  ;;  %v4692_v29 = vmul.f32 %v4691_v20, %v4689_v1  ;;  %v15276_v35 = vadd.s32 3, %v4698_v14  ;;  %v4788_v38 = vor.u32 %v4787_v7, %v4786_v55 }
 0x4b2   : > { %v4792_v22 = vor.u32 4788187, %v4791_v0  ;;  %vm7738_vm11 = vcmp.lt.s32.totalorder %v7737_v49, 0  ;;  %v15278_v59 = vsub.s32 32, %v5143_v13  ;;  %v7740_v56 = vmin.u32 %v4987_v16, %v15239_v9  ;;  %v15315_v16 = vld [vmem:[%s8726_s8 + $0x180] sm:$0xff] }
 0x4b3   : > { %v5086_v37 = vadd.s32 536870912, %v15262_v42  ;;  %v18307_v24 = vand.u32 2147483647, %v15138_v39  ;;  %v15283_v5 = vshrl.u32 %v5141_v4, 5  ;;  %vm4601_vm7 = vcmp.eq.s32.totalorder %v15236_v61, 0 }
 0x4b4   : > { %v5146_v53 = vshll.u32 %v18400_v17, %v5143_v13  ;;  %v5147_v30 = vshrl.u32 %v18380_v27, %v15278_v59  ;;  %v5149_v21 = vshll.u32 %v18380_v27, %v5143_v13  ;;  %v5155_v45 = vshll.u32 %v18395_v25, %v5143_v13 }
 0x4b5   : > { %v5150_v15 = vshrl.u32 %v18483_v36, %v15278_v59  ;;  %v5152_v41 = vshll.u32 %v18483_v36, %v5143_v13  ;;  %v5153_v54 = vshrl.u32 %v18395_v25, %v15278_v59  ;;  %v5156_v52 = vshrl.u32 %v18396_v8, %v15278_v59 }
 0x4b6   : > { %v4606_v51 = vsel %vm4604_vm6, %v4605_v19, %v15208_v60  ;;  %v4693_v32 = vxor.u32 2147483648, %v4692_v29  ;;  %vm4715_vm14 = vcmp.lt.s32.totalorder %v15302_v47, 0  ;;  %v4795_v58 = vcvt.s32.f32 %v4788_v38 }
 0x4b7   : > { %v4799_v34 = vsub.s32 4, %v14965_v63  ;;  %v15307_v14 = vsel %vm7738_vm11, 0, %v7737_v49  ;;  %v15309_v1 = vshrl.u32 %v5086_v37, 30  ;;  %v5136_v20 = vand.u32 8388607, %v18307_v24 }
 0x4b8   : > { %v5158_v55 = vshll.u32 %v18396_v8, %v5143_v13  ;;  %v4793_v11 = vand.u32 2147483647, %v4792_v22  ;;  %v4989_v7 = vclz %v7740_v56  ;;  %v5148_v0 = vor.u32 %v5147_v30, %v5146_v53 }
 0x4b9   : > { %v5157_v4 = vor.u32 %v5156_v52, %v5155_v45  ;;  %vm4600_vm8 = vcmp.lt.s32.totalorder %v15236_v61, 2  ;;  %v5151_v19 = vor.u32 %v5150_v15, %v5149_v21  ;;  %v5154_v38 = vor.u32 %v5153_v54, %v5152_v41 }
 0x4ba   : > { %v5159_v49 = vshrl.u32 %v18482_v12, %v15278_v59  ;;  %vm5164_vm9 = vcmp.lt.s32.totalorder %v15283_v5, 4  ;;  %v4694_v37 = vsel %vm4611_vm10, %v4693_v32, %v4692_v29  ;;  %v4893_v13 = vsub.s32 4294967266, %v15307_v14 }
 0x4bb   : > { %vm5161_vm0 = vcmp.lt.s32.totalorder %v15283_v5, 1  ;;  %vm5163_vm5 = vcmp.lt.s32.totalorder %v15283_v5, 3  ;;  %v18677_v22 = vand.u32 2147483647, %v14531_v2  ;;  %v5088_v53 = vshll.u32 %v15309_v1, 30 }
 0x4bc   : > { %v5137_v30 = vor.u32 8388608, %v5136_v20  ;;  %v5160_v21 = vor.u32 %v5159_v49, %v5158_v55  ;;  %v5170_v45 = vsel %vm5164_vm9, %v5157_v4, 920167782  ;;  %vm4597_vm10 = vweird.f32 %v15003_v26 }
 0x4bd   : > { %vm15328_vm15 = vcmp.le.f32.partialorder %v18677_v22, 0.7853982  ;;  %v4796_v29 = vmul.f32 %v4795_v58, %v4793_v11  ;;  %v4873_v15 = vadd.s32 %v14951_v48, %v14969_v33  ;;  %v7741_v41 = vadd.s32 4294967294, %v4989_v7 }
 0x4be   : > { %v5236_v2 = vand.u32 2139095040, %v15315_v16  ;;  %vm5162_vm2 = vcmp.lt.s32.totalorder %v15283_v5, 2  ;;  %v5169_v54 = vsel %vm5161_vm0, %v5148_v0, %v5151_v19  ;;  %v5171_v52 = vsel %vm5163_vm5, %v5154_v38, %v5170_v45 }
 0x4bf   : > { %v5174_v32 = vsel %vm5164_vm9, %v5160_v21, 1326507024  ;;  %v4889_v20 = vsub.s32 32, %v15307_v14  ;;  %v4894_v58 = vadd.s32 127, %v4893_v13  ;;  %v5173_v48 = vsel %vm5161_vm0, %v5151_v19, %v5154_v38 }
 0x4c0   : > { %v5175_v33 = vsel %vm5163_vm5, %v5157_v4, %v5174_v32  ;;  %v4603_v55 = vsel %vm4601_vm7, %v15168_v23, %v4602_v43  ;;  %v4800_v11 = vsel %vm4715_vm14, %v4799_v34, %v14965_v63  ;;  %v15360_v7 = vsub.s32 %v15262_v42, %v5088_v53 }
 0x4c1   : > { %v15362_v49 = vshll.u32 %v5137_v30, 8  ;;  %v4697_v13 = vsel %vm15175_vm1, %v15159_v40, %v4694_v37  ;;  %vm7742_vm13 = vcmp.lt.s32.totalorder %v7741_v41, 0  ;;  %v5172_v60 = vsel %vm5162_vm2, %v5169_v54, %v5171_v52 }
 0x4c2   : > { %v5237_v4 = vshrl.u32 %v5236_v2, 23  ;;  %v4797_v22 = vxor.u32 2147483648, %v4796_v29  ;;  %v4890_v23 = vshll.u32 %v15153_v44, %v15307_v14  ;;  %v5145_v63 = vshrl.u32 %v18400_v17, %v15278_v59 }
 0x4c3   : > { %v5176_v42 = vsel %vm5162_vm2, %v5173_v48, %v5175_v33  ;;  %v4891_v43 = vshrl.u32 %v4873_v15, %v4889_v20  ;;  %v4895_v34 = vshll.u32 %v4894_v58, 23  ;;  %v5166_v46 = vsel %vm5164_vm9, %v5154_v38, 2102212464 }
 0x4c4   : > { %v7751_v37 = vadd.s32 4294967169, %v5237_v4  ;;  %v15377_v53 = vsel %vm7742_vm13, 0, %v7741_v41  ;;  %v5091_v30 = vsub.s32 0, %v15360_v7  ;;  %v4607_v44 = vsel %vm4600_vm8, %v4603_v55, %v4606_v51 }
 0x4c5   : > { %v15381_v21 = vmul.u32.u64.low %v15362_v49, %v5172_v60  ;;  %v15382_v45 = vmul.u32.u64.high %v15362_v49, %v5172_v60, %v15381_v21  ;;  %v4802_v59 = vsel %vm15328_vm15, 0, %v4800_v11  ;;  %8313 = vcosq.f32 %v4697_v13 }
 0x4c6   : > { %v15390_v14 = vmul.u32.u64.low %v15362_v49, %v5176_v42  ;;  %v15391_v15 = vmul.u32.u64.high %v15362_v49, %v5176_v42, %v15390_v14  ;;  %v5165_v38 = vsel %vm5161_vm0, %v5145_v63, %v5148_v0  ;;  %v5167_v41 = vsel %vm5163_vm5, %v5151_v19, %v5166_v46  ;;  %v15436_v63 = vld [vmem:[%s8726_s8 + $0x188] sm:$0xff] }
 0x4c7   : > { %v5243_v2 = vadd.s32 1, %v7751_v37  ;;  %v4798_v54 = vsel %vm4715_vm14, %v4797_v22, %v4796_v29  ;;  %v15399_v61 = vor.u32 %v4891_v43, %v4890_v23  ;;  %v4896_v51 = vor.u32 4788187, %v4895_v34 }
 0x4c8   : > { %v4997_v52 = vsub.s32 4294967266, %v15377_v53  ;;  %v15404_v32 = vsel %vm4597_vm10, nan, %v4607_v44  ;;  %v15407_v20 = vand.u32 3, %v15276_v35  ;;  %v7744_v0 = vmin.u32 %v5091_v30, %v15360_v7 }
 0x4c9   : > { %18680 = vst [vmem:[#allocation55_spill] sm:$0xff] %v15404_v32  ;;  %vm5244_vm1 = vcmp.gt.s32.totalorder %v5243_v2, 0  ;;  %v15410_v19 = vadd.s32 3, %v4802_v59  ;;  %v5168_v29 = vsel %vm5162_vm2, %v5165_v38, %v5167_v41  ;;  %v18306_v58 = vand.u32 2147483647, %v15315_v16 }
 0x4ca   : > { %v5245_v48 = vsel %vm5244_vm1, %v5243_v2, 0  ;;  %8315 = vsinq.f32 %v4697_v13  ;;  %v15418_v26 = vsel %vm15328_vm15, %v15302_v47, %v4798_v54  ;;  %v4977_v35 = vadd.s32 %v15056_v28, %v15065_v18  ;;  %v15461_v54 = vld [vmem:[%s8726_s8 + $0x160] sm:$0xff] }
 0x4cb   : > { %v5247_v33 = vand.u32 31, %v5245_v48  ;;  %v4897_v55 = vand.u32 2147483647, %v4896_v51  ;;  %v4899_v11 = vcvt.s32.f32 %v15399_v61  ;;  %v4993_v5 = vsub.s32 32, %v15377_v53 }
 0x4cc   : > { %v4998_v60 = vadd.s32 127, %v4997_v52  ;;  %v5093_v4 = vclz %v7744_v0  ;;  %v5184_v22 = vmul.u32 %v15362_v49, %v5168_v29  ;;  %v5187_v13 = vadd.s32 1, %v15382_v45 }
 0x4cd   : > { %v15426_v23 = vsub.s32 32, %v5247_v33  ;;  %vm5186_vm12 = vc.u32 %v15391_v15, %v15381_v21  ;;  %v5240_v28 = vand.u32 8388607, %v18306_v58  ;;  %v15432_v18 = vshrl.u32 %v5245_v48, 5 }
 0x4ce   : > { %v5250_v56 = vshll.u32 %v18400_v17, %v5247_v33  ;;  %v5253_v42 = vshll.u32 %v18380_v27, %v5247_v33  ;;  %v5256_v43 = vshll.u32 %v18483_v36, %v5247_v33  ;;  %v5259_v34 = vshll.u32 %v18395_v25, %v5247_v33 }
 0x4cf   : > { %v5251_v49 = vshrl.u32 %v18380_v27, %v15426_v23  ;;  %v5254_v46 = vshrl.u32 %v18483_v36, %v15426_v23  ;;  %v5257_v37 = vshrl.u32 %v18395_v25, %v15426_v23  ;;  %v5260_v30 = vshrl.u32 %v18396_v8, %v15426_v23  ;;  %v8314_v59 = vpop.eup %8313 }
 0x4d0   : > { %v5262_v44 = vshll.u32 %v18396_v8, %v5247_v33  ;;  %v4994_v14 = vshll.u32 %v15239_v9, %v15377_v53  ;;  %v4995_v38 = vshrl.u32 %v4977_v35, %v4993_v5  ;;  %v5188_v41 = vsel %vm5186_vm12, %v5187_v13, %v15382_v45 }
 0x4d1   : > { %v5263_v2 = vshrl.u32 %v18482_v12, %v15426_v23  ;;  %vm4708_vm3 = vcmp.eq.s32.totalorder %v15407_v20, 2  ;;  %8317 = vcosq.f32 %v15418_v26  ;;  %vm4819_vm4 = vcmp.lt.s32.totalorder %v15461_v54, 0 }
 0x4d2   : > { %v4999_v61 = vshll.u32 %v4998_v60, 23  ;;  %v7745_v51 = vadd.s32 4294967294, %v5093_v4  ;;  %v5340_v9 = vand.u32 2139095040, %v15436_v63  ;;  %vm4705_vm6 = vcmp.eq.s32.totalorder %v15407_v20, 0  ;;  %v18681_v60 = vld [vmem:[#allocation49_spill] sm:$0xff] }
 0x4d3   : > { %v5241_v53 = vor.u32 8388608, %v5240_v28  ;;  %v15466_v52 = vor.u32 %v5251_v49, %v5250_v56  ;;  %v15468_v45 = vor.u32 %v5254_v46, %v5253_v42  ;;  %v5258_v0 = vor.u32 %v5257_v37, %v5256_v43  ;;  %v18685_v56 = vld [vmem:[#allocation51_spill] sm:$0xff] }
 0x4d4   : > { %v15470_v29 = vadd.s32 %v5188_v41, %v5184_v22  ;;  %v5261_v48 = vor.u32 %v5260_v30, %v5259_v34  ;;  %v5264_v35 = vor.u32 %v5263_v2, %v5262_v44  ;;  %vm5265_vm11 = vcmp.lt.s32.totalorder %v15432_v18, 1  ;;  %v8316_v33 = vpop.eup %8315 }
 0x4d5   : > { %v4709_v5 = vxor.u32 2147483648, %v8314_v59  ;;  %v18682_v4 = vand.u32 2147483647, %v18681_v60  ;;  %v4900_v28 = vmul.f32 %v4899_v11, %v4897_v55  ;;  %v4903_v49 = vsub.s32 4, %v18685_v56 }
 0x4d6   : > { %v4996_v42 = vor.u32 %v4995_v38, %v4994_v14  ;;  %vm7746_vm14 = vcmp.lt.s32.totalorder %v7745_v51, 0  ;;  %vm5267_vm8 = vcmp.lt.s32.totalorder %v15432_v18, 3  ;;  %vm5268_vm9 = vcmp.lt.s32.totalorder %v15432_v18, 4 }
 0x4d7   : > { %vm15475_vm7 = vcmp.le.f32.partialorder %v18682_v4, 0.7853982  ;;  %v5341_v22 = vshrl.u32 %v5340_v9, 23  ;;  %v5000_v43 = vor.u32 4788187, %v4999_v61  ;;  %vm5266_vm0 = vcmp.lt.s32.totalorder %v15432_v18, 2 }
 0x4d8   : > { %v5273_v34 = vsel %vm5265_vm11, %v15466_v52, %v15468_v45  ;;  %v5277_v55 = vsel %vm5265_vm11, %v15468_v45, %v5258_v0  ;;  %v5190_v11 = vadd.s32 536870912, %v15470_v29  ;;  %v5274_v46 = vsel %vm5268_vm9, %v5261_v48, 920167782 }
 0x4d9   : > { %v5278_v37 = vsel %vm5268_vm9, %v5264_v35, 1326507024  ;;  %v15495_v30 = vshll.u32 %v5241_v53, 8  ;;  %v4706_v44 = vxor.u32 2147483648, %v8316_v33  ;;  %v15497_v14 = vsel %vm7746_vm14, 0, %v7745_v51 }
 0x4da   : > { %v5275_v38 = vsel %vm5267_vm8, %v5258_v0, %v5274_v46  ;;  %v5279_v41 = vsel %vm5267_vm8, %v5261_v48, %v5278_v37  ;;  %v4901_v2 = vxor.u32 2147483648, %v4900_v28  ;;  %v7755_v60 = vadd.s32 4294967169, %v5341_v22  ;;  %v18686_v22 = vld [vmem:[#allocation16_spill] sm:$0xff] }
 0x4db   : > { %v5276_v61 = vsel %vm5266_vm0, %v5273_v34, %v5275_v38  ;;  %v5280_v9 = vsel %vm5266_vm0, %v5277_v55, %v5279_v41  ;;  %v15508_v53 = vand.u32 3, %v15410_v19  ;;  %v4904_v51 = vsel %vm4819_vm4, %v4903_v49, %v18685_v56  ;;  %v15513_v46 = vpop.eup %8317 }
 0x4dc   : > { %v5001_v35 = vand.u32 2147483647, %v5000_v43  ;;  %v5003_v4 = vcvt.s32.f32 %v4996_v42  ;;  %v5101_v48 = vsub.s32 4294967266, %v15497_v14  ;;  %v15516_v37 = vshrl.u32 %v5190_v11, 30 }
 0x4dd   : > { %v15519_v34 = vmul.u32.u64.low %v15495_v30, %v5280_v9  ;;  %v15520_v38 = vmul.u32.u64.high %v15495_v30, %v5280_v9, %v15519_v34  ;;  %v15524_v19 = vsel %vm4708_vm3, %v4709_v5, %v8316_v33  ;;  %vm4923_vm5 = vcmp.lt.s32.totalorder %v18686_v22, 0 }
 0x4de   : > { %v15528_v56 = vmul.u32.u64.low %v15495_v30, %v5276_v61  ;;  %v15529_v49 = vmul.u32.u64.high %v15495_v30, %v5276_v61, %v15528_v56  ;;  %v5347_v42 = vadd.s32 1, %v7755_v60  ;;  %v15534_v43 = vsel %vm4705_vm6, %v8314_v59, %v4706_v44 }
 0x4df   : > { %v4902_v55 = vsel %vm4819_vm4, %v4901_v2, %v4900_v28  ;;  %v4906_v11 = vsel %vm15475_vm7, 0, %v4904_v51  ;;  %v5249_v33 = vshrl.u32 %v18400_v17, %v15426_v23  ;;  %v5004_v5 = vmul.f32 %v5003_v4, %v5001_v35 }
 0x4e0   : > { %v5081_v41 = vadd.s32 %v15213_v3, %v15225_v62  ;;  %v5097_v61 = vsub.s32 32, %v15497_v14  ;;  %v5270_v9 = vsel %vm5268_vm9, %v5258_v0, 2102212464  ;;  %v5102_v59 = vadd.s32 127, %v5101_v48 }
 0x4e1   : > { %v5192_v44 = vshll.u32 %v15516_v37, 30  ;;  %v18305_v28 = vand.u32 2147483647, %v15436_v63  ;;  %vm5348_vm15 = vcmp.gt.s32.totalorder %v5347_v42, 0  ;;  %8319 = vsinq.f32 %v15418_v26 }
 0x4e2   : > { %v15551_v23 = vadd.s32 3, %v4906_v11  ;;  %v5349_v60 = vsel %vm5348_vm15, %v5347_v42, 0  ;;  %v18687_v3 = vand.u32 2147483647, %v18686_v22  ;;  %v5007_v0 = vsub.s32 4, %v15179_v10 }
 0x4e3   : > { %v5269_v51 = vsel %vm5265_vm11, %v5249_v33, %v15466_v52  ;;  %v5271_v26 = vsel %vm5267_vm8, %v15468_v45, %v5270_v9  ;;  %v5351_v35 = vand.u32 31, %v5349_v60  ;;  %v4905_v4 = vsel %vm15475_vm7, %v15461_v54, %v4902_v55 }
 0x4e4   : > { %vm15555_vm10 = vcmp.le.f32.partialorder %v18687_v3, 0.7853982  ;;  %v5005_v48 = vxor.u32 2147483648, %v5004_v5  ;;  %v5098_v34 = vshll.u32 %v15360_v7, %v15497_v14  ;;  %v5099_v42 = vshrl.u32 %v5081_v41, %v5097_v61 }
 0x4e5   : > { %v5103_v11 = vshll.u32 %v5102_v59, 23  ;;  %v15572_v3 = vsub.s32 %v15470_v29, %v5192_v44  ;;  %v5344_v52 = vand.u32 8388607, %v18305_v28  ;;  %v5352_v33 = vsub.s32 32, %v5351_v35 }
 0x4e6   : > { %v5272_v45 = vsel %vm5266_vm0, %v5269_v51, %v5271_v26  ;;  %vm5290_vm2 = vc.u32 %v15520_v38, %v15528_v56  ;;  %v5291_v13 = vadd.s32 1, %v15529_v49  ;;  %v5354_v55 = vshll.u32 %v18400_v17, %v5351_v35 }
 0x4e7   : > { %v5355_v7 = vshrl.u32 %v18380_v27, %v5352_v33  ;;  %v5357_v14 = vshll.u32 %v18380_v27, %v5351_v35  ;;  %v5358_v29 = vshrl.u32 %v18483_v36, %v5352_v33  ;;  %v5363_v41 = vshll.u32 %v18395_v25, %v5351_v35 }
 0x4e8   : > { %v15586_v61 = vshrl.u32 %v5349_v60, 5  ;;  %v5360_v18 = vshll.u32 %v18483_v36, %v5351_v35  ;;  %v5361_v9 = vshrl.u32 %v18395_v25, %v5352_v33  ;;  %v5364_v59 = vshrl.u32 %v18396_v8, %v5352_v33 }
 0x4e9   : > { %8321 = vcosq.f32 %v4905_v4  ;;  %v5006_v44 = vsel %vm4923_vm5, %v5005_v48, %v5004_v5  ;;  %v5366_v51 = vshll.u32 %v18396_v8, %v5351_v35  ;;  %v5367_v26 = vshrl.u32 %v18482_v12, %v5352_v33 }
 0x4ea   : > { %v5100_v28 = vor.u32 %v5099_v42, %v5098_v34  ;;  %v5104_v58 = vor.u32 4788187, %v5103_v11  ;;  %v5288_v60 = vmul.u32 %v15495_v30, %v5272_v45  ;;  %v5345_v24 = vor.u32 8388608, %v5344_v52  ;;  %v15604_v42 = vld [vmem:[%s8726_s8 + $0x190] sm:$0xff] }
 0x4eb   : > { %vm4704_vm13 = vcmp.lt.s32.totalorder %v15407_v20, 2  ;;  %vm4809_vm1 = vcmp.eq.s32.totalorder %v15508_v53, 0  ;;  %vm4812_vm12 = vcmp.eq.s32.totalorder %v15508_v53, 2  ;;  %v5292_v5 = vsel %vm5290_vm2, %v5291_v13, %v15529_v49  ;;  %v8320_v34 = vpop.eup %8319  ;;  %v15614_v49 = vld [vmem:[%s8726_s8 + $0x168] sm:$0xff] }
 0x4ec   : > { %v5356_v35 = vor.u32 %v5355_v7, %v5354_v55  ;;  %v5359_v48 = vor.u32 %v5358_v29, %v5357_v14  ;;  %v5365_v2 = vor.u32 %v5364_v59, %v5363_v41  ;;  %v5195_v30 = vsub.s32 0, %v15572_v3 }
 0x4ed   : > { %v5362_v11 = vor.u32 %v5361_v9, %v5360_v18  ;;  %vm5369_vm3 = vcmp.lt.s32.totalorder %v15586_v61, 1  ;;  %vm5372_vm4 = vcmp.lt.s32.totalorder %v15586_v61, 4  ;;  %8323 = vsinq.f32 %v4905_v4  ;;  %v18690_v18 = vld [vmem:[#allocation50_spill] sm:$0xff] }
 0x4ee   : > { %v5008_v52 = vsel %vm4923_vm5, %v5007_v0, %v15179_v10  ;;  %v5368_v45 = vor.u32 %v5367_v26, %v5366_v51  ;;  %vm5371_vm6 = vcmp.lt.s32.totalorder %v15586_v61, 3  ;;  %v5009_v13 = vsel %vm15555_vm10, %v15614_v49, %v5006_v44 }
 0x4ef   : > { %v5107_v55 = vcvt.s32.f32 %v5100_v28  ;;  %v15619_v7 = vadd.s32 %v5292_v5, %v5288_v60  ;;  %vm5370_vm11 = vcmp.lt.s32.totalorder %v15586_v61, 2  ;;  %vm4701_vm7 = vweird.f32 %v15159_v40 }
 0x4f0   : > { %v5377_v22 = vsel %vm5369_vm3, %v5356_v35, %v5359_v48  ;;  %v5378_v10 = vsel %vm5372_vm4, %v5365_v2, 920167782  ;;  %v15627_v0 = vshll.u32 %v5345_v24, 8  ;;  %v5444_v4 = vand.u32 2139095040, %v15604_v42 }
 0x4f1   : > { %v5105_v14 = vand.u32 2147483647, %v5104_v58  ;;  %v7748_v29 = vmin.u32 %v5195_v30, %v15572_v3  ;;  %v5353_v28 = vshrl.u32 %v18400_v17, %v5352_v33  ;;  %v5379_v41 = vsel %vm5371_vm6, %v5362_v11, %v5378_v10 }
 0x4f2   : > { %vm4808_vm14 = vcmp.lt.s32.totalorder %v15508_v53, 2  ;;  %8325 = vcosq.f32 %v5009_v13  ;;  %vm5027_vm8 = vcmp.lt.s32.totalorder %v18690_v18, 0  ;;  %v5380_v9 = vsel %vm5370_vm11, %v5377_v22, %v5379_v41 }
 0x4f3   : > { %v5381_v24 = vsel %vm5369_vm3, %v5359_v48, %v5362_v11  ;;  %v5382_v58 = vsel %vm5372_vm4, %v5368_v45, 1326507024  ;;  %v4810_v59 = vxor.u32 2147483648, %v8320_v34  ;;  %v5010_v33 = vsel %vm15555_vm10, 0, %v5008_v52  ;;  %v8322_v26 = vpop.eup %8321 }
 0x4f4   : > { %v5294_v44 = vadd.s32 536870912, %v15619_v7  ;;  %v5374_v51 = vsel %vm5372_vm4, %v5362_v11, 2102212464  ;;  %v5383_v60 = vsel %vm5371_vm6, %v5365_v2, %v5382_v58  ;;  %v5445_v22 = vshrl.u32 %v5444_v4, 23 }
 0x4f5   : > { %v15650_v5 = vmul.u32.u64.low %v15627_v0, %v5380_v9  ;;  %v15651_v30 = vmul.u32.u64.high %v15627_v0, %v5380_v9, %v15650_v5  ;;  %v18691_v45 = vand.u32 2147483647, %v18690_v18  ;;  %v5108_v52 = vmul.f32 %v5107_v55, %v5105_v14 }
 0x4f6   : > { %v5197_v10 = vclz %v7748_v29  ;;  %v5373_v11 = vsel %vm5369_vm3, %v5353_v28, %v5356_v35  ;;  %v5384_v2 = vsel %vm5370_vm11, %v5381_v24, %v5383_v60  ;;  %v5375_v41 = vsel %vm5371_vm6, %v5359_v48, %v5374_v51 }
 0x4f7   : > { %vm15656_vm9 = vcmp.le.f32.partialorder %v18691_v45, 0.7853982  ;;  %v15667_v9 = vmul.u32.u64.low %v15627_v0, %v5384_v2  ;;  %v15668_v4 = vmul.u32.u64.high %v15627_v0, %v5384_v2, %v15667_v9  ;;  %v7759_v58 = vadd.s32 4294967169, %v5445_v22  ;;  %v8324_v28 = vpop.eup %8323 }
 0x4f8   : > { %v4711_v55 = vsel %vm4704_vm13, %v15534_v43, %v15524_v19  ;;  %v4811_v35 = vsel %vm4809_vm1, %v15513_v46, %v4810_v59  ;;  %v18694_v14 = vxor.u32 2147483648, %v15513_v46  ;;  %v15682_v48 = vand.u32 3, %v15551_v23 }
 0x4f9   : > { %8327 = vsinq.f32 %v5009_v13  ;;  %v5111_v24 = vsub.s32 4, %v15309_v1  ;;  %v15685_v51 = vshrl.u32 %v5294_v44, 30  ;;  %v5451_v20 = vadd.s32 1, %v7759_v58  ;;  %v15720_v58 = vld [vmem:[%s8726_s8 + $0x198] sm:$0xff] }
 0x4fa   : > { %v4814_v29 = vsel %vm4812_vm12, %v18694_v14, %v8320_v34  ;;  %v5014_v19 = vadd.s32 3, %v5010_v33  ;;  %v5109_v43 = vxor.u32 2147483648, %v5108_v52  ;;  %v5376_v59 = vsel %vm5370_vm11, %v5373_v11, %v5375_v41 }
 0x4fb   : > { %v5395_v46 = vadd.s32 1, %v15651_v30  ;;  %v4917_v60 = vxor.u32 2147483648, %v8322_v26  ;;  %v7749_v22 = vadd.s32 4294967294, %v5197_v10  ;;  %vm5394_vm0 = vc.u32 %v15668_v4, %v15650_v5 }
 0x4fc   : > { %vm5452_vm5 = vcmp.gt.s32.totalorder %v5451_v20, 0  ;;  %v15694_v23 = vsel %vm4701_vm7, nan, %v4711_v55  ;;  %vm4913_vm15 = vcmp.eq.s32.totalorder %v15682_v48, 0  ;;  %v4914_v34 = vxor.u32 2147483648, %v8324_v28  ;;  %v15698_v61 = vpop.eup %8325 }
 0x4fd   : > { %18695 = vst [vmem:[#allocation49_spill] sm:$0xff] %v15694_v23  ;;  %vm4916_vm10 = vcmp.eq.s32.totalorder %v15682_v48, 2  ;;  %v15703_v13 = vsel %vm5027_vm8, %v5111_v24, %v15309_v1  ;;  %v5296_v33 = vshll.u32 %v15685_v51, 30  ;;  %v5392_v44 = vmul.u32 %v15627_v0, %v5376_v59 }
 0x4fe   : > { %v5453_v40 = vsel %vm5452_vm5, %v5451_v20, 0  ;;  %v15709_v45 = vsel %vm4808_vm14, %v4811_v35, %v4814_v29  ;;  %v5110_v10 = vsel %vm5027_vm8, %v5109_v43, %v5108_v52  ;;  %v5396_v11 = vsel %vm5394_vm0, %v5395_v46, %v15651_v30 }
 0x4ff   : > { %v18308_v2 = vand.u32 2147483647, %v15604_v42  ;;  %v15715_v41 = vsel %vm4916_vm10, %v4917_v60, %v8324_v28  ;;  %v15717_v1 = vand.u32 3, %v5014_v19  ;;  %vm7750_vm2 = vcmp.lt.s32.totalorder %v7749_v22, 0 }
 0x500   : > { %v5455_v9 = vand.u32 31, %v5453_v40  ;;  %v15724_v53 = vsel %vm4913_vm15, %v8322_v26, %v4914_v34  ;;  %v15732_v52 = vadd.s32 %v15381_v21, %v15391_v15  ;;  %v5113_v55 = vsel %vm15656_vm9, %v18690_v18, %v5110_v10 }
 0x501   : > { %v15738_v35 = vsub.s32 %v15619_v7, %v5296_v33  ;;  %v15740_v14 = vadd.s32 %v5396_v11, %v5392_v44  ;;  %v15742_v29 = vsel %vm7750_vm2, 0, %v7749_v22  ;;  %v5448_v28 = vand.u32 8388607, %v18308_v2 }
 0x502   : > { %v5456_v26 = vsub.s32 32, %v5455_v9  ;;  %v5458_v24 = vshll.u32 %v18400_v17, %v5455_v9  ;;  %v5461_v21 = vshll.u32 %v18380_v27, %v5455_v9  ;;  %v15750_v20 = vshrl.u32 %v5453_v40, 5 }
 0x503   : > { %v15748_v15 = vpop.eup %8327  ;;  %v5467_v7 = vshll.u32 %v18395_v25, %v5455_v9  ;;  %v5548_v19 = vand.u32 2139095040, %v15720_v58  ;;  %v5464_v59 = vshll.u32 %v18483_v36, %v5455_v9  ;;  %v5299_v22 = vsub.s32 0, %v15738_v35 }
 0x504   : > { %v5459_v18 = vshrl.u32 %v18380_v27, %v5456_v26  ;;  %v5462_v43 = vshrl.u32 %v18483_v36, %v5456_v26  ;;  %v5465_v46 = vshrl.u32 %v18395_v25, %v5456_v26  ;;  %v5468_v60 = vshrl.u32 %v18396_v8, %v5456_v26 }
 0x505   : > { %v5398_v34 = vadd.s32 536870912, %v15740_v14  ;;  %v5470_v33 = vshll.u32 %v18396_v8, %v5455_v9  ;;  %v5471_v44 = vshrl.u32 %v18482_v12, %v5456_v26  ;;  %v5018_v40 = vxor.u32 2147483648, %v15748_v15 }
 0x506   : > { %v5449_v10 = vor.u32 8388608, %v5448_v28  ;;  %v5460_v11 = vor.u32 %v5459_v18, %v5458_v24  ;;  %v5463_v2 = vor.u32 %v5462_v43, %v5461_v21  ;;  %vm4912_vm13 = vcmp.lt.s32.totalorder %v15682_v48, 2 }
 0x507   : > { %v5215_v30 = vsub.s32 4, %v15516_v37  ;;  %v5469_v0 = vor.u32 %v5468_v60, %v5467_v7  ;;  %vm5473_vm1 = vcmp.lt.s32.totalorder %v15750_v20, 1  ;;  %v5549_v23 = vshrl.u32 %v5548_v19, 23 }
 0x508   : > { %vm5017_vm12 = vcmp.eq.s32.totalorder %v15717_v1, 0  ;;  %vm5020_vm3 = vcmp.eq.s32.totalorder %v15717_v1, 2  ;;  %8329 = vcosq.f32 %v5113_v55  ;;  %v5205_v9 = vsub.s32 4294967266, %v15742_v29 }
 0x509   : > { %v5466_v32 = vor.u32 %v5465_v46, %v5464_v59  ;;  %vm5476_vm4 = vcmp.lt.s32.totalorder %v15750_v20, 4  ;;  %v7752_v28 = vmin.u32 %v5299_v22, %v15738_v35  ;;  %v15772_v24 = vshrl.u32 %v5398_v34, 30 }
 0x50a   : > { %v5472_v21 = vor.u32 %v5471_v44, %v5470_v33  ;;  %vm5475_vm6 = vcmp.lt.s32.totalorder %v15750_v20, 3  ;;  %vm5474_vm11 = vcmp.lt.s32.totalorder %v15750_v20, 2  ;;  %v5481_v18 = vsel %vm5473_vm1, %v5460_v11, %v5463_v2 }
 0x50b   : > { %v5482_v7 = vsel %vm5476_vm4, %v5469_v0, 920167782  ;;  %v15780_v19 = vshll.u32 %v5449_v10, 8  ;;  %vm4805_vm7 = vweird.f32 %v15302_v47  ;;  %vm4909_vm14 = vweird.f32 %v15461_v54 }
 0x50c   : > { %8331 = vsinq.f32 %v5113_v55  ;;  %vm5131_vm8 = vcmp.lt.s32.totalorder %v15138_v39, 0  ;;  %v5201_v43 = vsub.s32 32, %v15742_v29  ;;  %v5457_v59 = vshrl.u32 %v18400_v17, %v5456_v26 }
 0x50d   : > { %v7763_v46 = vadd.s32 4294967169, %v5549_v23  ;;  %v5206_v60 = vadd.s32 127, %v5205_v9  ;;  %v5478_v22 = vsel %vm5476_vm4, %v5466_v32, 2102212464  ;;  %v5483_v34 = vsel %vm5475_vm6, %v5466_v32, %v5482_v7 }
 0x50e   : > { %v5485_v33 = vsel %vm5473_vm1, %v5463_v2, %v5466_v32  ;;  %v5301_v44 = vclz %v7752_v28  ;;  %v5400_v55 = vshll.u32 %v15772_v24, 30  ;;  %v5484_v10 = vsel %vm5474_vm11, %v5481_v18, %v5483_v34 }
 0x50f   : > { %v5486_v26 = vsel %vm5476_vm4, %v5472_v21, 1326507024  ;;  %v18696_v23 = vand.u32 2147483647, %v15138_v39  ;;  %v5202_v7 = vshll.u32 %v15572_v3, %v15742_v29  ;;  %v5477_v21 = vsel %vm5473_vm1, %v5457_v59, %v5460_v11 }
 0x510   : > { %v5487_v32 = vsel %vm5475_vm6, %v5469_v0, %v5486_v26  ;;  %v15809_v28 = vmul.u32.u64.low %v15780_v19, %v5484_v10  ;;  %v15810_v6 = vmul.u32.u64.high %v15780_v19, %v5484_v10, %v15809_v28  ;;  %v5479_v18 = vsel %vm5475_vm6, %v5463_v2, %v5478_v22 }
 0x511   : > { %vm15800_vm0 = vcmp.le.f32.partialorder %v18696_v23, 0.7853982  ;;  %v5488_v34 = vsel %vm5474_vm11, %v5485_v33, %v5487_v32  ;;  %v5555_v23 = vadd.s32 1, %v7763_v46  ;;  %v5203_v3 = vshrl.u32 %v15732_v52, %v5201_v43 }
 0x512   : > { %v5207_v29 = vshll.u32 %v5206_v60, 23  ;;  %v15821_v0 = vmul.u32.u64.low %v15780_v19, %v5488_v34  ;;  %v15822_v26 = vmul.u32.u64.high %v15780_v19, %v5488_v34, %v15821_v0  ;;  %vm5016_vm5 = vcmp.lt.s32.totalorder %v15717_v1, 2  ;;  %v15828_v11 = vpop.eup %8329 }
 0x513   : > { %v7753_v10 = vadd.s32 4294967294, %v5301_v44  ;;  %v15826_v50 = vsub.s32 %v15740_v14, %v5400_v55  ;;  %vm5556_vm15 = vcmp.gt.s32.totalorder %v5555_v23, 0  ;;  %v4919_v2 = vsel %vm4912_vm13, %v15724_v53, %v15715_v41 }
 0x514   : > { %v5480_v52 = vsel %vm5474_vm11, %v5477_v21, %v5479_v18  ;;  %v5499_v43 = vadd.s32 1, %v15810_v6  ;;  %v5557_v59 = vsel %vm5556_vm15, %v5555_v23, 0  ;;  %v5019_v46 = vsel %vm5017_vm12, %v15698_v61, %v5018_v40 }
 0x515   : > { %v18699_v14 = vxor.u32 2147483648, %v15698_v61  ;;  %v18700_v48 = vsel %vm15656_vm9, 0, %v15703_v13  ;;  %v5559_v53 = vand.u32 31, %v5557_v59  ;;  %v5204_v20 = vor.u32 %v5203_v3, %v5202_v7 }
 0x516   : > { %v5118_v41 = vadd.s32 3, %v18700_v48  ;;  %v5208_v22 = vor.u32 4788187, %v5207_v29  ;;  %v15852_v33 = vsel %vm5131_vm8, %v5215_v30, %v15516_v37  ;;  %vm5498_vm10 = vc.u32 %v15822_v26, %v15809_v28  ;;  %v15856_v61 = vpop.eup %8331 }
 0x517   : > { %v5022_v60 = vsel %vm5020_vm3, %v18699_v14, %v15748_v15  ;;  %vm7754_vm2 = vcmp.lt.s32.totalorder %v7753_v10, 0  ;;  %v5403_v15 = vsub.s32 0, %v15826_v50  ;;  %v5496_v62 = vmul.u32 %v15780_v19, %v5480_v52 }
 0x518   : > { %v18309_v13 = vand.u32 2147483647, %v15720_v58  ;;  %v15864_v40 = vsel %vm4805_vm7, nan, %v15709_v45  ;;  %v15868_v37 = vsel %vm4909_vm14, nan, %v4919_v2  ;;  %v5500_v30 = vsel %vm5498_vm10, %v5499_v43, %v15810_v6 }
 0x519   : > { %18701 = vst [vmem:[#allocation51_spill] sm:$0xff] %v15864_v40  ;;  %18702 = vst [vmem:[#allocation16_spill] sm:$0xff] %v15868_v37  ;;  %v5560_v44 = vsub.s32 32, %v5559_v53  ;;  %v15873_v55 = vsel %vm5016_vm5, %v5019_v46, %v5022_v60  ;;  %v15875_v7 = vand.u32 3, %v5118_v41  ;;  %v5209_v45 = vand.u32 2147483647, %v5208_v22 }
 0x51a   : > { %v5211_v32 = vcvt.s32.f32 %v5204_v20  ;;  %v5289_v54 = vadd.s32 %v15528_v56, %v15520_v38  ;;  %v15883_v21 = vsel %vm7754_vm2, 0, %v7753_v10  ;;  %v7756_v6 = vmin.u32 %v5403_v15, %v15826_v50 }
 0x51b   : > { %v15886_v1 = vadd.s32 %v5500_v30, %v5496_v62  ;;  %v5552_v18 = vand.u32 8388607, %v18309_v13  ;;  %v5558_v34 = vshrl.u32 %v5557_v59, 5  ;;  %v5562_v23 = vshll.u32 %v18400_v17, %v5559_v53 }
 0x51c   : > { %v5563_v3 = vshrl.u32 %v18380_v27, %v5560_v44  ;;  %v5565_v29 = vshll.u32 %v18380_v27, %v5559_v53  ;;  %v5566_v0 = vshrl.u32 %v18483_v36, %v5560_v44  ;;  %v5568_v38 = vshll.u32 %v18483_v36, %v5559_v53 }
 0x51d   : > { %v5569_v56 = vshrl.u32 %v18395_v25, %v5560_v44  ;;  %v5571_v10 = vshll.u32 %v18395_v25, %v5559_v53  ;;  %v5572_v2 = vshrl.u32 %v18396_v8, %v5560_v44  ;;  %v5122_v52 = vxor.u32 2147483648, %v15856_v61 }
 0x51e   : > { %v5212_v43 = vmul.f32 %v5211_v32, %v5209_v45  ;;  %v5309_v59 = vsub.s32 4294967266, %v15883_v21  ;;  %v5574_v46 = vshll.u32 %v18396_v8, %v5559_v53  ;;  %vm5121_vm9 = vcmp.eq.s32.totalorder %v15875_v7, 0 }
 0x51f   : > { %vm5124_vm13 = vcmp.eq.s32.totalorder %v15875_v7, 2  ;;  %v5405_v14 = vclz %v7756_v6  ;;  %v5502_v60 = vadd.s32 536870912, %v15886_v1  ;;  %v5573_v48 = vor.u32 %v5572_v2, %v5571_v10 }
 0x520   : > { %v5575_v41 = vshrl.u32 %v18482_v12, %v5560_v44  ;;  %v5553_v20 = vor.u32 8388608, %v5552_v18  ;;  %v5561_v22 = vshrl.u32 %v18400_v17, %v5560_v44  ;;  %v5564_v15 = vor.u32 %v5563_v3, %v5562_v23 }
 0x521   : > { %v5567_v62 = vor.u32 %v5566_v0, %v5565_v29  ;;  %v5570_v30 = vor.u32 %v5569_v56, %v5568_v38  ;;  %vm5577_vm1 = vcmp.lt.s32.totalorder %v5558_v34, 1  ;;  %vm5580_vm12 = vcmp.lt.s32.totalorder %v5558_v34, 4  ;;  %v15915_v29 = vld [vmem:[%s8726_s8 + $0x1a0] sm:$0xff] }
 0x522   : > { %v5576_v45 = vor.u32 %v5575_v41, %v5574_v46  ;;  %vm5013_vm3 = vweird.f32 %v15614_v49  ;;  %vm5120_vm4 = vcmp.lt.s32.totalorder %v15875_v7, 2  ;;  %v5213_v53 = vxor.u32 2147483648, %v5212_v43 }
 0x523   : > { %v5305_v32 = vsub.s32 32, %v15883_v21  ;;  %v5310_v6 = vadd.s32 127, %v5309_v59  ;;  %vm5579_vm6 = vcmp.lt.s32.totalorder %v5558_v34, 3  ;;  %vm5235_vm11 = vcmp.lt.s32.totalorder %v15315_v16, 0 }
 0x524   : > { %v7757_v44 = vadd.s32 4294967294, %v5405_v14  ;;  %v15910_v18 = vshrl.u32 %v5502_v60, 30  ;;  %v5582_v23 = vsel %vm5580_vm12, %v5570_v30, 2102212464  ;;  %v5586_v3 = vsel %vm5580_vm12, %v5573_v48, 920167782 }
 0x525   : > { %vm5578_vm7 = vcmp.lt.s32.totalorder %v5558_v34, 2  ;;  %v5581_v0 = vsel %vm5577_vm1, %v5561_v22, %v5564_v15  ;;  %v5585_v38 = vsel %vm5577_vm1, %v5564_v15, %v5567_v62  ;;  %v5593_v56 = vshll.u32 %v5553_v20, 8  ;;  %v8450_v14 = vld [vmem:[%s8726_s8 + $0x170] sm:$0xff] }
 0x526   : > { %v5583_v10 = vsel %vm5579_vm6, %v5567_v62, %v5582_v23  ;;  %v5587_v2 = vsel %vm5579_vm6, %v5570_v30, %v5586_v3  ;;  %v5589_v59 = vsel %vm5577_vm1, %v5567_v62, %v5570_v30  ;;  %v5590_v46 = vsel %vm5580_vm12, %v5576_v45, 1326507024 }
 0x527   : > { %vm5117_vm14 = vweird.f32 %v8450_v14  ;;  %v18703_v60 = vand.u32 2147483647, %v15315_v16  ;;  %v5306_v22 = vshll.u32 %v15738_v35, %v15883_v21  ;;  %v5307_v20 = vshrl.u32 %v5289_v54, %v5305_v32 }
 0x528   : > { %v5311_v15 = vshll.u32 %v5310_v6, 23  ;;  %v5319_v23 = vsub.s32 4, %v15685_v51  ;;  %v5504_v3 = vshll.u32 %v15910_v18, 30  ;;  %v5588_v62 = vsel %vm5578_vm7, %v5585_v38, %v5587_v2 }
 0x529   : > { %vm15926_vm5 = vcmp.le.f32.partialorder %v18703_v60, 0.7853982  ;;  %v5591_v30 = vsel %vm5579_vm6, %v5573_v48, %v5590_v46  ;;  %v5652_v45 = vand.u32 2139095040, %v15915_v29  ;;  %v5584_v60 = vsel %vm5578_vm7, %v5581_v0, %v5583_v10 }
 0x52a   : > { %v5592_v13 = vsel %vm5578_vm7, %v5589_v59, %v5591_v30  ;;  %v15939_v47 = vmul.u32.u64.low %v5593_v56, %v5588_v62  ;;  %v15940_v19 = vmul.u32.u64.high %v5593_v56, %v5588_v62, %v15939_v47  ;;  %vm7758_vm15 = vcmp.lt.s32.totalorder %v7757_v44, 0 }
 0x52b   : > { %v15943_v35 = vmul.u32.u64.low %v5593_v56, %v5592_v13  ;;  %v15944_v54 = vmul.u32.u64.high %v5593_v56, %v5592_v13, %v15943_v35  ;;  %v5653_v21 = vshrl.u32 %v5652_v45, 23  ;;  %v5123_v32 = vsel %vm5121_vm9, %v15828_v11, %v5122_v52 }
 0x52c   : > { %v18706_v48 = vxor.u32 2147483648, %v15828_v11  ;;  %v5308_v6 = vor.u32 %v5307_v20, %v5306_v22  ;;  %v5312_v0 = vor.u32 4788187, %v5311_v15  ;;  %v5214_v38 = vsel %vm5131_vm8, %v5213_v53, %v5212_v43 }
 0x52d   : > { %v18707_v13 = vsel %vm15800_vm0, 0, %v15852_v33  ;;  %v5600_v2 = vmul.u32 %v5593_v56, %v5584_v60  ;;  %v7767_v59 = vadd.s32 4294967169, %v5653_v21  ;;  %v5320_v11 = vsel %vm5235_vm11, %v5319_v23, %v15685_v51  ;;  %v15979_v51 = vld [vmem:[%s8726_s8 + $0x178] sm:$0xff] }
 0x52e   : > { %v5126_v34 = vsel %vm5124_vm13, %v18706_v48, %v15856_v61  ;;  %v5222_v10 = vadd.s32 3, %v18707_v13  ;;  %v15963_v52 = vsel %vm7758_vm15, 0, %v7757_v44  ;;  %v15966_v61 = vsub.s32 %v15886_v1, %v5504_v3 }
 0x52f   : > { %v5603_v46 = vadd.s32 1, %v15940_v19  ;;  %v15972_v39 = vsel %vm5013_vm3, nan, %v15873_v55  ;;  %v5127_v33 = vsel %vm5120_vm4, %v5123_v32, %v5126_v34  ;;  %vm5602_vm8 = vc.u32 %v15944_v54, %v15939_v47 }
 0x530   : > { %18708 = vst [vmem:[#allocation50_spill] sm:$0xff] %v15972_v39  ;;  %v5659_v43 = vadd.s32 1, %v7767_v59  ;;  %v5217_v1 = vsel %vm15800_vm0, %v15979_v51, %v5214_v38  ;;  %v5313_v53 = vand.u32 2147483647, %v5312_v0  ;;  %v5315_v44 = vcvt.s32.f32 %v5308_v6  ;;  %v16009_v0 = vld [vmem:[%s8726_s8 + $0x1a8] sm:$0xff] }
 0x531   : > { %v5604_v56 = vsel %vm5602_vm8, %v5603_v46, %v15940_v19  ;;  %v5322_v49 = vsel %vm15926_vm5, 0, %v5320_v11  ;;  %v5413_v55 = vsub.s32 4294967266, %v15963_v52  ;;  %v15988_v22 = vand.u32 3, %v5222_v10 }
 0x532   : > { %v5605_v7 = vadd.s32 %v5604_v56, %v5600_v2  ;;  %vm5660_vm10 = vcmp.gt.s32.totalorder %v5659_v43, 0  ;;  %v5507_v20 = vsub.s32 0, %v15966_v61  ;;  %v18310_v15 = vand.u32 2147483647, %v15915_v29 }
 0x533   : > { %v5661_v23 = vsel %vm5660_vm10, %v5659_v43, 0  ;;  %v15993_v9 = vsel %vm5117_vm14, nan, %v5127_v33  ;;  %8333 = vcosq.f32 %v5217_v1  ;;  %v15995_v62 = vmul.f32 %v5315_v44, %v5313_v53 }
 0x534   : > { %18709 = vst [vmem:[#allocation56_spill] sm:$0xff] %v15993_v9  ;;  %v5606_v19 = vadd.s32 536870912, %v5605_v7  ;;  %v5663_v3 = vand.u32 31, %v5661_v23  ;;  %8335 = vsinq.f32 %v5217_v1  ;;  %v15997_v30 = vadd.s32 3, %v5322_v49 }
 0x535   : > { %v5393_v45 = vadd.s32 %v15650_v5, %v15668_v4  ;;  %v5409_v60 = vsub.s32 32, %v15963_v52  ;;  %v5414_v35 = vadd.s32 127, %v5413_v55  ;;  %v7760_v32 = vmin.u32 %v5507_v20, %v15966_v61 }
 0x536   : > { %v16002_v21 = vshrl.u32 %v5606_v19, 30  ;;  %v5664_v14 = vsub.s32 32, %v5663_v3  ;;  %v5656_v48 = vand.u32 8388607, %v18310_v15  ;;  %v5662_v34 = vshrl.u32 %v5661_v23, 5 }
 0x537   : > { %v5666_v6 = vshll.u32 %v18400_v17, %v5663_v3  ;;  %v5669_v4 = vshll.u32 %v18380_v27, %v5663_v3  ;;  %v5672_v13 = vshll.u32 %v18483_v36, %v5663_v3  ;;  %v5675_v59 = vshll.u32 %v18395_v25, %v5663_v3 }
 0x538   : > { %v5608_v38 = vshll.u32 %v16002_v21, 30  ;;  %v5667_v5 = vshrl.u32 %v18380_v27, %v5664_v14  ;;  %v5670_v10 = vshrl.u32 %v18483_v36, %v5664_v14  ;;  %v5673_v2 = vshrl.u32 %v18395_v25, %v5664_v14 }
 0x539   : > { %v5676_v11 = vshrl.u32 %v18396_v8, %v5664_v14  ;;  %v5410_v46 = vshll.u32 %v15826_v50, %v15963_v52  ;;  %v5411_v33 = vshrl.u32 %v5393_v45, %v5409_v60  ;;  %v5678_v1 = vshll.u32 %v18396_v8, %v5663_v3 }
 0x53a   : > { %v16021_v43 = vsub.s32 %v5605_v7, %v5608_v38  ;;  %v5415_v53 = vshll.u32 %v5414_v35, 23  ;;  %v5509_v44 = vclz %v7760_v32  ;;  %v5657_v56 = vor.u32 8388608, %v5656_v48 }
 0x53b   : > { %v5756_v49 = vand.u32 2139095040, %v16009_v0  ;;  %v5668_v20 = vor.u32 %v5667_v5, %v5666_v6  ;;  %v5671_v23 = vor.u32 %v5670_v10, %v5669_v4  ;;  %v5679_v19 = vshrl.u32 %v18482_v12, %v5664_v14 }
 0x53c   : > { %v5611_v55 = vsub.s32 0, %v16021_v43  ;;  %v5665_v15 = vshrl.u32 %v18400_v17, %v5664_v14  ;;  %v5674_v9 = vor.u32 %v5673_v2, %v5672_v13  ;;  %v5677_v50 = vor.u32 %v5676_v11, %v5675_v59 }
 0x53d   : > { %vm5681_vm0 = vcmp.lt.s32.totalorder %v5662_v34, 1  ;;  %v16028_v52 = vpop.eup %8333  ;;  %vm5228_vm2 = vcmp.eq.s32.totalorder %v15988_v22, 2  ;;  %v5317_v7 = vxor.u32 2147483648, %v15995_v62  ;;  %v5412_v3 = vor.u32 %v5411_v33, %v5410_v46 }
 0x53e   : > { %v7764_v45 = vmin.u32 %v5611_v55, %v16021_v43  ;;  %v5680_v60 = vor.u32 %v5679_v19, %v5678_v1  ;;  %v8336_v35 = vpop.eup %8335  ;;  %v7761_v32 = vadd.s32 4294967294, %v5509_v44  ;;  %vm5683_vm9 = vcmp.lt.s32.totalorder %v5662_v34, 3 }
 0x53f   : > { %vm5684_vm13 = vcmp.lt.s32.totalorder %v5662_v34, 4  ;;  %v5757_v48 = vshrl.u32 %v5756_v49, 23  ;;  %vm5339_vm1 = vcmp.lt.s32.totalorder %v15436_v63, 0  ;;  %v5416_v14 = vor.u32 4788187, %v5415_v53 }
 0x540   : > { %vm5682_vm12 = vcmp.lt.s32.totalorder %v5662_v34, 2  ;;  %v5689_v6 = vsel %vm5681_vm0, %v5668_v20, %v5671_v23  ;;  %v5697_v38 = vshll.u32 %v5657_v56, 8  ;;  %vm5225_vm3 = vcmp.eq.s32.totalorder %v15988_v22, 0 }
 0x541   : > { %v5685_v5 = vsel %vm5681_vm0, %v5665_v15, %v5668_v20  ;;  %v5686_v4 = vsel %vm5684_vm13, %v5674_v9, 2102212464  ;;  %v5690_v13 = vsel %vm5684_vm13, %v5677_v50, 920167782  ;;  %v5693_v10 = vsel %vm5681_vm0, %v5671_v23, %v5674_v9 }
 0x542   : > { %v5613_v2 = vclz %v7764_v45  ;;  %v5687_v59 = vsel %vm5683_vm9, %v5671_v23, %v5686_v4  ;;  %v5691_v11 = vsel %vm5683_vm9, %v5674_v9, %v5690_v13  ;;  %v5694_v46 = vsel %vm5684_vm13, %v5680_v60, 1326507024 }
 0x543   : > { %v18710_v33 = vand.u32 2147483647, %v15436_v63  ;;  %vm7762_vm6 = vcmp.lt.s32.totalorder %v7761_v32, 0  ;;  %v5692_v53 = vsel %vm5682_vm12, %v5689_v6, %v5691_v11  ;;  %v5695_v15 = vsel %vm5683_vm9, %v5677_v50, %v5694_v46 }
 0x544   : > { %v7771_v44 = vadd.s32 4294967169, %v5757_v48  ;;  %v5688_v56 = vsel %vm5682_vm12, %v5685_v5, %v5687_v59  ;;  %v5696_v49 = vsel %vm5682_vm12, %v5693_v10, %v5695_v15  ;;  %v5229_v9 = vxor.u32 2147483648, %v16028_v52 }
 0x545   : > { %vm16042_vm4 = vcmp.le.f32.partialorder %v18710_v33, 0.7853982  ;;  %v16050_v55 = vmul.u32.u64.low %v5697_v38, %v5692_v53  ;;  %v16051_v20 = vmul.u32.u64.high %v5697_v38, %v5692_v53, %v16050_v55  ;;  %v5423_v23 = vsub.s32 4, %v15772_v24 }
 0x546   : > { %v16056_v19 = vmul.u32.u64.low %v5697_v38, %v5696_v49  ;;  %v16057_v45 = vmul.u32.u64.high %v5697_v38, %v5696_v49, %v16056_v19  ;;  %v16060_v60 = vand.u32 3, %v15997_v30  ;;  %v5417_v50 = vand.u32 2147483647, %v5416_v14 }
 0x547   : > { %v5419_v48 = vcvt.s32.f32 %v5412_v3  ;;  %v7765_v6 = vadd.s32 4294967294, %v5613_v2  ;;  %v5318_v34 = vsel %vm5235_vm11, %v5317_v7, %v15995_v62  ;;  %v5512_v5 = vsel %vm7762_vm6, 0, %v7761_v32  ;;  %v16081_v62 = vld [vmem:[%s8726_s8 + $0x180] sm:$0xff] }
 0x548   : > { %v5704_v4 = vmul.u32 %v5697_v38, %v5688_v56  ;;  %v5763_v13 = vadd.s32 1, %v7771_v44  ;;  %v5226_v10 = vxor.u32 2147483648, %v8336_v35  ;;  %v5497_v59 = vadd.s32 %v15809_v28, %v15822_v26 }
 0x549   : > { %v5513_v11 = vsub.s32 32, %v5512_v5  ;;  %v5707_v30 = vadd.s32 1, %v16051_v20  ;;  %v16071_v14 = vsel %vm5228_vm2, %v5229_v9, %v8336_v35  ;;  %v16076_v16 = vsel %vm5339_vm1, %v5423_v23, %v15772_v24 }
 0x54a   : > { %vm5706_vm11 = vc.u32 %v16057_v45, %v16050_v55  ;;  %vm5764_vm7 = vcmp.gt.s32.totalorder %v5763_v13, 0  ;;  %v5321_v28 = vsel %vm15926_vm5, %v16081_v62, %v5318_v34  ;;  %v16086_v26 = vmul.f32 %v5419_v48, %v5417_v50 }
 0x54b   : > { %vm7766_vm14 = vcmp.lt.s32.totalorder %v7765_v6, 0  ;;  %v5708_v7 = vsel %vm5706_vm11, %v5707_v30, %v16051_v20  ;;  %v5517_v3 = vsub.s32 4294967266, %v5512_v5  ;;  %v18311_v24 = vand.u32 2147483647, %v16009_v0 }
 0x54c   : > { %v5709_v35 = vadd.s32 %v5708_v7, %v5704_v4  ;;  %v5765_v32 = vsel %vm5764_vm7, %v5763_v13, 0  ;;  %v16093_v38 = vsel %vm5225_vm3, %v16028_v52, %v5226_v10  ;;  %v5514_v2 = vshll.u32 %v15966_v61, %v5512_v5 }
 0x54d   : > { %v5515_v46 = vshrl.u32 %v5497_v59, %v5513_v11  ;;  %8337 = vcosq.f32 %v5321_v28  ;;  %v16099_v33 = vsel %vm7766_vm14, 0, %v7765_v6  ;;  %v5767_v15 = vand.u32 31, %v5765_v32 }
 0x54e   : > { %v5710_v53 = vadd.s32 536870912, %v5709_v35  ;;  %8339 = vsinq.f32 %v5321_v28  ;;  %v5601_v52 = vadd.s32 %v15939_v47, %v15944_v54  ;;  %v5518_v49 = vadd.s32 127, %v5517_v3 }
 0x54f   : > { %v5760_v61 = vand.u32 8388607, %v18311_v24  ;;  %v5768_v9 = vsub.s32 32, %v5767_v15  ;;  %v16109_v23 = vor.u32 %v5515_v46, %v5514_v2  ;;  %v5621_v19 = vsub.s32 4294967266, %v16099_v33 }
 0x550   : > { %v16105_v20 = vshrl.u32 %v5710_v53, 30  ;;  %v5770_v50 = vshll.u32 %v18400_v17, %v5767_v15  ;;  %v5773_v48 = vshll.u32 %v18380_v27, %v5767_v15  ;;  %v5766_v34 = vshrl.u32 %v5765_v32, 5 }
 0x551   : > { %v5771_v47 = vshrl.u32 %v18380_v27, %v5768_v9  ;;  %v5779_v54 = vshll.u32 %v18395_v25, %v5767_v15  ;;  %v5774_v5 = vshrl.u32 %v18483_v36, %v5768_v9  ;;  %v5776_v4 = vshll.u32 %v18483_v36, %v5767_v15 }
 0x552   : > { %v5712_v6 = vshll.u32 %v16105_v20, 30  ;;  %v5777_v13 = vshrl.u32 %v18395_v25, %v5768_v9  ;;  %v5780_v10 = vshrl.u32 %v18396_v8, %v5768_v9  ;;  %vm5224_vm5 = vcmp.lt.s32.totalorder %v15988_v22, 2 }
 0x553   : > { %v5519_v59 = vshll.u32 %v5518_v49, 23  ;;  %v5617_v11 = vsub.s32 32, %v16099_v33  ;;  %v5761_v28 = vor.u32 8388608, %v5760_v61  ;;  %v5618_v7 = vshll.u32 %v16021_v43, %v16099_v33  ;;  %v16132_v49 = vld [vmem:[%s8726_s8 + $0x1b0] sm:$0xff] }
 0x554   : > { %v16123_v30 = vsub.s32 %v5709_v35, %v5712_v6  ;;  %v5772_v3 = vor.u32 %v5771_v47, %v5770_v50  ;;  %v5775_v32 = vor.u32 %v5774_v5, %v5773_v48  ;;  %v5782_v2 = vshll.u32 %v18396_v8, %v5767_v15  ;;  %v16330_v47 = vld [vmem:[%s8726_s8 + $0x198] sm:$0xff] }
 0x555   : > { %vm5443_vm15 = vcmp.lt.s32.totalorder %v15604_v42, 0  ;;  %v5769_v53 = vshrl.u32 %v18400_v17, %v5768_v9  ;;  %v5781_v24 = vor.u32 %v5780_v10, %v5779_v54  ;;  %vm5785_vm8 = vcmp.lt.s32.totalorder %v5766_v34, 1 }
 0x556   : > { %v5715_v46 = vsub.s32 0, %v16123_v30  ;;  %v5622_v35 = vadd.s32 127, %v5621_v19  ;;  %v5778_v6 = vor.u32 %v5777_v13, %v5776_v4  ;;  %v5783_v61 = vshrl.u32 %v18482_v12, %v5768_v9 }
 0x557   : > { %vm5788_vm10 = vcmp.lt.s32.totalorder %v5766_v34, 4  ;;  %v16135_v43 = vpop.eup %8337  ;;  %vm5786_vm0 = vcmp.lt.s32.totalorder %v5766_v34, 2  ;;  %vm5787_vm2 = vcmp.lt.s32.totalorder %v5766_v34, 3  ;;  %v5801_v15 = vshll.u32 %v5761_v28, 8 }
 0x558   : > { %v7768_v33 = vmin.u32 %v5715_v46, %v16123_v30  ;;  %v16138_v50 = vpop.eup %8339  ;;  %v18713_v48 = vand.u32 2147483647, %v15604_v42  ;;  %v5784_v19 = vor.u32 %v5783_v61, %v5782_v2  ;;  %v5790_v54 = vsel %vm5788_vm10, %v5778_v6, 2102212464 }
 0x559   : > { %v5793_v9 = vsel %vm5785_vm8, %v5772_v3, %v5775_v32  ;;  %v5794_v5 = vsel %vm5788_vm10, %v5781_v24, 920167782  ;;  %v5619_v4 = vshrl.u32 %v5601_v52, %v5617_v11  ;;  %v5789_v10 = vsel %vm5785_vm8, %v5769_v53, %v5772_v3 }
 0x55a   : > { %vm16142_vm9 = vcmp.le.f32.partialorder %v18713_v48, 0.7853982  ;;  %v5717_v13 = vclz %v7768_v33  ;;  %v5860_v28 = vand.u32 2139095040, %v16132_v49  ;;  %vm5332_vm13 = vcmp.eq.s32.totalorder %v16060_v60, 2 }
 0x55b   : > { %v5791_v46 = vsel %vm5787_vm2, %v5775_v32, %v5790_v54  ;;  %v5795_v48 = vsel %vm5787_vm2, %v5778_v6, %v5794_v5  ;;  %v5797_v2 = vsel %vm5785_vm8, %v5775_v32, %v5778_v6  ;;  %v5798_v61 = vsel %vm5788_vm10, %v5784_v19, 1326507024 }
 0x55c   : > { %v5623_v41 = vshll.u32 %v5622_v35, 23  ;;  %v7769_v56 = vadd.s32 4294967294, %v5717_v13  ;;  %v5796_v44 = vsel %vm5786_vm0, %v5793_v9, %v5795_v48  ;;  %v5799_v52 = vsel %vm5787_vm2, %v5781_v24, %v5798_v61 }
 0x55d   : > { %v5520_v11 = vor.u32 4788187, %v5519_v59  ;;  %v5800_v3 = vsel %vm5786_vm0, %v5797_v2, %v5799_v52  ;;  %v16159_v53 = vmul.u32.u64.low %v5801_v15, %v5796_v44  ;;  %v16160_v33 = vmul.u32.u64.high %v5801_v15, %v5796_v44, %v16159_v53 }
 0x55e   : > { %v5792_v54 = vsel %vm5786_vm0, %v5789_v10, %v5791_v46  ;;  %v16164_v5 = vmul.u32.u64.low %v5801_v15, %v5800_v3  ;;  %v16165_v32 = vmul.u32.u64.high %v5801_v15, %v5800_v3, %v16164_v5  ;;  %v5861_v6 = vshrl.u32 %v5860_v28, 23  ;;  %v16191_v10 = vld [vmem:[%s8726_s8 + $0x188] sm:$0xff] }
 0x55f   : > { %v16171_v35 = vsel %vm5224_vm5, %v16093_v38, %v16071_v14  ;;  %v18716_v24 = vxor.u32 2147483648, %v16086_v26  ;;  %v18717_v34 = vsub.s32 4, %v15910_v18  ;;  %vm5547_vm12 = vcmp.lt.s32.totalorder %v15720_v58, 0 }
 0x560   : > { %v5620_v19 = vor.u32 %v5619_v4, %v5618_v7  ;;  %v5624_v9 = vor.u32 4788187, %v5623_v41  ;;  %vm7770_vm3 = vcmp.lt.s32.totalorder %v7769_v56, 0  ;;  %v7775_v22 = vadd.s32 4294967169, %v5861_v6 }
 0x561   : > { %v5422_v44 = vsel %vm5339_vm1, %v18716_v24, %v16086_v26  ;;  %v5528_v59 = vsel %vm5443_vm15, %v18717_v34, %v15910_v18  ;;  %v5333_v14 = vxor.u32 2147483648, %v16135_v43  ;;  %v18718_v38 = vsel %vm16042_vm4, 0, %v16076_v16 }
 0x562   : > { %v5430_v63 = vadd.s32 3, %v18718_v38  ;;  %v5808_v26 = vmul.u32 %v5801_v15, %v5792_v54  ;;  %v5811_v13 = vadd.s32 1, %v16160_v33  ;;  %v5425_v18 = vsel %vm16042_vm4, %v16191_v10, %v5422_v44 }
 0x563   : > { %v5521_v7 = vand.u32 2147483647, %v5520_v11  ;;  %v5523_v41 = vcvt.s32.f32 %v16109_v23  ;;  %v5530_v4 = vsel %vm16142_vm9, 0, %v5528_v59  ;;  %v5631_v28 = vsub.s32 4, %v16002_v21 }
 0x564   : > { %v16200_v46 = vsel %vm7770_vm3, 0, %v7769_v56  ;;  %vm5810_vm1 = vc.u32 %v16165_v32, %v16159_v53  ;;  %v5867_v16 = vadd.s32 1, %v7775_v22  ;;  %v5625_v15 = vand.u32 2147483647, %v5624_v9 }
 0x565   : > { %v5627_v48 = vcvt.s32.f32 %v5620_v19  ;;  %v5812_v2 = vsel %vm5810_vm1, %v5811_v13, %v16160_v33  ;;  %v18312_v1 = vand.u32 2147483647, %v16132_v49  ;;  %v16207_v23 = vand.u32 3, %v5430_v63 }
 0x566   : > { %v5813_v52 = vadd.s32 %v5812_v2, %v5808_v26  ;;  %vm5868_vm4 = vcmp.gt.s32.totalorder %v5867_v16, 0  ;;  %v16212_v56 = vsel %vm5332_vm13, %v5333_v14, %v16138_v50  ;;  %v16214_v11 = vadd.s32 3, %v5530_v4 }
 0x567   : > { %v5725_v3 = vsub.s32 4294967266, %v16200_v46  ;;  %v5869_v54 = vsel %vm5868_vm4, %v5867_v16, 0  ;;  %8341 = vcosq.f32 %v5425_v18  ;;  %v16217_v33 = vmul.f32 %v5523_v41, %v5521_v7 }
 0x568   : > { %v18719_v5 = vand.u32 2147483647, %v15720_v58  ;;  %v5814_v24 = vadd.s32 536870912, %v5813_v52  ;;  %v5871_v44 = vand.u32 31, %v5869_v54  ;;  %v16225_v34 = vmul.f32 %v5627_v48, %v5625_v15 }
 0x569   : > { %v16230_v59 = vsel %vm5547_vm12, %v5631_v28, %v16002_v21  ;;  %v5705_v19 = vadd.s32 %v16050_v55, %v16057_v45  ;;  %v5864_v9 = vand.u32 8388607, %v18312_v1  ;;  %vm5329_vm11 = vcmp.eq.s32.totalorder %v16060_v60, 0  ;;  %v16245_v55 = vld [vmem:[%s8726_s8 + $0x1b8] sm:$0xff] }
 0x56a   : > { %vm16221_vm6 = vcmp.le.f32.partialorder %v18719_v5, 0.7853982  ;;  %v5721_v22 = vsub.s32 32, %v16200_v46  ;;  %v5722_v14 = vshll.u32 %v16123_v30, %v16200_v46  ;;  %v16240_v38 = vshrl.u32 %v5814_v24, 30 }
 0x56b   : > { %v5872_v63 = vsub.s32 32, %v5871_v44  ;;  %v5726_v26 = vadd.s32 127, %v5725_v3  ;;  %v5870_v13 = vshrl.u32 %v5869_v54, 5  ;;  %v5874_v21 = vshll.u32 %v18400_v17, %v5871_v44 }
 0x56c   : > { %v5877_v7 = vshll.u32 %v18380_v27, %v5871_v44  ;;  %v5816_v45 = vshll.u32 %v16240_v38, 30  ;;  %v5880_v4 = vshll.u32 %v18483_v36, %v5871_v44  ;;  %v5883_v28 = vshll.u32 %v18395_v25, %v5871_v44 }
 0x56d   : > { %v5875_v41 = vshrl.u32 %v18380_v27, %v5872_v63  ;;  %v5878_v30 = vshrl.u32 %v18483_v36, %v5872_v63  ;;  %v5881_v46 = vshrl.u32 %v18395_v25, %v5872_v63  ;;  %v5884_v16 = vshrl.u32 %v18396_v8, %v5872_v63 }
 0x56e   : > { %v5886_v15 = vshll.u32 %v18396_v8, %v5871_v44  ;;  %v5723_v48 = vshrl.u32 %v5705_v19, %v5721_v22  ;;  %v16255_v2 = vsub.s32 %v5813_v52, %v5816_v45  ;;  %v5865_v3 = vor.u32 8388608, %v5864_v9 }
 0x56f   : > { %v5887_v54 = vshrl.u32 %v18482_v12, %v5872_v63  ;;  %vm5221_vm7 = vweird.f32 %v15979_v51  ;;  %8343 = vsinq.f32 %v5425_v18  ;;  %v5525_v5 = vxor.u32 2147483648, %v16217_v33 }
 0x570   : > { %v5727_v24 = vshll.u32 %v5726_v26, 23  ;;  %v5964_v1 = vand.u32 2139095040, %v16245_v55  ;;  %vm5328_vm14 = vcmp.lt.s32.totalorder %v16060_v60, 2  ;;  %v5819_v61 = vsub.s32 0, %v16255_v2 }
 0x571   : > { %v5876_v39 = vor.u32 %v5875_v41, %v5874_v21  ;;  %v5879_v44 = vor.u32 %v5878_v30, %v5877_v7  ;;  %v5882_v19 = vor.u32 %v5881_v46, %v5880_v4  ;;  %v5634_v52 = vsel %vm16221_vm6, 0, %v16230_v59  ;;  %v16266_v18 = vpop.eup %8341 }
 0x572   : > { %v5885_v9 = vor.u32 %v5884_v16, %v5883_v28  ;;  %v5888_v22 = vor.u32 %v5887_v54, %v5886_v15  ;;  %vm5889_vm5 = vcmp.lt.s32.totalorder %v5870_v13, 1  ;;  %v5629_v26 = vxor.u32 2147483648, %v16225_v34 }
 0x573   : > { %v5724_v45 = vor.u32 %v5723_v48, %v5722_v14  ;;  %v5873_v37 = vshrl.u32 %v18400_v17, %v5872_v63  ;;  %v5905_v40 = vshll.u32 %v5865_v3, 8  ;;  %v7772_v57 = vmin.u32 %v5819_v61, %v16255_v2 }
 0x574   : > { %vm5891_vm8 = vcmp.lt.s32.totalorder %v5870_v13, 3  ;;  %vm5892_vm10 = vcmp.lt.s32.totalorder %v5870_v13, 4  ;;  %v5965_v21 = vshrl.u32 %v5964_v1, 23  ;;  %v5728_v7 = vor.u32 4788187, %v5727_v24 }
 0x575   : > { %vm5890_vm0 = vcmp.lt.s32.totalorder %v5870_v13, 2  ;;  %v5897_v59 = vsel %vm5889_vm5, %v5876_v39, %v5879_v44  ;;  %v5901_v41 = vsel %vm5889_vm5, %v5879_v44, %v5882_v19  ;;  %v18722_v4 = vxor.u32 2147483648, %v16138_v50 }
 0x576   : > { %v5894_v28 = vsel %vm5892_vm10, %v5882_v19, 2102212464  ;;  %v5898_v63 = vsel %vm5892_vm10, %v5885_v9, 920167782  ;;  %v5902_v30 = vsel %vm5892_vm10, %v5888_v22, 1326507024  ;;  %v5893_v61 = vsel %vm5889_vm5, %v5873_v37, %v5876_v39 }
 0x577   : > { %v5331_v14 = vsel %vm5329_vm11, %v16135_v43, %v18722_v4  ;;  %v5895_v46 = vsel %vm5891_vm8, %v5879_v44, %v5894_v28  ;;  %v5899_v16 = vsel %vm5891_vm8, %v5882_v19, %v5898_v63  ;;  %v5903_v1 = vsel %vm5891_vm8, %v5885_v9, %v5902_v30  ;;  %v16314_v9 = vld [vmem:[%s8726_s8 + $0x190] sm:$0xff] }
 0x578   : > { %v5821_v15 = vclz %v7772_v57  ;;  %v5900_v48 = vsel %vm5890_vm0, %v5897_v59, %v5899_v16  ;;  %v5904_v3 = vsel %vm5890_vm0, %v5901_v41, %v5903_v1  ;;  %v7779_v54 = vadd.s32 4294967169, %v5965_v21 }
 0x579   : > { %v5526_v50 = vsel %vm5443_vm15, %v5525_v5, %v16217_v33  ;;  %v5731_v43 = vcvt.s32.f32 %v5724_v45  ;;  %v16284_v24 = vmul.u32.u64.low %v5905_v40, %v5904_v3  ;;  %v16285_v4 = vmul.u32.u64.high %v5905_v40, %v5904_v3, %v16284_v24  ;;  %v16287_v22 = vpop.eup %8343 }
 0x57a   : > { %v5729_v37 = vand.u32 2147483647, %v5728_v7  ;;  %v5896_v39 = vsel %vm5890_vm0, %v5893_v61, %v5895_v46  ;;  %v16290_v57 = vmul.u32.u64.low %v5905_v40, %v5900_v48  ;;  %v16291_v44 = vmul.u32.u64.high %v5905_v40, %v5900_v48, %v16290_v57 }
 0x57b   : > { %v16297_v19 = vsel %vm5221_vm7, nan, %v16171_v35  ;;  %vm5436_vm15 = vcmp.eq.s32.totalorder %v16207_v23, 2  ;;  %v5437_v42 = vxor.u32 2147483648, %v16266_v18  ;;  %v5971_v33 = vadd.s32 1, %v7779_v54 }
 0x57c   : > { %v16304_v5 = vsel %vm5328_vm14, %v5331_v14, %v16212_v56  ;;  %v16307_v13 = vand.u32 3, %v16214_v11  ;;  %v5630_v51 = vsel %vm5547_vm12, %v5629_v26, %v16225_v34  ;;  %vm5651_vm2 = vcmp.lt.s32.totalorder %v15915_v29, 0 }
 0x57d   : > { %v7773_v35 = vadd.s32 4294967294, %v5821_v15  ;;  %v5529_v45 = vsel %vm16142_vm9, %v16314_v9, %v5526_v50  ;;  %v5638_v60 = vadd.s32 3, %v5634_v52  ;;  %v5912_v56 = vmul.u32 %v5905_v40, %v5896_v39 }
 0x57e   : > { %v18314_v21 = vand.u32 2147483647, %v16245_v55  ;;  %v5732_v7 = vmul.f32 %v5731_v43, %v5729_v37  ;;  %vm5914_vm13 = vc.u32 %v16285_v4, %v16290_v57  ;;  %v5915_v58 = vadd.s32 1, %v16291_v44 }
 0x57f   : > { %vm5972_vm12 = vcmp.gt.s32.totalorder %v5971_v33, 0  ;;  %v5434_v11 = vxor.u32 2147483648, %v16287_v22  ;;  %v16327_v34 = vsel %vm5436_vm15, %v5437_v42, %v16287_v22  ;;  %v5633_v40 = vsel %vm16221_vm6, %v16330_v47, %v5630_v51 }
 0x580   : > { %v18723_v52 = vand.u32 2147483647, %v15915_v29  ;;  %v5973_v59 = vsel %vm5972_vm12, %v5971_v33, 0  ;;  %8345 = vcosq.f32 %v5529_v45  ;;  %vm7774_vm3 = vcmp.lt.s32.totalorder %v7773_v35, 0 }
 0x581   : > { %v5916_v41 = vsel %vm5914_vm13, %v5915_v58, %v16291_v44  ;;  %v5975_v14 = vand.u32 31, %v5973_v59  ;;  %8347 = vsinq.f32 %v5529_v45  ;;  %v16342_v28 = vand.u32 3, %v5638_v60 }
 0x582   : > { %vm16337_vm9 = vcmp.le.f32.partialorder %v18723_v52, 0.7853982  ;;  %v5735_v63 = vsub.s32 4, %v16105_v20  ;;  %v5917_v30 = vadd.s32 %v5916_v41, %v5912_v56  ;;  %8349 = vcosq.f32 %v5633_v40  ;;  %v16373_v41 = vld [vmem:[%s8726_s8 + $0x1c0] sm:$0xff] }
 0x583   : > { %v5733_v6 = vxor.u32 2147483648, %v5732_v7  ;;  %v5968_v61 = vand.u32 8388607, %v18314_v21  ;;  %v5976_v46 = vsub.s32 32, %v5975_v14  ;;  %v16347_v16 = vsel %vm7774_vm3, 0, %v7773_v35 }
 0x584   : > { %v5918_v1 = vadd.s32 536870912, %v5917_v30  ;;  %v16349_v15 = vshrl.u32 %v5973_v59, 5  ;;  %v5978_v48 = vshll.u32 %v18400_v17, %v5975_v14  ;;  %v5981_v54 = vshll.u32 %v18380_v27, %v5975_v14 }
 0x585   : > { %v5979_v3 = vshrl.u32 %v18380_v27, %v5976_v46  ;;  %v5982_v50 = vshrl.u32 %v18483_v36, %v5976_v46  ;;  %v5987_v43 = vshll.u32 %v18395_v25, %v5975_v14  ;;  %v5984_v37 = vshll.u32 %v18483_v36, %v5975_v14 }
 0x586   : > { %v16356_v24 = vshrl.u32 %v5918_v1, 30  ;;  %v5985_v39 = vshrl.u32 %v18395_v25, %v5976_v46  ;;  %v5988_v44 = vshrl.u32 %v18396_v8, %v5976_v46  ;;  %vm5433_vm1 = vcmp.eq.s32.totalorder %v16207_v23, 0 }
 0x587   : > { %8351 = vsinq.f32 %v5633_v40  ;;  %v5736_v42 = vsel %vm5651_vm2, %v5735_v63, %v16105_v20  ;;  %v5990_v33 = vshll.u32 %v18396_v8, %v5975_v14  ;;  %v5991_v51 = vshrl.u32 %v18482_v12, %v5976_v46 }
 0x588   : > { %v5734_v35 = vsel %vm5651_vm2, %v5733_v6, %v5732_v7  ;;  %v5829_v45 = vsub.s32 4294967266, %v16347_v16  ;;  %v5920_v60 = vshll.u32 %v16356_v24, 30  ;;  %v5969_v56 = vor.u32 8388608, %v5968_v61 }
 0x589   : > { %v5977_v58 = vshrl.u32 %v18400_v17, %v5976_v46  ;;  %v5980_v52 = vor.u32 %v5979_v3, %v5978_v48  ;;  %v5983_v40 = vor.u32 %v5982_v50, %v5981_v54  ;;  %v5989_v59 = vor.u32 %v5988_v44, %v5987_v43 }
 0x58a   : > { %v16375_v20 = vsub.s32 %v5917_v30, %v5920_v60  ;;  %v5986_v14 = vor.u32 %v5985_v39, %v5984_v37  ;;  %vm5993_vm4 = vcmp.lt.s32.totalorder %v16349_v15, 1  ;;  %vm5996_vm6 = vcmp.lt.s32.totalorder %v16349_v15, 4  ;;  %v16379_v7 = vpop.eup %8345 }
 0x58b   : > { %v5737_v63 = vsel %vm16337_vm9, %v15915_v29, %v5734_v35  ;;  %v5809_v6 = vadd.s32 %v16159_v53, %v16165_v32  ;;  %v5992_v61 = vor.u32 %v5991_v51, %v5990_v33  ;;  %vm5995_vm11 = vcmp.lt.s32.totalorder %v16349_v15, 3  ;;  %v16387_v46 = vpop.eup %8347 }
 0x58c   : > { %v5825_v30 = vsub.s32 32, %v16347_v16  ;;  %v5830_v1 = vadd.s32 127, %v5829_v45  ;;  %vm5994_vm7 = vcmp.lt.s32.totalorder %v16349_v15, 2  ;;  %v5998_v48 = vsel %vm5996_vm6, %v5986_v14, 2102212464  ;;  %v16393_v3 = vpop.eup %8349 }
 0x58d   : > { %v6001_v29 = vsel %vm5993_vm4, %v5980_v52, %v5983_v40  ;;  %v6002_v53 = vsel %vm5996_vm6, %v5989_v59, 920167782  ;;  %v6009_v32 = vshll.u32 %v5969_v56, 8  ;;  %v6068_v54 = vand.u32 2139095040, %v16373_v41 }
 0x58e   : > { %8353 = vcosq.f32 %v5737_v63  ;;  %v5923_v50 = vsub.s32 0, %v16375_v20  ;;  %v5997_v43 = vsel %vm5993_vm4, %v5977_v58, %v5980_v52  ;;  %v6003_v37 = vsel %vm5995_vm11, %v5986_v14, %v6002_v53 }
 0x58f   : > { %vm5325_vm14 = vweird.f32 %v16081_v62  ;;  %vm5432_vm5 = vcmp.lt.s32.totalorder %v16207_v23, 2  ;;  %vm5755_vm8 = vcmp.lt.s32.totalorder %v16009_v0, 0  ;;  %v5999_v39 = vsel %vm5995_vm11, %v5983_v40, %v5998_v48 }
 0x590   : > { %v6004_v44 = vsel %vm5994_vm7, %v6001_v29, %v6003_v37  ;;  %v6005_v33 = vsel %vm5993_vm4, %v5983_v40, %v5986_v14  ;;  %v6006_v51 = vsel %vm5996_vm6, %v5992_v61, 1326507024  ;;  %vm5537_vm10 = vcmp.eq.s32.totalorder %v16307_v13, 0 }
 0x591   : > { %vm5540_vm0 = vcmp.eq.s32.totalorder %v16307_v13, 2  ;;  %v5738_v35 = vsel %vm16337_vm9, 0, %v5736_v42  ;;  %v5826_v45 = vshll.u32 %v16255_v2, %v16347_v16  ;;  %v5827_v60 = vshrl.u32 %v5809_v6, %v5825_v30  ;;  %v8352_v58 = vpop.eup %8351 }
 0x592   : > { %v5831_v56 = vshll.u32 %v5830_v1, 23  ;;  %v6007_v52 = vsel %vm5995_vm11, %v5989_v59, %v6006_v51  ;;  %v16424_v40 = vmul.u32.u64.low %v6009_v32, %v6004_v44  ;;  %v16425_v14 = vmul.u32.u64.high %v6009_v32, %v6004_v44, %v16424_v40 }
 0x593   : > { %v6069_v61 = vshrl.u32 %v6068_v54, 23  ;;  %v5435_v26 = vsel %vm5433_vm1, %v16266_v18, %v5434_v11  ;;  %v7776_v42 = vmin.u32 %v5923_v50, %v16375_v20  ;;  %v6000_v2 = vsel %vm5994_vm7, %v5997_v43, %v5999_v39 }
 0x594   : > { %v6008_v16 = vsel %vm5994_vm7, %v6005_v33, %v6007_v52  ;;  %v5742_v59 = vadd.s32 3, %v5738_v35  ;;  %vm5641_vm15 = vcmp.eq.s32.totalorder %v16342_v28, 0  ;;  %8355 = vsinq.f32 %v5737_v63 }
 0x595   : > { %v16438_v6 = vmul.u32.u64.low %v6009_v32, %v6008_v16  ;;  %v16439_v30 = vmul.u32.u64.high %v6009_v32, %v6008_v16, %v16438_v6  ;;  %v7783_v1 = vadd.s32 4294967169, %v6069_v61  ;;  %v5828_v22 = vor.u32 %v5827_v60, %v5826_v45 }
 0x596   : > { %v5839_v48 = vsub.s32 4, %v16240_v38  ;;  %v5832_v18 = vor.u32 4788187, %v5831_v56  ;;  %v6016_v11 = vmul.u32 %v6009_v32, %v6000_v2  ;;  %v6019_v29 = vadd.s32 1, %v16425_v14 }
 0x597   : > { %v6075_v53 = vadd.s32 1, %v7783_v1  ;;  %v5538_v54 = vxor.u32 2147483648, %v16387_v46  ;;  %v5541_v15 = vxor.u32 2147483648, %v16379_v7  ;;  %vm5644_vm2 = vcmp.eq.s32.totalorder %v16342_v28, 2 }
 0x598   : > { %v5925_v50 = vclz %v7776_v42  ;;  %v5645_v43 = vxor.u32 2147483648, %v16393_v3  ;;  %v16448_v37 = vand.u32 3, %v5742_v59  ;;  %vm6018_vm13 = vc.u32 %v16439_v30, %v16424_v40  ;;  %v16452_v63 = vpop.eup %8353  ;;  %v16478_v42 = vld [vmem:[%s8726_s8 + $0x1c8] sm:$0xff] }
 0x599   : > { %vm6076_vm12 = vcmp.gt.s32.totalorder %v6075_v53, 0  ;;  %v5642_v32 = vxor.u32 2147483648, %v8352_v58  ;;  %v16457_v39 = vsel %vm5755_vm8, %v5839_v48, %v16240_v38  ;;  %v6020_v44 = vsel %vm6018_vm13, %v6019_v29, %v16425_v14 }
 0x59a   : > { %v18313_v33 = vand.u32 2147483647, %v16373_v41  ;;  %v5833_v51 = vand.u32 2147483647, %v5832_v18  ;;  %v5835_v35 = vcvt.s32.f32 %v5828_v22  ;;  %v6021_v45 = vadd.s32 %v6020_v44, %v6016_v11 }
 0x59b   : > { %v6077_v60 = vsel %vm6076_vm12, %v6075_v53, 0  ;;  %v16464_v56 = vsel %vm5325_vm14, nan, %v16304_v5  ;;  %v16469_v52 = vsel %vm5432_vm5, %v5435_v26, %v16327_v34  ;;  %v18727_v38 = vand.u32 2147483647, %v16009_v0 }
 0x59c   : > { %18726 = vst [vmem:[#allocation57_spill] sm:$0xff] %v16464_v56  ;;  %v7777_v61 = vadd.s32 4294967294, %v5925_v50  ;;  %v16483_v62 = vsel %vm5537_vm10, %v16379_v7, %v5538_v54  ;;  %v16488_v23 = vsel %vm5540_vm0, %v5541_v15, %v16387_v46  ;;  %v6022_v5 = vadd.s32 536870912, %v6021_v45 }
 0x59d   : > { %vm16473_vm9 = vcmp.le.f32.partialorder %v18727_v38, 0.7853982  ;;  %v6079_v34 = vand.u32 31, %v6077_v60  ;;  %v16493_v26 = vsel %vm5641_vm15, %v16393_v3, %v5642_v32  ;;  %v16497_v2 = vsel %vm5644_vm2, %v5645_v43, %v8352_v58 }
 0x59e   : > { %vm5748_vm3 = vcmp.eq.s32.totalorder %v16448_v37, 2  ;;  %v5749_v7 = vxor.u32 2147483648, %v16452_v63  ;;  %v16504_v16 = vmul.f32 %v5835_v35, %v5833_v51  ;;  %v16506_v59 = vshrl.u32 %v6022_v5, 30  ;;  %v8356_v1 = vpop.eup %8355 }
 0x59f   : > { %v6072_v3 = vand.u32 8388607, %v18313_v33  ;;  %v6080_v6 = vsub.s32 32, %v6079_v34  ;;  %vm5745_vm1 = vcmp.eq.s32.totalorder %v16448_v37, 0  ;;  %vm7778_vm4 = vcmp.lt.s32.totalorder %v7777_v61, 0 }
 0x5a0   : > { %v6082_v58 = vshll.u32 %v18400_v17, %v6079_v34  ;;  %v6085_v22 = vshll.u32 %v18380_v27, %v6079_v34  ;;  %v6172_v48 = vand.u32 2139095040, %v16478_v42  ;;  %v6024_v18 = vshll.u32 %v16506_v59, 30 }
 0x5a1   : > { %v6078_v11 = vshrl.u32 %v6077_v60, 5  ;;  %v6083_v29 = vshrl.u32 %v18380_v27, %v6080_v6  ;;  %v6091_v53 = vshll.u32 %v18395_v25, %v6079_v34  ;;  %v6086_v54 = vshrl.u32 %v18483_v36, %v6080_v6 }
 0x5a2   : > { %v6088_v15 = vshll.u32 %v18483_v36, %v6079_v34  ;;  %v6089_v50 = vshrl.u32 %v18395_v25, %v6080_v6  ;;  %v6092_v43 = vshrl.u32 %v18396_v8, %v6080_v6  ;;  %v16521_v32 = vsub.s32 %v6021_v45, %v6024_v18 }
 0x5a3   : > { %v6073_v44 = vor.u32 8388608, %v6072_v3  ;;  %v6094_v51 = vshll.u32 %v18396_v8, %v6079_v34  ;;  %v6095_v35 = vshrl.u32 %v18482_v12, %v6080_v6  ;;  %vm5536_vm6 = vcmp.lt.s32.totalorder %v16307_v13, 2 }
 0x5a4   : > { %vm5640_vm11 = vcmp.lt.s32.totalorder %v16342_v28, 2  ;;  %v5746_v60 = vxor.u32 2147483648, %v8356_v1  ;;  %vm5859_vm7 = vcmp.lt.s32.totalorder %v16132_v49, 0  ;;  %v16530_v38 = vadd.s32 %v16290_v57, %v16285_v4 }
 0x5a5   : > { %v6084_v5 = vor.u32 %v6083_v29, %v6082_v58  ;;  %v6087_v33 = vor.u32 %v6086_v54, %v6085_v22  ;;  %v5837_v45 = vxor.u32 2147483648, %v16504_v16  ;;  %v6093_v3 = vor.u32 %v6092_v43, %v6091_v53 }
 0x5a6   : > { %vm6097_vm14 = vcmp.lt.s32.totalorder %v6078_v11, 1  ;;  %v6173_v34 = vshrl.u32 %v6172_v48, 23  ;;  %vm5744_vm5 = vcmp.lt.s32.totalorder %v16448_v37, 2  ;;  %v16535_v18 = vsel %vm7778_vm4, 0, %v7777_v61 }
 0x5a7   : > { %v6081_v21 = vshrl.u32 %v18400_v17, %v6080_v6  ;;  %v6090_v46 = vor.u32 %v6089_v50, %v6088_v15  ;;  %vm6100_vm10 = vcmp.lt.s32.totalorder %v6078_v11, 4  ;;  %v6027_v56 = vsub.s32 0, %v16521_v32  ;;  %v8456_v50 = vld [vmem:[%s8726_s8 + $0x1a0] sm:$0xff] }
 0x5a8   : > { %v6096_v4 = vor.u32 %v6095_v35, %v6094_v51  ;;  %vm6099_vm0 = vcmp.lt.s32.totalorder %v6078_v11, 3  ;;  %v6113_v57 = vshll.u32 %v6073_v44, 8  ;;  %v18730_v58 = vand.u32 2147483647, %v16132_v49 }
 0x5a9   : > { %vm6098_vm13 = vcmp.lt.s32.totalorder %v6078_v11, 2  ;;  %v6102_v61 = vsel %vm6100_vm10, %v6090_v46, 2102212464  ;;  %v6105_v6 = vsel %vm6097_vm14, %v6084_v5, %v6087_v33  ;;  %v6106_v48 = vsel %vm6100_vm10, %v6093_v3, 920167782 }
 0x5aa   : > { %vm16542_vm2 = vcmp.le.f32.partialorder %v18730_v58, 0.7853982  ;;  %vm5533_vm12 = vweird.f32 %v16314_v9  ;;  %vm5637_vm4 = vweird.f32 %v16330_v47  ;;  %v5750_v29 = vsel %vm5748_vm3, %v5749_v7, %v8356_v1 }
 0x5ab   : > { %v5933_v53 = vsub.s32 4294967266, %v16535_v18  ;;  %v5943_v54 = vsub.s32 4, %v16356_v24  ;;  %v7787_v15 = vadd.s32 4294967169, %v6173_v34  ;;  %vm5741_vm15 = vweird.f32 %v8456_v50 }
 0x5ac   : > { %v6101_v43 = vsel %vm6097_vm14, %v6081_v21, %v6084_v5  ;;  %v6103_v44 = vsel %vm6099_vm0, %v6087_v33, %v6102_v61  ;;  %v6107_v51 = vsel %vm6099_vm0, %v6090_v46, %v6106_v48  ;;  %v6109_v35 = vsel %vm6097_vm14, %v6087_v33, %v6090_v46 }
 0x5ad   : > { %v5747_v58 = vsel %vm5745_vm1, %v16452_v63, %v5746_v60  ;;  %v7780_v7 = vmin.u32 %v6027_v56, %v16521_v32  ;;  %v6108_v1 = vsel %vm6098_vm13, %v6105_v6, %v6107_v51  ;;  %v6110_v34 = vsel %vm6100_vm10, %v6096_v4, 1326507024 }
 0x5ae   : > { %v5838_v21 = vsel %vm5755_vm8, %v5837_v45, %v16504_v16  ;;  %v6111_v5 = vsel %vm6099_vm0, %v6093_v3, %v6110_v34  ;;  %v16570_v61 = vmul.u32.u64.low %v6113_v57, %v6108_v1  ;;  %v16571_v48 = vmul.u32.u64.high %v6113_v57, %v6108_v1, %v16570_v61 }
 0x5af   : > { %v5944_v63 = vsel %vm5859_vm7, %v5943_v54, %v16356_v24  ;;  %v6104_v33 = vsel %vm6098_vm13, %v6101_v43, %v6103_v44  ;;  %v6112_v56 = vsel %vm6098_vm13, %v6109_v35, %v6111_v5  ;;  %v6179_v46 = vadd.s32 1, %v7787_v15 }
 0x5b0   : > { %v5929_v60 = vsub.s32 32, %v16535_v18  ;;  %v5934_v4 = vadd.s32 127, %v5933_v53  ;;  %v16580_v6 = vmul.u32.u64.low %v6113_v57, %v6112_v56  ;;  %v16581_v16 = vmul.u32.u64.high %v6113_v57, %v6112_v56, %v16580_v6 }
 0x5b1   : > { %v5543_v45 = vsel %vm5536_vm6, %v16483_v62, %v16488_v23  ;;  %v5647_v24 = vsel %vm5640_vm11, %v16493_v26, %v16497_v2  ;;  %v6029_v3 = vclz %v7780_v7  ;;  %vm6180_vm8 = vcmp.gt.s32.totalorder %v6179_v46, 0 }
 0x5b2   : > { %v18733_v11 = vsel %vm16473_vm9, 0, %v16457_v39  ;;  %v6120_v54 = vmul.u32 %v6113_v57, %v6104_v33  ;;  %v6123_v15 = vadd.s32 1, %v16571_v48  ;;  %v6181_v43 = vsel %vm6180_vm8, %v6179_v46, 0 }
 0x5b3   : > { %v5846_v53 = vadd.s32 3, %v18733_v11  ;;  %v5751_v13 = vsel %vm5744_vm5, %v5747_v58, %v5750_v29  ;;  %v5841_v62 = vsel %vm16473_vm9, %v16009_v0, %v5838_v21  ;;  %v5946_v28 = vsel %vm16542_vm2, 0, %v5944_v63 }
 0x5b4   : > { %v6183_v23 = vand.u32 31, %v6181_v43  ;;  %v5930_v26 = vshll.u32 %v16375_v20, %v16535_v18  ;;  %v5931_v39 = vshrl.u32 %v16530_v38, %v5929_v60  ;;  %v5935_v2 = vshll.u32 %v5934_v4, 23 }
 0x5b5   : > { %vm6122_vm3 = vc.u32 %v16581_v16, %v16570_v61  ;;  %vm18734_vm1 = vweird.f32 %v16191_v10  ;;  %v7781_v14 = vadd.s32 4294967294, %v6029_v3  ;;  %v6169_v57 = vand.u32 2147483647, %v16478_v42 }
 0x5b6   : > { %v16611_v37 = vsel %vm18734_vm1, nan, %v16469_v52  ;;  %v6124_v0 = vsel %vm6122_vm3, %v6123_v15, %v16571_v48  ;;  %v16617_v29 = vsel %vm5533_vm12, nan, %v5543_v45  ;;  %v16621_v20 = vsel %vm5637_vm4, nan, %v5647_v24 }
 0x5b7   : > { %v6125_v38 = vadd.s32 %v6124_v0, %v6120_v54  ;;  %v6184_v18 = vsub.s32 32, %v6183_v23  ;;  %v16624_v44 = vsel %vm5741_vm15, nan, %v5751_v13  ;;  %8357 = vcosq.f32 %v5841_v62 }
 0x5b8   : > { %v16626_v10 = vand.u32 3, %v5846_v53  ;;  %v16628_v52 = vadd.s32 3, %v5946_v28  ;;  %8359 = vsinq.f32 %v5841_v62  ;;  %v5932_v51 = vor.u32 %v5931_v39, %v5930_v26 }
 0x5b9   : > { %v5936_v35 = vor.u32 4788187, %v5935_v2  ;;  %v6126_v9 = vadd.s32 536870912, %v6125_v38  ;;  %vm7782_vm9 = vcmp.lt.s32.totalorder %v7781_v14, 0  ;;  %v6176_v47 = vand.u32 8388607, %v6169_v57 }
 0x5ba   : > { %v6182_v58 = vshrl.u32 %v6181_v43, 5  ;;  %v6186_v7 = vshll.u32 %v18400_v17, %v6183_v23  ;;  %v6187_v50 = vshrl.u32 %v18380_v27, %v6184_v18  ;;  %v6189_v34 = vshll.u32 %v18380_v27, %v6183_v23 }
 0x5bb   : > { %v16633_v1 = vshrl.u32 %v6126_v9, 30  ;;  %v6190_v21 = vshrl.u32 %v18483_v36, %v6184_v18  ;;  %v6192_v5 = vshll.u32 %v18483_v36, %v6183_v23  ;;  %v6193_v48 = vshrl.u32 %v18395_v25, %v6184_v18 }
 0x5bc   : > { %v6195_v63 = vshll.u32 %v18395_v25, %v6183_v23  ;;  %v6196_v33 = vshrl.u32 %v18396_v8, %v6184_v18  ;;  %v5937_v56 = vand.u32 2147483647, %v5936_v35  ;;  %v5939_v46 = vcvt.s32.f32 %v5932_v51 }
 0x5bd   : > { %v6128_v60 = vshll.u32 %v16633_v1, 30  ;;  %v6198_v4 = vshll.u32 %v18396_v8, %v6183_v23  ;;  %v16645_v6 = vsel %vm7782_vm9, 0, %v7781_v14  ;;  %v6177_v45 = vor.u32 8388608, %v6176_v47 }
 0x5be   : > { %v6197_v24 = vor.u32 %v6196_v33, %v6195_v63  ;;  %v6199_v3 = vshrl.u32 %v18482_v12, %v6184_v18  ;;  %v6185_v53 = vshrl.u32 %v18400_v17, %v6184_v18  ;;  %v6188_v54 = vor.u32 %v6187_v50, %v6186_v7 }
 0x5bf   : > { %v16648_v11 = vsub.s32 %v6125_v38, %v6128_v60  ;;  %v6191_v15 = vor.u32 %v6190_v21, %v6189_v34  ;;  %v6194_v43 = vor.u32 %v6193_v48, %v6192_v5  ;;  %vm6201_vm6 = vcmp.lt.s32.totalorder %v6182_v58, 1  ;;  %v16660_v38 = vld [vmem:[%s8726_s8 + $0x1d0] sm:$0xff] }
 0x5c0   : > { %v6200_v13 = vor.u32 %v6199_v3, %v6198_v4  ;;  %vm6204_vm11 = vcmp.lt.s32.totalorder %v6182_v58, 4  ;;  %v5940_v62 = vmul.f32 %v5939_v46, %v5937_v56  ;;  %v6037_v28 = vsub.s32 4294967266, %v16645_v6 }
 0x5c1   : > { %v6131_v23 = vsub.s32 0, %v16648_v11  ;;  %vm6203_vm14 = vcmp.lt.s32.totalorder %v6182_v58, 3  ;;  %v16653_v26 = vpop.eup %8357  ;;  %vm6202_vm5 = vcmp.lt.s32.totalorder %v6182_v58, 2  ;;  %v6206_v39 = vsel %vm6204_vm11, %v6194_v43, 2102212464 }
 0x5c2   : > { %v6210_v2 = vsel %vm6204_vm11, %v6197_v24, 920167782  ;;  %v6217_v14 = vshll.u32 %v6177_v45, 8  ;;  %v16657_v0 = vpop.eup %8359  ;;  %v6205_v51 = vsel %vm6201_vm6, %v6185_v53, %v6188_v54  ;;  %v6207_v35 = vsel %vm6203_vm14, %v6191_v15, %v6206_v39 }
 0x5c3   : > { %v7784_v18 = vmin.u32 %v6131_v23, %v16648_v11  ;;  %v6209_v9 = vsel %vm6201_vm6, %v6188_v54, %v6191_v15  ;;  %v6017_v47 = vadd.s32 %v16424_v40, %v16439_v30  ;;  %v6211_v7 = vsel %vm6203_vm14, %v6194_v43, %v6210_v2 }
 0x5c4   : > { %v6213_v50 = vsel %vm6201_vm6, %v6191_v15, %v6194_v43  ;;  %v6214_v34 = vsel %vm6204_vm11, %v6200_v13, 1326507024  ;;  %vm5852_vm10 = vcmp.eq.s32.totalorder %v16626_v10, 2  ;;  %v5941_v21 = vxor.u32 2147483648, %v5940_v62 }
 0x5c5   : > { %v6033_v5 = vsub.s32 32, %v16645_v6  ;;  %v6038_v48 = vadd.s32 127, %v6037_v28  ;;  %v6133_v63 = vclz %v7784_v18  ;;  %vm5849_vm0 = vcmp.eq.s32.totalorder %v16626_v10, 0 }
 0x5c6   : > { %v6208_v33 = vsel %vm6202_vm5, %v6205_v51, %v6207_v35  ;;  %v6212_v56 = vsel %vm6202_vm5, %v6209_v9, %v6211_v7  ;;  %v6215_v40 = vsel %vm6203_vm14, %v6197_v24, %v6214_v34  ;;  %v6276_v30 = vand.u32 2139095040, %v16660_v38 }
 0x5c7   : > { %v7785_v46 = vadd.s32 4294967294, %v6133_v63  ;;  %v6216_v60 = vsel %vm6202_vm5, %v6213_v50, %v6215_v40  ;;  %v16679_v4 = vmul.u32.u64.low %v6217_v14, %v6212_v56  ;;  %v16680_v45 = vmul.u32.u64.high %v6217_v14, %v6212_v56, %v16679_v4 }
 0x5c8   : > { %v5853_v3 = vxor.u32 2147483648, %v16653_v26  ;;  %vm5963_vm15 = vcmp.lt.s32.totalorder %v16245_v55, 0  ;;  %v16685_v53 = vmul.u32.u64.low %v6217_v14, %v6216_v60  ;;  %v16686_v54 = vmul.u32.u64.high %v6217_v14, %v6216_v60, %v16685_v53 }
 0x5c9   : > { %v6277_v15 = vshrl.u32 %v6276_v30, 23  ;;  %v5942_v24 = vsel %vm5859_vm7, %v5941_v21, %v5940_v62  ;;  %v6034_v43 = vshll.u32 %v16521_v32, %v16645_v6  ;;  %v6035_v58 = vshrl.u32 %v6017_v47, %v6033_v5 }
 0x5ca   : > { %vm7786_vm13 = vcmp.lt.s32.totalorder %v7785_v46, 0  ;;  %v6039_v13 = vshll.u32 %v6038_v48, 23  ;;  %v6224_v23 = vmul.u32 %v6217_v14, %v6208_v33  ;;  %v6121_v2 = vadd.s32 %v16570_v61, %v16581_v16 }
 0x5cb   : > { %v6136_v28 = vsel %vm7786_vm13, 0, %v7785_v46  ;;  %v7791_v39 = vadd.s32 4294967169, %v6277_v15  ;;  %v6227_v35 = vadd.s32 1, %v16680_v45  ;;  %v5850_v9 = vxor.u32 2147483648, %v16657_v0 }
 0x5cc   : > { %v6137_v18 = vsub.s32 32, %v6136_v28  ;;  %v6141_v51 = vsub.s32 4294967266, %v6136_v28  ;;  %v6047_v62 = vsub.s32 4, %v16506_v59  ;;  %vm6226_vm7 = vc.u32 %v16686_v54, %v16679_v4 }
 0x5cd   : > { %v6283_v32 = vadd.s32 1, %v7791_v39  ;;  %v5945_v6 = vsel %vm16542_vm2, %v16132_v49, %v5942_v24  ;;  %v6036_v14 = vor.u32 %v6035_v58, %v6034_v43  ;;  %v6228_v61 = vsel %vm6226_vm7, %v6227_v35, %v16680_v45  ;;  %v16735_v24 = vld [vmem:[%s8726_s8 + $0x1d8] sm:$0xff] }
 0x5ce   : > { %v6142_v47 = vadd.s32 127, %v6141_v51  ;;  %v6040_v16 = vor.u32 4788187, %v6039_v13  ;;  %v6229_v7 = vadd.s32 %v6228_v61, %v6224_v23  ;;  %v6273_v50 = vand.u32 2147483647, %v16660_v38 }
 0x5cf   : > { %vm6284_vm12 = vcmp.gt.s32.totalorder %v6283_v32, 0  ;;  %v6138_v34 = vshll.u32 %v16648_v11, %v6136_v28  ;;  %v6139_v21 = vshrl.u32 %v6121_v2, %v6137_v18  ;;  %v16708_v63 = vsel %vm5852_vm10, %v5853_v3, %v16657_v0 }
 0x5d0   : > { %v6143_v5 = vshll.u32 %v6142_v47, 23  ;;  %v6285_v48 = vsel %vm6284_vm12, %v6283_v32, 0  ;;  %v16711_v49 = vand.u32 3, %v16628_v52  ;;  %v6230_v22 = vadd.s32 536870912, %v6229_v7 }
 0x5d1   : > { %v6287_v33 = vand.u32 31, %v6285_v48  ;;  %v16716_v56 = vsel %vm5849_vm0, %v16653_v26, %v5850_v9  ;;  %8361 = vcosq.f32 %v5945_v6  ;;  %v18735_v11 = vand.u32 2147483647, %v16245_v55 }
 0x5d2   : > { %v6043_v0 = vcvt.s32.f32 %v6036_v14  ;;  %v16727_v52 = vsel %vm5963_vm15, %v6047_v62, %v16506_v59  ;;  %v6041_v30 = vand.u32 2147483647, %v6040_v16  ;;  %v16729_v46 = vshrl.u32 %v6230_v22, 30 }
 0x5d3   : > { %vm16720_vm2 = vcmp.le.f32.partialorder %v18735_v11, 0.7853982  ;;  %v6280_v26 = vand.u32 8388607, %v6273_v50  ;;  %v6288_v60 = vsub.s32 32, %v6287_v33  ;;  %v6140_v45 = vor.u32 %v6139_v21, %v6138_v34 }
 0x5d4   : > { %v6144_v3 = vor.u32 4788187, %v6143_v5  ;;  %v6286_v53 = vshrl.u32 %v6285_v48, 5  ;;  %v6290_v15 = vshll.u32 %v18400_v17, %v6287_v33  ;;  %v6232_v43 = vshll.u32 %v16729_v46, 30  ;;  %v8457_v5 = vld [vmem:[%s8726_s8 + $0x1a8] sm:$0xff] }
 0x5d5   : > { %v6291_v58 = vshrl.u32 %v18380_v27, %v6288_v60  ;;  %v6293_v59 = vshll.u32 %v18380_v27, %v6287_v33  ;;  %v6296_v13 = vshll.u32 %v18483_v36, %v6287_v33  ;;  %v6294_v28 = vshrl.u32 %v18483_v36, %v6288_v60 }
 0x5d6   : > { %v6297_v23 = vshrl.u32 %v18395_v25, %v6288_v60  ;;  %v6299_v39 = vshll.u32 %v18395_v25, %v6287_v33  ;;  %v6300_v2 = vshrl.u32 %v18396_v8, %v6288_v60  ;;  %8363 = vsinq.f32 %v5945_v6 }
 0x5d7   : > { %v6044_v18 = vmul.f32 %v6043_v0, %v6041_v30  ;;  %v16745_v51 = vsub.s32 %v6229_v7, %v6232_v43  ;;  %v6302_v35 = vshll.u32 %v18396_v8, %v6287_v33  ;;  %vm5848_vm4 = vcmp.lt.s32.totalorder %v16626_v10, 2 }
 0x5d8   : > { %v6147_v9 = vcvt.s32.f32 %v6140_v45  ;;  %v6281_v62 = vor.u32 8388608, %v6280_v26  ;;  %v6289_v32 = vshrl.u32 %v18400_v17, %v6288_v60  ;;  %v6380_v14 = vand.u32 2139095040, %v16735_v24 }
 0x5d9   : > { %v6235_v47 = vsub.s32 0, %v16745_v51  ;;  %v6292_v61 = vor.u32 %v6291_v58, %v6290_v15  ;;  %v6295_v16 = vor.u32 %v6294_v28, %v6293_v59  ;;  %v6303_v6 = vshrl.u32 %v18482_v12, %v6288_v60 }
 0x5da   : > { %v6145_v34 = vand.u32 2147483647, %v6144_v3  ;;  %v6298_v21 = vor.u32 %v6297_v23, %v6296_v13  ;;  %v6301_v7 = vor.u32 %v6300_v2, %v6299_v39  ;;  %vm6305_vm8 = vcmp.lt.s32.totalorder %v6286_v53, 1 }
 0x5db   : > { %vm5845_vm3 = vweird.f32 %v8457_v5  ;;  %v6045_v48 = vxor.u32 2147483648, %v6044_v18  ;;  %v6050_v22 = vsel %vm16720_vm2, 0, %v16727_v52  ;;  %v7788_v33 = vmin.u32 %v6235_v47, %v16745_v51  ;;  %v16758_v0 = vpop.eup %8361 }
 0x5dc   : > { %v6304_v11 = vor.u32 %v6303_v6, %v6302_v35  ;;  %vm6307_vm1 = vcmp.lt.s32.totalorder %v6286_v53, 3  ;;  %vm6308_vm9 = vcmp.lt.s32.totalorder %v6286_v53, 4  ;;  %v6321_v30 = vshll.u32 %v6281_v62, 8 }
 0x5dd   : > { %v6381_v26 = vshrl.u32 %v6380_v14, 23  ;;  %v6237_v60 = vclz %v7788_v33  ;;  %vm6306_vm6 = vcmp.lt.s32.totalorder %v6286_v53, 2  ;;  %v6309_v45 = vsel %vm6305_vm8, %v6289_v32, %v6292_v61 }
 0x5de   : > { %v6313_v3 = vsel %vm6305_vm8, %v6292_v61, %v6295_v16  ;;  %vm6067_vm11 = vcmp.lt.s32.totalorder %v16373_v41, 0  ;;  %v6148_v15 = vmul.f32 %v6147_v9, %v6145_v34  ;;  %v6310_v43 = vsel %vm6308_vm9, %v6298_v21, 2102212464 }
 0x5df   : > { %v6314_v52 = vsel %vm6308_vm9, %v6301_v7, 920167782  ;;  %v6317_v58 = vsel %vm6305_vm8, %v6295_v16, %v6298_v21  ;;  %v7789_v59 = vadd.s32 4294967294, %v6237_v60  ;;  %v6311_v13 = vsel %vm6307_vm1, %v6295_v16, %v6310_v43 }
 0x5e0   : > { %v6315_v28 = vsel %vm6307_vm1, %v6298_v21, %v6314_v52  ;;  %v6318_v23 = vsel %vm6308_vm9, %v6304_v11, 1326507024  ;;  %v6312_v39 = vsel %vm6306_vm6, %v6309_v45, %v6311_v13  ;;  %v7795_v62 = vadd.s32 4294967169, %v6381_v26  ;;  %v8364_v32 = vpop.eup %8363 }
 0x5e1   : > { %v6316_v2 = vsel %vm6306_vm6, %v6313_v3, %v6315_v28  ;;  %v6319_v35 = vsel %vm6307_vm1, %v6301_v7, %v6318_v23  ;;  %v18738_v9 = vand.u32 2147483647, %v16373_v41  ;;  %vm7790_vm5 = vcmp.lt.s32.totalorder %v7789_v59, 0 }
 0x5e2   : > { %v6320_v47 = vsel %vm6306_vm6, %v6317_v58, %v6319_v35  ;;  %v16776_v61 = vmul.u32.u64.low %v6321_v30, %v6316_v2  ;;  %v16777_v16 = vmul.u32.u64.high %v6321_v30, %v6316_v2, %v16776_v61  ;;  %vm5953_vm10 = vcmp.eq.s32.totalorder %v16711_v49, 0 }
 0x5e3   : > { %vm16771_vm14 = vcmp.le.f32.partialorder %v18738_v9, 0.7853982  ;;  %v6240_v6 = vsel %vm7790_vm5, 0, %v7789_v59  ;;  %v16781_v34 = vmul.u32.u64.low %v6321_v30, %v6320_v47  ;;  %v16782_v21 = vmul.u32.u64.high %v6321_v30, %v6320_v47, %v16781_v34 }
 0x5e4   : > { %v5855_v7 = vsel %vm5848_vm4, %v16716_v56, %v16708_v63  ;;  %vm5956_vm0 = vcmp.eq.s32.totalorder %v16711_v49, 2  ;;  %v6046_v53 = vsel %vm5963_vm15, %v6045_v48, %v6044_v18  ;;  %v6054_v33 = vadd.s32 3, %v6050_v22 }
 0x5e5   : > { %v6245_v11 = vsub.s32 4294967266, %v6240_v6  ;;  %v6328_v26 = vmul.u32 %v6321_v30, %v6312_v39  ;;  %v6377_v60 = vand.u32 2147483647, %v16735_v24  ;;  %v6387_v45 = vadd.s32 1, %v7795_v62 }
 0x5e6   : > { %v6149_v3 = vxor.u32 2147483648, %v6148_v15  ;;  %v6225_v43 = vadd.s32 %v16679_v4, %v16686_v54  ;;  %v6241_v52 = vsub.s32 32, %v6240_v6  ;;  %v6331_v58 = vadd.s32 1, %v16777_v16 }
 0x5e7   : > { %v16796_v10 = vsel %vm5845_vm3, nan, %v5855_v7  ;;  %v5957_v63 = vxor.u32 2147483648, %v16758_v0  ;;  %vm6330_vm15 = vc.u32 %v16782_v21, %v16776_v61  ;;  %vm6388_vm13 = vcmp.gt.s32.totalorder %v6387_v45, 0 }
 0x5e8   : > { %v5954_v56 = vxor.u32 2147483648, %v8364_v32  ;;  %v6049_v18 = vsel %vm16720_vm2, %v16245_v55, %v6046_v53  ;;  %v6151_v48 = vsub.s32 4, %v16633_v1  ;;  %vm6171_vm7 = vcmp.lt.s32.totalorder %v16478_v42, 0 }
 0x5e9   : > { %v6332_v4 = vsel %vm6330_vm15, %v6331_v58, %v16777_v16  ;;  %v16807_v54 = vand.u32 3, %v6054_v33  ;;  %v6246_v5 = vadd.s32 127, %v6245_v11  ;;  %v6389_v30 = vsel %vm6388_vm13, %v6387_v45, 0 }
 0x5ea   : > { %v6333_v22 = vadd.s32 %v6332_v4, %v6328_v26  ;;  %v6150_v59 = vsel %vm6067_vm11, %v6149_v3, %v6148_v15  ;;  %v6242_v13 = vshll.u32 %v16745_v51, %v6240_v6  ;;  %v6243_v28 = vshrl.u32 %v6225_v43, %v6241_v52 }
 0x5eb   : > { %v6384_v55 = vand.u32 8388607, %v6377_v60  ;;  %v16816_v40 = vsel %vm5956_vm0, %v5957_v63, %v8364_v32  ;;  %8365 = vcosq.f32 %v6049_v18  ;;  %v6391_v39 = vand.u32 31, %v6389_v30 }
 0x5ec   : > { %v6334_v23 = vadd.s32 536870912, %v6333_v22  ;;  %v16821_v2 = vsel %vm5953_vm10, %v16758_v0, %v5954_v56  ;;  %8367 = vsinq.f32 %v6049_v18  ;;  %v16826_v51 = vsel %vm6067_vm11, %v6151_v48, %v16633_v1 }
 0x5ed   : > { %v6255_v15 = vsub.s32 4, %v16729_v46  ;;  %v6153_v35 = vsel %vm16771_vm14, %v16373_v41, %v6150_v59  ;;  %v6247_v62 = vshll.u32 %v6246_v5, 23  ;;  %v6392_v9 = vsub.s32 32, %v6391_v39  ;;  %v16856_v5 = vld [vmem:[%s8726_s8 + $0x1e0] sm:$0xff] }
 0x5ee   : > { %v16832_v32 = vshrl.u32 %v6334_v23, 30  ;;  %v6244_v47 = vor.u32 %v6243_v28, %v6242_v13  ;;  %v6385_v16 = vor.u32 8388608, %v6384_v55  ;;  %v6394_v0 = vshll.u32 %v18400_v17, %v6391_v39 }
 0x5ef   : > { %v6397_v6 = vshll.u32 %v18380_v27, %v6391_v39  ;;  %v6390_v1 = vshrl.u32 %v6389_v30, 5  ;;  %v6395_v7 = vshrl.u32 %v18380_v27, %v6392_v9  ;;  %v6403_v53 = vshll.u32 %v18395_v25, %v6391_v39 }
 0x5f0   : > { %v6336_v34 = vshll.u32 %v16832_v32, 30  ;;  %v6398_v33 = vshrl.u32 %v18483_v36, %v6392_v9  ;;  %v6400_v41 = vshll.u32 %v18483_v36, %v6391_v39  ;;  %v6401_v11 = vshrl.u32 %v18395_v25, %v6392_v9 }
 0x5f1   : > { %v6404_v26 = vshrl.u32 %v18396_v8, %v6392_v9  ;;  %8369 = vcosq.f32 %v6153_v35  ;;  %v6248_v45 = vor.u32 4788187, %v6247_v62  ;;  %v16846_v3 = vsel %vm6171_vm7, %v6255_v15, %v16729_v46 }
 0x5f2   : > { %v16848_v43 = vsub.s32 %v6333_v22, %v6336_v34  ;;  %v6396_v52 = vor.u32 %v6395_v7, %v6394_v0  ;;  %v6399_v58 = vor.u32 %v6398_v33, %v6397_v6  ;;  %v6406_v63 = vshll.u32 %v18396_v8, %v6391_v39  ;;  %v8458_v0 = vld [vmem:[%s8726_s8 + $0x1b0] sm:$0xff] }
 0x5f3   : > { %v16851_v56 = vshll.u32 %v6385_v16, 8  ;;  %v6393_v48 = vshrl.u32 %v18400_v17, %v6392_v9  ;;  %v6405_v4 = vor.u32 %v6404_v26, %v6403_v53  ;;  %vm6409_vm12 = vcmp.lt.s32.totalorder %v6390_v1, 1 }
 0x5f4   : > { %v6339_v18 = vsub.s32 0, %v16848_v43  ;;  %vm5952_vm2 = vcmp.lt.s32.totalorder %v16711_v49, 2  ;;  %vm16861_vm4 = vcmp.le.f32.partialorder %v6169_v57, 0.7853982  ;;  %v6251_v22 = vcvt.s32.f32 %v6244_v47 }
 0x5f5   : > { %v6402_v30 = vor.u32 %v6401_v11, %v6400_v41  ;;  %v6407_v59 = vshrl.u32 %v18482_v12, %v6392_v9  ;;  %vm6412_vm8 = vcmp.lt.s32.totalorder %v6390_v1, 4  ;;  %v8366_v13 = vpop.eup %8365  ;;  %vm6060_vm3 = vcmp.eq.s32.totalorder %v16807_v54, 2 }
 0x5f6   : > { %v6249_v28 = vand.u32 2147483647, %v6248_v45  ;;  %v7792_v55 = vmin.u32 %v6339_v18, %v16848_v43  ;;  %vm6410_vm1 = vcmp.lt.s32.totalorder %v6390_v1, 2  ;;  %vm6411_vm9 = vcmp.lt.s32.totalorder %v6390_v1, 3  ;;  %v8368_v23 = vpop.eup %8367 }
 0x5f7   : > { %vm6057_vm6 = vcmp.eq.s32.totalorder %v16807_v54, 0  ;;  %v6408_v57 = vor.u32 %v6407_v59, %v6406_v63  ;;  %v6414_v39 = vsel %vm6412_vm8, %v6402_v30, 2102212464  ;;  %v6417_v15 = vsel %vm6409_vm12, %v6396_v52, %v6399_v58 }
 0x5f8   : > { %v6418_v62 = vsel %vm6412_vm8, %v6405_v4, 920167782  ;;  %8371 = vsinq.f32 %v6153_v35  ;;  %v6341_v9 = vclz %v7792_v55  ;;  %v6413_v47 = vsel %vm6409_vm12, %v6393_v48, %v6396_v52 }
 0x5f9   : > { %v6484_v16 = vand.u32 2139095040, %v16856_v5  ;;  %vm5949_vm11 = vweird.f32 %v8458_v0  ;;  %v6415_v6 = vsel %vm6411_vm9, %v6399_v58, %v6414_v39  ;;  %v6419_v34 = vsel %vm6411_vm9, %v6402_v30, %v6418_v62 }
 0x5fa   : > { %v6421_v7 = vsel %vm6409_vm12, %v6399_v58, %v6402_v30  ;;  %v6422_v53 = vsel %vm6412_vm8, %v6408_v57, 1326507024  ;;  %v6252_v33 = vmul.f32 %v6251_v22, %v6249_v28  ;;  %v7793_v41 = vadd.s32 4294967294, %v6341_v9 }
 0x5fb   : > { %v6420_v11 = vsel %vm6410_vm1, %v6417_v15, %v6419_v34  ;;  %v6423_v35 = vsel %vm6411_vm9, %v6405_v4, %v6422_v53  ;;  %v6416_v26 = vsel %vm6410_vm1, %v6413_v47, %v6415_v6  ;;  %v16888_v18 = vpop.eup %8369  ;;  %v6485_v22 = vshrl.u32 %v6484_v16, 23 }
 0x5fc   : > { %v6424_v45 = vsel %vm6410_vm1, %v6421_v7, %v6423_v35  ;;  %v16884_v52 = vmul.u32.u64.low %v16851_v56, %v6420_v11  ;;  %v16885_v63 = vmul.u32.u64.high %v16851_v56, %v6420_v11, %v16884_v52  ;;  %vm7794_vm5 = vcmp.lt.s32.totalorder %v7793_v41, 0 }
 0x5fd   : > { %v16891_v58 = vmul.u32.u64.low %v16851_v56, %v6424_v45  ;;  %v16892_v48 = vmul.u32.u64.high %v16851_v56, %v6424_v45, %v16891_v58  ;;  %v6058_v30 = vxor.u32 2147483648, %v8368_v23  ;;  %v6061_v59 = vxor.u32 2147483648, %v8366_v13 }
 0x5fe   : > { %v6154_v1 = vsel %vm16771_vm14, 0, %v16826_v51  ;;  %v6344_v4 = vsel %vm7794_vm5, 0, %v7793_v41  ;;  %v6253_v28 = vxor.u32 2147483648, %v6252_v33  ;;  %v6258_v55 = vsel %vm16861_vm4, 0, %v16846_v3 }
 0x5ff   : > { %v6349_v57 = vsub.s32 4294967266, %v6344_v4  ;;  %v7799_v39 = vadd.s32 4294967169, %v6485_v22  ;;  %v6329_v15 = vadd.s32 %v16776_v61, %v16782_v21  ;;  %v6345_v62 = vsub.s32 32, %v6344_v4 }
 0x600   : > { %v6432_v9 = vmul.u32 %v16851_v56, %v6416_v26  ;;  %v6435_v47 = vadd.s32 1, %v16885_v63  ;;  %v5959_v14 = vsel %vm5952_vm2, %v16821_v2, %v16816_v40  ;;  %vm6056_vm14 = vcmp.lt.s32.totalorder %v16807_v54, 2 }
 0x601   : > { %v6158_v51 = vadd.s32 3, %v6154_v1  ;;  %v6350_v16 = vadd.s32 127, %v6349_v57  ;;  %v6062_v3 = vsel %vm6060_vm3, %v6061_v59, %v8368_v23  ;;  %v6262_v6 = vadd.s32 3, %v6258_v55 }
 0x602   : > { %vm6434_vm10 = vc.u32 %v16892_v48, %v16884_v52  ;;  %v6491_v61 = vadd.s32 1, %v7799_v39  ;;  %v16913_v21 = vpop.eup %8371  ;;  %v6059_v56 = vsel %vm6057_vm6, %v8366_v13, %v6058_v30  ;;  %v6254_v49 = vsel %vm6171_vm7, %v6253_v28, %v6252_v33 }
 0x603   : > { %vm6275_vm0 = vcmp.lt.s32.totalorder %v16660_v38, 0  ;;  %v6436_v40 = vsel %vm6434_vm10, %v6435_v47, %v16885_v63  ;;  %v6481_v2 = vand.u32 2147483647, %v16856_v5  ;;  %v6346_v23 = vshll.u32 %v16848_v43, %v6344_v4 }
 0x604   : > { %v6347_v34 = vshrl.u32 %v6329_v15, %v6345_v62  ;;  %v6437_v7 = vadd.s32 %v6436_v40, %v6432_v9  ;;  %vm6492_vm15 = vcmp.gt.s32.totalorder %v6491_v61, 0  ;;  %v16924_v53 = vsel %vm5949_vm11, nan, %v5959_v14 }
 0x605   : > { %v16926_v41 = vand.u32 3, %v6158_v51  ;;  %v6351_v13 = vshll.u32 %v6350_v16, 23  ;;  %v6493_v11 = vsel %vm6492_vm15, %v6491_v61, 0  ;;  %v16930_v33 = vsel %vm6056_vm14, %v6059_v56, %v6062_v3 }
 0x606   : > { %v16932_v35 = vand.u32 3, %v6262_v6  ;;  %v6438_v26 = vadd.s32 536870912, %v6437_v7  ;;  %v6495_v45 = vand.u32 31, %v6493_v11  ;;  %v6162_v43 = vxor.u32 2147483648, %v16913_v21 }
 0x607   : > { %v6165_v63 = vxor.u32 2147483648, %v16888_v18  ;;  %v6257_v0 = vsel %vm16861_vm4, %v16478_v42, %v6254_v49  ;;  %vm16941_vm13 = vcmp.le.f32.partialorder %v6273_v50, 0.7853982  ;;  %v6359_v54 = vsub.s32 4, %v16832_v32  ;;  %v16955_v50 = vld [vmem:[%s8726_s8 + $0x1e8] sm:$0xff] }
 0x608   : > { %v6348_v22 = vor.u32 %v6347_v34, %v6346_v23  ;;  %v16946_v30 = vshrl.u32 %v6438_v26, 30  ;;  %v6488_v59 = vand.u32 8388607, %v6481_v2  ;;  %v6496_v1 = vsub.s32 32, %v6495_v45 }
 0x609   : > { %v6352_v4 = vor.u32 4788187, %v6351_v13  ;;  %v16950_v28 = vshrl.u32 %v6493_v11, 5  ;;  %v6498_v42 = vshll.u32 %v18400_v17, %v6495_v45  ;;  %v6501_v46 = vshll.u32 %v18380_v27, %v6495_v45 }
 0x60a   : > { %v6440_v55 = vshll.u32 %v16946_v30, 30  ;;  %v6499_v57 = vshrl.u32 %v18380_v27, %v6496_v1  ;;  %v6504_v39 = vshll.u32 %v18483_v36, %v6495_v45  ;;  %v6507_v15 = vshll.u32 %v18395_v25, %v6495_v45 }
 0x60b   : > { %v6502_v62 = vshrl.u32 %v18483_v36, %v6496_v1  ;;  %v6505_v9 = vshrl.u32 %v18395_v25, %v6496_v1  ;;  %v6508_v47 = vshrl.u32 %v18396_v8, %v6496_v1  ;;  %v6510_v14 = vshll.u32 %v18396_v8, %v6495_v45 }
 0x60c   : > { %v6360_v51 = vsel %vm6275_vm0, %v6359_v54, %v16832_v32  ;;  %v16968_v16 = vsub.s32 %v6437_v7, %v6440_v55  ;;  %v6489_v3 = vor.u32 8388608, %v6488_v59  ;;  %v6511_v6 = vshrl.u32 %v18482_v12, %v6496_v1 }
 0x60d   : > { %vm6164_vm7 = vcmp.eq.s32.totalorder %v16926_v41, 2  ;;  %8373 = vcosq.f32 %v6257_v0  ;;  %v6353_v61 = vand.u32 2147483647, %v6352_v4  ;;  %v6355_v56 = vcvt.s32.f32 %v6348_v22 }
 0x60e   : > { %v6588_v49 = vand.u32 2139095040, %v16955_v50  ;;  %vm6161_vm12 = vcmp.eq.s32.totalorder %v16926_v41, 0  ;;  %v6443_v40 = vsub.s32 0, %v16968_v16  ;;  %v6500_v23 = vor.u32 %v6499_v57, %v6498_v42 }
 0x60f   : > { %v6503_v34 = vor.u32 %v6502_v62, %v6501_v46  ;;  %v6506_v13 = vor.u32 %v6505_v9, %v6504_v39  ;;  %v6497_v32 = vshrl.u32 %v18400_v17, %v6496_v1  ;;  %v6509_v7 = vor.u32 %v6508_v47, %v6507_v15 }
 0x610   : > { %v6512_v11 = vor.u32 %v6511_v6, %v6510_v14  ;;  %vm6513_vm2 = vcmp.lt.s32.totalorder %v16950_v28, 1  ;;  %8375 = vsinq.f32 %v6257_v0  ;;  %v6362_v26 = vsel %vm16941_vm13, 0, %v6360_v51 }
 0x611   : > { %v7796_v45 = vmin.u32 %v6443_v40, %v16968_v16  ;;  %v6529_v54 = vshll.u32 %v6489_v3, 8  ;;  %v6356_v22 = vmul.f32 %v6355_v56, %v6353_v61  ;;  %vm6515_vm4 = vcmp.lt.s32.totalorder %v16950_v28, 3 }
 0x612   : > { %vm6516_vm8 = vcmp.lt.s32.totalorder %v16950_v28, 4  ;;  %v6589_v59 = vshrl.u32 %v6588_v49, 23  ;;  %vm6160_vm3 = vcmp.lt.s32.totalorder %v16926_v41, 2  ;;  %vm6514_vm1 = vcmp.lt.s32.totalorder %v16950_v28, 2 }
 0x613   : > { %v6445_v1 = vclz %v7796_v45  ;;  %v6521_v4 = vsel %vm6513_vm2, %v6500_v23, %v6503_v34  ;;  %v6525_v42 = vsel %vm6513_vm2, %v6503_v34, %v6506_v13  ;;  %vm6268_vm9 = vcmp.eq.s32.totalorder %v16932_v35, 2 }
 0x614   : > { %v6517_v0 = vsel %vm6513_vm2, %v6497_v32, %v6500_v23  ;;  %v6518_v46 = vsel %vm6516_vm8, %v6506_v13, 2102212464  ;;  %v6522_v55 = vsel %vm6516_vm8, %v6509_v7, 920167782  ;;  %v6526_v57 = vsel %vm6516_vm8, %v6512_v11, 1326507024 }
 0x615   : > { %v7797_v39 = vadd.s32 4294967294, %v6445_v1  ;;  %v6519_v15 = vsel %vm6515_vm4, %v6503_v34, %v6518_v46  ;;  %v6523_v62 = vsel %vm6515_vm4, %v6506_v13, %v6522_v55  ;;  %v6527_v9 = vsel %vm6515_vm4, %v6509_v7, %v6526_v57 }
 0x616   : > { %v6357_v47 = vxor.u32 2147483648, %v6356_v22  ;;  %v6524_v14 = vsel %vm6514_vm1, %v6521_v4, %v6523_v62  ;;  %v6528_v51 = vsel %vm6514_vm1, %v6525_v42, %v6527_v9  ;;  %v7803_v3 = vadd.s32 4294967169, %v6589_v59 }
 0x617   : > { %v6433_v6 = vadd.s32 %v16884_v52, %v16892_v48  ;;  %vm7798_vm6 = vcmp.lt.s32.totalorder %v7797_v39, 0  ;;  %v16997_v61 = vmul.u32.u64.low %v6529_v54, %v6528_v51  ;;  %v16998_v56 = vmul.u32.u64.high %v6529_v54, %v6528_v51, %v16997_v61  ;;  %v17000_v49 = vpop.eup %8373 }
 0x618   : > { %v6448_v40 = vsel %vm7798_vm6, 0, %v7797_v39  ;;  %v6520_v23 = vsel %vm6514_vm1, %v6517_v0, %v6519_v15  ;;  %v17004_v34 = vmul.u32.u64.low %v6529_v54, %v6524_v14  ;;  %v17005_v13 = vmul.u32.u64.high %v6529_v54, %v6524_v14, %v17004_v34 }
 0x619   : > { %v6166_v52 = vsel %vm6164_vm7, %v6165_v63, %v16913_v21  ;;  %v6449_v48 = vsub.s32 32, %v6448_v40  ;;  %v6453_v32 = vsub.s32 4294967266, %v6448_v40  ;;  %v6595_v7 = vadd.s32 1, %v7803_v3 }
 0x61a   : > { %v6163_v28 = vsel %vm6161_vm12, %v16888_v18, %v6162_v43  ;;  %v6358_v11 = vsel %vm6275_vm0, %v6357_v47, %v6356_v22  ;;  %v6366_v45 = vadd.s32 3, %v6362_v26  ;;  %v6585_v59 = vand.u32 2147483647, %v16955_v50  ;;  %v8376_v1 = vpop.eup %8375 }
 0x61b   : > { %v6269_v4 = vxor.u32 2147483648, %v17000_v49  ;;  %vm6379_vm11 = vcmp.lt.s32.totalorder %v16735_v24, 0  ;;  %v6450_v63 = vshll.u32 %v16968_v16, %v6448_v40  ;;  %v6454_v42 = vadd.s32 127, %v6453_v32 }
 0x61c   : > { %v6536_v0 = vmul.u32 %v6529_v54, %v6520_v23  ;;  %v6451_v21 = vshrl.u32 %v6433_v6, %v6449_v48  ;;  %vm6538_vm5 = vc.u32 %v16998_v56, %v17004_v34  ;;  %v6539_v18 = vadd.s32 1, %v17005_v13 }
 0x61d   : > { %vm6596_vm14 = vcmp.gt.s32.totalorder %v6595_v7, 0  ;;  %vm6265_vm10 = vcmp.eq.s32.totalorder %v16932_v35, 0  ;;  %v6361_v43 = vsel %vm16941_vm13, %v16660_v38, %v6358_v11  ;;  %v6455_v26 = vshll.u32 %v6454_v42, 23 }
 0x61e   : > { %v6597_v22 = vsel %vm6596_vm14, %v6595_v7, 0  ;;  %v17033_v16 = vsel %vm6160_vm3, %v6163_v28, %v6166_v52  ;;  %v17035_v54 = vand.u32 3, %v6366_v45  ;;  %v6540_v46 = vsel %vm6538_vm5, %v6539_v18, %v17005_v13  ;;  %v17070_v18 = vld [vmem:[%s8726_s8 + $0x1f0] sm:$0xff] }
 0x61f   : > { %v6599_v55 = vand.u32 31, %v6597_v22  ;;  %v6266_v57 = vxor.u32 2147483648, %v8376_v1  ;;  %v6270_v39 = vsel %vm6268_vm9, %v6269_v4, %v8376_v1  ;;  %vm17042_vm0 = vcmp.le.f32.partialorder %v6377_v60, 0.7853982 }
 0x620   : > { %v6541_v38 = vadd.s32 %v6540_v46, %v6536_v0  ;;  %v6592_v41 = vand.u32 8388607, %v6585_v59  ;;  %vm6264_vm15 = vcmp.lt.s32.totalorder %v16932_v35, 2  ;;  %8377 = vcosq.f32 %v6361_v43 }
 0x621   : > { %v6452_v15 = vor.u32 %v6451_v21, %v6450_v63  ;;  %v6463_v62 = vsub.s32 4, %v16946_v30  ;;  %v6600_v9 = vsub.s32 32, %v6599_v55  ;;  %v6456_v47 = vor.u32 4788187, %v6455_v26 }
 0x622   : > { %v6542_v14 = vadd.s32 536870912, %v6541_v38  ;;  %v17050_v51 = vshrl.u32 %v6597_v22, 5  ;;  %v6602_v60 = vshll.u32 %v18400_v17, %v6599_v55  ;;  %v6605_v6 = vshll.u32 %v18380_v27, %v6599_v55 }
 0x623   : > { %v6603_v3 = vshrl.u32 %v18380_v27, %v6600_v9  ;;  %v6606_v61 = vshrl.u32 %v18483_v36, %v6600_v9  ;;  %v6611_v40 = vshll.u32 %v18395_v25, %v6599_v55  ;;  %v6608_v13 = vshll.u32 %v18483_v36, %v6599_v55 }
 0x624   : > { %v17057_v23 = vshrl.u32 %v6542_v14, 30  ;;  %v6609_v52 = vshrl.u32 %v18395_v25, %v6600_v9  ;;  %v6612_v48 = vshrl.u32 %v18396_v8, %v6600_v9  ;;  %8379 = vsinq.f32 %v6361_v43 }
 0x625   : > { %v6464_v32 = vsel %vm6379_vm11, %v6463_v62, %v16946_v30  ;;  %v6614_v7 = vshll.u32 %v18396_v8, %v6599_v55  ;;  %v6615_v28 = vshrl.u32 %v18482_v12, %v6600_v9  ;;  %v6457_v11 = vand.u32 2147483647, %v6456_v47 }
 0x626   : > { %v6459_v45 = vcvt.s32.f32 %v6452_v15  ;;  %v6544_v1 = vshll.u32 %v17057_v23, 30  ;;  %v6593_v4 = vor.u32 8388608, %v6592_v41  ;;  %v6601_v63 = vshrl.u32 %v18400_v17, %v6600_v9 }
 0x627   : > { %v6604_v42 = vor.u32 %v6603_v3, %v6602_v60  ;;  %v6607_v0 = vor.u32 %v6606_v61, %v6605_v6  ;;  %v6613_v21 = vor.u32 %v6612_v48, %v6611_v40  ;;  %v6610_v26 = vor.u32 %v6609_v52, %v6608_v13  ;;  %v8459_v6 = vld [vmem:[%s8726_s8 + $0x1b8] sm:$0xff]  ;;  %v8460_v13 = vld [vmem:[%s8726_s8 + $0x1c0] sm:$0xff]  ;;  %v8461_v52 = vld [vmem:[%s8726_s8 + $0x1c8] sm:$0xff] }
 0x628   : > { %v17072_v43 = vsub.s32 %v6541_v38, %v6544_v1  ;;  %vm6617_vm13 = vcmp.lt.s32.totalorder %v17050_v51, 1  ;;  %vm6620_vm7 = vcmp.lt.s32.totalorder %v17050_v51, 4  ;;  %v6267_v30 = vsel %vm6265_vm10, %v17000_v49, %v6266_v57 }
 0x629   : > { %v6466_v22 = vsel %vm17042_vm0, 0, %v6464_v32  ;;  %v6616_v46 = vor.u32 %v6615_v28, %v6614_v7  ;;  %vm6619_vm12 = vcmp.lt.s32.totalorder %v17050_v51, 3  ;;  %vm6372_vm2 = vcmp.eq.s32.totalorder %v17035_v54, 2 }
 0x62a   : > { %v6460_v55 = vmul.f32 %v6459_v45, %v6457_v11  ;;  %v6547_v38 = vsub.s32 0, %v17072_v43  ;;  %vm6618_vm4 = vcmp.lt.s32.totalorder %v17050_v51, 2  ;;  %v6622_v41 = vsel %vm6620_vm7, %v6610_v26, 2102212464  ;;  %v8378_v15 = vpop.eup %8377 }
 0x62b   : > { %vm6369_vm8 = vcmp.eq.s32.totalorder %v17035_v54, 0  ;;  %vm6483_vm3 = vcmp.lt.s32.totalorder %v16856_v5, 0  ;;  %v6625_v49 = vsel %vm6617_vm13, %v6604_v42, %v6607_v0  ;;  %v6626_v57 = vsel %vm6620_vm7, %v6613_v21, 920167782 }
 0x62c   : > { %v6633_v62 = vshll.u32 %v6593_v4, 8  ;;  %v6692_v9 = vand.u32 2139095040, %v17070_v18  ;;  %v17096_v47 = vsel %vm6264_vm15, %v6267_v30, %v6270_v39  ;;  %v7800_v14 = vmin.u32 %v6547_v38, %v17072_v43 }
 0x62d   : > { %v6621_v60 = vsel %vm6617_vm13, %v6601_v63, %v6604_v42  ;;  %v6627_v3 = vsel %vm6619_vm12, %v6610_v26, %v6626_v57  ;;  %vm6053_vm1 = vweird.f32 %v8459_v6  ;;  %v6623_v61 = vsel %vm6619_vm12, %v6607_v0, %v6622_v41 }
 0x62e   : > { %v6628_v40 = vsel %vm6618_vm4, %v6625_v49, %v6627_v3  ;;  %v6629_v35 = vsel %vm6617_vm13, %v6607_v0, %v6610_v26  ;;  %v6630_v39 = vsel %vm6620_vm7, %v6616_v46, 1326507024  ;;  %vm6157_vm9 = vweird.f32 %v8460_v13  ;;  %v8380_v45 = vpop.eup %8379 }
 0x62f   : > { %vm6261_vm6 = vweird.f32 %v8461_v52  ;;  %v6461_v48 = vxor.u32 2147483648, %v6460_v55  ;;  %v6470_v32 = vadd.s32 3, %v6466_v22  ;;  %vm17116_vm5 = vcmp.le.f32.partialorder %v6481_v2, 0.7853982 }
 0x630   : > { %v6549_v28 = vclz %v7800_v14  ;;  %v6689_v11 = vand.u32 2147483647, %v17070_v18  ;;  %vm6368_vm14 = vcmp.lt.s32.totalorder %v17035_v54, 2  ;;  %v6631_v1 = vsel %vm6619_vm12, %v6613_v21, %v6630_v39 }
 0x631   : > { %v17124_v4 = vmul.u32.u64.low %v6633_v62, %v6628_v40  ;;  %v17125_v63 = vmul.u32.u64.high %v6633_v62, %v6628_v40, %v17124_v4  ;;  %v6693_v42 = vshrl.u32 %v6692_v9, 23  ;;  %v6567_v2 = vsub.s32 4, %v17057_v23 }
 0x632   : > { %v7801_v0 = vadd.s32 4294967294, %v6549_v28  ;;  %v6624_v26 = vsel %vm6618_vm4, %v6621_v60, %v6623_v61  ;;  %v6632_v30 = vsel %vm6618_vm4, %v6629_v35, %v6631_v1  ;;  %v6373_v22 = vxor.u32 2147483648, %v8378_v15 }
 0x633   : > { %v17133_v46 = vmul.u32.u64.low %v6633_v62, %v6632_v30  ;;  %v17134_v38 = vmul.u32.u64.high %v6633_v62, %v6632_v30, %v17133_v46  ;;  %v7807_v41 = vadd.s32 4294967169, %v6693_v42  ;;  %v6370_v21 = vxor.u32 2147483648, %v8380_v45 }
 0x634   : > { %v6462_v49 = vsel %vm6379_vm11, %v6461_v48, %v6460_v55  ;;  %v6537_v57 = vadd.s32 %v17004_v34, %v16998_v56  ;;  %vm7802_vm10 = vcmp.lt.s32.totalorder %v7801_v0, 0  ;;  %v6640_v14 = vmul.u32 %v6633_v62, %v6624_v26 }
 0x635   : > { %v6552_v9 = vsel %vm7802_vm10, 0, %v7801_v0  ;;  %v6643_v60 = vadd.s32 1, %v17125_v63  ;;  %v6699_v3 = vadd.s32 1, %v7807_v41  ;;  %v6568_v35 = vsel %vm6483_vm3, %v6567_v2, %v17057_v23 }
 0x636   : > { %v6553_v51 = vsub.s32 32, %v6552_v9  ;;  %v6554_v61 = vshll.u32 %v17072_v43, %v6552_v9  ;;  %v6557_v40 = vsub.s32 4294967266, %v6552_v9  ;;  %v6374_v55 = vsel %vm6372_vm2, %v6373_v22, %v8380_v45 }
 0x637   : > { %v6465_v56 = vsel %vm17042_vm0, %v16735_v24, %v6462_v49  ;;  %vm6642_vm11 = vc.u32 %v17134_v38, %v17124_v4  ;;  %vm6700_vm15 = vcmp.gt.s32.totalorder %v6699_v3, 0  ;;  %v6371_v34 = vsel %vm6369_vm8, %v8378_v15, %v6370_v21  ;;  %v17160_v24 = vld [vmem:[%s8726_s8 + $0x1f8] sm:$0xff] }
 0x638   : > { %v6555_v43 = vshrl.u32 %v6537_v57, %v6553_v51  ;;  %v6558_v62 = vadd.s32 127, %v6557_v40  ;;  %v6644_v39 = vsel %vm6642_vm11, %v6643_v60, %v17125_v63  ;;  %v6570_v23 = vsel %vm17116_vm5, 0, %v6568_v35 }
 0x639   : > { %v6645_v48 = vadd.s32 %v6644_v39, %v6640_v14  ;;  %v6696_v28 = vand.u32 8388607, %v6689_v11  ;;  %v6701_v58 = vsel %vm6700_vm15, %v6699_v3, 0  ;;  %v17164_v45 = vsel %vm6053_vm1, nan, %v16930_v33 }
 0x63a   : > { %8381 = vcosq.f32 %v6465_v56  ;;  %v6556_v15 = vor.u32 %v6555_v43, %v6554_v61  ;;  %v6559_v1 = vshll.u32 %v6558_v62, 23  ;;  %v17168_v63 = vsel %vm6157_vm9, nan, %v17033_v16 }
 0x63b   : > { %v17172_v42 = vsel %vm6261_vm6, nan, %v17096_v47  ;;  %v6646_v0 = vadd.s32 536870912, %v6645_v48  ;;  %v6703_v2 = vand.u32 31, %v6701_v58  ;;  %v17176_v26 = vsel %vm6368_vm14, %v6371_v34, %v6374_v55 }
 0x63c   : > { %v17178_v6 = vand.u32 3, %v6470_v32  ;;  %v6560_v33 = vor.u32 4788187, %v6559_v1  ;;  %v17180_v30 = vadd.s32 3, %v6570_v23  ;;  %v6697_v46 = vor.u32 8388608, %v6696_v28 }
 0x63d   : > { %v6647_v22 = vshrl.u32 %v6646_v0, 30  ;;  %v6704_v13 = vsub.s32 32, %v6703_v2  ;;  %v6796_v16 = vand.u32 2139095040, %v17160_v24  ;;  %v6563_v41 = vcvt.s32.f32 %v6556_v15 }
 0x63e   : > { %v6702_v52 = vshrl.u32 %v6701_v58, 5  ;;  %v6706_v47 = vshll.u32 %v18400_v17, %v6703_v2  ;;  %v6709_v21 = vshll.u32 %v18380_v27, %v6703_v2  ;;  %v6561_v49 = vand.u32 2147483647, %v6560_v33 }
 0x63f   : > { %v6648_v54 = vshll.u32 %v6647_v22, 30  ;;  %v6707_v57 = vshrl.u32 %v18380_v27, %v6704_v13  ;;  %v6715_v32 = vshll.u32 %v18395_v25, %v6703_v2  ;;  %v6710_v9 = vshrl.u32 %v18483_v36, %v6704_v13 }
 0x640   : > { %v6712_v14 = vshll.u32 %v18483_v36, %v6703_v2  ;;  %v6713_v60 = vshrl.u32 %v18395_v25, %v6704_v13  ;;  %v6716_v3 = vshrl.u32 %v18396_v8, %v6704_v13  ;;  %8383 = vsinq.f32 %v6465_v56 }
 0x641   : > { %vm6587_vm0 = vcmp.lt.s32.totalorder %v16955_v50, 0  ;;  %v17192_v51 = vsub.s32 %v6645_v48, %v6648_v54  ;;  %v6718_v61 = vshll.u32 %v18396_v8, %v6703_v2  ;;  %v6719_v40 = vshrl.u32 %v18482_v12, %v6704_v13 }
 0x642   : > { %v6708_v35 = vor.u32 %v6707_v57, %v6706_v47  ;;  %v6711_v55 = vor.u32 %v6710_v9, %v6709_v21  ;;  %v18315_v34 = vand.u32 2147483647, %v17160_v24  ;;  %v6797_v43 = vshrl.u32 %v6796_v16, 23 }
 0x643   : > { %v6564_v62 = vmul.f32 %v6563_v41, %v6561_v49  ;;  %v6651_v39 = vsub.s32 0, %v17192_v51  ;;  %v6717_v23 = vor.u32 %v6716_v3, %v6715_v32  ;;  %vm6721_vm13 = vcmp.lt.s32.totalorder %v6702_v52, 1 }
 0x644   : > { %v17198_v28 = vpop.eup %8381  ;;  %v6705_v56 = vshrl.u32 %v18400_v17, %v6704_v13  ;;  %v6714_v48 = vor.u32 %v6713_v60, %v6712_v14  ;;  %vm6724_vm7 = vcmp.lt.s32.totalorder %v6702_v52, 4  ;;  %v6737_v58 = vshll.u32 %v6697_v46, 8 }
 0x645   : > { %v7804_v15 = vmin.u32 %v6651_v39, %v17192_v51  ;;  %v6671_v1 = vsub.s32 4, %v6647_v22  ;;  %v6720_v0 = vor.u32 %v6719_v40, %v6718_v61  ;;  %vm6723_vm12 = vcmp.lt.s32.totalorder %v6702_v52, 3 }
 0x646   : > { %vm6722_vm2 = vcmp.lt.s32.totalorder %v6702_v52, 2  ;;  %v6726_v2 = vsel %vm6724_vm7, %v6714_v48, 2102212464  ;;  %v6729_v33 = vsel %vm6721_vm13, %v6708_v35, %v6711_v55  ;;  %v6730_v16 = vsel %vm6724_vm7, %v6717_v23, 920167782  ;;  %v18751_v52 = vld [vmem:[#allocation11_spill] sm:$0xff] }
 0x647   : > { %v6477_v41 = vxor.u32 2147483648, %v17198_v28  ;;  %v6565_v47 = vxor.u32 2147483648, %v6564_v62  ;;  %v6653_v21 = vclz %v7804_v15  ;;  %v7811_v13 = vadd.s32 4294967169, %v6797_v43 }
 0x648   : > { %vm17208_vm4 = vcmp.le.f32.partialorder %v6585_v59, 0.7853982  ;;  %v6725_v49 = vsel %vm6721_vm13, %v6705_v56, %v6708_v35  ;;  %v6727_v54 = vsel %vm6723_vm12, %v6711_v55, %v6726_v2  ;;  %v6731_v57 = vsel %vm6723_vm12, %v6714_v48, %v6730_v16 }
 0x649   : > { %v6733_v32 = vsel %vm6721_vm13, %v6711_v55, %v6714_v48  ;;  %vm6473_vm8 = vcmp.eq.s32.totalorder %v17178_v6, 0  ;;  %vm6476_vm1 = vcmp.eq.s32.totalorder %v17178_v6, 2  ;;  %v6641_v9 = vadd.s32 %v17124_v4, %v17134_v38 }
 0x64a   : > { %v7805_v14 = vadd.s32 4294967294, %v6653_v21  ;;  %v6732_v59 = vsel %vm6722_vm2, %v6729_v33, %v6731_v57  ;;  %v6734_v60 = vsel %vm6724_vm7, %v6720_v0, 1326507024  ;;  %v6672_v3 = vsel %vm6587_vm0, %v6671_v1, %v6647_v22  ;;  %v8384_v55 = vpop.eup %8383 }
 0x64b   : > { %v6735_v61 = vsel %vm6723_vm12, %v6717_v23, %v6734_v60  ;;  %v17225_v40 = vmul.u32.u64.low %v6737_v58, %v6732_v59  ;;  %v17226_v35 = vmul.u32.u64.high %v6737_v58, %v6732_v59, %v17225_v40  ;;  %v6728_v43 = vsel %vm6722_vm2, %v6725_v49, %v6727_v54 }
 0x64c   : > { %vm7806_vm9 = vcmp.lt.s32.totalorder %v7805_v14, 0  ;;  %v6736_v4 = vsel %vm6722_vm2, %v6733_v32, %v6735_v61  ;;  %v6803_v38 = vadd.s32 1, %v7811_v13  ;;  %v6566_v39 = vsel %vm6483_vm3, %v6565_v47, %v6564_v62 }
 0x64d   : > { %v6656_v56 = vsel %vm7806_vm9, 0, %v7805_v14  ;;  %v17233_v48 = vmul.u32.u64.low %v6737_v58, %v6736_v4  ;;  %v17234_v15 = vmul.u32.u64.high %v6737_v58, %v6736_v4, %v17233_v48  ;;  %v6744_v0 = vmul.u32 %v6737_v58, %v6728_v43  ;;  %v18753_v58 = vld [vmem:[#allocation14_spill] sm:$0xff] }
 0x64e   : > { %v6657_v22 = vsub.s32 32, %v6656_v56  ;;  %v6658_v23 = vshll.u32 %v17192_v51, %v6656_v56  ;;  %v6661_v1 = vsub.s32 4294967266, %v6656_v56  ;;  %vm6804_vm6 = vcmp.gt.s32.totalorder %v6803_v38, 0  ;;  %v18752_v51 = vld [vmem:[#allocation13_spill] sm:$0xff] }
 0x64f   : > { %v6747_v2 = vadd.s32 1, %v17226_v35  ;;  %v6805_v33 = vsel %vm6804_vm6, %v6803_v38, 0  ;;  %v17239_v16 = vmul.f32 3.1415927, %v18751_v52  ;;  %v6569_v62 = vsel %vm17116_vm5, %v16856_v5, %v6566_v39 }
 0x650   : > { %v6659_v47 = vshrl.u32 %v6641_v9, %v6657_v22  ;;  %v6662_v21 = vadd.s32 127, %v6661_v1  ;;  %v6807_v13 = vand.u32 31, %v6805_v33  ;;  %v6474_v49 = vxor.u32 2147483648, %v8384_v55 }
 0x651   : > { %vm6746_vm3 = vc.u32 %v17234_v15, %v17225_v40  ;;  %v17247_v54 = vmul.f32 3.1415927, %v18752_v51  ;;  %v17250_v57 = vmul.f32 3.1415927, %v18753_v58  ;;  %6961 = vst [vmem:[%s17254_s19] sm:$0xff] %v17239_v16  ;;  %v6674_v32 = vsel %vm17208_vm4, 0, %v6672_v3 }
 0x652   : > { %v6660_v5 = vor.u32 %v6659_v47, %v6658_v23  ;;  %v6663_v7 = vshll.u32 %v6662_v21, 23  ;;  %v6748_v9 = vsel %vm6746_vm3, %v6747_v2, %v17226_v35  ;;  %8385 = vcosq.f32 %v6569_v62 }
 0x653   : > { %v17262_v14 = vand.u32 3, %v17180_v30  ;;  %v6749_v59 = vadd.s32 %v6748_v9, %v6744_v0  ;;  %v6808_v60 = vsub.s32 32, %v6807_v13  ;;  %6962 = vst [vmem:[%s17254_s19 + $0x8] sm:$0xff] %v17247_v54  ;;  %6963 = vst [vmem:[%s17254_s19 + $0x10] sm:$0xff] %v17250_v57  ;;  %8387 = vsinq.f32 %v6569_v62 }
 0x654   : > { %v6664_v61 = vor.u32 4788187, %v6663_v7  ;;  %v6667_v43 = vcvt.s32.f32 %v6660_v5  ;;  %v6800_v4 = vand.u32 8388607, %v18315_v34  ;;  %v17273_v3 = vsel %vm6473_vm8, %v17198_v28, %v6474_v49 }
 0x655   : > { %v17277_v30 = vsel %vm6476_vm1, %v6477_v41, %v8384_v55  ;;  %v6678_v35 = vadd.s32 3, %v6674_v32  ;;  %v6750_v38 = vadd.s32 536870912, %v6749_v59  ;;  %v6810_v56 = vshll.u32 %v18400_v17, %v6807_v13 }
 0x656   : > { %v6665_v39 = vand.u32 2147483647, %v6664_v61  ;;  %v6811_v48 = vshrl.u32 %v18380_v27, %v6808_v60  ;;  %v6813_v22 = vshll.u32 %v18380_v27, %v6807_v13  ;;  %v6814_v1 = vshrl.u32 %v18483_v36, %v6808_v60 }
 0x657   : > { %v17282_v23 = vshrl.u32 %v6750_v38, 30  ;;  %v6816_v28 = vshll.u32 %v18483_v36, %v6807_v13  ;;  %v6817_v0 = vshrl.u32 %v18395_v25, %v6808_v60  ;;  %v6806_v41 = vshrl.u32 %v6805_v33, 5 }
 0x658   : > { %v6668_v2 = vmul.f32 %v6667_v43, %v6665_v39  ;;  %v6819_v55 = vshll.u32 %v18395_v25, %v6807_v13  ;;  %v6820_v52 = vshrl.u32 %v18396_v8, %v6808_v60  ;;  %v17289_v62 = vand.u32 3, %v6678_v35 }
 0x659   : > { %v6752_v47 = vshll.u32 %v17282_v23, 30  ;;  %v6801_v21 = vor.u32 8388608, %v6800_v4  ;;  %v6822_v27 = vshll.u32 %v18396_v8, %v6807_v13  ;;  %v6809_v51 = vshrl.u32 %v18400_v17, %v6808_v60 }
 0x65a   : > { %v6669_v49 = vxor.u32 2147483648, %v6668_v2  ;;  %v6821_v58 = vor.u32 %v6820_v52, %v6819_v55  ;;  %v6823_v36 = vshrl.u32 %v18482_v12, %v6808_v60  ;;  %v6812_v33 = vor.u32 %v6811_v48, %v6810_v56  ;;  %v18756_v52 = vld [vmem:[#allocation15_spill] sm:$0xff] }
 0x65b   : > { %v17295_v5 = vsub.s32 %v6749_v59, %v6752_v47  ;;  %v6815_v7 = vor.u32 %v6814_v1, %v6813_v22  ;;  %v6818_v25 = vor.u32 %v6817_v0, %v6816_v28  ;;  %vm6825_vm5 = vcmp.lt.s32.totalorder %v6806_v41, 1  ;;  %v18806_v28 = vld [vmem:[#allocation53_spill] sm:$0xff] }
 0x65c   : > { %v6670_v32 = vsel %vm6587_vm0, %v6669_v49, %v6668_v2  ;;  %v6824_v9 = vor.u32 %v6823_v36, %v6822_v27  ;;  %vm6828_vm14 = vcmp.lt.s32.totalorder %v6806_v41, 4  ;;  %v17299_v61 = vpop.eup %8385  ;;  %v17303_v8 = vadd.s32 %v17225_v40, %v17234_v15 }
 0x65d   : > { %v6755_v17 = vsub.s32 0, %v17295_v5  ;;  %vm6827_vm10 = vcmp.lt.s32.totalorder %v6806_v41, 3  ;;  %v17306_v12 = vshll.u32 %v6801_v21, 8  ;;  %v17308_v13 = vpop.eup %8387  ;;  %vm6472_vm11 = vcmp.lt.s32.totalorder %v17178_v6, 2 }
 0x65e   : > { %v6673_v59 = vsel %vm17208_vm4, %v16955_v50, %v6670_v32  ;;  %vm6826_vm15 = vcmp.lt.s32.totalorder %v6806_v41, 2  ;;  %v6830_v60 = vsel %vm6828_vm14, %v6818_v25, 2102212464  ;;  %v6834_v43 = vsel %vm6828_vm14, %v6821_v58, 920167782  ;;  %v18759_v41 = vld [vmem:[#allocation17_spill] sm:$0xff] }
 0x65f   : > { %vm6580_vm0 = vcmp.eq.s32.totalorder %v17262_v14, 2  ;;  %vm6691_vm13 = vcmp.lt.s32.totalorder %v17070_v18, 0  ;;  %v7808_v40 = vmin.u32 %v6755_v17, %v17295_v5  ;;  %v6829_v15 = vsel %vm6825_vm5, %v6809_v51, %v6812_v33 }
 0x660   : > { %v6831_v4 = vsel %vm6827_vm10, %v6815_v7, %v6830_v60  ;;  %v6833_v35 = vsel %vm6825_vm5, %v6812_v33, %v6815_v7  ;;  %v6581_v46 = vxor.u32 2147483648, %v17299_v61  ;;  %v6835_v38 = vsel %vm6827_vm10, %v6818_v25, %v6834_v43 }
 0x661   : > { %v6837_v39 = vsel %vm6825_vm5, %v6815_v7, %v6818_v25  ;;  %v6838_v56 = vsel %vm6828_vm14, %v6824_v9, 1326507024  ;;  %vm6577_vm7 = vcmp.eq.s32.totalorder %v17262_v14, 0  ;;  %v6578_v48 = vxor.u32 2147483648, %v17308_v13  ;;  %v18758_v7 = vld [vmem:[#allocation19_spill] sm:$0xff] }
 0x662   : > { %8389 = vcosq.f32 %v6673_v59  ;;  %v6757_v22 = vclz %v7808_v40  ;;  %v6775_v1 = vsub.s32 4, %v17282_v23  ;;  %vm17331_vm12 = vcmp.le.f32.partialorder %v6689_v11, 0.7853982  ;;  %v18760_v9 = vld [vmem:[#allocation23_spill] sm:$0xff]  ;;  %v18761_v40 = vld [vmem:[#allocation22_spill] sm:$0xff] }
 0x663   : > { %v6832_v0 = vsel %vm6826_vm15, %v6829_v15, %v6831_v4  ;;  %v6836_v2 = vsel %vm6826_vm15, %v6833_v35, %v6835_v38  ;;  %v6839_v55 = vsel %vm6827_vm10, %v6821_v58, %v6838_v56  ;;  %v17339_v47 = vmul.f32 3.1415927, %v18756_v52  ;;  %v18757_v58 = vld [vmem:[#allocation20_spill] sm:$0xff] }
 0x664   : > { %v7809_v21 = vadd.s32 4294967294, %v6757_v22  ;;  %v6840_v27 = vsel %vm6826_vm15, %v6837_v39, %v6839_v55  ;;  %v17343_v49 = vmul.u32.u64.low %v17306_v12, %v6836_v2  ;;  %v17344_v11 = vmul.u32.u64.high %v17306_v12, %v6836_v2, %v17343_v49  ;;  %v18762_v4 = vld [vmem:[#allocation24_spill] sm:$0xff]  ;;  %v18763_v22 = vld [vmem:[#allocation18_spill] sm:$0xff] }
 0x665   : > { %vm6576_vm2 = vcmp.lt.s32.totalorder %v17262_v14, 2  ;;  %v17349_v51 = vmul.u32.u64.low %v17306_v12, %v6840_v27  ;;  %v17350_v36 = vmul.u32.u64.high %v17306_v12, %v6840_v27, %v17349_v51  ;;  %v17353_v33 = vmul.f32 3.1415927, %v18757_v58  ;;  %6964 = vst [vmem:[%s17254_s19 + $0x18] sm:$0xff] %v17339_v47 }
 0x666   : > { %v17356_v25 = vmul.f32 3.1415927, %v18758_v7  ;;  %8391 = vsinq.f32 %v6673_v59  ;;  %vm7810_vm4 = vcmp.lt.s32.totalorder %v7809_v21, 0  ;;  %v17361_v32 = vmul.f32 3.1415927, %v18759_v41  ;;  %v18765_v51 = vld [vmem:[#allocation26_spill] sm:$0xff] }
 0x667   : > { %v17364_v17 = vmul.f32 3.1415927, %v18760_v9  ;;  %v6760_v60 = vsel %vm7810_vm4, 0, %v7809_v21  ;;  %v6848_v43 = vmul.u32 %v17306_v12, %v6832_v0  ;;  %v17368_v15 = vmul.f32 3.1415927, %v18761_v40  ;;  %6965 = vst [vmem:[%s17254_s19 + $0x20] sm:$0xff] %v17353_v33 }
 0x668   : > { %v17371_v35 = vmul.f32 3.1415927, %v18762_v4  ;;  %6966 = vst [vmem:[%s17254_s19 + $0x28] sm:$0xff] %v17356_v25  ;;  %v6761_v59 = vsub.s32 32, %v6760_v60  ;;  %v6762_v38 = vshll.u32 %v17295_v5, %v6760_v60  ;;  %v6765_v39 = vsub.s32 4294967266, %v6760_v60  ;;  %6967 = vst [vmem:[%s17254_s19 + $0x30] sm:$0xff] %v17361_v32 }
 0x669   : > { %v6851_v56 = vadd.s32 1, %v17344_v11  ;;  %6968 = vst [vmem:[%s17254_s19 + $0x38] sm:$0xff] %v17364_v17  ;;  %v6776_v12 = vsel %vm6691_vm13, %v6775_v1, %v17282_v23  ;;  %vm6850_vm8 = vc.u32 %v17350_v36, %v17343_v49  ;;  %v17389_v0 = vmul.f32 3.1415927, %v18763_v22  ;;  %v18764_v5 = vld [vmem:[#allocation27_spill] sm:$0xff]  ;;  %6969 = vst [vmem:[%s17254_s19 + $0x40] sm:$0xff] %v17368_v15 }
 0x66a   : > { %v17392_v2 = vmul.f32 3.1415927, %v18764_v5  ;;  %6970 = vst [vmem:[%s17254_s19 + $0x48] sm:$0xff] %v17371_v35  ;;  %v17402_v55 = vsel %vm6472_vm11, %v17273_v3, %v17277_v30  ;;  %v6763_v23 = vshrl.u32 %v17303_v8, %v6761_v59  ;;  %v6766_v1 = vadd.s32 127, %v6765_v39  ;;  %v18766_v7 = vld [vmem:[#allocation30_spill] sm:$0xff]  ;;  %v18768_v60 = vld [vmem:[#allocation32_spill] sm:$0xff] }
 0x66b   : > { %v6852_v52 = vsel %vm6850_vm8, %v6851_v56, %v17344_v11  ;;  %v6582_v21 = vsel %vm6580_vm0, %v6581_v46, %v17308_v13  ;;  %v17410_v58 = vmul.f32 3.1415927, %v18765_v51  ;;  %v17413_v6 = vmul.f32 3.1415927, %v18766_v7  ;;  %6971 = vst [vmem:[%s17254_s19 + $0x50] sm:$0xff] %v17389_v0  ;;  %v18767_v46 = vld [vmem:[#allocation21_spill] sm:$0xff] }
 0x66c   : > { %v6853_v27 = vadd.s32 %v6852_v52, %v6848_v43  ;;  %6972 = vst [vmem:[%s17254_s19 + $0x58] sm:$0xff] %v17392_v2  ;;  %v17419_v3 = vpop.eup %8389  ;;  %vm6681_vm1 = vcmp.eq.s32.totalorder %v17289_v62, 0  ;;  %v6764_v30 = vor.u32 %v6763_v23, %v6762_v38  ;;  %v6767_v8 = vshll.u32 %v6766_v1, 23  ;;  %v18769_v40 = vld [vmem:[#allocation25_spill] sm:$0xff]  ;;  %v18772_v23 = vld [vmem:[#allocation35_spill] sm:$0xff] }
 0x66d   : > { %v6778_v13 = vsel %vm17331_vm12, 0, %v6776_v12  ;;  %v17425_v11 = vmul.f32 3.1415927, %v18767_v46  ;;  %v6579_v41 = vsel %vm6577_vm7, %v17299_v61, %v6578_v48  ;;  %v17431_v43 = vmul.f32 3.1415927, %v18768_v60  ;;  %6973 = vst [vmem:[%s17254_s19 + $0x60] sm:$0xff] %v17410_v58 }
 0x66e   : > { %v6854_v9 = vadd.s32 536870912, %v6853_v27  ;;  %v17434_v4 = vmul.f32 3.1415927, %v18769_v40  ;;  %6974 = vst [vmem:[%s17254_s19 + $0x68] sm:$0xff] %v17413_v6  ;;  %v17441_v59 = vld [vmem:[%s8726_s8 + $0x1d0] sm:$0xff]  ;;  %v17445_v38 = vld [vmem:[%s8726_s8 + $0x1d8] sm:$0xff]  ;;  %v6771_v48 = vcvt.s32.f32 %v6764_v30  ;;  %v6583_v30 = vsel %vm6576_vm2, %v6579_v41, %v6582_v21 }
 0x66f   : > { %vm6365_vm9 = vweird.f32 %v17441_v59  ;;  %vm6469_vm6 = vweird.f32 %v17445_v38  ;;  %vm6684_vm3 = vcmp.eq.s32.totalorder %v17289_v62, 2  ;;  %v6768_v61 = vor.u32 4788187, %v6767_v8  ;;  %v18770_v39 = vld [vmem:[#allocation37_spill] sm:$0xff]  ;;  %6975 = vst [vmem:[%s17254_s19 + $0x70] sm:$0xff] %v17425_v11  ;;  %v17455_v12 = vld [vmem:[%s8726_s8 + $0x1e0] sm:$0xff] }
 0x670   : > { %v17450_v56 = vmul.f32 3.1415927, %v18770_v39  ;;  %vm6573_vm5 = vweird.f32 %v17455_v12  ;;  %v6782_v22 = vadd.s32 3, %v6778_v13  ;;  %v17458_v5 = vshrl.u32 %v6854_v9, 30  ;;  %v18774_v52 = vld [vmem:[#allocation31_spill] sm:$0xff]  ;;  %6976 = vst [vmem:[%s17254_s19 + $0x78] sm:$0xff] %v17431_v43  ;;  %v8392_v7 = vpop.eup %8391 }
 0x671   : > { %v17461_v1 = vmul.f32 3.1415927, %v18772_v23  ;;  %v17464_v51 = vmul.f32 3.1415927, %v18774_v52  ;;  %6977 = vst [vmem:[%s17254_s19 + $0x80] sm:$0xff] %v17434_v4  ;;  %vm6680_vm14 = vcmp.lt.s32.totalorder %v17289_v62, 2  ;;  %vm6677_vm10 = vweird.f32 %v16955_v50 }
 0x672   : > { %18771 = vst [vmem:[#allocation11_spill] sm:$0xff] %v17450_v56  ;;  %v6769_v8 = vand.u32 2147483647, %v6768_v61  ;;  %v18776_v13 = vld [vmem:[#allocation33_spill] sm:$0xff]  ;;  %v18778_v9 = vld [vmem:[#allocation12_spill] sm:$0xff]  ;;  %6978 = vst [vmem:[%s17254_s19 + $0x88] sm:$0xff] %v17450_v56  ;;  %vm6781_vm7 = vweird.f32 %v17070_v18 }
 0x673   : > { %18773 = vst [vmem:[#allocation13_spill] sm:$0xff] %v17461_v1  ;;  %18775 = vst [vmem:[#allocation14_spill] sm:$0xff] %v17464_v51  ;;  %v17474_v46 = vmul.f32 3.1415927, %v18776_v13  ;;  %v17477_v60 = vmul.f32 3.1415927, %v18778_v9 }
 0x674   : > { %v6685_v40 = vxor.u32 2147483648, %v17419_v3  ;;  %v6856_v39 = vshll.u32 %v17458_v5, 30  ;;  %v18780_v23 = vld [vmem:[#allocation38_spill] sm:$0xff]  ;;  %v18782_v21 = vld [vmem:[#allocation41_spill] sm:$0xff]  ;;  %6979 = vst [vmem:[%s17254_s19 + $0x90] sm:$0xff] %v17461_v1  ;;  %6980 = vst [vmem:[%s17254_s19 + $0x98] sm:$0xff] %v17464_v51  ;;  %v6772_v61 = vmul.f32 %v6771_v48, %v6769_v8 }
 0x675   : > { %18777 = vst [vmem:[#allocation15_spill] sm:$0xff] %v17474_v46  ;;  %18779 = vst [vmem:[#allocation20_spill] sm:$0xff] %v17477_v60  ;;  %v17484_v14 = vmul.f32 3.1415927, %v18780_v23  ;;  %v17487_v41 = vmul.f32 3.1415927, %v18782_v21 }
 0x676   : > { %v18784_v52 = vld [vmem:[#allocation42_spill] sm:$0xff]  ;;  %v18786_v9 = vld [vmem:[#allocation29_spill] sm:$0xff]  ;;  %v18788_v56 = vld [vmem:[#allocation43_spill] sm:$0xff]  ;;  %6981 = vst [vmem:[%s17254_s19 + $0xa0] sm:$0xff] %v17474_v46  ;;  %v6682_v21 = vxor.u32 2147483648, %v8392_v7  ;;  %v17507_v48 = vsub.s32 %v6853_v27, %v6856_v39  ;;  %v17519_v46 = vand.u32 3, %v6782_v22 }
 0x677   : > { %18781 = vst [vmem:[#allocation19_spill] sm:$0xff] %v17484_v14  ;;  %18783 = vst [vmem:[#allocation17_spill] sm:$0xff] %v17487_v41  ;;  %v17494_v13 = vmul.f32 3.1415927, %v18784_v52  ;;  %v17497_v34 = vmul.f32 3.1415927, %v18786_v9 }
 0x678   : > { %v17500_v23 = vmul.f32 3.1415927, %v18788_v56  ;;  %6982 = vst [vmem:[%s17254_s19 + $0xa8] sm:$0xff] %v17477_v60  ;;  %v18790_v8 = vld [vmem:[#allocation45_spill] sm:$0xff]  ;;  %v18791_v9 = vld [vmem:[#allocation44_spill] sm:$0xff]  ;;  %6983 = vst [vmem:[%s17254_s19 + $0xb0] sm:$0xff] %v17484_v14 }
 0x679   : > { %18785 = vst [vmem:[#allocation23_spill] sm:$0xff] %v17494_v13  ;;  %18787 = vst [vmem:[#allocation22_spill] sm:$0xff] %v17497_v34  ;;  %v17510_v52 = vmul.f32 3.1415927, %v18790_v8  ;;  %v17513_v51 = vmul.f32 3.1415927, %v18791_v9  ;;  %v6686_v8 = vsel %vm6684_vm3, %v6685_v40, %v8392_v7 }
 0x67a   : > { %18789 = vst [vmem:[#allocation24_spill] sm:$0xff] %v17500_v23  ;;  %6984 = vst [vmem:[%s17254_s19 + $0xb8] sm:$0xff] %v17487_v41  ;;  %v6773_v56 = vxor.u32 2147483648, %v6772_v61  ;;  %v18792_v60 = vld [vmem:[#allocation47_spill] sm:$0xff]  ;;  %v18793_v27 = vld [vmem:[#allocation48_spill] sm:$0xff]  ;;  %v6859_v22 = vsub.s32 0, %v17507_v48 }
 0x67b   : > { %v17522_v1 = vmul.f32 3.1415927, %v18792_v60  ;;  %v17525_v39 = vmul.f32 3.1415927, %v18793_v27  ;;  %6985 = vst [vmem:[%s17254_s19 + $0xc0] sm:$0xff] %v17494_v13  ;;  %6986 = vst [vmem:[%s17254_s19 + $0xc8] sm:$0xff] %v17497_v34 }
 0x67c   : > { %6987 = vst [vmem:[%s17254_s19 + $0xd0] sm:$0xff] %v17500_v23  ;;  %v18794_v9 = vld [vmem:[#allocation28_spill] sm:$0xff]  ;;  %v18795_v41 = vld [vmem:[#allocation34_spill] sm:$0xff]  ;;  %6988 = vst [vmem:[%s17254_s19 + $0xd8] sm:$0xff] %v17510_v52  ;;  %v6774_v27 = vsel %vm6691_vm13, %v6773_v56, %v6772_v61  ;;  %vm6788_vm11 = vcmp.eq.s32.totalorder %v17519_v46, 2  ;;  %vm6785_vm15 = vcmp.eq.s32.totalorder %v17519_v46, 0 }
 0x67d   : > { %v17537_v60 = vmul.f32 3.1415927, %v18794_v9  ;;  %v17540_v14 = vmul.f32 3.1415927, %v18795_v41  ;;  %6989 = vst [vmem:[%s17254_s19 + $0xe0] sm:$0xff] %v17513_v51  ;;  %v18796_v23 = vld [vmem:[#allocation40_spill] sm:$0xff]  ;;  %v6683_v41 = vsel %vm6681_vm1, %v17419_v3, %v6682_v21  ;;  %v6777_v61 = vsel %vm17331_vm12, %v17070_v18, %v6774_v27 }
 0x67e   : > { %v17549_v7 = vmul.f32 3.1415927, %v18796_v23  ;;  %v18797_v40 = vld [vmem:[#allocation39_spill] sm:$0xff]  ;;  %v18799_v9 = vld [vmem:[#allocation46_spill] sm:$0xff]  ;;  %6990 = vst [vmem:[%s17254_s19 + $0xe8] sm:$0xff] %v17522_v1  ;;  %6991 = vst [vmem:[%s17254_s19 + $0xf0] sm:$0xff] %v17525_v39  ;;  %v7812_v23 = vmin.u32 %v6859_v22, %v17507_v48  ;;  %8393 = vcosq.f32 %v6777_v61 }
 0x67f   : > { %v17552_v34 = vmul.f32 3.1415927, %v18797_v40  ;;  %v17555_v13 = vmul.f32 3.1415927, %v18799_v9  ;;  %v18801_v56 = vld [vmem:[#allocation36_spill] sm:$0xff]  ;;  %6992 = vst [vmem:[%s17254_s19 + $0xf8] sm:$0xff] %v17537_v60  ;;  %8395 = vsinq.f32 %v6777_v61 }
 0x680   : > { %v17569_v40 = vmul.f32 3.1415927, %v18801_v56  ;;  %6993 = vst [vmem:[%s17254_s19 + $0x100] sm:$0xff] %v17540_v14  ;;  %v17576_v9 = vmul.f32 3.1415927, %v15254_v31  ;;  %v18804_v3 = vld [vmem:[#allocation52_spill] sm:$0xff]  ;;  %v6861_v56 = vclz %v7812_v23 }
 0x681   : > { %18798 = vst [vmem:[#allocation18_spill] sm:$0xff] %v17552_v34  ;;  %18800 = vst [vmem:[#allocation27_spill] sm:$0xff] %v17555_v13  ;;  %v17579_v21 = vmul.f32 3.1415927, %v18804_v3  ;;  %v17582_v27 = vmul.f32 3.1415927, %v18806_v28 }
 0x682   : > { %18802 = vst [vmem:[#allocation26_spill] sm:$0xff] %v17569_v40  ;;  %18803 = vst [vmem:[#allocation30_spill] sm:$0xff] %v17576_v9  ;;  %v6376_v22 = vsel %vm6365_vm9, nan, %v17176_v26  ;;  %v6480_v31 = vsel %vm6469_vm6, nan, %v17402_v55  ;;  %v6584_v3 = vsel %vm6573_vm5, nan, %v6583_v30  ;;  %v18808_v28 = vld [vmem:[#allocation54_spill] sm:$0xff]  ;;  %v6687_v55 = vsel %vm6680_vm14, %v6683_v41, %v6686_v8 }
 0x683   : > { %18805 = vst [vmem:[#allocation21_spill] sm:$0xff] %v17579_v21  ;;  %18807 = vst [vmem:[#allocation32_spill] sm:$0xff] %v17582_v27  ;;  %v18810_v59 = vld [vmem:[#allocation55_spill] sm:$0xff]  ;;  %v7813_v38 = vadd.s32 4294967294, %v6861_v56  ;;  %v18812_v12 = vld [vmem:[#allocation49_spill] sm:$0xff]  ;;  %v6849_v41 = vadd.s32 %v17343_v49, %v17350_v36  ;;  %vm6784_vm13 = vcmp.lt.s32.totalorder %v17519_v46, 2  ;;  %vm6885_vm9 = vweird.f32 %v17160_v24 }
 0x684   : > { %6994 = vst [vmem:[%s17254_s19 + $0x108] sm:$0xff] %v17549_v7  ;;  %6995 = vst [vmem:[%s17254_s19 + $0x110] sm:$0xff] %v17552_v34  ;;  %v17605_v26 = vmul.f32 3.1415927, %v18810_v59  ;;  %v17617_v30 = vmul.f32 3.1415927, %v18812_v12 }
 0x685   : > { %6996 = vst [vmem:[%s17254_s19 + $0x118] sm:$0xff] %v17555_v13  ;;  %6997 = vst [vmem:[%s17254_s19 + $0x120] sm:$0xff] %v17569_v40  ;;  %v17602_v13 = vmul.f32 3.1415927, %v18808_v28  ;;  %v18814_v61 = vld [vmem:[#allocation51_spill] sm:$0xff]  ;;  %v18816_v28 = vld [vmem:[#allocation16_spill] sm:$0xff] }
 0x686   : > { %18811 = vst [vmem:[#allocation37_spill] sm:$0xff] %v17605_v26  ;;  %6998 = vst [vmem:[%s17254_s19 + $0x128] sm:$0xff] %v17576_v9  ;;  %v17620_v23 = vmul.f32 3.1415927, %v18814_v61  ;;  %v17623_v59 = vmul.f32 3.1415927, %v18816_v28 }
 0x687   : > { %18809 = vst [vmem:[#allocation25_spill] sm:$0xff] %v17602_v13  ;;  %6999 = vst [vmem:[%s17254_s19 + $0x130] sm:$0xff] %v17579_v21  ;;  %v18818_v21 = vld [vmem:[#allocation50_spill] sm:$0xff]  ;;  %v18820_v62 = vld [vmem:[#allocation56_spill] sm:$0xff]  ;;  %vm7814_vm0 = vcmp.lt.s32.totalorder %v7813_v38, 0  ;;  %v6688_v61 = vsel %vm6677_vm10, nan, %v6687_v55 }
 0x688   : > { %7000 = vst [vmem:[%s17254_s19 + $0x138] sm:$0xff] %v17582_v27  ;;  %18813 = vst [vmem:[#allocation35_spill] sm:$0xff] %v17617_v30  ;;  %v17626_v27 = vmul.f32 3.1415927, %v18818_v21  ;;  %v17629_v8 = vmul.f32 3.1415927, %v18820_v62 }
 0x689   : > { %18815 = vst [vmem:[#allocation31_spill] sm:$0xff] %v17620_v23  ;;  %18817 = vst [vmem:[#allocation33_spill] sm:$0xff] %v17623_v59  ;;  %v17638_v56 = vmul.f32 3.1415927, %v16297_v19  ;;  %v18823_v12 = vld [vmem:[#allocation57_spill] sm:$0xff]  ;;  %v6864_v28 = vsel %vm7814_vm0, 0, %v7813_v38 }
 0x68a   : > { %18819 = vst [vmem:[#allocation12_spill] sm:$0xff] %v17626_v27  ;;  %18821 = vst [vmem:[#allocation38_spill] sm:$0xff] %v17629_v8  ;;  %v17641_v21 = vmul.f32 3.1415927, %v18823_v12  ;;  %v17650_v49 = vmul.f32 3.1415927, %v16611_v37  ;;  %v6866_v50 = vshll.u32 %v17507_v48, %v6864_v28 }
 0x68b   : > { %7001 = vst [vmem:[%s17254_s19 + $0x140] sm:$0xff] %v17602_v13  ;;  %7002 = vst [vmem:[%s17254_s19 + $0x148] sm:$0xff] %v17605_v26  ;;  %v17653_v19 = vmul.f32 3.1415927, %v16617_v29  ;;  %v6865_v36 = vsub.s32 32, %v6864_v28  ;;  %v6869_v55 = vsub.s32 4294967266, %v6864_v28 }
 0x68c   : > { %18822 = vst [vmem:[#allocation41_spill] sm:$0xff] %v17638_v56  ;;  %18824 = vst [vmem:[#allocation42_spill] sm:$0xff] %v17641_v21  ;;  %v17663_v38 = vmul.f32 3.1415927, %v16621_v20  ;;  %v17670_v37 = vmul.f32 3.1415927, %v16624_v44 }
 0x68d   : > { %7003 = vst [vmem:[%s17254_s19 + $0x150] sm:$0xff] %v17617_v30  ;;  %7004 = vst [vmem:[%s17254_s19 + $0x158] sm:$0xff] %v17620_v23  ;;  %v17673_v29 = vmul.f32 3.1415927, %v16796_v10  ;;  %v17676_v62 = vmul.f32 3.1415927, %v16924_v53  ;;  %v6867_v20 = vshrl.u32 %v6849_v41, %v6865_v36  ;;  %v8394_v10 = vpop.eup %8393 }
 0x68e   : > { %18825 = vst [vmem:[#allocation29_spill] sm:$0xff] %v17650_v49  ;;  %18826 = vst [vmem:[#allocation43_spill] sm:$0xff] %v17653_v19  ;;  %v6870_v48 = vadd.s32 127, %v6869_v55  ;;  %v17683_v12 = vmul.f32 3.1415927, %v17164_v45  ;;  %v8396_v45 = vpop.eup %8395  ;;  %vm6795_vm12 = vcmp.lt.s32.totalorder %v17160_v24, 0 }
 0x68f   : > { %7005 = vst [vmem:[%s17254_s19 + $0x160] sm:$0xff] %v17623_v59  ;;  %7006 = vst [vmem:[%s17254_s19 + $0x168] sm:$0xff] %v17626_v27  ;;  %v17686_v44 = vmul.f32 3.1415927, %v17168_v63  ;;  %v17691_v53 = vmul.f32 3.1415927, %v17172_v42  ;;  %v6868_v36 = vor.u32 %v6867_v20, %v6866_v50 }
 0x690   : > { %7007 = vst [vmem:[%s17254_s19 + $0x170] sm:$0xff] %v17629_v8  ;;  %18827 = vst [vmem:[#allocation45_spill] sm:$0xff] %v17663_v38  ;;  %v17693_v28 = vmul.f32 3.1415927, %v6376_v22  ;;  %v17695_v41 = vmul.f32 3.1415927, %v6480_v31 }
 0x691   : > { %7008 = vst [vmem:[%s17254_s19 + $0x178] sm:$0xff] %v17638_v56  ;;  %7009 = vst [vmem:[%s17254_s19 + $0x180] sm:$0xff] %v17641_v21  ;;  %v6789_v63 = vxor.u32 2147483648, %v8394_v10  ;;  %v6871_v55 = vshll.u32 %v6870_v48, 23  ;;  %v17703_v42 = vmul.f32 3.1415927, %v6584_v3  ;;  %v6875_v20 = vcvt.s32.f32 %v6868_v36 }
 0x692   : > { %18828 = vst [vmem:[#allocation44_spill] sm:$0xff] %v17670_v37  ;;  %18829 = vst [vmem:[#allocation47_spill] sm:$0xff] %v17673_v29  ;;  %v6786_v22 = vxor.u32 2147483648, %v8396_v45  ;;  %v17710_v31 = vmul.f32 3.1415927, %v6688_v61  ;;  %vm7029_vm6 = vcmask (!%p7815_p6), 0  }
 0x693   : > { %18830 = vst [vmem:[#allocation48_spill] sm:$0xff] %v17676_v62  ;;  %7010 = vst [vmem:[%s17254_s19 + $0x188] sm:$0xff] %v17650_v49  ;;  %v6790_v3 = vsel %vm6788_vm11, %v6789_v63, %v8396_v45  ;;  %v6872_v50 = vor.u32 4788187, %v6871_v55  ;;  %v18839_v45 = vand.u32 2147483647, %v17160_v24 }
 0x694   : > { %7011 = vst [vmem:[%s17254_s19 + $0x190] sm:$0xff] %v17653_v19  ;;  %18831 = vst [vmem:[#allocation28_spill] sm:$0xff] %v17683_v12  ;;  %v6787_v61 = vsel %vm6785_vm15, %v8394_v10, %v6786_v22 }
 0x695   : > { %18832 = vst [vmem:[#allocation34_spill] sm:$0xff] %v17686_v44  ;;  %7012 = vst [vmem:[%s17254_s19 + $0x198] sm:$0xff] %v17663_v38  ;;  %v6791_v48 = vsel %vm6784_vm13, %v6787_v61, %v6790_v3  ;;  %vm6794_vm2 = vcmp.le.f32.partialorder %v18839_v45, 0.7853982  ;;  %v8600_v45 = vmov (!%p7815_p6), 0.0  }
 0x696   : > { %18833 = vst [vmem:[#allocation40_spill] sm:$0xff] %v17691_v53  ;;  %18834 = vst [vmem:[#allocation39_spill] sm:$0xff] %v17693_v28 }
 0x697   : > { %18835 = vst [vmem:[#allocation46_spill] sm:$0xff] %v17695_v41  ;;  %7013 = vst [vmem:[%s17254_s19 + $0x1a0] sm:$0xff] %v17670_v37 }
 0x698   : > { %7014 = vst [vmem:[%s17254_s19 + $0x1a8] sm:$0xff] %v17673_v29  ;;  %7015 = vst [vmem:[%s17254_s19 + $0x1b0] sm:$0xff] %v17676_v62 }
 0x699   : > { %18836 = vst [vmem:[#allocation36_spill] sm:$0xff] %v17703_v42  ;;  %7016 = vst [vmem:[%s17254_s19 + $0x1b8] sm:$0xff] %v17683_v12 }
 0x69a   : > { %7017 = vst [vmem:[%s17254_s19 + $0x1c0] sm:$0xff] %v17686_v44  ;;  %18837 = vst [vmem:[#allocation52_spill] sm:$0xff] %v17710_v31 }
 0x69b   : > { %7018 = vst [vmem:[%s17254_s19 + $0x1c8] sm:$0xff] %v17691_v53  ;;  %7019 = vst [vmem:[%s17254_s19 + $0x1d0] sm:$0xff] %v17693_v28  ;;  %v6873_v53 = vand.u32 2147483647, %v6872_v50  ;;  %v6879_v28 = vsub.s32 4, %v17458_v5 }
 0x69c   : > { %7020 = vst [vmem:[%s17254_s19 + $0x1d8] sm:$0xff] %v17695_v41  ;;  %7021 = vst [vmem:[%s17254_s19 + $0x1e0] sm:$0xff] %v17703_v42  ;;  %v6792_v41 = vsel %vm6781_vm7, nan, %v6791_v48 }
 0x69d   : > { %7022 = vst [vmem:[%s17254_s19 + $0x1e8] sm:$0xff] %v17710_v31  ;;  %v6876_v44 = vmul.f32 %v6875_v20, %v6873_v53  ;;  %v17728_v18 = vmul.f32 3.1415927, %v6792_v41  ;;  %v6880_v36 = vsel %vm6795_vm12, %v6879_v28, %v17458_v5  ;;  %7030 = vst.msk [vmem:[#allocation6] sm:$0x1] (!%p7815_p6), %vm7029_vm6, %v8600_v45 }
 0x69e   : > { %v6882_v55 = vsel %vm6794_vm2, 0, %v6880_v36 }
 0x69f   : > { %18838 = vst [vmem:[#allocation53_spill] sm:$0xff] %v17728_v18  ;;  %v6877_v63 = vxor.u32 2147483648, %v6876_v44  ;;  %7023 = vst [vmem:[%s17254_s19 + $0x1f0] sm:$0xff] %v17728_v18  ;;  %v6886_v53 = vadd.s32 3, %v6882_v55 }
 0x6a1   : > { %v6878_v46 = vsel %vm6795_vm12, %v6877_v63, %v6876_v44  ;;  %v6887_v41 = vand.u32 3, %v6886_v53 }
 0x6a2   : > { %v6881_v10 = vsel %vm6794_vm2, %v17160_v24, %v6878_v46 }
 0x6a3   : > { %8397 = vcosq.f32 %v6881_v10  ;;  %vm6892_vm4 = vcmp.eq.s32.totalorder %v6887_v41, 2  ;;  %vm6889_vm8 = vcmp.eq.s32.totalorder %v6887_v41, 0  ;;  %vm6888_vm1 = vcmp.lt.s32.totalorder %v6887_v41, 2 }
 0x6a4   : > { %8399 = vsinq.f32 %v6881_v10 }
 0x6ad   : > { %v8398_v22 = vpop.eup %8397 }
 0x6ae   : > { %v8400_v3 = vpop.eup %8399  ;;  %v6893_v50 = vxor.u32 2147483648, %v8398_v22 }
 0x6af   : > { %v6890_v20 = vxor.u32 2147483648, %v8400_v3 }
 0x6b0   : > { %v6894_v5 = vsel %vm6892_vm4, %v6893_v50, %v8400_v3  ;;  %7028 = sbr.rel (%p7815_p6) target bundleno = 1719 (0x6b7), region = 32 }
 0x6b1   : > { %v6891_v28 = vsel %vm6889_vm8, %v8398_v22, %v6890_v20 }
 0x6b2   : > { %v6895_v44 = vsel %vm6888_vm1, %v6891_v28, %v6894_v5 }
 0x6b3   : > { %v6896_v61 = vsel %vm6885_vm9, nan, %v6895_v44 }
 0x6b4   : > { %v17738_v48 = vmul.f32 3.1415927, %v6896_v61 }
 0x6b6   : > { %18840 = vst [vmem:[#allocation54_spill] sm:$0xff] %v17738_v48  ;;  %7024 = vst [vmem:[%s17254_s19 + $0x1f8] sm:$0xff] %v17738_v48 }
 0x6b7 PF: > { %v7032_v63 = vlaneseq  ;;  %s7816_s26 = sshll.u32 %s8641_s13, 9  ;;  %s7432_s5 = scalar_lea.sflag [#allocation4], %s8720_s3 }
 0x6b8   : > { %v17749_v55 = vstv %s7816_s26  ;;  %s7818_s6 = sshll.u32 (%p8666_p9), %s8641_s13, 6 }
 0x6b9   : > { %v17744_v36 = vshrl.u32 %v7032_v63, 7  ;;  %s7440_s14 = ssub.s32 (%p8666_p9), 129, %s7818_s6 }
 0x6ba   : > { %p7441_p7 = scmp.lt.s32.totalorder (%p8666_p9), %s7440_s14, 64 }
 0x6bb   : > { %v7066_v24 = vadd.s32 264, %v17744_v36  ;;  %v7067_v46 = vadd.s32 272, %v17744_v36  ;;  %v7068_v10 = vadd.s32 280, %v17744_v36  ;;  %v7069_v53 = vadd.s32 288, %v17744_v36 }
 0x6bc   : > { %v7070_v41 = vadd.s32 296, %v17744_v36  ;;  %v7071_v22 = vadd.s32 304, %v17744_v36  ;;  %v7072_v3 = vadd.s32 312, %v17744_v36  ;;  %v7073_v50 = vadd.s32 320, %v17744_v36 }
 0x6bd   : > { %v7074_v20 = vadd.s32 328, %v17744_v36  ;;  %v7075_v5 = vadd.s32 336, %v17744_v36  ;;  %v7076_v28 = vadd.s32 344, %v17744_v36  ;;  %v7077_v44 = vadd.s32 352, %v17744_v36 }
 0x6be   : > { %v7078_v61 = vadd.s32 360, %v17744_v36  ;;  %v7079_v45 = vadd.s32 368, %v17744_v36  ;;  %v7080_v63 = vadd.s32 376, %v17744_v36  ;;  %v7081_v48 = vadd.s32 384, %v17744_v36 }
 0x6bf   : > { %v7082_v18 = vadd.s32 392, %v17744_v36  ;;  %v7083_v31 = vadd.s32 400, %v17744_v36  ;;  %v7084_v42 = vadd.s32 408, %v17744_v36  ;;  %v7085_v12 = vadd.s32 416, %v17744_v36 }
 0x6c0   : > { %v7086_v62 = vadd.s32 424, %v17744_v36  ;;  %v7087_v29 = vadd.s32 432, %v17744_v36  ;;  %v7088_v37 = vadd.s32 440, %v17744_v36  ;;  %v7089_v38 = vadd.s32 448, %v17744_v36 }
 0x6c1   : > { %v7090_v19 = vadd.s32 456, %v17744_v36  ;;  %v7091_v49 = vadd.s32 464, %v17744_v36  ;;  %v7092_v21 = vadd.s32 472, %v17744_v36  ;;  %v7093_v56 = vadd.s32 480, %v17744_v36 }
 0x6c2   : > { %v7094_v8 = vadd.s32 488, %v17744_v36  ;;  %v7095_v27 = vadd.s32 496, %v17744_v36  ;;  %v7096_v59 = vadd.s32 504, %v17744_v36  ;;  %v17780_v23 = vadd.s32 %v17749_v55, %v7066_v24 }
 0x6c3   : > { %v17783_v30 = vadd.s32 %v17749_v55, %v7067_v46  ;;  %v17786_v26 = vadd.s32 %v17749_v55, %v7068_v10  ;;  %v17789_v13 = vadd.s32 %v17749_v55, %v7069_v53  ;;  %v17792_v9 = vadd.s32 %v17749_v55, %v7070_v41 }
 0x6c4   : > { %v17795_v40 = vadd.s32 %v17749_v55, %v7071_v22  ;;  %v17798_v34 = vadd.s32 %v17749_v55, %v7072_v3  ;;  %v17801_v24 = vadd.s32 %v17749_v55, %v7073_v50  ;;  %v17804_v46 = vadd.s32 %v17749_v55, %v7074_v20 }
 0x6c5   : > { %v17807_v10 = vadd.s32 %v17749_v55, %v7075_v5  ;;  %v17810_v53 = vadd.s32 %v17749_v55, %v7076_v28  ;;  %v17813_v41 = vadd.s32 %v17749_v55, %v7077_v44  ;;  %v17816_v22 = vadd.s32 %v17749_v55, %v7078_v61 }
 0x6c6   : > { %v17819_v3 = vadd.s32 %v17749_v55, %v7079_v45  ;;  %v17822_v50 = vadd.s32 %v17749_v55, %v7080_v63  ;;  %v17825_v20 = vadd.s32 %v17749_v55, %v7081_v48  ;;  %v17828_v5 = vadd.s32 %v17749_v55, %v7082_v18 }
 0x6c7   : > { %v17831_v28 = vadd.s32 %v17749_v55, %v7083_v31  ;;  %v17834_v44 = vadd.s32 %v17749_v55, %v7084_v42  ;;  %v17837_v61 = vadd.s32 %v17749_v55, %v7085_v12  ;;  %v17840_v45 = vadd.s32 %v17749_v55, %v7086_v62 }
 0x6c8   : > { %v17843_v63 = vadd.s32 %v17749_v55, %v7087_v29  ;;  %v17846_v48 = vadd.s32 %v17749_v55, %v7088_v37  ;;  %v17849_v18 = vadd.s32 %v17749_v55, %v7089_v38  ;;  %v17852_v31 = vadd.s32 %v17749_v55, %v7090_v19 }
 0x6c9   : > { %v17855_v42 = vadd.s32 %v17749_v55, %v7091_v49  ;;  %v17858_v12 = vadd.s32 %v17749_v55, %v7092_v21  ;;  %v17861_v62 = vadd.s32 %v17749_v55, %v7093_v56  ;;  %v17864_v29 = vadd.s32 %v17749_v55, %v7094_v8 }
 0x6ca   : > { %18841 = vst [vmem:[#allocation55_spill] sm:$0xff] %v17849_v18  ;;  %18842 = vst [vmem:[#allocation49_spill] sm:$0xff] %v17852_v31  ;;  %v17867_v37 = vadd.s32 %v17749_v55, %v7095_v27  ;;  %v17870_v38 = vadd.s32 %v17749_v55, %v7096_v59  ;;  %v7034_v19 = vadd.s32 8, %v17744_v36  ;;  %v7035_v49 = vadd.s32 16, %v17744_v36 }
 0x6cb   : > { %18843 = vst [vmem:[#allocation51_spill] sm:$0xff] %v17855_v42  ;;  %18844 = vst [vmem:[#allocation16_spill] sm:$0xff] %v17858_v12  ;;  %v7036_v42 = vadd.s32 24, %v17744_v36  ;;  %v7098_v21 = vadd.s32 %v17749_v55, %v17744_v36  ;;  %v7037_v8 = vadd.s32 32, %v17744_v36  ;;  %v7226_v27 = vmul.f32 %v17239_v16, %v17239_v16 }
 0x6cc   : > { %18845 = vst [vmem:[#allocation50_spill] sm:$0xff] %v17861_v62  ;;  %18846 = vst [vmem:[#allocation56_spill] sm:$0xff] %v17864_v29  ;;  %v7099_v56 = vadd.s32 %v17749_v55, %v7034_v19  ;;  %v7100_v29 = vadd.s32 %v17749_v55, %v7035_v49  ;;  %v7227_v59 = vmul.f32 %v17247_v54, %v17247_v54  ;;  %v7039_v19 = vadd.s32 48, %v17744_v36 }
 0x6cd   : > { %18847 = vst [vmem:[#allocation57_spill] sm:$0xff] %v17867_v37  ;;  %18848 = vst [vmem:[#allocation58_spill] sm:$0xff] %v17870_v38  ;;  %v7038_v38 = vadd.s32 40, %v17744_v36  ;;  %v7101_v37 = vadd.s32 %v17749_v55, %v7036_v42  ;;  %vm7162_vm3 = vcmp.lt.s32.totalorder %v7098_v21, 1027  ;;  %v7228_v62 = vmul.f32 %v17250_v57, %v17250_v57 }
 0x6ce   : > { %vm7163_vm5 = vcmp.lt.s32.totalorder %v7099_v56, 1027  ;;  %v7102_v12 = vadd.s32 %v17749_v55, %v7037_v8  ;;  %vm7164_vm14 = vcmp.lt.s32.totalorder %v7100_v29, 1027  ;;  %v7229_v16 = vmul.f32 %v17339_v47, %v17339_v47 }
 0x6cf   : > { %v7290_v49 = vsel %vm7162_vm3, %v7226_v27, 0.0  ;;  %v7291_v31 = vsel %vm7163_vm5, %v7227_v59, 0.0  ;;  %v7040_v54 = vadd.s32 56, %v17744_v36  ;;  %v7103_v18 = vadd.s32 %v17749_v55, %v7038_v38 }
 0x6d0   : > { %vm7165_vm10 = vcmp.lt.s32.totalorder %v7101_v37, 1027  ;;  %v7230_v42 = vmul.f32 %v17353_v33, %v17353_v33  ;;  %v7292_v21 = vsel %vm7164_vm14, %v7228_v62, 0.0  ;;  %v7041_v57 = vadd.s32 64, %v17744_v36 }
 0x6d1   : > { %v7104_v56 = vadd.s32 %v17749_v55, %v7039_v19  ;;  %vm7166_vm11 = vcmp.lt.s32.totalorder %v7102_v12, 1027  ;;  %v7355_v29 = vadd.f32 %v7291_v31, %v7290_v49  ;;  %v7231_v47 = vmul.f32 %v17356_v25, %v17356_v25 }
 0x6d2   : > { %v7293_v8 = vsel %vm7165_vm10, %v7229_v16, 0.0  ;;  %v7042_v27 = vadd.s32 72, %v17744_v36  ;;  %v7105_v59 = vadd.s32 %v17749_v55, %v7040_v54  ;;  %vm7167_vm15 = vcmp.lt.s32.totalorder %v7103_v18, 1027 }
 0x6d3   : > { %v7356_v37 = vadd.f32 %v7355_v29, %v7292_v21  ;;  %v7232_v33 = vmul.f32 %v17361_v32, %v17361_v32  ;;  %v7294_v62 = vsel %vm7166_vm11, %v7230_v42, 0.0  ;;  %v7043_v38 = vadd.s32 80, %v17744_v36 }
 0x6d4   : > { %v7106_v19 = vadd.s32 %v17749_v55, %v7041_v57  ;;  %vm7168_vm0 = vcmp.lt.s32.totalorder %v7104_v56, 1027  ;;  %v7233_v25 = vmul.f32 %v17364_v17, %v17364_v17  ;;  %v7295_v12 = vsel %vm7167_vm15, %v7231_v47, 0.0 }
 0x6d5   : > { %v7357_v31 = vadd.f32 %v7356_v37, %v7293_v8  ;;  %v7044_v16 = vadd.s32 88, %v17744_v36  ;;  %v7107_v49 = vadd.s32 %v17749_v55, %v7042_v27  ;;  %vm7169_vm13 = vcmp.lt.s32.totalorder %v7105_v59, 1027 }
 0x6d6   : > { %v7234_v32 = vmul.f32 %v17368_v15, %v17368_v15  ;;  %v7296_v54 = vsel %vm7168_vm0, %v7232_v33, 0.0  ;;  %v7045_v42 = vadd.s32 96, %v17744_v36  ;;  %v7108_v21 = vadd.s32 %v17749_v55, %v7043_v38 }
 0x6d7   : > { %v7358_v18 = vadd.f32 %v7357_v31, %v7294_v62  ;;  %vm7170_vm7 = vcmp.lt.s32.totalorder %v7106_v19, 1027  ;;  %v7235_v17 = vmul.f32 %v17371_v35, %v17371_v35  ;;  %v7297_v56 = vsel %vm7169_vm13, %v7233_v25, 0.0 }
 0x6d8   : > { %v7046_v29 = vadd.s32 104, %v17744_v36  ;;  %v7109_v47 = vadd.s32 %v17749_v55, %v7044_v16  ;;  %vm7171_vm12 = vcmp.lt.s32.totalorder %v7107_v49, 1027  ;;  %v7236_v15 = vmul.f32 %v17389_v0, %v17389_v0 }
 0x6d9   : > { %v7359_v57 = vadd.f32 %v7358_v18, %v7295_v12  ;;  %v7298_v27 = vsel %vm7170_vm7, %v7234_v32, 0.0  ;;  %v7047_v59 = vadd.s32 112, %v17744_v36  ;;  %v7110_v37 = vadd.s32 %v17749_v55, %v7045_v42 }
 0x6da   : > { %vm7172_vm2 = vcmp.lt.s32.totalorder %v7108_v21, 1027  ;;  %v7237_v35 = vmul.f32 %v17392_v2, %v17392_v2  ;;  %v7299_v62 = vsel %vm7171_vm12, %v7235_v17, 0.0  ;;  %v7048_v38 = vadd.s32 120, %v17744_v36 }
 0x6db   : > { %v7360_v8 = vadd.f32 %v7359_v57, %v7296_v54  ;;  %v7111_v19 = vadd.s32 %v17749_v55, %v7046_v29  ;;  %vm7173_vm4 = vcmp.lt.s32.totalorder %v7109_v47, 1027  ;;  %v7238_v0 = vmul.f32 %v17410_v58, %v17410_v58 }
 0x6dc   : > { %v7300_v25 = vsel %vm7172_vm2, %v7236_v15, 0.0  ;;  %v7049_v12 = vadd.s32 128, %v17744_v36  ;;  %v7112_v16 = vadd.s32 %v17749_v55, %v7047_v59  ;;  %vm7174_vm8 = vcmp.lt.s32.totalorder %v7110_v37, 1027 }
 0x6dd   : > { %v7361_v33 = vadd.f32 %v7360_v8, %v7297_v56  ;;  %v7239_v2 = vmul.f32 %v17413_v6, %v17413_v6  ;;  %v7301_v18 = vsel %vm7173_vm4, %v7237_v35, 0.0  ;;  %v7050_v32 = vadd.s32 136, %v17744_v36  ;;  %v18849_v35 = vld [vmem:[#allocation11_spill] sm:$0xff] }
 0x6de   : > { %v7113_v54 = vadd.s32 %v17749_v55, %v7048_v38  ;;  %vm7175_vm1 = vcmp.lt.s32.totalorder %v7111_v19, 1027  ;;  %v7240_v58 = vmul.f32 %v17425_v11, %v17425_v11  ;;  %v7302_v21 = vsel %vm7174_vm8, %v7238_v0, 0.0  ;;  %v18850_v0 = vld [vmem:[#allocation13_spill] sm:$0xff] }
 0x6df   : > { %v7362_v31 = vadd.f32 %v7361_v33, %v7298_v27  ;;  %v7051_v57 = vadd.s32 144, %v17744_v36  ;;  %v7114_v17 = vadd.s32 %v17749_v55, %v7049_v12  ;;  %vm7176_vm9 = vcmp.lt.s32.totalorder %v7112_v16, 1027 }
 0x6e0   : > { %v7241_v6 = vmul.f32 %v17431_v43, %v17431_v43  ;;  %v7303_v29 = vsel %vm7175_vm1, %v7239_v2, 0.0  ;;  %v7052_v47 = vadd.s32 152, %v17744_v36  ;;  %v7115_v8 = vadd.s32 %v17749_v55, %v7050_v32  ;;  %v18851_v2 = vld [vmem:[#allocation14_spill] sm:$0xff] }
 0x6e1   : > { %v7363_v49 = vadd.f32 %v7362_v31, %v7299_v62  ;;  %vm7177_vm6 = vcmp.lt.s32.totalorder %v7113_v54, 1027  ;;  %v7242_v11 = vmul.f32 %v17434_v4, %v17434_v4  ;;  %v7304_v27 = vsel %vm7176_vm9, %v7240_v58, 0.0 }
 0x6e2   : > { %v7053_v59 = vadd.s32 160, %v17744_v36  ;;  %v7116_v37 = vadd.s32 %v17749_v55, %v7051_v57  ;;  %vm7178_vm3 = vcmp.lt.s32.totalorder %v7114_v17, 1027  ;;  %v7243_v43 = vmul.f32 %v18849_v35, %v18849_v35 }
 0x6e3   : > { %v7364_v42 = vadd.f32 %v7363_v49, %v7300_v25  ;;  %v7305_v62 = vsel %vm7177_vm6, %v7241_v6, 0.0  ;;  %v7054_v38 = vadd.s32 168, %v17744_v36  ;;  %v7117_v19 = vadd.s32 %v17749_v55, %v7052_v47  ;;  %v18853_v47 = vld [vmem:[#allocation20_spill] sm:$0xff] }
 0x6e4   : > { %vm7179_vm5 = vcmp.lt.s32.totalorder %v7115_v8, 1027  ;;  %v7244_v4 = vmul.f32 %v18850_v0, %v18850_v0  ;;  %v7306_v25 = vsel %vm7178_vm3, %v7242_v11, 0.0  ;;  %v7055_v12 = vadd.s32 176, %v17744_v36 }
 0x6e5   : > { %v7365_v56 = vadd.f32 %v7364_v42, %v7301_v18  ;;  %v7118_v16 = vadd.s32 %v17749_v55, %v7053_v59  ;;  %vm7180_vm14 = vcmp.lt.s32.totalorder %v7116_v37, 1027  ;;  %v7245_v18 = vmul.f32 %v18851_v2, %v18851_v2  ;;  %v18854_v37 = vld [vmem:[#allocation19_spill] sm:$0xff] }
 0x6e6   : > { %v7307_v32 = vsel %vm7179_vm5, %v7243_v43, 0.0  ;;  %v7056_v54 = vadd.s32 184, %v17744_v36  ;;  %v7119_v42 = vadd.s32 %v17749_v55, %v7054_v38  ;;  %vm7181_vm10 = vcmp.lt.s32.totalorder %v7117_v19, 1027  ;;  %v18855_v19 = vld [vmem:[#allocation17_spill] sm:$0xff] }
 0x6e7   : > { %v7366_v15 = vadd.f32 %v7365_v56, %v7302_v21  ;;  %v18852_v21 = vld [vmem:[#allocation15_spill] sm:$0xff]  ;;  %v7308_v17 = vsel %vm7180_vm14, %v7244_v4, 0.0  ;;  %v7057_v56 = vadd.s32 192, %v17744_v36  ;;  %v7120_v6 = vadd.s32 %v17749_v55, %v7055_v12 }
 0x6e8   : > { %v7246_v57 = vmul.f32 %v18852_v21, %v18852_v21  ;;  %vm7182_vm11 = vcmp.lt.s32.totalorder %v7118_v16, 1027  ;;  %v7247_v8 = vmul.f32 %v18853_v47, %v18853_v47  ;;  %v7058_v11 = vadd.s32 200, %v17744_v36  ;;  %v18856_v16 = vld [vmem:[#allocation23_spill] sm:$0xff] }
 0x6e9   : > { %v7367_v33 = vadd.f32 %v7366_v15, %v7303_v29  ;;  %v7309_v15 = vsel %vm7181_vm10, %v7245_v18, 0.0  ;;  %vm7183_vm15 = vcmp.lt.s32.totalorder %v7119_v42, 1027  ;;  %v7059_v43 = vadd.s32 208, %v17744_v36  ;;  %v18857_v42 = vld [vmem:[#allocation22_spill] sm:$0xff] }
 0x6ea   : > { %v7310_v35 = vsel %vm7182_vm11, %v7246_v57, 0.0  ;;  %vm7184_vm0 = vcmp.lt.s32.totalorder %v7120_v6, 1027  ;;  %v7311_v0 = vsel %vm7183_vm15, %v7247_v8, 0.0  ;;  %v7060_v4 = vadd.s32 216, %v17744_v36  ;;  %v18858_v6 = vld [vmem:[#allocation24_spill] sm:$0xff] }
 0x6eb   : > { %v7368_v31 = vadd.f32 %v7367_v33, %v7304_v27  ;;  %v7121_v27 = vadd.s32 %v17749_v55, %v7056_v54  ;;  %v7248_v33 = vmul.f32 %v18854_v37, %v18854_v37  ;;  %v7061_v18 = vadd.s32 224, %v17744_v36 }
 0x6ec   : > { %v7062_v57 = vadd.s32 232, %v17744_v36  ;;  %v7063_v8 = vadd.s32 240, %v17744_v36  ;;  %v7064_v37 = vadd.s32 248, %v17744_v36  ;;  %vm7195_vm5 = vcmp.lt.s32.totalorder %v17780_v23, 1027 }
 0x6ed   : > { %v7369_v49 = vadd.f32 %v7368_v31, %v7305_v62  ;;  %v7122_v62 = vadd.s32 %v17749_v55, %v7057_v56  ;;  %v7249_v31 = vmul.f32 %v18855_v19, %v18855_v19  ;;  %vm7185_vm13 = vcmp.lt.s32.totalorder %v7121_v27, 1027 }
 0x6ee   : > { %v7312_v2 = vsel %vm7184_vm0, %v7248_v33, 0.0  ;;  %v7253_v27 = vmul.f32 %v17510_v52, %v17510_v52  ;;  %v7127_v33 = vadd.s32 %v17749_v55, %v7062_v57  ;;  %v7128_v19 = vadd.s32 %v17749_v55, %v7063_v8  ;;  %v18862_v8 = vld [vmem:[#allocation30_spill] sm:$0xff] }
 0x6ef   : > { %v7370_v58 = vadd.f32 %v7369_v49, %v7306_v25  ;;  %v7123_v25 = vadd.s32 %v17749_v55, %v7058_v11  ;;  %v7250_v49 = vmul.f32 %v18856_v16, %v18856_v16  ;;  %vm7186_vm7 = vcmp.lt.s32.totalorder %v7122_v62, 1027 }
 0x6f0   : > { %v7313_v21 = vsel %vm7185_vm13, %v7249_v31, 0.0  ;;  %v7255_v52 = vmul.f32 %v17522_v1, %v17522_v1  ;;  %vm7191_vm1 = vcmp.lt.s32.totalorder %v7127_v33, 1027  ;;  %vm7192_vm9 = vcmp.lt.s32.totalorder %v7128_v19, 1027  ;;  %v18864_v33 = vld [vmem:[#allocation32_spill] sm:$0xff] }
 0x6f1   : > { %v7371_v29 = vadd.f32 %v7370_v58, %v7307_v32  ;;  %v7124_v32 = vadd.s32 %v17749_v55, %v7059_v43  ;;  %v7251_v58 = vmul.f32 %v18857_v42, %v18857_v42  ;;  %vm7187_vm12 = vcmp.lt.s32.totalorder %v7123_v25, 1027 }
 0x6f2   : > { %v7314_v47 = vsel %vm7186_vm7, %v7250_v49, 0.0  ;;  %v7254_v43 = vmul.f32 %v17513_v51, %v17513_v51  ;;  %v7257_v49 = vmul.f32 %v17537_v60, %v17537_v60  ;;  %v7258_v1 = vmul.f32 %v17540_v14, %v17540_v14 }
 0x6f3   : > { %v7372_v59 = vadd.f32 %v7371_v29, %v7308_v17  ;;  %v7125_v17 = vadd.s32 %v17749_v55, %v7060_v4  ;;  %v7252_v29 = vmul.f32 %v18858_v6, %v18858_v6  ;;  %vm7188_vm2 = vcmp.lt.s32.totalorder %v7124_v32, 1027 }
 0x6f4   : > { %v7129_v4 = vadd.s32 %v17749_v55, %v7064_v37  ;;  %vm7196_vm14 = vcmp.lt.s32.totalorder %v17783_v30, 1027  ;;  %vm7197_vm10 = vcmp.lt.s32.totalorder %v17786_v26, 1027  ;;  %vm7198_vm11 = vcmp.lt.s32.totalorder %v17789_v13, 1027 }
 0x6f5   : > { %v7373_v38 = vadd.f32 %v7372_v59, %v7309_v15  ;;  %v7126_v15 = vadd.s32 %v17749_v55, %v7061_v18  ;;  %v7315_v59 = vsel %vm7187_vm12, %v7251_v58, 0.0  ;;  %vm7189_vm4 = vcmp.lt.s32.totalorder %v7125_v17, 1027  ;;  %v18859_v58 = vld [vmem:[#allocation18_spill] sm:$0xff]  ;;  %v18860_v17 = vld [vmem:[#allocation27_spill] sm:$0xff] }
 0x6f6   : > { %v7316_v62 = vsel %vm7188_vm2, %v7252_v29, 0.0  ;;  %vm7193_vm6 = vcmp.lt.s32.totalorder %v7129_v4, 1027  ;;  %v7261_v14 = vmul.f32 %v18860_v17, %v18860_v17  ;;  %v18861_v29 = vld [vmem:[#allocation26_spill] sm:$0xff]  ;;  %vm7199_vm15 = vcmp.lt.s32.totalorder %v17792_v9, 1027  ;;  %v18867_v4 = vld [vmem:[#allocation35_spill] sm:$0xff] }
 0x6f7   : > { %v7374_v12 = vadd.f32 %v7373_v38, %v7310_v35  ;;  %v7065_v38 = vadd.s32 256, %v17744_v36  ;;  %vm7190_vm8 = vcmp.lt.s32.totalorder %v7126_v15, 1027  ;;  %v7321_v42 = vsel %vm7193_vm6, %v7257_v49, 0.0  ;;  %v18869_v49 = vld [vmem:[#allocation33_spill] sm:$0xff] }
 0x6f8   : > { %v7318_v16 = vsel %vm7190_vm8, %v7254_v43, 0.0  ;;  %v7263_v15 = vmul.f32 %v18862_v8, %v18862_v8  ;;  %vm7200_vm0 = vcmp.lt.s32.totalorder %v17795_v40, 1027  ;;  %vm7201_vm13 = vcmp.lt.s32.totalorder %v17798_v34, 1027  ;;  %v18876_v8 = vld [vmem:[#allocation45_spill] sm:$0xff] }
 0x6f9   : > { %v7375_v54 = vadd.f32 %v7374_v12, %v7311_v0  ;;  %v7317_v0 = vsel %vm7189_vm4, %v7253_v27, 0.0  ;;  %v7256_v12 = vmul.f32 %v17525_v39, %v17525_v39  ;;  %v7130_v51 = vadd.s32 %v17749_v55, %v7065_v38  ;;  %v18863_v27 = vld [vmem:[#allocation21_spill] sm:$0xff] }
 0x6fa   : > { %v7259_v39 = vmul.f32 %v17549_v7, %v17549_v7  ;;  %v7262_v7 = vmul.f32 %v18861_v29, %v18861_v29  ;;  %v7327_v43 = vsel %vm7199_vm15, %v7263_v15, 0.0  ;;  %vm7202_vm7 = vcmp.lt.s32.totalorder %v17801_v24, 1027 }
 0x6fb   : > { %v7376_v56 = vadd.f32 %v7375_v54, %v7312_v2  ;;  %v7319_v2 = vsel %vm7191_vm1, %v7255_v52, 0.0  ;;  %v7320_v32 = vsel %vm7192_vm9, %v7256_v12, 0.0  ;;  %vm7194_vm3 = vcmp.lt.s32.totalorder %v7130_v51, 1027 }
 0x6fc   : > { %v7322_v60 = vsel %vm7194_vm3, %v7258_v1, 0.0  ;;  %v7326_v37 = vsel %vm7198_vm11, %v7262_v7, 0.0  ;;  %vm7203_vm12 = vcmp.lt.s32.totalorder %v17804_v46, 1027  ;;  %vm7204_vm2 = vcmp.lt.s32.totalorder %v17807_v10, 1027  ;;  %v18870_v1 = vld [vmem:[#allocation12_spill] sm:$0xff]  ;;  %v18875_v7 = vld [vmem:[#allocation43_spill] sm:$0xff] }
 0x6fd   : > { %v7377_v11 = vadd.f32 %v7376_v56, %v7313_v21  ;;  %v7260_v21 = vmul.f32 %v18859_v58, %v18859_v58  ;;  %v7323_v56 = vsel %vm7195_vm5, %v7259_v39, 0.0  ;;  %vm7205_vm4 = vcmp.lt.s32.totalorder %v17810_v53, 1027  ;;  %v18871_v39 = vld [vmem:[#allocation38_spill] sm:$0xff]  ;;  %v18872_v58 = vld [vmem:[#allocation41_spill] sm:$0xff] }
 0x6fe   : > { %vm7206_vm8 = vcmp.lt.s32.totalorder %v17813_v41, 1027  ;;  %vm7207_vm1 = vcmp.lt.s32.totalorder %v17816_v22, 1027  ;;  %vm7208_vm9 = vcmp.lt.s32.totalorder %v17819_v3, 1027  ;;  %vm7209_vm6 = vcmp.lt.s32.totalorder %v17822_v50, 1027 }
 0x6ff   : > { %v7378_v35 = vadd.f32 %v7377_v11, %v7314_v47  ;;  %v7324_v47 = vsel %vm7196_vm14, %v7260_v21, 0.0  ;;  %v7325_v11 = vsel %vm7197_vm10, %v7261_v14, 0.0  ;;  %v7273_v21 = vmul.f32 %v18872_v58, %v18872_v58  ;;  %v18892_v58 = vld [vmem:[#allocation56_spill] sm:$0xff] }
 0x700   : > { %vm7210_vm3 = vcmp.lt.s32.totalorder %v17825_v20, 1027  ;;  %vm7211_vm5 = vcmp.lt.s32.totalorder %v17828_v5, 1027  ;;  %vm7212_vm14 = vcmp.lt.s32.totalorder %v17831_v28, 1027  ;;  %v7277_v15 = vmul.f32 %v18876_v8, %v18876_v8 }
 0x701   : > { %v7379_v31 = vadd.f32 %v7378_v35, %v7315_v59  ;;  %v7264_v59 = vmul.f32 %v18863_v27, %v18863_v27  ;;  %v7265_v35 = vmul.f32 %v18864_v33, %v18864_v33  ;;  %v7337_v29 = vsel %vm7209_vm6, %v7273_v21, 0.0 }
 0x702   : > { %vm7213_vm10 = vcmp.lt.s32.totalorder %v17834_v44, 1027  ;;  %vm7214_vm11 = vcmp.lt.s32.totalorder %v17837_v61, 1027  ;;  %vm7215_vm15 = vcmp.lt.s32.totalorder %v17840_v45, 1027  ;;  %v18882_v45 = vld [vmem:[#allocation55_spill] sm:$0xff] }
 0x703   : > { %v7380_v25 = vadd.f32 %v7379_v31, %v7316_v62  ;;  %v18865_v62 = vld [vmem:[#allocation25_spill] sm:$0xff]  ;;  %v7328_v19 = vsel %vm7200_vm0, %v7264_v59, 0.0  ;;  %v7341_v33 = vsel %vm7213_vm10, %v7277_v15, 0.0  ;;  %vm7216_vm0 = vcmp.lt.s32.totalorder %v17843_v63, 1027 }
 0x704   : > { %v7266_v38 = vmul.f32 %v18865_v62, %v18865_v62  ;;  %v18866_v31 = vld [vmem:[#allocation37_spill] sm:$0xff]  ;;  %v18880_v62 = vld [vmem:[#allocation28_spill] sm:$0xff] }
 0x705   : > { %v7381_v36 = vadd.f32 %v7380_v25, %v7317_v0  ;;  %v7267_v52 = vmul.f32 %v18866_v31, %v18866_v31  ;;  %v7329_v0 = vsel %vm7201_vm13, %v7265_v35, 0.0  ;;  %v7268_v25 = vmul.f32 %v18867_v4, %v18867_v4  ;;  %v18879_v35 = vld [vmem:[#allocation48_spill] sm:$0xff]  ;;  %v18884_v63 = vld [vmem:[#allocation49_spill] sm:$0xff] }
 0x706   : > { %v7330_v12 = vsel %vm7202_vm7, %v7266_v38, 0.0  ;;  %v7281_v38 = vmul.f32 %v18880_v62, %v18880_v62  ;;  %vm7217_vm13 = vcmp.lt.s32.totalorder %v17846_v48, 1027  ;;  %vm7218_vm7 = vcmp.lt.s32.totalorder %v18882_v45, 1027  ;;  %v18886_v48 = vld [vmem:[#allocation51_spill] sm:$0xff] }
 0x707   : > { %v7382_v18 = vadd.f32 %v7381_v36, %v7318_v16  ;;  %v18868_v16 = vld [vmem:[#allocation31_spill] sm:$0xff]  ;;  %v7331_v36 = vsel %vm7203_vm12, %v7267_v52, 0.0  ;;  %vm7219_vm12 = vcmp.lt.s32.totalorder %v18884_v63, 1027 }
 0x708   : > { %v7269_v51 = vmul.f32 %v18868_v16, %v18868_v16 }
 0x709   : > { %v7383_v54 = vadd.f32 %v7382_v18, %v7319_v2  ;;  %v7270_v2 = vmul.f32 %v18869_v49, %v18869_v49  ;;  %v7332_v18 = vsel %vm7204_vm2, %v7268_v25, 0.0  ;;  %v7345_v25 = vsel %vm7217_vm13, %v7281_v38, 0.0 }
 0x70a   : > { %vm7220_vm2 = vcmp.lt.s32.totalorder %v18886_v48, 1027 }
 0x70b   : > { %v7384_v55 = vadd.f32 %v7383_v54, %v7320_v32  ;;  %v7271_v32 = vmul.f32 %v18870_v1, %v18870_v1  ;;  %v7333_v54 = vsel %vm7205_vm4, %v7269_v51, 0.0  ;;  %v18889_v1 = vld [vmem:[#allocation36_spill] sm:$0xff] }
 0x70d   : > { %v7385_v57 = vadd.f32 %v7384_v55, %v7321_v42  ;;  %v7272_v42 = vmul.f32 %v18871_v39, %v18871_v39  ;;  %v7334_v55 = vsel %vm7206_vm8, %v7270_v2, 0.0 }
 0x70f   : > { %v7386_v6 = vadd.f32 %v7385_v57, %v7322_v60  ;;  %v7335_v60 = vsel %vm7207_vm1, %v7271_v32, 0.0  ;;  %v18873_v57 = vld [vmem:[#allocation42_spill] sm:$0xff]  ;;  %v7336_v14 = vsel %vm7208_vm9, %v7272_v42, 0.0  ;;  %v7286_v32 = vmul.f32 %v18889_v1, %v18889_v1  ;;  %v18891_v42 = vld [vmem:[#allocation52_spill] sm:$0xff] }
 0x710   : > { %v7274_v17 = vmul.f32 %v18873_v57, %v18873_v57  ;;  %vm7223_vm1 = vcmp.lt.s32.totalorder %v18892_v58, 1027 }
 0x711   : > { %v7387_v23 = vadd.f32 %v7386_v6, %v7323_v56  ;;  %v18874_v56 = vld [vmem:[#allocation29_spill] sm:$0xff] }
 0x712   : > { %v7275_v6 = vmul.f32 %v18874_v56, %v18874_v56 }
 0x713   : > { %v7388_v30 = vadd.f32 %v7387_v23, %v7324_v47  ;;  %v7276_v47 = vmul.f32 %v18875_v7, %v18875_v7  ;;  %v7338_v23 = vsel %vm7210_vm3, %v7274_v17, 0.0  ;;  %v18894_v17 = vld [vmem:[#allocation57_spill] sm:$0xff]  ;;  %vm7429_vm3 = vcmask 0  }
 0x714   : > { %vm7224_vm9 = vcmp.lt.s32.totalorder %v18894_v17, 1027 }
 0x715   : > { %v7389_v26 = vadd.f32 %v7388_v30, %v7325_v11  ;;  %v7339_v11 = vsel %vm7211_vm5, %v7275_v6, 0.0  ;;  %v18877_v30 = vld [vmem:[#allocation44_spill] sm:$0xff]  ;;  %v7340_v59 = vsel %vm7212_vm14, %v7276_v47, 0.0 }
 0x716   : > { %v7278_v27 = vmul.f32 %v18877_v30, %v18877_v30 }
 0x717   : > { %v7390_v13 = vadd.f32 %v7389_v26, %v7326_v37  ;;  %v18878_v37 = vld [vmem:[#allocation47_spill] sm:$0xff] }
 0x718   : > { %v7279_v26 = vmul.f32 %v18878_v37, %v18878_v37  ;;  %v7354_v37 = vld [vmem:[#allocation6] sm:$0x1] }
 0x719   : > { %v7391_v9 = vadd.f32 %v7390_v13, %v7327_v43  ;;  %v7280_v43 = vmul.f32 %v18879_v35, %v18879_v35  ;;  %v7342_v13 = vsel %vm7214_vm11, %v7278_v27, 0.0 }
 0x71b   : > { %v7392_v40 = vadd.f32 %v7391_v9, %v7328_v19  ;;  %v7343_v19 = vsel %vm7215_vm15, %v7279_v26, 0.0  ;;  %v18881_v9 = vld [vmem:[#allocation34_spill] sm:$0xff]  ;;  %v7344_v52 = vsel %vm7216_vm0, %v7280_v43, 0.0 }
 0x71c   : > { %v7282_v31 = vmul.f32 %v18881_v9, %v18881_v9 }
 0x71d   : > { %v7393_v34 = vadd.f32 %v7392_v40, %v7329_v0  ;;  %v18883_v40 = vld [vmem:[#allocation40_spill] sm:$0xff] }
 0x71e   : > { %v7283_v4 = vmul.f32 %v18883_v40, %v18883_v40  ;;  %v7346_v51 = vsel %vm7218_vm7, %v7282_v31, 0.0 }
 0x71f   : > { %v7394_v24 = vadd.f32 %v7393_v34, %v7330_v12  ;;  %v18885_v34 = vld [vmem:[#allocation39_spill] sm:$0xff] }
 0x720   : > { %v7284_v16 = vmul.f32 %v18885_v34, %v18885_v34  ;;  %v7347_v2 = vsel %vm7219_vm12, %v7283_v4, 0.0 }
 0x721   : > { %v7395_v46 = vadd.f32 %v7394_v24, %v7331_v36  ;;  %v18887_v24 = vld [vmem:[#allocation46_spill] sm:$0xff] }
 0x722   : > { %v7285_v49 = vmul.f32 %v18887_v24, %v18887_v24 }
 0x723   : > { %v7396_v10 = vadd.f32 %v7395_v46, %v7332_v18  ;;  %v18888_v18 = vld [vmem:[#allocation16_spill] sm:$0xff] }
 0x724   : > { %vm7221_vm4 = vcmp.lt.s32.totalorder %v18888_v18, 1027 }
 0x725   : > { %v7397_v53 = vadd.f32 %v7396_v10, %v7333_v54  ;;  %v7348_v54 = vsel %vm7220_vm2, %v7284_v16, 0.0  ;;  %v18890_v10 = vld [vmem:[#allocation50_spill] sm:$0xff] }
 0x726   : > { %vm7222_vm8 = vcmp.lt.s32.totalorder %v18890_v10, 1027 }
 0x727   : > { %v7398_v41 = vadd.f32 %v7397_v53, %v7334_v55  ;;  %v7287_v55 = vmul.f32 %v18891_v42, %v18891_v42  ;;  %v7349_v53 = vsel %vm7221_vm4, %v7285_v49, 0.0  ;;  %v7350_v57 = vsel %vm7222_vm8, %v7286_v32, 0.0 }
 0x729   : > { %v7399_v22 = vadd.f32 %v7398_v41, %v7335_v60  ;;  %v18893_v60 = vld [vmem:[#allocation53_spill] sm:$0xff]  ;;  %v7351_v6 = vsel %vm7223_vm1, %v7287_v55, 0.0 }
 0x72a   : > { %v7288_v41 = vmul.f32 %v18893_v60, %v18893_v60 }
 0x72b   : > { %v7400_v3 = vadd.f32 %v7399_v22, %v7336_v14  ;;  %v18895_v22 = vld [vmem:[#allocation54_spill] sm:$0xff] }
 0x72c   : > { %v7289_v56 = vmul.f32 %v18895_v22, %v18895_v22  ;;  %v7352_v7 = vsel %vm7224_vm9, %v7288_v41, 0.0 }
 0x72d   : > { %v7401_v50 = vadd.f32 %v7400_v3, %v7337_v29  ;;  %v18896_v29 = vld [vmem:[#allocation58_spill] sm:$0xff] }
 0x72e   : > { %vm7225_vm6 = vcmp.lt.s32.totalorder %v18896_v29, 1027 }
 0x72f   : > { %v7402_v20 = vadd.f32 %v7401_v50, %v7338_v23  ;;  %v7353_v23 = vsel %vm7225_vm6, %v7289_v56, 0.0 }
 0x731   : > { %v7403_v5 = vadd.f32 %v7402_v20, %v7339_v11 }
 0x733   : > { %v7404_v28 = vadd.f32 %v7403_v5, %v7340_v59 }
 0x735   : > { %v7405_v44 = vadd.f32 %v7404_v28, %v7341_v33 }
 0x737   : > { %v7406_v61 = vadd.f32 %v7405_v44, %v7342_v13 }
 0x739   : > { %v7407_v0 = vadd.f32 %v7406_v61, %v7343_v19 }
 0x73b   : > { %v7408_v12 = vadd.f32 %v7407_v0, %v7344_v52 }
 0x73d   : > { %v7409_v36 = vadd.f32 %v7408_v12, %v7345_v25 }
 0x73f   : > { %v7410_v46 = vadd.f32 %v7409_v36, %v7346_v51 }
 0x741   : > { %v7411_v39 = vadd.f32 %v7410_v46, %v7347_v2 }
 0x743   : > { %v7412_v21 = vadd.f32 %v7411_v39, %v7348_v54 }
 0x745   : > { %v7413_v14 = vadd.f32 %v7412_v21, %v7349_v53 }
 0x747   : > { %v7414_v3 = vadd.f32 %v7413_v14, %v7350_v57 }
 0x749   : > { %v7415_v47 = vadd.f32 %v7414_v3, %v7351_v6 }
 0x74b   : > { %v7416_v50 = vadd.f32 %v7415_v47, %v7352_v7 }
 0x74d   : > { %v7417_v8 = vadd.f32 %v7416_v50, %v7353_v23 }
 0x74f   : > { %7418 = vadd.xlane.f32.xlu0 %v7417_v8 }
 0x7dc   : > { %v7419_v15 = vpop.xlane.xlu0 %7418 }
 0x7dd   : > { %v7420_v11 = vrot.slane %v7419_v15, 4 }
 0x7df   : > { %v7421_v20 = vadd.f32 %v7420_v11, %v7419_v15 }
 0x7e1   : > { %v7422_v30 = vrot.slane %v7421_v20, 2 }
 0x7e3   : > { %v7423_v27 = vadd.f32 %v7422_v30, %v7421_v20 }
 0x7e5   : > { %v7424_v59 = vrot.slane %v7423_v27, 1 }
 0x7e7   : > { %v7425_v5 = vadd.f32 %v7424_v59, %v7423_v27 }
 0x7e9   : > { %8086 = vpush %v7425_v5 }
 0x818   : > { %7438 = sbr.rel (!%p8666_p9) target bundleno = 2107 (0x83b), region = 36 }
 0x81a   : > { %s8087_s28 = spop %8086 }
 0x81b   : > { %v7427_v26 = vstv %s8087_s28 }
 0x81c   : > { %v7428_v33 = vadd.f32 %v7427_v26, %v7354_v37 }
 0x81e   : > { %7430 = vst.msk [vmem:[#allocation6] sm:$0x1] %vm7429_vm3, %v7428_v33 }
 0x81f   : > { %s18910_s14 = smov (!%p7441_p7, %s7440_s14), 64 }
 0x820   : > { %s18101_s16 = sshll.u32 %s18910_s14, 7 }
 0x821   : > { %s7445_s17 = ssub.s32 8192, %s18101_s16 }
 0x822   : > { %7446 = vsyncadd %s7432_s5, %s7445_s17  ;;  %p7820_p10 = scmp.ne.s32.totalorder %s18101_s16, 0  ;;  %s7829_s20 = sshll.u32 %s8641_s13, 13 }
 0x823   : > { %s18111_s24 = scalar_lea.hbm %s18182_s1, %s7829_s20  ;;  %s7451_s25 = sshll.u32 %s17254_s19, 4  ;;  %s18114_s25 = int_to_ptr.vmem [resolvable:$true] %s7451_s25 }
 0x824   : > { %s8493_s27 = scalar_lea.vmem %s18114_s25, %s18101_s16  ;;  %s8601_s29 = smov [#allocation5]  }
 0x825   : > { %p8494_p9 = scmp.ne.s32.totalorder %s18114_s25, %s8493_s27  ;;  %s8497_s30 = sshll.u32 %s8601_s29, 4  ;;  %s8498_s30 = int_to_ptr.vmem [resolvable:$false] %s8497_s30 }
 0x826   : > { %s8499_s4 = scalar_lea.vmem %s8498_s30, 16384  ;;  %p8500_p0 = scmp.lt.s32.totalorder %s18114_s25, %s8498_s30 }
 0x827   : > { %p8495_p13 = pnand %p8494_p9, %p7820_p10  ;;  %p8501_p1 = scmp.lt.s32.totalorder %s8499_s4, %s8493_s27 }
 0x829   : > { %p8496_p12 = pneg %p8495_p13  ;;  %p8502_p3 = por %p8501_p1, %p8500_p0 }
 0x82b   : > { %p8503_p4 = pnand %p8502_p3, %p8496_p12 }
 0x82d   : > { %8506 = shalt.err (!%p8503_p4)
}
 0x82e   : > { %s8507_s7 = scalar_lea.hbm %s18111_s24, %s18101_s16  ;;  %s8511_s26 = scalar_lea.hbm %s18182_s1, 16512 }
 0x82f   : > { %p8508_p5 = scmp.ne.s32.totalorder %s18111_s24, %s8507_s7  ;;  %p8512_p11 = scmp.lt.u32.totalorder %s18111_s24, %s18182_s1 }
 0x830   : > { %p8513_p6 = scmp.lt.u32.totalorder %s8511_s26, %s8507_s7  ;;  %p8515_p9 = scmp.lt.u32.totalorder %s8507_s7, %s18111_s24 }
 0x831   : > { %p8509_p2 = pnand %p8508_p5, %p7820_p10 }
 0x832   : > { %p8514_p7 = por %p8513_p6, %p8512_p11 }
 0x833   : > { %p8510_p8 = pneg %p8509_p2 }
 0x834   : > { %p8516_p13 = por %p8515_p9, %p8514_p7 }
 0x836   : > { %p8517_p12 = pnand %p8516_p13, %p8510_p8 }
 0x838   : > { %8520 = shalt.err (!%p8517_p12)
}
 0x839   : > { %s8602_s14 = smov 128   ;;  %s8603_s17 = smov 8  }
 0x83a   : > { %7457 = dma.vmem_to_hbm [thread:$0]  (%p7820_p10), %s18114_s25, %s18101_s16, %s18111_s24, %s7432_s5, %s8602_s14, %s8602_s14, %s8603_s17  }
 0x83b PF: > { %s8604_s20 = smov [#allocation6]   ;;  %p18897_p1 = scmp.eq.s32.totalorder %s8641_s13, 2 }
 0x83c   : > { %s7465_s22 = sshll.u32 %s8604_s20, 4  ;;  %s7466_s22 = int_to_ptr.vmem [resolvable:$true] %s7465_s22 }
 0x83d   : > { %s8521_s23 = scalar_lea.vmem %s7466_s22, 16  ;;  %s8527_s27 = scalar_lea.vmem %s7466_s22, 32 }
 0x83e   : > { %p8522_p0 = scmp.ne.s32.totalorder %s7466_s22, %s8521_s23  ;;  %p8528_p5 = scmp.lt.s32.totalorder %s7466_s22, %s7466_s22 }
 0x83f   : > { %p8529_p2 = scmp.lt.s32.totalorder %s8527_s27, %s8521_s23 }
 0x840   : > { %p8523_p3 = pnand %p8522_p0, %p18897_p1 }
 0x841   : > { %p8530_p8 = por %p8529_p2, %p8528_p5 }
 0x842   : > { %p8524_p4 = pneg %p8523_p3 }
 0x844   : > { %p8531_p11 = pnand %p8530_p8, %p8524_p4 }
 0x846   : > { %8534 = shalt.err (!%p8531_p11)
}
 0x847   : > { %s8535_s3 = scalar_lea.hbm %s18183_s2, 16  ;;  %p18898_p6 = pmov %p18897_p1 }
 0x848   : > { %p8536_p10 = scmp.ne.s32.totalorder %s18183_s2, %s8535_s3  ;;  %p8541_p13 = scmp.lt.u32.totalorder %s8535_s3, %s18183_s2 }
 0x84a   : > { %p8537_p7 = pnand %p8536_p10, %p18898_p6 }
 0x84c   : > { %p8538_p9 = pneg %p8537_p7 }
 0x84e   : > { %p8543_p12 = pnand %p8541_p13, %p8538_p9 }
 0x850   : > { %8546 = shalt.err (!%p8543_p12)
}
 0x851   : > { %p18899_p0 = pmov %p18897_p1 }
 0x853   : > { %8090 = dma.vmem_to_hbm [thread:$0]  (%p18899_p0), %s7466_s22, 16, %s18183_s2, [#allocation7]  }
 0x854   : > { %p18900_p1 = pmov %p18899_p0 }
 0x855   : > { %p18901_p3 = pmov %p18899_p0 }
 0x856   : > { %8568 = dma.done.wait (%p18900_p1), [#allocation7], 16  }
 0x857   : > { %8570 = vsyncadd (%p18901_p3), [#allocation7], 4294967280 }
 0x858 PF: > { %p8100_p4 = scmp.ge.s32.totalorder %s8589_s12, 2  ;;  %s7481_s8 = sand.u32 1, %s8577_s9  }
 0x859   : > { %p18902_p5 = scmp.ne.s32.totalorder %s18358_s21, 0  ;;  %s7482_s19 = scalar_lea.sflag [#allocation4], %s7481_s8 }
 0x85b   : > { %p8095_p2 = pnand %p8100_p4, %p18902_p5 }
 0x85d   : > { %8572 = dma.done.wait (!%p8095_p2), %s7482_s19, 8192  }
 0x85e   : > { %8574 = vsyncadd (!%p8095_p2), %s7482_s19, 4294959104  ;;  %p17_p8 = scmp.ge.s32.totalorder %s8645_s15, 5   ;;  %s18903_s9 = smov %s8581_s10 }
 0x85f   : > { %s18904_s10 = smov %s8585_s11  ;;  %s18905_s11 = smov %s8657_s18 }
 0x860   : > { %s18906_s12 = smov %s8645_s15  ;;  %19 = sbr.rel (!%p17_p8) target bundleno = 6 (0x6), region = 81 }
 0x867   :  { %7487 = vsyncpa [#allocation3], 1 }
 0x868   :  { %7489 = vsyncpa [#allocation3 + $0x1], 1 }
 0x869   :  { %7490 = vsyncpa [#allocation4], 1 }
 0x86a   :  { %7492 = vsyncpa [#allocation4 + $0x1], 1 }
 0x86b   :  { %7493 = vsyncpa [#allocation7], 1 }

</bundles_post_ra>
